<compile_context>
chip_gen: v5e
topology: v5e:2x2
jax: 0.10.0
libtpu: 0.0.40
codegen_flags: <defaults>
</compile_context>

<pallas_src>
import jax
import jax.numpy as jnp
from jax import lax
from jax.experimental import pallas as pl
from jax.experimental.pallas import tpu as pltpu


def _round_up(v, m):
    return ((v + m - 1) // m) * m


_HALO_OFF_W = 16  # bf16 sublane-tile-aligned column offset of the image in the scratch


# ---------------------------------------------------------------------------
# Fused kernel: one batch element per grid step.
# ---------------------------------------------------------------------------
def _basic_block_kernel(x_ref, w1_ref, b1_ref, w2_ref, b2_ref,
                        o_ref, xp_ref, yp_ref):
    """x_ref : (1, H, W, Cp) f32   input tile (also used as the residual)
    w*_ref : (3, 3*Cp, Cp)  bf16  per-kh weight matrices, BN scale pre-folded
    b*_ref : (1, Cp)        f32   folded BatchNorm bias
    o_ref  : (1, H, W, Cp)  f32   output tile
    xp_ref, yp_ref : (H+2, pad_w, Cp) bf16 VMEM scratch with a zero halo."""
    _, h, w, cp = x_ref.shape
    off = _HALO_OFF_W

    x = x_ref[0]  # (H, W, Cp) f32 -- reused as the residual (no reload from HBM)

    def zero_halo_ring(pad_ref):
        # Zero only the ring that conv3x3 actually reads (perimeter traffic,
        # not a full-scratch fill).  Interior is overwritten below.
        zrow = jnp.zeros((1, w + 2, cp), pad_ref.dtype)
        pad_ref[pl.ds(0, 1), pl.ds(off - 1, w + 2), :] = zrow
        pad_ref[pl.ds(h + 1, 1), pl.ds(off - 1, w + 2), :] = zrow
        zcol = jnp.zeros((h, 1, cp), pad_ref.dtype)
        pad_ref[pl.ds(1, h), pl.ds(off - 1, 1), :] = zcol
        pad_ref[pl.ds(1, h), pl.ds(off + w, 1), :] = zcol

    def conv3x3(pad_ref, w_ref):
        # Tap-grouped im2col: for each kh, concat the 3 W-shifted slabs along
        # the lane axis while still 3-D, reshape ONCE, and accumulate a
        # K = 3*Cp bf16 MXU matmul in f32.
        acc = None
        for kh in range(3):
            slab = jnp.concatenate(
                [pad_ref[pl.ds(kh, h), pl.ds(off - 1 + kw, w), :]
                 for kw in range(3)],
                axis=-1)                                   # (H, W, 3*Cp) bf16
            part = jnp.dot(slab.reshape(h * w, 3 * cp), w_ref[kh],
                           preferred_element_type=jnp.float32)
            acc = part if acc is None else acc + part
        return acc                                         # (H*W, Cp) f32

    # ---- conv1 + bn1 + ReLU (BN scale already folded into w1) ---------------
    zero_halo_ring(xp_ref)
    xp_ref[pl.ds(1, h), pl.ds(off, w), :] = x.astype(jnp.bfloat16)
    y = jnp.maximum(conv3x3(xp_ref, w1_ref) + b1_ref[...], 0.0)

    # ---- conv2 + bn2 + residual add + ReLU (y never leaves VMEM) ------------
    zero_halo_ring(yp_ref)
    yp_ref[pl.ds(1, h), pl.ds(off, w), :] = y.astype(jnp.bfloat16).reshape(h, w, cp)
    z = conv3x3(yp_ref, w2_ref) + b2_ref[...] + x.reshape(h * w, cp)  # f32 residual
    o_ref[0] = jnp.maximum(z, 0.0).reshape(h, w, cp)       # lane-dense store


# ---------------------------------------------------------------------------
# pallas_call wrapper (grid over batch; full spatial tile per step)
# ---------------------------------------------------------------------------
def _fused_basic_block(x_nhwc_cp, w1_mat, b1, w2_mat, b2):
    n, h, w, cp = x_nhwc_cp.shape
    pad_w = _round_up(w + _HALO_OFF_W + 1, 16)             # bf16 sublane multiple

    img_spec = pl.BlockSpec((1, h, w, cp), lambda i: (i, 0, 0, 0))
    wgt_spec = pl.BlockSpec((3, 3 * cp, cp), lambda i: (0, 0, 0))  # grid-invariant
    vec_spec = pl.BlockSpec((1, cp), lambda i: (0, 0))             # grid-invariant

    return pl.pallas_call(
        _basic_block_kernel,
        out_shape=jax.ShapeDtypeStruct((n, h, w, cp), jnp.float32),
        grid=(n,),
        in_specs=[img_spec, wgt_spec, vec_spec, wgt_spec, vec_spec],
        out_specs=img_spec,
        scratch_shapes=[
            pltpu.VMEM((h + 2, pad_w, cp), jnp.bfloat16),  # x with halo (bf16)
            pltpu.VMEM((h + 2, pad_w, cp), jnp.bfloat16),  # y with halo (bf16)
        ],
        compiler_params=pltpu.CompilerParams(
            dimension_semantics=("parallel",),             # batch across TCs
            vmem_limit_bytes=48 * 1024 * 1024,             # v7x-safe budget
        ),
    )(x_nhwc_cp, w1_mat, b1, w2_mat, b2)


# ---------------------------------------------------------------------------
# Parameters + forward
# ---------------------------------------------------------------------------
def init_basic_block_params(key, inplanes, planes, stride=1, abits=32, wbits=32):
    if abits != 32 or wbits != 32:
        # TODO(synk): quantized QConv2d / Hardtanh activation path not implemented.
        raise NotImplementedError("only abits = wbits = 32 (plain conv + ReLU)")
    if stride != 1 or inplanes != planes:
        # TODO(synk): strided conv1 + downsample residual path not implemented.
        raise NotImplementedError("only stride=1, downsample=None, inplanes==planes")

    k1, k2 = jax.random.split(key)
    w1 = jax.random.normal(k1, (3, 3, inplanes, planes), jnp.float32) * (2.0 / (inplanes * 9)) ** 0.5
    w2 = jax.random.normal(k2, (3, 3, planes, planes), jnp.float32) * (2.0 / (planes * 9)) ** 0.5

    # BatchNorm2d folded for inference (PyTorch defaults); bn1 and bn2 are
    # packed independently so real trained stats drop in without changes.
    eps = 1e-5

    def bn_fold(gamma, beta, mean, var):
        scale = gamma / jnp.sqrt(var + eps)
        return scale, beta - mean * scale

    ones = jnp.ones((planes,), jnp.float32)
    zeros = jnp.zeros((planes,), jnp.float32)
    s1, b1 = bn_fold(ones, zeros, zeros, ones)
    s2, b2 = bn_fold(ones, zeros, zeros, ones)

    cp = _round_up(max(inplanes, planes), 128)             # lane-dense channel width

    def pack_weight(wt, cin, cout, scale):
        # (3,3,Cin,Cout) -> pad channels -> fold BN scale into output columns
        # -> (3, 3*Cp, Cp) bf16, per-kh rows ordered (kw, cin) to match the
        # in-kernel tap-grouped im2col layout.
        wp = jnp.zeros((3, 3, cp, cp), jnp.float32).at[:, :, :cin, :cout].set(wt)
        sp = jnp.zeros((cp,), jnp.float32).at[:cout].set(scale)
        wp = wp * sp[None, None, None, :]                  # free at pack time
        return wp.reshape(3, 3 * cp, cp).astype(jnp.bfloat16)

    def pack_vec(v, cout):
        return jnp.zeros((1, cp), jnp.float32).at[0, :cout].set(v)

    return {
        # kernel operands (channel-padded, BN-scale folded, bf16 weights)
        "w1_mat": pack_weight(w1, inplanes, planes, s1), "b1": pack_vec(b1, planes),
        "w2_mat": pack_weight(w2, planes, planes, s2), "b2": pack_vec(b2, planes),
        # raw f32 parameters (used only by the reference check in __main__)
        "w1_raw": w1, "w2_raw": w2,
        "s1_raw": s1, "b1_raw": b1, "s2_raw": s2, "b2_raw": b2,
    }


def basic_block_forward_nhwc_padded(x_nhwc_cp, params):
    """Fast path: NHWC activations with channels already lane-padded.  Keep a
    full network in this layout to avoid per-block transposes / pads."""
    return _fused_basic_block(x_nhwc_cp, params["w1_mat"], params["b1"],
                              params["w2_mat"], params["b2"])


@jax.jit
def basic_block_forward(x_nchw, params):
    """PyTorch-compatible entry: NCHW in / NCHW out.  The boundary transpose
    and channel pad/slice disappear when the net stays NHWC + lane-padded."""
    c = x_nchw.shape[1]
    cp = params["w1_mat"].shape[-1]
    x = jnp.transpose(x_nchw, (0, 2, 3, 1)).astype(jnp.float32)   # NCHW -> NHWC
    x = jnp.pad(x, ((0, 0), (0, 0), (0, 0), (0, cp - c)))          # lane-pad channels
    out = basic_block_forward_nhwc_padded(x, params)
    return jnp.transpose(out[..., :c], (0, 3, 1, 2))               # NHWC -> NCHW


# ---------------------------------------------------------------------------
# Pure-JAX f32 reference (for numerical validation)
# ---------------------------------------------------------------------------
def _reference_basic_block(x_nchw, params):
    w1, w2 = params["w1_raw"], params["w2_raw"]
    s1, b1 = params["s1_raw"], params["b1_raw"]
    s2, b2 = params["s2_raw"], params["b2_raw"]
    dn = lax.conv_dimension_numbers(x_nchw.shape, w1.shape, ("NCHW", "HWIO", "NCHW"))

    def conv(x, wt):
        return lax.conv_general_dilated(x, wt, (1, 1), "SAME",
                                        dimension_numbers=dn,
                                        precision=lax.Precision.HIGHEST)

    bc = lambda v: v[None, :, None, None]
    y = jnp.maximum(conv(x_nchw, w1) * bc(s1) + bc(b1), 0.0)
    z = conv(y, w2) * bc(s2) + bc(b2) + x_nchw
    return jnp.maximum(z, 0.0)


if __name__ == "__main__":
    key = jax.random.PRNGKey(0)
    k_x, k_p = jax.random.split(key)

    N, C, H, W = 2, 4, 16, 16                              # inplanes == planes == 4
    x = jax.random.normal(k_x, (N, C, H, W), jnp.float32)
    params = init_basic_block_params(k_p, inplanes=C, planes=C, stride=1)

    out = jax.block_until_ready(basic_block_forward(x, params))
    assert out.shape == (N, C, H, W), out.shape
    assert bool(jnp.all(out >= 0.0))                       # final ReLU

    ref = jax.block_until_ready(_reference_basic_block(x, params))
    max_err = float(jnp.max(jnp.abs(out - ref)))
    assert max_err < 3e-1, f"max abs error vs f32 reference: {max_err}"
    print("KERNEL_OK")
</pallas_src>

<mosaic_0001>
module attributes {stable_mosaic.version = 11 : i64} {
  func.func @_basic_block_kernel(%arg0: i32, %arg1: memref<1x16x16x128xf32, #tpu.memory_space<vmem>>, %arg2: memref<3x384x128xbf16, #tpu.memory_space<vmem>>, %arg3: memref<1x128xf32, #tpu.memory_space<vmem>>, %arg4: memref<3x384x128xbf16, #tpu.memory_space<vmem>>, %arg5: memref<1x128xf32, #tpu.memory_space<vmem>>, %arg6: memref<1x16x16x128xf32, #tpu.memory_space<vmem>>, %arg7: memref<18x48x128xbf16, #tpu.memory_space<vmem>>, %arg8: memref<18x48x128xbf16, #tpu.memory_space<vmem>>) attributes {dimension_semantics = [#tpu.dimension_semantics<parallel>], iteration_bounds = array<i64: 2>, scalar_prefetch = 0 : i64, scratch_operands = 2 : i64, tpu.core_type = #tpu.core_type<tc>, window_params = [{transform_indices = @transform_0, window_bounds = array<i64: 1, 16, 16, 128>}, {pipeline_mode = #tpu.pipeline_mode<synchronous>, transform_indices = @transform_1, window_bounds = array<i64: 3, 384, 128>}, {pipeline_mode = #tpu.pipeline_mode<synchronous>, transform_indices = @transform_2, window_bounds = array<i64: 1, 128>}, {pipeline_mode = #tpu.pipeline_mode<synchronous>, transform_indices = @transform_3, window_bounds = array<i64: 3, 384, 128>}, {pipeline_mode = #tpu.pipeline_mode<synchronous>, transform_indices = @transform_4, window_bounds = array<i64: 1, 128>}, {transform_indices = @transform_5, window_bounds = array<i64: 1, 16, 16, 128>}]} {
    %c0 = arith.constant 0 : index
    %c0_0 = arith.constant 0 : index
    %c0_1 = arith.constant 0 : index
    %c0_2 = arith.constant 0 : index
    %0 = vector.load %arg1[%c0, %c0_0, %c0_1, %c0_2] : memref<1x16x16x128xf32, #tpu.memory_space<vmem>>, vector<1x16x16x128xf32>
    %1 = vector.shape_cast %0 : vector<1x16x16x128xf32> to vector<16x16x128xf32>
    %cst = arith.constant 0.000000e+00 : bf16
    %2 = vector.broadcast %cst : bf16 to vector<1x18x128xbf16>
    %c0_3 = arith.constant 0 : index
    %c15 = arith.constant 15 : index
    %c0_4 = arith.constant 0 : index
    %3 = vector.load %arg7[%c0_3, %c15, %c0_4] : memref<18x48x128xbf16, #tpu.memory_space<vmem>>, vector<1x18x128xbf16>
    tpu.vector_store %arg7[%c0_3, %c15, %c0_4], %2 {strides = array<i32>} : memref<18x48x128xbf16, #tpu.memory_space<vmem>>, vector<1x18x128xbf16>,
    %c17 = arith.constant 17 : index
    %c15_5 = arith.constant 15 : index
    %c0_6 = arith.constant 0 : index
    %4 = vector.load %arg7[%c17, %c15_5, %c0_6] : memref<18x48x128xbf16, #tpu.memory_space<vmem>>, vector<1x18x128xbf16>
    tpu.vector_store %arg7[%c17, %c15_5, %c0_6], %2 {strides = array<i32>} : memref<18x48x128xbf16, #tpu.memory_space<vmem>>, vector<1x18x128xbf16>,
    %cst_7 = arith.constant 0.000000e+00 : bf16
    %5 = vector.broadcast %cst_7 : bf16 to vector<16x1x128xbf16>
    %c1 = arith.constant 1 : index
    %c15_8 = arith.constant 15 : index
    %c0_9 = arith.constant 0 : index
    %6 = vector.load %arg7[%c1, %c15_8, %c0_9] : memref<18x48x128xbf16, #tpu.memory_space<vmem>>, vector<16x1x128xbf16>
    tpu.vector_store %arg7[%c1, %c15_8, %c0_9], %5 {strides = array<i32>} : memref<18x48x128xbf16, #tpu.memory_space<vmem>>, vector<16x1x128xbf16>,
    %c1_10 = arith.constant 1 : index
    %c32 = arith.constant 32 : index
    %c0_11 = arith.constant 0 : index
    %7 = vector.load %arg7[%c1_10, %c32, %c0_11] : memref<18x48x128xbf16, #tpu.memory_space<vmem>>, vector<16x1x128xbf16>
    tpu.vector_store %arg7[%c1_10, %c32, %c0_11], %5 {strides = array<i32>} : memref<18x48x128xbf16, #tpu.memory_space<vmem>>, vector<16x1x128xbf16>,
    %8 = arith.truncf %1 : vector<16x16x128xf32> to vector<16x16x128xbf16>
    %c1_12 = arith.constant 1 : index
    %c16 = arith.constant 16 : index
    %c0_13 = arith.constant 0 : index
    %9 = vector.load %arg7[%c1_12, %c16, %c0_13] : memref<18x48x128xbf16, #tpu.memory_space<vmem>>, vector<16x16x128xbf16>
    tpu.vector_store %arg7[%c1_12, %c16, %c0_13], %8 {strides = array<i32>} : memref<18x48x128xbf16, #tpu.memory_space<vmem>>, vector<16x16x128xbf16>,
    %c0_14 = arith.constant 0 : index
    %c15_15 = arith.constant 15 : index
    %c0_16 = arith.constant 0 : index
    %10 = vector.load %arg7[%c0_14, %c15_15, %c0_16] : memref<18x48x128xbf16, #tpu.memory_space<vmem>>, vector<16x16x128xbf16>
    %c0_17 = arith.constant 0 : index
    %c16_18 = arith.constant 16 : index
    %c0_19 = arith.constant 0 : index
    %11 = vector.load %arg7[%c0_17, %c16_18, %c0_19] : memref<18x48x128xbf16, #tpu.memory_space<vmem>>, vector<16x16x128xbf16>
    %c0_20 = arith.constant 0 : index
    %c17_21 = arith.constant 17 : index
    %c0_22 = arith.constant 0 : index
    %12 = vector.load %arg7[%c0_20, %c17_21, %c0_22] : memref<18x48x128xbf16, #tpu.memory_space<vmem>>, vector<16x16x128xbf16>
    %13 = tpu.concatenate %10, %11, %12 in 2 : vector<16x16x128xbf16>, vector<16x16x128xbf16>, vector<16x16x128xbf16> -> vector<16x16x384xbf16>
    %14 = vector.shape_cast %13 : vector<16x16x384xbf16> to vector<256x384xbf16>
    %c0_23 = arith.constant 0 : index
    %c0_24 = arith.constant 0 : index
    %c0_25 = arith.constant 0 : index
    %15 = vector.load %arg2[%c0_23, %c0_24, %c0_25] : memref<3x384x128xbf16, #tpu.memory_space<vmem>>, vector<1x384x128xbf16>
    %16 = vector.shape_cast %15 : vector<1x384x128xbf16> to vector<384x128xbf16>
    %cst_26 = arith.constant dense<0.000000e+00> : vector<256x128xf32>
    %17 = tpu.matmul %14, %16, %cst_26 {dimension_numbers = #tpu.dot_dimension_numbers<[1], [0], [0], [1], [0, 0, 1, 1], [], []>} : vector<256x384xbf16>, vector<384x128xbf16>, vector<256x128xf32> -> vector<256x128xf32>
    %c1_27 = arith.constant 1 : index
    %c15_28 = arith.constant 15 : index
    %c0_29 = arith.constant 0 : index
    %18 = vector.load %arg7[%c1_27, %c15_28, %c0_29] : memref<18x48x128xbf16, #tpu.memory_space<vmem>>, vector<16x16x128xbf16>
    %c1_30 = arith.constant 1 : index
    %c16_31 = arith.constant 16 : index
    %c0_32 = arith.constant 0 : index
    %19 = vector.load %arg7[%c1_30, %c16_31, %c0_32] : memref<18x48x128xbf16, #tpu.memory_space<vmem>>, vector<16x16x128xbf16>
    %c1_33 = arith.constant 1 : index
    %c17_34 = arith.constant 17 : index
    %c0_35 = arith.constant 0 : index
    %20 = vector.load %arg7[%c1_33, %c17_34, %c0_35] : memref<18x48x128xbf16, #tpu.memory_space<vmem>>, vector<16x16x128xbf16>
    %21 = tpu.concatenate %18, %19, %20 in 2 : vector<16x16x128xbf16>, vector<16x16x128xbf16>, vector<16x16x128xbf16> -> vector<16x16x384xbf16>
    %22 = vector.shape_cast %21 : vector<16x16x384xbf16> to vector<256x384xbf16>
    %c1_36 = arith.constant 1 : index
    %c0_37 = arith.constant 0 : index
    %c0_38 = arith.constant 0 : index
    %23 = vector.load %arg2[%c1_36, %c0_37, %c0_38] : memref<3x384x128xbf16, #tpu.memory_space<vmem>>, vector<1x384x128xbf16>
    %24 = vector.shape_cast %23 : vector<1x384x128xbf16> to vector<384x128xbf16>
    %cst_39 = arith.constant dense<0.000000e+00> : vector<256x128xf32>
    %25 = tpu.matmul %22, %24, %cst_39 {dimension_numbers = #tpu.dot_dimension_numbers<[1], [0], [0], [1], [0, 0, 1, 1], [], []>} : vector<256x384xbf16>, vector<384x128xbf16>, vector<256x128xf32> -> vector<256x128xf32>
    %26 = arith.addf %17, %25 : vector<256x128xf32>
    %c2 = arith.constant 2 : index
    %c15_40 = arith.constant 15 : index
    %c0_41 = arith.constant 0 : index
    %27 = vector.load %arg7[%c2, %c15_40, %c0_41] : memref<18x48x128xbf16, #tpu.memory_space<vmem>>, vector<16x16x128xbf16>
    %c2_42 = arith.constant 2 : index
    %c16_43 = arith.constant 16 : index
    %c0_44 = arith.constant 0 : index
    %28 = vector.load %arg7[%c2_42, %c16_43, %c0_44] : memref<18x48x128xbf16, #tpu.memory_space<vmem>>, vector<16x16x128xbf16>
    %c2_45 = arith.constant 2 : index
    %c17_46 = arith.constant 17 : index
    %c0_47 = arith.constant 0 : index
    %29 = vector.load %arg7[%c2_45, %c17_46, %c0_47] : memref<18x48x128xbf16, #tpu.memory_space<vmem>>, vector<16x16x128xbf16>
    %30 = tpu.concatenate %27, %28, %29 in 2 : vector<16x16x128xbf16>, vector<16x16x128xbf16>, vector<16x16x128xbf16> -> vector<16x16x384xbf16>
    %31 = vector.shape_cast %30 : vector<16x16x384xbf16> to vector<256x384xbf16>
    %c2_48 = arith.constant 2 : index
    %c0_49 = arith.constant 0 : index
    %c0_50 = arith.constant 0 : index
    %32 = vector.load %arg2[%c2_48, %c0_49, %c0_50] : memref<3x384x128xbf16, #tpu.memory_space<vmem>>, vector<1x384x128xbf16>
    %33 = vector.shape_cast %32 : vector<1x384x128xbf16> to vector<384x128xbf16>
    %cst_51 = arith.constant dense<0.000000e+00> : vector<256x128xf32>
    %34 = tpu.matmul %31, %33, %cst_51 {dimension_numbers = #tpu.dot_dimension_numbers<[1], [0], [0], [1], [0, 0, 1, 1], [], []>} : vector<256x384xbf16>, vector<384x128xbf16>, vector<256x128xf32> -> vector<256x128xf32>
    %35 = arith.addf %26, %34 : vector<256x128xf32>
    %c0_52 = arith.constant 0 : index
    %c0_53 = arith.constant 0 : index
    %36 = vector.load %arg3[%c0_52, %c0_53] : memref<1x128xf32, #tpu.memory_space<vmem>>, vector<1x128xf32>
    %37 = vector.broadcast %36 : vector<1x128xf32> to vector<256x128xf32>
    %38 = arith.addf %35, %37 : vector<256x128xf32>
    %cst_54 = arith.constant 0.000000e+00 : f32
    %39 = vector.broadcast %cst_54 : f32 to vector<256x128xf32>
    %40 = arith.maximumf %38, %39 : vector<256x128xf32>
    %cst_55 = arith.constant 0.000000e+00 : bf16
    %41 = vector.broadcast %cst_55 : bf16 to vector<1x18x128xbf16>
    %c0_56 = arith.constant 0 : index
    %c15_57 = arith.constant 15 : index
    %c0_58 = arith.constant 0 : index
    %42 = vector.load %arg8[%c0_56, %c15_57, %c0_58] : memref<18x48x128xbf16, #tpu.memory_space<vmem>>, vector<1x18x128xbf16>
    tpu.vector_store %arg8[%c0_56, %c15_57, %c0_58], %41 {strides = array<i32>} : memref<18x48x128xbf16, #tpu.memory_space<vmem>>, vector<1x18x128xbf16>,
    %c17_59 = arith.constant 17 : index
    %c15_60 = arith.constant 15 : index
    %c0_61 = arith.constant 0 : index
    %43 = vector.load %arg8[%c17_59, %c15_60, %c0_61] : memref<18x48x128xbf16, #tpu.memory_space<vmem>>, vector<1x18x128xbf16>
    tpu.vector_store %arg8[%c17_59, %c15_60, %c0_61], %41 {strides = array<i32>} : memref<18x48x128xbf16, #tpu.memory_space<vmem>>, vector<1x18x128xbf16>,
    %cst_62 = arith.constant 0.000000e+00 : bf16
    %44 = vector.broadcast %cst_62 : bf16 to vector<16x1x128xbf16>
    %c1_63 = arith.constant 1 : index
    %c15_64 = arith.constant 15 : index
    %c0_65 = arith.constant 0 : index
    %45 = vector.load %arg8[%c1_63, %c15_64, %c0_65] : memref<18x48x128xbf16, #tpu.memory_space<vmem>>, vector<16x1x128xbf16>
    tpu.vector_store %arg8[%c1_63, %c15_64, %c0_65], %44 {strides = array<i32>} : memref<18x48x128xbf16, #tpu.memory_space<vmem>>, vector<16x1x128xbf16>,
    %c1_66 = arith.constant 1 : index
    %c32_67 = arith.constant 32 : index
    %c0_68 = arith.constant 0 : index
    %46 = vector.load %arg8[%c1_66, %c32_67, %c0_68] : memref<18x48x128xbf16, #tpu.memory_space<vmem>>, vector<16x1x128xbf16>
    tpu.vector_store %arg8[%c1_66, %c32_67, %c0_68], %44 {strides = array<i32>} : memref<18x48x128xbf16, #tpu.memory_space<vmem>>, vector<16x1x128xbf16>,
    %47 = arith.truncf %40 : vector<256x128xf32> to vector<256x128xbf16>
    %48 = vector.shape_cast %47 : vector<256x128xbf16> to vector<16x16x128xbf16>
    %c1_69 = arith.constant 1 : index
    %c16_70 = arith.constant 16 : index
    %c0_71 = arith.constant 0 : index
    %49 = vector.load %arg8[%c1_69, %c16_70, %c0_71] : memref<18x48x128xbf16, #tpu.memory_space<vmem>>, vector<16x16x128xbf16>
    tpu.vector_store %arg8[%c1_69, %c16_70, %c0_71], %48 {strides = array<i32>} : memref<18x48x128xbf16, #tpu.memory_space<vmem>>, vector<16x16x128xbf16>,
    %c0_72 = arith.constant 0 : index
    %c15_73 = arith.constant 15 : index
    %c0_74 = arith.constant 0 : index
    %50 = vector.load %arg8[%c0_72, %c15_73, %c0_74] : memref<18x48x128xbf16, #tpu.memory_space<vmem>>, vector<16x16x128xbf16>
    %c0_75 = arith.constant 0 : index
    %c16_76 = arith.constant 16 : index
    %c0_77 = arith.constant 0 : index
    %51 = vector.load %arg8[%c0_75, %c16_76, %c0_77] : memref<18x48x128xbf16, #tpu.memory_space<vmem>>, vector<16x16x128xbf16>
    %c0_78 = arith.constant 0 : index
    %c17_79 = arith.constant 17 : index
    %c0_80 = arith.constant 0 : index
    %52 = vector.load %arg8[%c0_78, %c17_79, %c0_80] : memref<18x48x128xbf16, #tpu.memory_space<vmem>>, vector<16x16x128xbf16>
    %53 = tpu.concatenate %50, %51, %52 in 2 : vector<16x16x128xbf16>, vector<16x16x128xbf16>, vector<16x16x128xbf16> -> vector<16x16x384xbf16>
    %54 = vector.shape_cast %53 : vector<16x16x384xbf16> to vector<256x384xbf16>
    %c0_81 = arith.constant 0 : index
    %c0_82 = arith.constant 0 : index
    %c0_83 = arith.constant 0 : index
    %55 = vector.load %arg4[%c0_81, %c0_82, %c0_83] : memref<3x384x128xbf16, #tpu.memory_space<vmem>>, vector<1x384x128xbf16>
    %56 = vector.shape_cast %55 : vector<1x384x128xbf16> to vector<384x128xbf16>
    %cst_84 = arith.constant dense<0.000000e+00> : vector<256x128xf32>
    %57 = tpu.matmul %54, %56, %cst_84 {dimension_numbers = #tpu.dot_dimension_numbers<[1], [0], [0], [1], [0, 0, 1, 1], [], []>} : vector<256x384xbf16>, vector<384x128xbf16>, vector<256x128xf32> -> vector<256x128xf32>
    %c1_85 = arith.constant 1 : index
    %c15_86 = arith.constant 15 : index
    %c0_87 = arith.constant 0 : index
    %58 = vector.load %arg8[%c1_85, %c15_86, %c0_87] : memref<18x48x128xbf16, #tpu.memory_space<vmem>>, vector<16x16x128xbf16>
    %c1_88 = arith.constant 1 : index
    %c16_89 = arith.constant 16 : index
    %c0_90 = arith.constant 0 : index
    %59 = vector.load %arg8[%c1_88, %c16_89, %c0_90] : memref<18x48x128xbf16, #tpu.memory_space<vmem>>, vector<16x16x128xbf16>
    %c1_91 = arith.constant 1 : index
    %c17_92 = arith.constant 17 : index
    %c0_93 = arith.constant 0 : index
    %60 = vector.load %arg8[%c1_91, %c17_92, %c0_93] : memref<18x48x128xbf16, #tpu.memory_space<vmem>>, vector<16x16x128xbf16>
    %61 = tpu.concatenate %58, %59, %60 in 2 : vector<16x16x128xbf16>, vector<16x16x128xbf16>, vector<16x16x128xbf16> -> vector<16x16x384xbf16>
    %62 = vector.shape_cast %61 : vector<16x16x384xbf16> to vector<256x384xbf16>
    %c1_94 = arith.constant 1 : index
    %c0_95 = arith.constant 0 : index
    %c0_96 = arith.constant 0 : index
    %63 = vector.load %arg4[%c1_94, %c0_95, %c0_96] : memref<3x384x128xbf16, #tpu.memory_space<vmem>>, vector<1x384x128xbf16>
    %64 = vector.shape_cast %63 : vector<1x384x128xbf16> to vector<384x128xbf16>
    %cst_97 = arith.constant dense<0.000000e+00> : vector<256x128xf32>
    %65 = tpu.matmul %62, %64, %cst_97 {dimension_numbers = #tpu.dot_dimension_numbers<[1], [0], [0], [1], [0, 0, 1, 1], [], []>} : vector<256x384xbf16>, vector<384x128xbf16>, vector<256x128xf32> -> vector<256x128xf32>
    %66 = arith.addf %57, %65 : vector<256x128xf32>
    %c2_98 = arith.constant 2 : index
    %c15_99 = arith.constant 15 : index
    %c0_100 = arith.constant 0 : index
    %67 = vector.load %arg8[%c2_98, %c15_99, %c0_100] : memref<18x48x128xbf16, #tpu.memory_space<vmem>>, vector<16x16x128xbf16>
    %c2_101 = arith.constant 2 : index
    %c16_102 = arith.constant 16 : index
    %c0_103 = arith.constant 0 : index
    %68 = vector.load %arg8[%c2_101, %c16_102, %c0_103] : memref<18x48x128xbf16, #tpu.memory_space<vmem>>, vector<16x16x128xbf16>
    %c2_104 = arith.constant 2 : index
    %c17_105 = arith.constant 17 : index
    %c0_106 = arith.constant 0 : index
    %69 = vector.load %arg8[%c2_104, %c17_105, %c0_106] : memref<18x48x128xbf16, #tpu.memory_space<vmem>>, vector<16x16x128xbf16>
    %70 = tpu.concatenate %67, %68, %69 in 2 : vector<16x16x128xbf16>, vector<16x16x128xbf16>, vector<16x16x128xbf16> -> vector<16x16x384xbf16>
    %71 = vector.shape_cast %70 : vector<16x16x384xbf16> to vector<256x384xbf16>
    %c2_107 = arith.constant 2 : index
    %c0_108 = arith.constant 0 : index
    %c0_109 = arith.constant 0 : index
    %72 = vector.load %arg4[%c2_107, %c0_108, %c0_109] : memref<3x384x128xbf16, #tpu.memory_space<vmem>>, vector<1x384x128xbf16>
    %73 = vector.shape_cast %72 : vector<1x384x128xbf16> to vector<384x128xbf16>
    %cst_110 = arith.constant dense<0.000000e+00> : vector<256x128xf32>
    %74 = tpu.matmul %71, %73, %cst_110 {dimension_numbers = #tpu.dot_dimension_numbers<[1], [0], [0], [1], [0, 0, 1, 1], [], []>} : vector<256x384xbf16>, vector<384x128xbf16>, vector<256x128xf32> -> vector<256x128xf32>
    %75 = arith.addf %66, %74 : vector<256x128xf32>
    %c0_111 = arith.constant 0 : index
    %c0_112 = arith.constant 0 : index
    %76 = vector.load %arg5[%c0_111, %c0_112] : memref<1x128xf32, #tpu.memory_space<vmem>>, vector<1x128xf32>
    %77 = vector.broadcast %76 : vector<1x128xf32> to vector<256x128xf32>
    %78 = arith.addf %75, %77 : vector<256x128xf32>
    %79 = vector.shape_cast %1 : vector<16x16x128xf32> to vector<256x128xf32>
    %80 = arith.addf %78, %79 : vector<256x128xf32>
    %cst_113 = arith.constant 0.000000e+00 : f32
    %81 = vector.broadcast %cst_113 : f32 to vector<256x128xf32>
    %82 = arith.maximumf %80, %81 : vector<256x128xf32>
    %83 = vector.shape_cast %82 : vector<256x128xf32> to vector<16x16x128xf32>
    %c0_114 = arith.constant 0 : index
    %c0_115 = arith.constant 0 : index
    %c0_116 = arith.constant 0 : index
    %c0_117 = arith.constant 0 : index
    %84 = vector.load %arg6[%c0_114, %c0_115, %c0_116, %c0_117] : memref<1x16x16x128xf32, #tpu.memory_space<vmem>>, vector<1x16x16x128xf32>
    %85 = vector.shape_cast %84 : vector<1x16x16x128xf32> to vector<16x16x128xf32>
    %86 = vector.shape_cast %83 : vector<16x16x128xf32> to vector<1x16x16x128xf32>
    tpu.vector_store %arg6[%c0_114, %c0_115, %c0_116, %c0_117], %86 {strides = array<i32>} : memref<1x16x16x128xf32, #tpu.memory_space<vmem>>, vector<1x16x16x128xf32>,
    return
  }
  func.func @transform_0(%arg0: i32) -> (i32, i32, i32, i32) {
    %c0_i32 = arith.constant 0 : i32
    %c0_i32_0 = arith.constant 0 : i32
    %c0_i32_1 = arith.constant 0 : i32
    %c0_i32_2 = arith.constant 0 : i32
    return %arg0, %c0_i32, %c0_i32_0, %c0_i32_1 : i32, i32, i32, i32
  }
  func.func @transform_1(%arg0: i32) -> (i32, i32, i32) {
    %c0_i32 = arith.constant 0 : i32
    %c0_i32_0 = arith.constant 0 : i32
    %c0_i32_1 = arith.constant 0 : i32
    %c0_i32_2 = arith.constant 0 : i32
    return %c0_i32, %c0_i32_0, %c0_i32_1 : i32, i32, i32
  }
  func.func @transform_2(%arg0: i32) -> (i32, i32) {
    %c0_i32 = arith.constant 0 : i32
    %c0_i32_0 = arith.constant 0 : i32
    %c0_i32_1 = arith.constant 0 : i32
    return %c0_i32, %c0_i32_0 : i32, i32
  }
  func.func @transform_3(%arg0: i32) -> (i32, i32, i32) {
    %c0_i32 = arith.constant 0 : i32
    %c0_i32_0 = arith.constant 0 : i32
    %c0_i32_1 = arith.constant 0 : i32
    %c0_i32_2 = arith.constant 0 : i32
    return %c0_i32, %c0_i32_0, %c0_i32_1 : i32, i32, i32
  }
  func.func @transform_4(%arg0: i32) -> (i32, i32) {
    %c0_i32 = arith.constant 0 : i32
    %c0_i32_0 = arith.constant 0 : i32
    %c0_i32_1 = arith.constant 0 : i32
    return %c0_i32, %c0_i32_0 : i32, i32
  }
  func.func @transform_5(%arg0: i32) -> (i32, i32, i32, i32) {
    %c0_i32 = arith.constant 0 : i32
    %c0_i32_0 = arith.constant 0 : i32
    %c0_i32_1 = arith.constant 0 : i32
    %c0_i32_2 = arith.constant 0 : i32
    return %arg0, %c0_i32, %c0_i32_0, %c0_i32_1 : i32, i32, i32, i32
  }
}

</mosaic_0001>

<bundles_post_ra>
// kernel: basic_block_forward.1
= control target key start
LH: loop header
LB: loop body
LE: loop exit
PB: predicated region body
PF: predicated region fallthrough
CT: control target
= control target key end

     0   :  { %s12930_s18 = smov 0   ;;  %s15995_s0 = inlined_call_operand.vmem [shape: f32[2,16,16,128], index: 0, kind: input, shape index: {}]   ;;  %s15996_s1 = inlined_call_operand.vmem [shape: bf16[3,384,128], index: 1, kind: input, shape index: {}]   ;;  %s15997_s2 = inlined_call_operand.vmem [shape: f32[1,128], index: 2, kind: input, shape index: {}]   ;;  %s15998_s3 = inlined_call_operand.vmem [shape: bf16[3,384,128], index: 3, kind: input, shape index: {}]   ;;  %s15999_s4 = inlined_call_operand.vmem [shape: f32[1,128], index: 4, kind: input, shape index: {}]   ;;  %s16000_s5 = inlined_call_operand.vmem [shape: f32[2,16,16,128], index: 5, kind: output, shape index: {}]  }
   0x1 LB: > { %s10709_s19 = sadd.s32 4294967295, %s12897_s18   ;;  %p10713_p0 = scmp.ge.s32.totalorder %s12897_s18, 1  ;;  %s12897_s18 = sphi %s12930_s18, %s15_s18  }
   0x2   : > { %p187_p1 = scmp.lt.s32.totalorder %s12897_s18, 3 }
   0x4   : > { %p188_p2 = pnand %p10713_p0, %p187_p1 }
   0x6   : > { %191 = sbr.rel (%p188_p2) target bundleno = 1498 (0x5da), region = 40 }
   0xb   : > { %v11521_v0 = vld [vmem:[%s15996_s1 + $0xf8] sm:$0xff]  ;;  %p215_p3 = scmp.lt.s32.totalorder %s10709_s19, 1  ;;  %v11520_v2 = vld [vmem:[%s15996_s1 + $0xf0] sm:$0xff]  ;;  %vm258_vm0 = vcmask 1043459   ;;  %vm259_vm1 = vsmask.f32 7950 }
   0xc   : > { %v11529_v1 = vld [vmem:[%s15996_s1 + $0x138] sm:$0xff]  ;;  %3021 = vmatpush.bf16.msra.mxu0 %v11521_v0  ;;  %12690 = vmatpush.bf16.msra.mxu2 %v11521_v0  ;;  %v11528_v3 = vld [vmem:[%s15996_s1 + $0x130] sm:$0xff]  ;;  %v11519_v4 = vld [vmem:[%s15996_s1 + $0xe8] sm:$0xff]  ;;  %v16005_v5 = vmov 0  ;;  %vm875_vm3 = vsmask.f32 4352 }
   0xd   : > { %s16191_s19 = smov (!%p215_p3, %s10709_s19), 1  ;;  %3110 = vmatpush.bf16.msra.mxu1 %v11529_v1  ;;  %12698 = vmatpush.bf16.msra.mxu3 %v11529_v1  ;;  %vm12963_vm2 = vmand %vm258_vm0, %vm259_vm1  ;;  %v282_v6 = vld [vmem:[#allocation2 + $0x1c] sm:$0x8]  ;;  %v11527_v11 = vld [vmem:[%s15996_s1 + $0x128] sm:$0xff]  ;;  %vm266_vm4 = vcmask 1040384   ;;  %vm826_vm7 = vcmask 1042432  }
   0xe   : > { %s11488_s28 = sshll.u32 %s16191_s19, 8  ;;  %v16006_v5 = vsel %vm12963_vm2, 4294967295, %v16005_v5  ;;  %v283_v9 = vsel %vm12963_vm2, 0, %v282_v6  ;;  %v306_v14 = vld [vmem:[#allocation2 + $0xdc] sm:$0x8]  ;;  %v11518_v15 = vld [vmem:[%s15996_s1 + $0xe0] sm:$0xff] }
   0xf   : > { %s12961_s8 = scalar_lea.vmem %s15995_s0, %s11488_s28  ;;  %16007 = vst [vmem:[#allocation4_spill] sm:$0xff] %v16006_v5  ;;  %v307_v16 = vsel %vm12963_vm2, 0, %v306_v14  ;;  %v11526_v19 = vld [vmem:[%s15996_s1 + $0x120] sm:$0xff]  ;;  %v285_v24 = vld [vmem:[#allocation2 + $0x34] sm:$0x8]  ;;  %v11517_v40 = vld [vmem:[%s15996_s1 + $0xd8] sm:$0xff]  ;;  %s15748_s26 = scalar_lea.vmem %s16000_s5, %s11488_s28 }
  0x10   : > { %3022 = vmatpush.bf16.msra.mxu0 %v11520_v2  ;;  %12691 = vmatpush.bf16.msra.mxu2 %v11520_v2  ;;  %v226_v7 = vld [vmem:[%s12961_s8] sm:$0xff]  ;;  %v227_v8 = vld [vmem:[%s12961_s8 + $0x8] sm:$0xff]  ;;  %284 = vst [vmem:[#allocation2 + $0x1c] sm:$0x8] %v283_v9  ;;  %v228_v18 = vld [vmem:[%s12961_s8 + $0x10] sm:$0xff]  ;;  %v286_v28 = vsel %vm12963_vm2, 0, %v285_v24 }
  0x11   : > { %v242_v10 = vld [vmem:[%s12961_s8 + $0x80] sm:$0xff]  ;;  %3111 = vmatpush.bf16.msra.mxu1 %v11528_v3  ;;  %12699 = vmatpush.bf16.msra.mxu3 %v11528_v3  ;;  %v11637_v12 = vpack.c.bf16 %v227_v8, %v226_v7  ;;  %v243_v13 = vld [vmem:[%s12961_s8 + $0x88] sm:$0xff]  ;;  %v229_v23 = vld [vmem:[%s12961_s8 + $0x18] sm:$0xff]  ;;  %308 = vst [vmem:[#allocation2 + $0xdc] sm:$0x8] %v307_v16 }
  0x12   : > { %v11677_v17 = vpack.c.bf16 %v243_v13, %v242_v10  ;;  %v244_v29 = vld [vmem:[%s12961_s8 + $0x90] sm:$0xff]  ;;  %v12989_v33 = vpack.c.bf16 %v229_v23, %v228_v18  ;;  %v245_v34 = vld [vmem:[%s12961_s8 + $0x98] sm:$0xff]  ;;  %287 = vst [vmem:[#allocation2 + $0x34] sm:$0x8] %v286_v28  ;;  %v11515_v9 = vld [vmem:[%s15996_s1 + $0xc8] sm:$0xff] }
  0x13   : > { %12178 = vst [vmem:[#allocation2 + $0x20] sm:$0xff] %v11637_v12   ;;  %v11781_v20 = vunpack.c.h.b16 %v11637_v12  ;;  %v1869_v21 = vshrl.u32 %v11637_v12, 16  ;;  %v1872_v22 = vshll.u32 %v11637_v12, 16  ;;  %v309_v35 = vld [vmem:[#allocation2 + $0xf4] sm:$0x8]  ;;  %v12998_v47 = vpack.c.bf16 %v245_v34, %v244_v29  ;;  %v11525_v48 = vld [vmem:[%s15996_s1 + $0x118] sm:$0xff] }
  0x14   : > { %3023 = vmatpush.bf16.msra.mxu0 %v11519_v4  ;;  %12692 = vmatpush.bf16.msra.mxu2 %v11519_v4  ;;  %v11813_v25 = vunpack.c.h.b16 %v11677_v17  ;;  %v1933_v26 = vshrl.u32 %v11677_v17, 16  ;;  %v1936_v27 = vshll.u32 %v11677_v17, 16  ;;  %12186 = vst [vmem:[#allocation2 + $0xe0] sm:$0xff] %v11677_v17   ;;  %v310_v39 = vsel %vm12963_vm2, 0, %v309_v35  ;;  %v11516_v57 = vld [vmem:[%s15996_s1 + $0xd0] sm:$0xff]  ;;  %v11523_v16 = vld [vmem:[%s15996_s1 + $0x108] sm:$0xff] }
  0x15   : > { %3112 = vmatpush.bf16.msra.mxu1 %v11527_v11  ;;  %12700 = vmatpush.bf16.msra.mxu3 %v11527_v11  ;;  %v1821_v30 = vpack.c.b16 %v11781_v20, %v11781_v20  ;;  %v1871_v31 = vrot.slane %v1869_v21, 4  ;;  %v1874_v32 = vrot.slane %v1872_v22, 5  ;;  %12179 = vst [vmem:[#allocation2 + $0x38] sm:$0xff] %v12989_v33   ;;  %v11785_v62 = vunpack.c.h.b16 %v12989_v33  ;;  %v11524_v63 = vld [vmem:[%s15996_s1 + $0x110] sm:$0xff]  ;;  %v11514_v22 = vld [vmem:[%s15996_s1 + $0xc0] sm:$0xff] }
  0x16   : > { %v1837_v36 = vpack.c.b16 %v11813_v25, %v11813_v25  ;;  %v1935_v37 = vrot.slane %v1933_v26, 4  ;;  %v1938_v38 = vrot.slane %v1936_v27, 5  ;;  %311 = vst [vmem:[#allocation2 + $0xf4] sm:$0x8] %v310_v39  ;;  %v11817_v20 = vunpack.c.h.b16 %v12998_v47  ;;  %v11522_v23 = vld [vmem:[%s15996_s1 + $0x100] sm:$0xff] }
  0x17   : > { %v2101_v41 = vshrl.u32 %v1821_v30, 16  ;;  %v1875_v42 = vor.u32 %v1874_v32, %v1871_v31  ;;  %v12372_v43 = vld [vmem:[#allocation2 + $0x1c] sm:$0x8]  ;;  %v2104_v44 = vshll.u32 %v1821_v30, 16  ;;  %12187 = vst [vmem:[#allocation2 + $0xf8] sm:$0xff] %v12998_v47   ;;  %v1877_v21 = vshrl.u32 %v12989_v33, 16 }
  0x18   : > { %3024 = vmatpush.bf16.msra.mxu0 %v11518_v15  ;;  %12693 = vmatpush.bf16.msra.mxu2 %v11518_v15  ;;  %v2445_v45 = vshrl.u32 %v1837_v36, 16  ;;  %v1939_v46 = vor.u32 %v1938_v38, %v1935_v37  ;;  %v2448_v49 = vshll.u32 %v1837_v36, 16  ;;  %v12404_v56 = vld [vmem:[#allocation2 + $0xdc] sm:$0x8]  ;;  %v230_v35 = vld [vmem:[%s12961_s8 + $0x20] sm:$0xff] }
  0x19   : > { %3113 = vmatpush.bf16.msra.mxu1 %v11526_v19  ;;  %12701 = vmatpush.bf16.msra.mxu3 %v11526_v19  ;;  %v2110_v51 = vshrl.u32 %v1875_v42, 16  ;;  %v2113_v52 = vshll.u32 %v1875_v42, 16  ;;  %v13007_v58 = vrot.slane %v2101_v41, 3  ;;  %v13009_v59 = vrot.slane %v2104_v44, 4  ;;  %v12376_v14 = vld [vmem:[#allocation2 + $0x34] sm:$0x8] }
  0x1a   : > { %v12722_v50 = vld [vmem:[#allocation2 + $0x1c] sm:$0xf0]   ;;  %v2454_v53 = vshrl.u32 %v1939_v46, 16  ;;  %v2457_v54 = vshll.u32 %v1939_v46, 16  ;;  %v13011_v61 = vrot.slane %v2445_v45, 3  ;;  %v2450_v3 = vrot.slane %v2448_v49, 4 }
  0x1b   : > { %v12373_v55 = vor.u32 %v12722_v50, %v12372_v43  ;;  %v12730_v60 = vld [vmem:[#allocation2 + $0xdc] sm:$0xf0]   ;;  %v13017_v4 = vrot.slane %v2110_v51, 3  ;;  %v13019_v6 = vrot.slane %v2113_v52, 4  ;;  %v13031_v19 = vpack.c.b16 %v11785_v62, %v11785_v62  ;;  %v11537_v30 = vld [vmem:[%s15996_s1 + $0x178] sm:$0xff]  ;;  %v231_v41 = vld [vmem:[%s12961_s8 + $0x28] sm:$0xff] }
  0x1c   : > { %3025 = vmatpush.bf16.msra.mxu0 %v11517_v40  ;;  %12694 = vmatpush.bf16.msra.mxu2 %v11517_v40  ;;  %v12405_v2 = vor.u32 %v12730_v60, %v12404_v56  ;;  %v13021_v7 = vrot.slane %v2454_v53, 3  ;;  %v13023_v8 = vrot.slane %v2457_v54, 4  ;;  %v12723_v15 = vld [vmem:[#allocation2 + $0x34] sm:$0xf0]   ;;  %v2107_v25 = vor.u32 %v13009_v59, %v13007_v58  ;;  %v288_v36 = vld [vmem:[#allocation2 + $0x4c] sm:$0x8] }
  0x1d   : > { %3114 = vmatpush.bf16.msra.mxu1 %v11525_v48  ;;  %12702 = vmatpush.bf16.msra.mxu3 %v11525_v48  ;;  %v2093_v0 = vshrl.u32 %v12373_v55, 16  ;;  %v2096_v1 = vshll.u32 %v12373_v55, 16  ;;  %v13043_v26 = vor.u32 %v12723_v15, %v12376_v14  ;;  %v2451_v28 = vor.u32 %v2450_v3, %v13011_v61  ;;  %v11497_v31 = vld [vmem:[%s15996_s1 + $0x38] sm:$0xff]  ;;  %v12408_v32 = vld [vmem:[#allocation2 + $0xf4] sm:$0x8]  ;;  %v246_v42 = vld [vmem:[%s12961_s8 + $0xa0] sm:$0xff] }
  0x1e   : > { %v2437_v12 = vshrl.u32 %v12405_v2, 16  ;;  %v2440_v13 = vshll.u32 %v12405_v2, 16  ;;  %v2116_v29 = vor.u32 %v13019_v6, %v13017_v4  ;;  %v12731_v34 = vld [vmem:[#allocation2 + $0xf4] sm:$0xf0]   ;;  %v2460_v37 = vor.u32 %v13023_v8, %v13021_v7  ;;  %v247_v43 = vld [vmem:[%s12961_s8 + $0xa8] sm:$0xff] }
  0x1f   : > { %v2095_v10 = vrot.slane %v2093_v0, 3  ;;  %v2098_v11 = vrot.slane %v2096_v1, 4  ;;  %v2144_v38 = vshrl.u32 %v13031_v19, 16  ;;  %v2147_v39 = vshll.u32 %v13031_v19, 16  ;;  %v312_v49 = vld [vmem:[#allocation2 + $0x10c] sm:$0x8] }
  0x20   : > { %3026 = vmatpush.bf16.msra.mxu0 %v11516_v57  ;;  %12695 = vmatpush.bf16.msra.mxu2 %v11516_v57  ;;  %v2439_v17 = vrot.slane %v2437_v12, 3  ;;  %v2442_v18 = vrot.slane %v2440_v13, 4  ;;  %v13059_v40 = vpack.c.b16 %v11817_v20, %v11817_v20  ;;  %v1879_v44 = vrot.slane %v1877_v21, 4  ;;  %v291_v61 = vld [vmem:[#allocation2 + $0x64] sm:$0x8]  ;;  %v11536_v0 = vld [vmem:[%s15996_s1 + $0x170] sm:$0xff] }
  0x21   : > { %3115 = vmatpush.bf16.msra.mxu1 %v11524_v63  ;;  %12703 = vmatpush.bf16.msra.mxu3 %v11524_v63  ;;  %v2099_v24 = vor.u32 %v2098_v11, %v2095_v10  ;;  %v1880_v45 = vshll.u32 %v12989_v33, 16  ;;  %v1941_v46 = vshrl.u32 %v12998_v47, 16  ;;  %v1944_v48 = vshll.u32 %v12998_v47, 16  ;;  %v11505_v47 = vld [vmem:[%s15996_s1 + $0x78] sm:$0xff]  ;;  %v11496_v1 = vld [vmem:[%s15996_s1 + $0x30] sm:$0xff] }
  0x22   : > { %v2443_v27 = vor.u32 %v2442_v18, %v2439_v17  ;;  %v2136_v51 = vshrl.u32 %v13043_v26, 16  ;;  %v12409_v52 = vor.u32 %v12731_v34, %v12408_v32  ;;  %v289_v53 = vsel %vm12963_vm2, 0, %v288_v36  ;;  %v11504_v12 = vld [vmem:[%s15996_s1 + $0x70] sm:$0xff]  ;;  %v11535_v17 = vld [vmem:[%s15996_s1 + $0x168] sm:$0xff] }
  0x23   : > { %v2108_v50 = vsel %vm875_vm3, %v2099_v24, %v2107_v25  ;;  %v1882_v55 = vrot.slane %v1880_v45, 5  ;;  %v1943_v56 = vrot.slane %v1941_v46, 4  ;;  %v1946_v33 = vrot.slane %v1944_v48, 5  ;;  %290 = vst [vmem:[#allocation2 + $0x4c] sm:$0x8] %v289_v53  ;;  %v11495_v18 = vld [vmem:[%s15996_s1 + $0x28] sm:$0xff] }
  0x24   : > { %3027 = vmatpush.bf16.msra.mxu0 %v11515_v9  ;;  %12696 = vmatpush.bf16.msra.mxu2 %v11515_v9  ;;  %v2452_v54 = vsel %vm875_vm3, %v2443_v27, %v2451_v28  ;;  %v2139_v57 = vshll.u32 %v13043_v26, 16  ;;  %v13076_v58 = vpack.c.bf16 %v231_v41, %v230_v35  ;;  %v313_v59 = vsel %vm12963_vm2, 0, %v312_v49  ;;  %v315_v28 = vld [vmem:[#allocation2 + $0x124] sm:$0x8]  ;;  %v11503_v34 = vld [vmem:[%s15996_s1 + $0x68] sm:$0xff] }
  0x25   : > { %3116 = vmatpush.bf16.msra.mxu1 %v11523_v16  ;;  %12704 = vmatpush.bf16.msra.mxu3 %v11523_v16  ;;  %v13080_v60 = vpack.c.bf16 %v247_v43, %v246_v42  ;;  %v1883_v62 = vor.u32 %v1882_v55, %v1879_v44  ;;  %v1947_v63 = vor.u32 %v1946_v33, %v1943_v56  ;;  %v292_v2 = vsel %vm12963_vm2, 0, %v291_v61 }
  0x26   : > { %314 = vst [vmem:[#allocation2 + $0x10c] sm:$0x8] %v313_v59  ;;  %v13090_v3 = vrot.slane %v2144_v38, 3  ;;  %v13092_v4 = vrot.slane %v2147_v39, 4  ;;  %v2488_v6 = vshrl.u32 %v13059_v40, 16  ;;  %v2480_v7 = vshrl.u32 %v12409_v52, 16 }
  0x27   : > { %12180 = vst [vmem:[#allocation2 + $0x50] sm:$0xff] %v13076_v58   ;;  %v2483_v8 = vshll.u32 %v12409_v52, 16  ;;  %v2491_v9 = vshll.u32 %v13059_v40, 16  ;;  %v2138_v10 = vrot.slane %v2136_v51, 3  ;;  %v2141_v11 = vrot.slane %v2139_v57, 4  ;;  %v248_v39 = vld [vmem:[%s12961_s8 + $0xb0] sm:$0xff] }
  0x28   : > { %3028 = vmatpush.bf16.msra.mxu0 %v11514_v22  ;;  %12697 = vmatpush.bf16.msra.mxu2 %v11514_v22  ;;  %12188 = vst [vmem:[#allocation2 + $0x110] sm:$0xff] %v13080_v60   ;;  %v1885_v13 = vshrl.u32 %v13076_v58, 16  ;;  %v2153_v14 = vshrl.u32 %v1883_v62, 16  ;;  %v2156_v15 = vshll.u32 %v1883_v62, 16  ;;  %v2497_v16 = vshrl.u32 %v1947_v63, 16  ;;  %v232_v22 = vld [vmem:[%s12961_s8 + $0x30] sm:$0xff] }
  0x29   : > { %3117 = vmatpush.bf16.msra.mxu1 %v11522_v23  ;;  %12705 = vmatpush.bf16.msra.mxu3 %v11522_v23  ;;  %293 = vst [vmem:[#allocation2 + $0x64] sm:$0x8] %v292_v2  ;;  %v2150_v19 = vor.u32 %v13092_v4, %v13090_v3  ;;  %v2490_v20 = vrot.slane %v2488_v6, 3  ;;  %v2500_v21 = vshll.u32 %v1947_v63, 16  ;;  %v233_v23 = vld [vmem:[%s12961_s8 + $0x38] sm:$0xff]  ;;  %v2482_v24 = vrot.slane %v2480_v7, 3 }
  0x2a   : > { %v2485_v25 = vrot.slane %v2483_v8, 4  ;;  %v2493_v26 = vrot.slane %v2491_v9, 4  ;;  %v1888_v27 = vshll.u32 %v13076_v58, 16  ;;  %v1887_v32 = vrot.slane %v1885_v13, 4  ;;  %v249_v40 = vld [vmem:[%s12961_s8 + $0xb8] sm:$0xff]  ;;  %v11534_v9 = vld [vmem:[%s15996_s1 + $0x160] sm:$0xff] }
  0x2b   : > { %3029 = vmatmul.bf16.vlgmr.msra.gmra.mxu0 %v2108_v50  ;;  %3069 = vmatmul.bf16.vlgmr.msra.gmra.mxu2 %v2452_v54  ;;  %v2155_v35 = vrot.slane %v2153_v14, 3  ;;  %v2158_v36 = vrot.slane %v2156_v15, 4  ;;  %v13118_v38 = vpack.c.bf16 %v233_v23, %v232_v22  ;;  %v2502_v41 = vrot.slane %v2500_v21, 4  ;;  %v12380_v48 = vld [vmem:[#allocation2 + $0x4c] sm:$0x8]  ;;  %v11502_v14 = vld [vmem:[%s15996_s1 + $0x60] sm:$0xff] }
  0x2c   : > { %3199 = vmatpush.bf16.msrb.mxu2 %v11537_v30  ;;  %3118 = vmatmul.bf16.vlgmr.msra.gmra.mxu1 %v2116_v29  ;;  %v2142_v29 = vor.u32 %v2141_v11, %v2138_v10  ;;  %v11789_v30 = vunpack.c.h.b16 %v13076_v58  ;;  %v1949_v42 = vshrl.u32 %v13080_v60, 16  ;;  %v1952_v43 = vshll.u32 %v13080_v60, 16  ;;  %v11494_v10 = vld [vmem:[%s15996_s1 + $0x20] sm:$0xff]  ;;  %v294_v15 = vld [vmem:[#allocation2 + $0x7c] sm:$0x8] }
  0x2d   : > { %3432 = vmatpush.bf16.msrb.mxu3 %v11497_v31  ;;  %3521 = vmatpush.bf16.msrb.mxu0 %v11505_v47  ;;  %v11821_v31 = vunpack.c.h.b16 %v13080_v60  ;;  %v316_v44 = vsel %vm12963_vm2, 0, %v315_v28  ;;  %v2486_v45 = vor.u32 %v2485_v25, %v2482_v24  ;;  %v2494_v46 = vor.u32 %v2493_v26, %v2490_v20  ;;  %12181 = vst [vmem:[#allocation2 + $0x68] sm:$0xff] %v13118_v38   ;;  %v12412_v52 = vld [vmem:[#allocation2 + $0x10c] sm:$0x8]  ;;  %v234_v23 = vld [vmem:[%s12961_s8 + $0x40] sm:$0xff] }
  0x2e   : > { %3158 = vmatmul.bf16.vlgmr.msra.gmra.mxu3 %v2460_v37  ;;  %v2499_v37 = vrot.slane %v2497_v16, 3  ;;  %v12724_v49 = vld [vmem:[#allocation2 + $0x4c] sm:$0xf0]   ;;  %v1890_v50 = vrot.slane %v1888_v27, 5  ;;  %v1825_v51 = vpack.c.b16 %v11789_v30, %v11789_v30  ;;  %317 = vst [vmem:[#allocation2 + $0x124] sm:$0x8] %v316_v44  ;;  %v13127_v54 = vpack.c.bf16 %v249_v40, %v248_v39 }
  0x2f   : > { %v12732_v53 = vld [vmem:[#allocation2 + $0x10c] sm:$0xf0]   ;;  %v1841_v55 = vpack.c.b16 %v11821_v31, %v11821_v31  ;;  %v2151_v56 = vsel %vm875_vm3, %v2142_v29, %v2150_v19  ;;  %v12381_v33 = vor.u32 %v12724_v49, %v12380_v48  ;;  %v1951_v47 = vrot.slane %v1949_v42, 4  ;;  %v235_v24 = vld [vmem:[%s12961_s8 + $0x48] sm:$0xff]  ;;  %v250_v40 = vld [vmem:[%s12961_s8 + $0xc0] sm:$0xff] }
  0x30   : > { %3200 = vmatpush.bf16.msrb.mxu2 %v11536_v0  ;;  %v1954_v57 = vrot.slane %v1952_v43, 5  ;;  %12189 = vst [vmem:[#allocation2 + $0x128] sm:$0xff] %v13127_v54   ;;  %v2495_v58 = vsel %vm875_vm3, %v2486_v45, %v2494_v46  ;;  %v2159_v59 = vor.u32 %v2158_v36, %v2155_v35  ;;  %v2503_v60 = vor.u32 %v2502_v41, %v2499_v37  ;;  %v12384_v35 = vld [vmem:[#allocation2 + $0x64] sm:$0x8]  ;;  %v251_v41 = vld [vmem:[%s12961_s8 + $0xc8] sm:$0xff] }
  0x31   : > { %3433 = vmatpush.bf16.msrb.mxu3 %v11496_v1  ;;  %3522 = vmatpush.bf16.msrb.mxu0 %v11504_v12  ;;  %v12413_v61 = vor.u32 %v12732_v53, %v12412_v52  ;;  %v2187_v62 = vshrl.u32 %v1825_v51, 16  ;;  %v2190_v63 = vshll.u32 %v1825_v51, 16  ;;  %v1891_v0 = vor.u32 %v1890_v50, %v1887_v32  ;;  %v318_v32 = vld [vmem:[#allocation2 + $0x13c] sm:$0x8] }
  0x32   : > { %v2531_v1 = vshrl.u32 %v1841_v55, 16  ;;  %v2534_v2 = vshll.u32 %v1841_v55, 16  ;;  %v2179_v3 = vshrl.u32 %v12381_v33, 16  ;;  %v2182_v4 = vshll.u32 %v12381_v33, 16 }
  0x33   : > { %v1955_v6 = vor.u32 %v1954_v57, %v1951_v47  ;;  %v2523_v7 = vshrl.u32 %v12413_v61, 16  ;;  %v2526_v8 = vshll.u32 %v12413_v61, 16  ;;  %v2189_v11 = vrot.slane %v2187_v62, 3 }
  0x34   : > { %3201 = vmatpush.bf16.msrb.mxu2 %v11535_v17  ;;  %v2192_v12 = vrot.slane %v2190_v63, 4  ;;  %v2196_v13 = vshrl.u32 %v1891_v0, 16  ;;  %v2533_v16 = vrot.slane %v2531_v1, 3  ;;  %v2536_v17 = vrot.slane %v2534_v2, 4  ;;  %v12725_v46 = vld [vmem:[#allocation2 + $0x64] sm:$0xf0]  }
  0x35   : > { %3434 = vmatpush.bf16.msrb.mxu3 %v11495_v18  ;;  %3523 = vmatpush.bf16.msrb.mxu0 %v11503_v34  ;;  %v2199_v18 = vshll.u32 %v1891_v0, 16  ;;  %v2181_v19 = vrot.slane %v2179_v3, 3  ;;  %v2184_v20 = vrot.slane %v2182_v4, 4  ;;  %v2540_v21 = vshrl.u32 %v1955_v6, 16  ;;  %v12416_v48 = vld [vmem:[#allocation2 + $0x124] sm:$0x8] }
  0x36   : > { %v2543_v22 = vshll.u32 %v1955_v6, 16  ;;  %v2525_v25 = vrot.slane %v2523_v7, 3  ;;  %v2528_v26 = vrot.slane %v2526_v8, 4  ;;  %v295_v27 = vsel %vm12963_vm2, 0, %v294_v15  ;;  %v297_v6 = vld [vmem:[#allocation2 + $0x94] sm:$0x8] }
  0x37   : > { %v2193_v28 = vor.u32 %v2192_v12, %v2189_v11  ;;  %v2198_v29 = vrot.slane %v2196_v13, 3  ;;  %v11793_v30 = vunpack.c.h.b16 %v13118_v38  ;;  %v11825_v31 = vunpack.c.h.b16 %v13127_v54  ;;  %296 = vst [vmem:[#allocation2 + $0x7c] sm:$0x8] %v295_v27  ;;  %v12733_v50 = vld [vmem:[#allocation2 + $0x124] sm:$0xf0]   ;;  %v237_v11 = vld [vmem:[%s12961_s8 + $0x58] sm:$0xff] }
  0x38   : > { %3202 = vmatpush.bf16.msrb.mxu2 %v11534_v9  ;;  %v2201_v34 = vrot.slane %v2199_v18, 4  ;;  %v1893_v36 = vshrl.u32 %v13118_v38, 16  ;;  %v1896_v37 = vshll.u32 %v13118_v38, 16  ;;  %v13149_v39 = vpack.c.bf16 %v235_v24, %v234_v23  ;;  %v11493_v15 = vld [vmem:[%s15996_s1 + $0x18] sm:$0xff] }
  0x39   : > { %3435 = vmatpush.bf16.msrb.mxu3 %v11494_v10  ;;  %3524 = vmatpush.bf16.msrb.mxu0 %v11502_v14  ;;  %v2185_v42 = vor.u32 %v2184_v20, %v2181_v19  ;;  %v2537_v43 = vor.u32 %v2536_v17, %v2533_v16  ;;  %v2542_v44 = vrot.slane %v2540_v21, 3  ;;  %v2545_v45 = vrot.slane %v2543_v22, 4  ;;  %v236_v10 = vld [vmem:[%s12961_s8 + $0x50] sm:$0xff]  ;;  %v11533_v14 = vld [vmem:[%s15996_s1 + $0x158] sm:$0xff] }
  0x3a   : > { %v2529_v49 = vor.u32 %v2528_v26, %v2525_v25  ;;  %v1957_v51 = vshrl.u32 %v13127_v54, 16  ;;  %v1960_v52 = vshll.u32 %v13127_v54, 16  ;;  %12182 = vst [vmem:[#allocation2 + $0x80] sm:$0xff] %v13149_v39   ;;  %v319_v38 = vsel %vm12963_vm2, 0, %v318_v32  ;;  %v11501_v20 = vld [vmem:[%s15996_s1 + $0x58] sm:$0xff] }
  0x3b   : > { %3034 = vmatmul.bf16.gmra.mxu0 %v2151_v56  ;;  %3074 = vmatmul.bf16.gmra.mxu2 %v2495_v58  ;;  %v1827_v53 = vpack.c.b16 %v11793_v30, %v11793_v30  ;;  %v1843_v55 = vpack.c.b16 %v11825_v31, %v11825_v31  ;;  %320 = vst [vmem:[#allocation2 + $0x13c] sm:$0x8] %v319_v38  ;;  %v1895_v33 = vrot.slane %v1893_v36, 4  ;;  %v1898_v47 = vrot.slane %v1896_v37, 5 }
  0x3c   : > { %3123 = vmatmul.bf16.gmra.mxu1 %v2159_v59  ;;  %v13158_v56 = vpack.c.bf16 %v251_v41, %v250_v40  ;;  %v2194_v57 = vsel %vm875_vm3, %v2185_v42, %v2193_v28  ;;  %v2202_v58 = vor.u32 %v2201_v34, %v2198_v29  ;;  %v12385_v59 = vor.u32 %v12725_v46, %v12384_v35  ;;  %v321_v28 = vld [vmem:[#allocation2 + $0x154] sm:$0x8]  ;;  %v253_v35 = vld [vmem:[%s12961_s8 + $0xd8] sm:$0xff] }
  0x3d   : > { %v2538_v54 = vsel %vm875_vm3, %v2529_v49, %v2537_v43  ;;  %v2546_v61 = vor.u32 %v2545_v45, %v2542_v44  ;;  %v1959_v62 = vrot.slane %v1957_v51, 4  ;;  %v1962_v63 = vrot.slane %v1960_v52, 5  ;;  %3203 = vmatpush.bf16.msrb.mxu2 %v11533_v14  ;;  %3436 = vmatpush.bf16.msrb.mxu3 %v11493_v15  ;;  %v252_v34 = vld [vmem:[%s12961_s8 + $0xd0] sm:$0xff] }
  0x3e   : > { %3163 = vmatmul.bf16.gmra.mxu3 %v2503_v60  ;;  %v12417_v60 = vor.u32 %v12733_v50, %v12416_v48  ;;  %12190 = vst [vmem:[#allocation2 + $0x140] sm:$0xff] %v13158_v56   ;;  %v2230_v0 = vshrl.u32 %v1827_v53, 16  ;;  %v2233_v1 = vshll.u32 %v1827_v53, 16  ;;  %v2574_v2 = vshrl.u32 %v1843_v55, 16  ;;  %3525 = vmatpush.bf16.msrb.mxu0 %v11501_v20  ;;  %v12388_v45 = vld [vmem:[#allocation2 + $0x7c] sm:$0x8] }
  0x3f   : > { %v2577_v3 = vshll.u32 %v1843_v55, 16  ;;  %v1899_v4 = vor.u32 %v1898_v47, %v1895_v33  ;;  %v2222_v7 = vshrl.u32 %v12385_v59, 16  ;;  %v2225_v8 = vshll.u32 %v12385_v59, 16  ;;  %v254_v20 = vld [vmem:[%s12961_s8 + $0xe0] sm:$0xff] }
  0x40   : > { %v2566_v9 = vshrl.u32 %v12417_v60, 16  ;;  %v2569_v12 = vshll.u32 %v12417_v60, 16  ;;  %v1963_v13 = vor.u32 %v1962_v63, %v1959_v62  ;;  %v298_v16 = vsel %vm12963_vm2, 0, %v297_v6 }
  0x41   : > { %v2232_v17 = vrot.slane %v2230_v0, 3  ;;  %v2235_v18 = vrot.slane %v2233_v1, 4  ;;  %v2576_v19 = vrot.slane %v2574_v2, 3  ;;  %v2579_v21 = vrot.slane %v2577_v3, 4  ;;  %299 = vst [vmem:[#allocation2 + $0x94] sm:$0x8] %v298_v16 }
  0x42   : > { %v2239_v22 = vshrl.u32 %v1899_v4, 16  ;;  %v2242_v23 = vshll.u32 %v1899_v4, 16  ;;  %v13176_v24 = vpack.c.bf16 %v237_v11, %v236_v10  ;;  %v2224_v25 = vrot.slane %v2222_v7, 3  ;;  %v12726_v49 = vld [vmem:[#allocation2 + $0x7c] sm:$0xf0]   ;;  %v239_v4 = vld [vmem:[%s12961_s8 + $0x68] sm:$0xff] }
  0x43   : > { %v2227_v26 = vrot.slane %v2225_v8, 4  ;;  %v2568_v27 = vrot.slane %v2566_v9, 3  ;;  %v2571_v29 = vrot.slane %v2569_v12, 4  ;;  %v2583_v30 = vshrl.u32 %v1963_v13, 16  ;;  %v12420_v33 = vld [vmem:[#allocation2 + $0x13c] sm:$0x8] }
  0x44   : > { %v2586_v31 = vshll.u32 %v1963_v13, 16  ;;  %v11797_v32 = vunpack.c.h.b16 %v13149_v39  ;;  %12183 = vst [vmem:[#allocation2 + $0x98] sm:$0xff] %v13176_v24   ;;  %v2236_v36 = vor.u32 %v2235_v18, %v2232_v17  ;;  %v11829_v37 = vunpack.c.h.b16 %v13158_v56  ;;  %v238_v3 = vld [vmem:[%s12961_s8 + $0x60] sm:$0xff]  ;;  %v300_v9 = vld [vmem:[#allocation2 + $0xac] sm:$0x8] }
  0x45   : > { %v1901_v40 = vshrl.u32 %v13149_v39, 16  ;;  %v1904_v41 = vshll.u32 %v13149_v39, 16  ;;  %v2580_v42 = vor.u32 %v2579_v21, %v2576_v19  ;;  %v2241_v43 = vrot.slane %v2239_v22, 3  ;;  %v12734_v47 = vld [vmem:[#allocation2 + $0x13c] sm:$0xf0]   ;;  %v255_v21 = vld [vmem:[%s12961_s8 + $0xe8] sm:$0xff] }
  0x46   : > { %v2244_v44 = vrot.slane %v2242_v23, 4  ;;  %v322_v46 = vsel %vm12963_vm2, 0, %v321_v28  ;;  %v2228_v48 = vor.u32 %v2227_v26, %v2224_v25  ;;  %v1965_v50 = vshrl.u32 %v13158_v56, 16  ;;  %v324_v17 = vld [vmem:[#allocation2 + $0x16c] sm:$0x8]  ;;  %v11492_v28 = vld [vmem:[%s15996_s1 + $0x10] sm:$0xff] }
  0x47   : > { %v1968_v51 = vshll.u32 %v13158_v56, 16  ;;  %323 = vst [vmem:[#allocation2 + $0x154] sm:$0x8] %v322_v46  ;;  %v13189_v52 = vpack.c.bf16 %v253_v35, %v252_v34  ;;  %v2572_v38 = vor.u32 %v2571_v29, %v2568_v27  ;;  %v2585_v53 = vrot.slane %v2583_v30, 3  ;;  %v11532_v27 = vld [vmem:[%s15996_s1 + $0x150] sm:$0xff]  ;;  %3437 = vmatpush.bf16.msrb.mxu3 %v11492_v28  ;;  %v11491_v28 = vld [vmem:[%s15996_s1 + $0x8] sm:$0xff] }
  0x48   : > { %v2588_v55 = vrot.slane %v2586_v31, 4  ;;  %v1829_v39 = vpack.c.b16 %v11797_v32, %v11797_v32  ;;  %v1906_v59 = vrot.slane %v1904_v41, 5  ;;  %v12389_v60 = vor.u32 %v12726_v49, %v12388_v45  ;;  %v11500_v29 = vld [vmem:[%s15996_s1 + $0x50] sm:$0xff]  ;;  %3204 = vmatpush.bf16.msrb.mxu2 %v11532_v27  ;;  %v11531_v27 = vld [vmem:[%s15996_s1 + $0x148] sm:$0xff] }
  0x49   : > { %12191 = vst [vmem:[#allocation2 + $0x158] sm:$0xff] %v13189_v52   ;;  %v12421_v56 = vor.u32 %v12734_v47, %v12420_v33  ;;  %v1970_v62 = vrot.slane %v1968_v51, 5  ;;  %v2581_v63 = vsel %vm875_vm3, %v2572_v38, %v2580_v42  ;;  %v2245_v0 = vor.u32 %v2244_v44, %v2241_v43  ;;  %3526 = vmatpush.bf16.msrb.mxu0 %v11500_v29  ;;  %v12392_v47 = vld [vmem:[#allocation2 + $0x94] sm:$0x8]  ;;  %v11499_v29 = vld [vmem:[%s15996_s1 + $0x48] sm:$0xff] }
  0x4a   : > { %v2589_v1 = vor.u32 %v2588_v55, %v2585_v53  ;;  %v2273_v2 = vshrl.u32 %v1829_v39, 16  ;;  %v2276_v6 = vshll.u32 %v1829_v39, 16  ;;  %v13196_v10 = vpack.c.bf16 %v239_v4, %v238_v3 }
  0x4b   : > { %3039 = vmatmul.bf16.gmra.mxu0 %v2194_v57  ;;  %3079 = vmatmul.bf16.gmra.mxu2 %v2538_v54  ;;  %v1845_v57 = vpack.c.b16 %v11829_v37, %v11829_v37  ;;  %v2237_v54 = vsel %vm875_vm3, %v2228_v48, %v2236_v36  ;;  %v2265_v11 = vshrl.u32 %v12389_v60, 16  ;;  %v2268_v12 = vshll.u32 %v12389_v60, 16 }
  0x4c   : > { %3128 = vmatmul.bf16.gmra.mxu1 %v2202_v58  ;;  %v1903_v58 = vrot.slane %v1901_v40, 4  ;;  %v2609_v13 = vshrl.u32 %v12421_v56, 16  ;;  %v301_v16 = vsel %vm12963_vm2, 0, %v300_v9  ;;  %12184 = vst [vmem:[#allocation2 + $0xb0] sm:$0xff] %v13196_v10   ;;  %v2275_v18 = vrot.slane %v2273_v2, 3  ;;  %3205 = vmatpush.bf16.msrb.mxu2 %v11531_v27 }
  0x4d   : > { %v2617_v7 = vshrl.u32 %v1845_v57, 16  ;;  %v2620_v14 = vshll.u32 %v1845_v57, 16  ;;  %v2612_v19 = vshll.u32 %v12421_v56, 16  ;;  %v2278_v22 = vrot.slane %v2276_v6, 4  ;;  %302 = vst [vmem:[#allocation2 + $0xac] sm:$0x8] %v301_v16  ;;  %3438 = vmatpush.bf16.msrb.mxu3 %v11491_v28  ;;  %3527 = vmatpush.bf16.msrb.mxu0 %v11499_v29 }
  0x4e   : > { %3168 = vmatmul.bf16.gmra.mxu3 %v2546_v61  ;;  %v1967_v61 = vrot.slane %v1965_v50, 4  ;;  %v1907_v8 = vor.u32 %v1906_v59, %v1903_v58  ;;  %v11801_v26 = vunpack.c.h.b16 %v13176_v24  ;;  %v2267_v30 = vrot.slane %v2265_v11, 3  ;;  %v12727_v57 = vld [vmem:[#allocation2 + $0x94] sm:$0xf0]   ;;  %v240_v11 = vld [vmem:[%s12961_s8 + $0x70] sm:$0xff]  ;;  %v11530_v29 = vld [vmem:[%s15996_s1 + $0x140] sm:$0xff] }
  0x4f   : > { %v2619_v23 = vrot.slane %v2617_v7, 3  ;;  %v2270_v31 = vrot.slane %v2268_v12, 4  ;;  %v325_v34 = vsel %vm12963_vm2, 0, %v324_v17  ;;  %v2611_v35 = vrot.slane %v2609_v13, 3  ;;  %v241_v12 = vld [vmem:[%s12961_s8 + $0x78] sm:$0xff]  ;;  %v256_v16 = vld [vmem:[%s12961_s8 + $0xf0] sm:$0xff] }
  0x50   : > { %v1971_v15 = vor.u32 %v1970_v62, %v1967_v61  ;;  %v2282_v25 = vshrl.u32 %v1907_v8, 16  ;;  %v2285_v32 = vshll.u32 %v1907_v8, 16  ;;  %v2622_v36 = vrot.slane %v2620_v14, 4  ;;  %326 = vst [vmem:[#allocation2 + $0x16c] sm:$0x8] %v325_v34  ;;  %v257_v17 = vld [vmem:[%s12961_s8 + $0xf8] sm:$0xff]  ;;  %3206 = vmatpush.bf16.msrb.mxu2 %v11530_v29 }
  0x51   : > { %v2614_v41 = vrot.slane %v2612_v19, 4  ;;  %v1909_v42 = vshrl.u32 %v13176_v24, 16  ;;  %v1912_v43 = vshll.u32 %v13176_v24, 16  ;;  %v13217_v44 = vpack.c.bf16 %v255_v21, %v254_v20  ;;  %v12735_v56 = vld [vmem:[#allocation2 + $0x154] sm:$0xf0]  }
  0x52   : > { %v2626_v37 = vshrl.u32 %v1971_v15, 16  ;;  %v2629_v40 = vshll.u32 %v1971_v15, 16  ;;  %v1831_v45 = vpack.c.b16 %v11801_v26, %v11801_v26  ;;  %v11833_v46 = vunpack.c.h.b16 %v13189_v52  ;;  %v303_v15 = vld [vmem:[#allocation2 + $0xc4] sm:$0x8]  ;;  %v11513_v34 = vld [vmem:[%s15996_s1 + $0xb8] sm:$0xff] }
  0x53   : > { %v2271_v48 = vor.u32 %v2270_v31, %v2267_v30  ;;  %v2279_v49 = vor.u32 %v2278_v22, %v2275_v18  ;;  %v2284_v50 = vrot.slane %v2282_v25, 3  ;;  %v2287_v51 = vrot.slane %v2285_v32, 4  ;;  %12192 = vst [vmem:[#allocation2 + $0x170] sm:$0xff] %v13217_v44   ;;  %v327_v22 = vld [vmem:[#allocation2 + $0x184] sm:$0x8]  ;;  %3610 = vmatpush.bf16.msrb.mxu1 %v11513_v34 }
  0x54   : > { %v2628_v38 = vrot.slane %v2626_v37, 3  ;;  %v2631_v53 = vrot.slane %v2629_v40, 4  ;;  %v1973_v55 = vshrl.u32 %v13189_v52, 16  ;;  %v1976_v39 = vshll.u32 %v13189_v52, 16 }
  0x55   : > { %v2615_v33 = vor.u32 %v2614_v41, %v2611_v35  ;;  %v2623_v24 = vor.u32 %v2622_v36, %v2619_v23  ;;  %v1911_v58 = vrot.slane %v1909_v42, 4  ;;  %v1914_v59 = vrot.slane %v1912_v43, 5 }
  0x56   : > { %v2316_v60 = vshrl.u32 %v1831_v45, 16  ;;  %v1847_v61 = vpack.c.b16 %v11833_v46, %v11833_v46  ;;  %v2288_v62 = vor.u32 %v2287_v51, %v2284_v50  ;;  %v1975_v52 = vrot.slane %v1973_v55, 4 }
  0x57   : > { %v1978_v2 = vrot.slane %v1976_v39, 5  ;;  %v2624_v3 = vsel %vm875_vm3, %v2615_v33, %v2623_v24  ;;  %v2632_v4 = vor.u32 %v2631_v53, %v2628_v38  ;;  %v1915_v7 = vor.u32 %v1914_v59, %v1911_v58 }
  0x58   : > { %v13225_v8 = vrot.slane %v2316_v60, 3  ;;  %v2660_v9 = vshrl.u32 %v1847_v61, 16  ;;  %v2663_v14 = vshll.u32 %v1847_v61, 16  ;;  %v304_v21 = vsel %vm12963_vm2, 0, %v303_v15  ;;  %v12728_v61 = vld [vmem:[#allocation2 + $0xac] sm:$0xf0]  }
  0x59   : > { %v1979_v20 = vor.u32 %v1978_v2, %v1975_v52  ;;  %v2325_v26 = vshrl.u32 %v1915_v7, 16  ;;  %v13244_v30 = vpack.c.bf16 %v241_v12, %v240_v11  ;;  %v2328_v32 = vshll.u32 %v1915_v7, 16  ;;  %305 = vst [vmem:[#allocation2 + $0xc4] sm:$0x8] %v304_v21  ;;  %v261_v15 = vld [vmem:[#allocation2 + $0x4] sm:$0x8] }
  0x5a   : > { %v2662_v31 = vrot.slane %v2660_v9, 3  ;;  %v328_v35 = vsel %vm12963_vm2, 0, %v327_v22  ;;  %v13251_v36 = vpack.c.bf16 %v257_v17, %v256_v16  ;;  %v2665_v37 = vrot.slane %v2663_v14, 4 }
  0x5b   : > { %3044 = vmatmul.bf16.gmra.mxu0 %v2237_v54  ;;  %3084 = vmatmul.bf16.gmra.mxu2 %v2581_v63  ;;  %v12424_v54 = vld [vmem:[#allocation2 + $0x154] sm:$0x8]  ;;  %v2319_v63 = vshll.u32 %v1831_v45, 16  ;;  %v11805_v40 = vunpack.c.h.b16 %v13196_v10  ;;  %v1917_v41 = vshrl.u32 %v13196_v10, 16  ;;  %v1920_v42 = vshll.u32 %v13196_v10, 16  ;;  %12185 = vst [vmem:[#allocation2 + $0xc8] sm:$0xff] %v13244_v30  }
  0x5c   : > { %3133 = vmatmul.bf16.gmra.mxu1 %v2245_v0  ;;  %v2280_v0 = vsel %vm875_vm3, %v2271_v48, %v2279_v49  ;;  %v12425_v6 = vor.u32 %v12735_v56, %v12424_v54  ;;  %v2669_v46 = vshrl.u32 %v1979_v20, 16  ;;  %v2672_v48 = vshll.u32 %v1979_v20, 16  ;;  %329 = vst [vmem:[#allocation2 + $0x184] sm:$0x8] %v328_v35  ;;  %v12396_v56 = vld [vmem:[#allocation2 + $0xac] sm:$0x8] }
  0x5d   : > { %v13229_v13 = vrot.slane %v2319_v63, 4  ;;  %v1981_v51 = vshrl.u32 %v13217_v44, 16  ;;  %v1984_v38 = vshll.u32 %v13217_v44, 16  ;;  %12193 = vst [vmem:[#allocation2 + $0x188] sm:$0xff] %v13251_v36   ;;  %v2327_v53 = vrot.slane %v2325_v26, 3  ;;  %v11511_v35 = vld [vmem:[%s15996_s1 + $0xa8] sm:$0xff] }
  0x5e   : > { %3173 = vmatmul.bf16.gmra.mxu3 %v2589_v1  ;;  %v12393_v1 = vor.u32 %v12727_v57, %v12392_v47  ;;  %v2652_v23 = vshrl.u32 %v12425_v6, 16  ;;  %v2655_v25 = vshll.u32 %v12425_v6, 16  ;;  %v1833_v55 = vpack.c.b16 %v11805_v40, %v11805_v40 }
  0x5f   : > { %v2322_v10 = vor.u32 %v13229_v13, %v13225_v8  ;;  %v11837_v39 = vunpack.c.h.b16 %v13217_v44  ;;  %v1919_v33 = vrot.slane %v1917_v41, 4  ;;  %v1922_v24 = vrot.slane %v1920_v42, 5  ;;  %v330_v13 = vld [vmem:[#allocation2 + $0x28] sm:$0x1] }
  0x60   : > { %v2308_v18 = vshrl.u32 %v12393_v1, 16  ;;  %v2311_v19 = vshll.u32 %v12393_v1, 16  ;;  %v2654_v49 = vrot.slane %v2652_v23, 3  ;;  %v2657_v50 = vrot.slane %v2655_v25, 4  ;;  %v12736_v1 = vld [vmem:[#allocation2 + $0x16c] sm:$0xf0]  }
  0x61   : > { %v2330_v57 = vrot.slane %v2328_v32, 4  ;;  %v2671_v58 = vrot.slane %v2669_v46, 3  ;;  %v2674_v59 = vrot.slane %v2672_v48, 4  ;;  %v2666_v54 = vor.u32 %v2665_v37, %v2662_v31  ;;  %v11512_v23 = vld [vmem:[%s15996_s1 + $0xb0] sm:$0xff]  ;;  %v11490_v31 = vld [vmem:[%s15996_s1] sm:$0xff] }
  0x62   : > { %v2310_v43 = vrot.slane %v2308_v18, 3  ;;  %v2313_v45 = vrot.slane %v2311_v19, 4  ;;  %v2658_v60 = vor.u32 %v2657_v50, %v2654_v49  ;;  %v1986_v63 = vrot.slane %v1984_v38, 5  ;;  %3611 = vmatpush.bf16.msrb.mxu1 %v11512_v23  ;;  %v11498_v37 = vld [vmem:[%s15996_s1 + $0x40] sm:$0xff]  ;;  %3439 = vmatpush.bf16.msrb.mxu3 %v11490_v31 }
  0x63   : > { %v2359_v52 = vshrl.u32 %v1833_v55, 16  ;;  %v1849_v2 = vpack.c.b16 %v11837_v39, %v11837_v39  ;;  %vm267_vm5 = vsmask.f32 256  ;;  %v12397_v6 = vor.u32 %v12728_v61, %v12396_v56  ;;  %3528 = vmatpush.bf16.msrb.mxu0 %v11498_v37  ;;  %v12400_v56 = vld [vmem:[#allocation2 + $0xc4] sm:$0x8] }
  0x64   : > { %v2314_v47 = vor.u32 %v2313_v45, %v2310_v43  ;;  %v2667_v7 = vsel %vm875_vm3, %v2658_v60, %v2666_v54  ;;  %v2675_v8 = vor.u32 %v2674_v59, %v2671_v58  ;;  %vm13265_vm6 = vmand %vm266_vm4, %vm267_vm5  ;;  %v16008_v12 = vmov 0 }
  0x65   : > { %v16009_v12 = vsel %vm13265_vm6, 4294967295, %v16008_v12  ;;  %v2362_v14 = vshll.u32 %v1833_v55, 16  ;;  %v13269_v16 = vrot.slane %v2359_v52, 3  ;;  %v2703_v17 = vshrl.u32 %v1849_v2, 16 }
  0x66   : > { %v2323_v44 = vsel %vm875_vm3, %v2314_v47, %v2322_v10  ;;  %16010 = vst [vmem:[#allocation5_spill] sm:$0xff] %v16009_v12  ;;  %v2706_v18 = vshll.u32 %v1849_v2, 16  ;;  %v2351_v20 = vshrl.u32 %v12397_v6, 16  ;;  %v2354_v21 = vshll.u32 %v12397_v6, 16  ;;  %3612 = vmatpush.bf16.msrb.mxu1 %v11511_v35  ;;  %v12432_v2 = vld [vmem:[#allocation2 + $0x184] sm:$0x8] }
  0x67   : > { %v331_v25 = vsel %vm13265_vm6, 0, %v330_v13  ;;  %v262_v32 = vsel %vm12963_vm2, 0, %v261_v15  ;;  %v2364_v40 = vrot.slane %v2362_v14, 4  ;;  %v2705_v41 = vrot.slane %v2703_v17, 3 }
  0x68   : > { %332 = vst [vmem:[#allocation2 + $0x28] sm:$0x1] %v331_v25  ;;  %v2708_v42 = vrot.slane %v2706_v18, 4  ;;  %v1925_v43 = vshrl.u32 %v13244_v30, 16  ;;  %v2353_v45 = vrot.slane %v2351_v20, 3  ;;  %v2356_v46 = vrot.slane %v2354_v21, 4 }
  0x69   : > { %263 = vst [vmem:[#allocation2 + $0x4] sm:$0x8] %v262_v32  ;;  %v12899_v50 = vmov 0   ;;  %v11809_v39 = vunpack.c.h.b16 %v13244_v30  ;;  %v11841_v47 = vunpack.c.h.b16 %v13251_v36  ;;  %v1989_v58 = vshrl.u32 %v13251_v36, 16  ;;  %v11545_v32 = vld [vmem:[%s15996_s1 + $0x1b8] sm:$0xff] }
  0x6a   : > { %264 = vst [vmem:[#allocation2 + $0x8] sm:$0xf] %v12899_v50  ;;  %v1992_v59 = vshll.u32 %v13251_v36, 16  ;;  %v2365_v60 = vor.u32 %v2364_v40, %v13269_v16  ;;  %v2709_v54 = vor.u32 %v2708_v42, %v2705_v41  ;;  %v2357_v61 = vor.u32 %v2356_v46, %v2353_v45  ;;  %5061 = vmatpush.bf16.msra.mxu2 %v11545_v32 }
  0x6b   : > { %3049 = vmatmul.bf16.gmra.mxu0 %v2280_v0  ;;  %3089 = vmatmul.bf16.gmra.mxu2 %v2624_v3  ;;  %v12428_v0 = vld [vmem:[#allocation2 + $0x16c] sm:$0x8]  ;;  %v1923_v3 = vor.u32 %v1922_v24, %v1919_v33  ;;  %265 = vst [vmem:[#allocation2 + $0xc] sm:$0xf] %v12899_v50  ;;  %v11510_v33 = vld [vmem:[%s15996_s1 + $0xa0] sm:$0xff]  ;;  %v1835_v52 = vpack.c.b16 %v11809_v39, %v11809_v39 }
  0x6c   : > { %3138 = vmatmul.bf16.gmra.mxu1 %v2288_v62  ;;  %v1983_v62 = vrot.slane %v1981_v51, 4  ;;  %v12429_v9 = vor.u32 %v12736_v1, %v12428_v0  ;;  %276 = vst [vmem:[#allocation2 + $0x1a0] sm:$0xf] %v12899_v50  ;;  %v269_v24 = vld [vmem:[#allocation2 + $0x10] sm:$0x1]  ;;  %v1851_v36 = vpack.c.b16 %v11841_v47, %v11841_v47  ;;  %v2366_v13 = vsel %vm875_vm3, %v2357_v61, %v2365_v60 }
  0x6d   : > { %v2368_v19 = vshrl.u32 %v1923_v3, 16  ;;  %v2371_v22 = vshll.u32 %v1923_v3, 16  ;;  %277 = vst [vmem:[#allocation2 + $0x1a4] sm:$0xf] %v12899_v50  ;;  %v270_v0 = vsel %vm13265_vm6, 0, %v269_v24  ;;  %3613 = vmatpush.bf16.msrb.mxu1 %v11510_v33  ;;  %v2402_v17 = vshrl.u32 %v1835_v52, 16 }
  0x6e   : > { %3178 = vmatmul.bf16.gmra.mxu3 %v2632_v4  ;;  %v2331_v4 = vor.u32 %v2330_v57, %v2327_v53  ;;  %v1987_v11 = vor.u32 %v1986_v63, %v1983_v62  ;;  %v2695_v26 = vshrl.u32 %v12429_v9, 16  ;;  %v2698_v27 = vshll.u32 %v12429_v9, 16  ;;  %5431 = vst [vmem:[#allocation3 + $0x8] sm:$0xf] %v12899_v50  ;;  %v333_v1 = vld [vmem:[#allocation2 + $0x40] sm:$0x1] }
  0x6f   : > { %v13291_v48 = vrot.slane %v2368_v19, 3  ;;  %v13293_v49 = vrot.slane %v2371_v22, 4  ;;  %v1928_v53 = vshll.u32 %v13244_v30, 16  ;;  %v1927_v57 = vrot.slane %v1925_v43, 4  ;;  %v12729_v30 = vld [vmem:[#allocation2 + $0xc4] sm:$0xf0]  }
  0x70   : > { %v2712_v28 = vshrl.u32 %v1987_v11, 16  ;;  %v2715_v34 = vshll.u32 %v1987_v11, 16  ;;  %v2697_v51 = vrot.slane %v2695_v26, 3  ;;  %v2700_v38 = vrot.slane %v2698_v27, 4  ;;  %5432 = vst [vmem:[#allocation3 + $0xc] sm:$0xf] %v12899_v50 }
  0x71   : > { %v1930_v63 = vrot.slane %v1928_v53, 5  ;;  %v12737_v3 = vld [vmem:[#allocation2 + $0x184] sm:$0xf0]   ;;  %5440 = vst [vmem:[#allocation3 + $0x1a0] sm:$0xf] %v12899_v50  ;;  %v334_v6 = vsel %vm13265_vm6, 0, %v333_v1  ;;  %v12401_v9 = vor.u32 %v12729_v30, %v12400_v56 }
  0x72   : > { %v2714_v10 = vrot.slane %v2712_v28, 3  ;;  %v2717_v55 = vrot.slane %v2715_v34, 4  ;;  %v2701_v62 = vor.u32 %v2700_v38, %v2697_v51  ;;  %5441 = vst [vmem:[#allocation3 + $0x1a4] sm:$0xf] %v12899_v50  ;;  %v11509_v11 = vld [vmem:[%s15996_s1 + $0x98] sm:$0xff]  ;;  %v12433_v15 = vor.u32 %v12737_v3, %v12432_v2  ;;  %v11508_v26 = vld [vmem:[%s15996_s1 + $0x90] sm:$0xff] }
  0x73   : > { %271 = vst [vmem:[#allocation2 + $0x10] sm:$0x1] %v270_v0  ;;  %v1931_v16 = vor.u32 %v1930_v63, %v1927_v57  ;;  %3614 = vmatpush.bf16.msrb.mxu1 %v11509_v11  ;;  %v1708_v18 = vld [vmem:[#allocation2 + $0x28] sm:$0x1]  ;;  %v2405_v19 = vshll.u32 %v1835_v52, 16  ;;  %v2746_v20 = vshrl.u32 %v1851_v36, 16 }
  0x74   : > { %v2710_v14 = vsel %vm875_vm3, %v2701_v62, %v2709_v54  ;;  %335 = vst [vmem:[#allocation2 + $0x40] sm:$0x1] %v334_v6  ;;  %v2749_v21 = vshll.u32 %v1851_v36, 16  ;;  %v2394_v23 = vshrl.u32 %v12401_v9, 16  ;;  %v2397_v25 = vshll.u32 %v12401_v9, 16  ;;  %v11553_v34 = vld [vmem:[%s15996_s1 + $0x1f8] sm:$0xff] }
  0x75   : > { %v2738_v27 = vshrl.u32 %v12433_v15, 16  ;;  %v2741_v28 = vshll.u32 %v12433_v15, 16  ;;  %v2411_v29 = vshrl.u32 %v1931_v16, 16  ;;  %v2012_v31 = vunpack.c.l.b16 %v1708_v18  ;;  %5150 = vmatpush.bf16.msra.mxu3 %v11553_v34  ;;  %v12194_v50 = vld [vmem:[#allocation2 + $0x8] sm:$0xff]   ;;  %v12813_v24 = vld [vmem:[#allocation2 + $0x20] sm:$0xff]  ;;  %v11561_v56 = vld [vmem:[%s15996_s1 + $0x238] sm:$0xff] }
  0x76   : > { %v2404_v35 = vrot.slane %v2402_v17, 3  ;;  %v2414_v37 = vshll.u32 %v1931_v16, 16  ;;  %v2407_v40 = vrot.slane %v2405_v19, 4  ;;  %v2748_v41 = vrot.slane %v2746_v20, 3  ;;  %v11507_v51 = vld [vmem:[%s15996_s1 + $0x88] sm:$0xff]  ;;  %v11506_v30 = vld [vmem:[%s15996_s1 + $0x80] sm:$0xff]  ;;  %5239 = vmatpush.bf16.msra.mxu0 %v11561_v56 }
  0x77   : > { %3615 = vmatpush.bf16.msrb.mxu1 %v11508_v26  ;;  %v2751_v42 = vrot.slane %v2749_v21, 4  ;;  %v2396_v46 = vrot.slane %v2394_v23, 3  ;;  %v2743_v53 = vrot.slane %v2741_v28, 4  ;;  %v2028_v39 = vpack.c.b16 %v2012_v31, %v2012_v31  ;;  %v12308_v57 = vld [vmem:[#allocation2 + $0x4] sm:$0x8] }
  0x78   : > { %v2416_v33 = vrot.slane %v2414_v37, 4  ;;  %v2044_v47 = vrot.slane %v12813_v24, 5  ;;  %v651_v60 = vshrl.u32 %v12194_v50, 16  ;;  %v654_v54 = vshll.u32 %v12194_v50, 16  ;;  %v336_v26 = vld [vmem:[#allocation2 + $0x58] sm:$0x1] }
  0x79   : > { %v2752_v63 = vor.u32 %v2751_v42, %v2748_v41  ;;  %v2045_v2 = vrot.slane %v2028_v39, 5  ;;  %v11717_v3 = vunpack.c.h.b16 %v12194_v50  ;;  %v827_v9 = vrot.slane %v12194_v50, 5  ;;  %v491_v32 = vld [vmem:[#allocation2 + $0x28] sm:$0x1] }
  0x7a   : > { %v490_v45 = vld [vmem:[#allocation2 + $0x10] sm:$0x1]  ;;  %v2119_v6 = vshrl.u32 %v2044_v47, 16  ;;  %v2122_v15 = vshll.u32 %v2044_v47, 16 }
  0x7b   : > { %3054 = vmatmul.bf16.gmra.mxu0 %v2323_v44  ;;  %3094 = vmatmul.bf16.gmra.mxu2 %v2667_v7  ;;  %v1991_v44 = vrot.slane %v1989_v58, 4  ;;  %v2374_v7 = vor.u32 %v13293_v49, %v13291_v48  ;;  %v2399_v48 = vrot.slane %v2397_v25, 4  ;;  %v794_v38 = vunpack.c.l.b16 %v490_v45  ;;  %v12706_v58 = vld [vmem:[#allocation2 + $0x4] sm:$0xf0]   ;;  %v12195_v45 = vld [vmem:[#allocation2 + $0x20] sm:$0xff]  }
  0x7c   : > { %3143 = vmatmul.bf16.gmra.mxu1 %v2331_v4  ;;  %v1994_v4 = vrot.slane %v1992_v59, 5  ;;  %v2408_v59 = vor.u32 %v2407_v40, %v2404_v35  ;;  %v12309_v36 = vor.u32 %v12706_v58, %v12308_v57  ;;  %v2046_v18 = vsel %vm826_vm7, %v2044_v47, %v2045_v2  ;;  %v12312_v47 = vld [vmem:[#allocation2 + $0x1c] sm:$0x8]  ;;  %v12707_v57 = vld [vmem:[#allocation2 + $0x1c] sm:$0xf0]  }
  0x7d   : > { %3616 = vmatpush.bf16.msrb.mxu1 %v11507_v51  ;;  %v810_v61 = vpack.c.b16 %v794_v38, %v794_v38  ;;  %v2400_v62 = vor.u32 %v2399_v48, %v2396_v46  ;;  %v603_v19 = vpack.c.b16 %v11717_v3, %v11717_v3  ;;  %v13336_v21 = vrot.slane %v2119_v6, 3 }
  0x7e   : > { %3183 = vmatmul.bf16.gmra.mxu3 %v2675_v8  ;;  %v2718_v8 = vor.u32 %v2717_v55, %v2714_v10  ;;  %v1995_v22 = vor.u32 %v1994_v4, %v1991_v44  ;;  %v2740_v10 = vrot.slane %v2738_v27, 3  ;;  %v2413_v55 = vrot.slane %v2411_v29, 3  ;;  %v1709_v44 = vld [vmem:[#allocation2 + $0x40] sm:$0x1] }
  0x7f   : > { %v828_v11 = vrot.slane %v810_v61, 5  ;;  %v2013_v16 = vunpack.c.l.b16 %v1709_v44  ;;  %v877_v20 = vshrl.u32 %v12309_v36, 16  ;;  %v13339_v27 = vrot.slane %v2122_v15, 4 }
  0x80   : > { %v2755_v43 = vshrl.u32 %v1995_v22, 16  ;;  %v2758_v49 = vshll.u32 %v1995_v22, 16  ;;  %v2744_v52 = vor.u32 %v2743_v53, %v2740_v10  ;;  %v2417_v4 = vor.u32 %v2416_v33, %v2413_v55  ;;  %v12814_v53 = vld [vmem:[#allocation2 + $0x38] sm:$0xff] }
  0x81   : > { %3617 = vmatpush.bf16.msrb.mxu1 %v11506_v30  ;;  %v880_v22 = vshll.u32 %v12309_v36, 16  ;;  %v829_v25 = vsel %vm826_vm7, %v827_v9, %v828_v11  ;;  %v2127_v28 = vshrl.u32 %v2046_v18, 16  ;;  %v2130_v29 = vshll.u32 %v2046_v18, 16 }
  0x82   : > { %v2757_v0 = vrot.slane %v2755_v43, 3  ;;  %v2760_v1 = vrot.slane %v2758_v49, 4  ;;  %v2753_v17 = vsel %vm875_vm3, %v2744_v52, %v2752_v63  ;;  %v2029_v31 = vpack.c.b16 %v2013_v16, %v2013_v16 }
  0x83   : > { %v879_v34 = vrot.slane %v877_v20, 3  ;;  %v885_v35 = vshrl.u32 %v603_v19, 16  ;;  %v888_v37 = vshll.u32 %v603_v19, 16  ;;  %v903_v40 = vshrl.u32 %v827_v9, 16 }
  0x84   : > { %v906_v41 = vshll.u32 %v827_v9, 16  ;;  %v911_v42 = vshrl.u32 %v829_v25, 16  ;;  %v914_v43 = vshll.u32 %v829_v25, 16  ;;  %v337_v46 = vsel %vm13265_vm6, 0, %v336_v26 }
  0x85   : > { %v882_v48 = vrot.slane %v880_v22, 4  ;;  %v795_v51 = vunpack.c.l.b16 %v491_v32  ;;  %338 = vst [vmem:[#allocation2 + $0x58] sm:$0x1] %v337_v46  ;;  %v2129_v38 = vrot.slane %v2127_v28, 3  ;;  %v2132_v10 = vrot.slane %v2130_v29, 4  ;;  %v12196_v46 = vld [vmem:[#allocation2 + $0x38] sm:$0xff]  }
  0x86   : > { %v2047_v55 = vrot.slane %v12814_v53, 5  ;;  %v2048_v39 = vrot.slane %v2029_v31, 5  ;;  %v887_v33 = vrot.slane %v885_v35, 3  ;;  %v890_v24 = vrot.slane %v888_v37, 4  ;;  %v11552_v53 = vld [vmem:[%s15996_s1 + $0x1f0] sm:$0xff] }
  0x87   : > { %v11721_v58 = vunpack.c.h.b16 %v12195_v45  ;;  %v916_v56 = vrot.slane %v914_v43, 4  ;;  %v2125_v30 = vor.u32 %v13339_v27, %v13336_v21  ;;  %v811_v63 = vpack.c.b16 %v795_v51, %v795_v51  ;;  %v339_v27 = vld [vmem:[#allocation2 + $0x70] sm:$0x1]  ;;  %5151 = vmatpush.bf16.msra.mxu3 %v11552_v53 }
  0x88   : > { %v659_v52 = vshrl.u32 %v12195_v45, 16  ;;  %v662_v2 = vshll.u32 %v12195_v45, 16  ;;  %v2133_v3 = vor.u32 %v2132_v10, %v2129_v38  ;;  %v883_v36 = vor.u32 %v882_v48, %v879_v34  ;;  %v492_v48 = vld [vmem:[#allocation2 + $0x40] sm:$0x1]  ;;  %v11544_v10 = vld [vmem:[%s15996_s1 + $0x1b0] sm:$0xff] }
  0x89   : > { %v891_v44 = vor.u32 %v890_v24, %v887_v33  ;;  %v2165_v9 = vshll.u32 %v2047_v55, 16  ;;  %v13346_v15 = vrot.slane %v12195_v45, 5  ;;  %v831_v16 = vrot.slane %v811_v63, 5  ;;  %5062 = vmatpush.bf16.msra.mxu2 %v11544_v10  ;;  %v12316_v63 = vld [vmem:[#allocation2 + $0x34] sm:$0x8] }
  0x8a   : > { %v661_v19 = vrot.slane %v659_v52, 4  ;;  %v664_v20 = vrot.slane %v662_v2, 5  ;;  %v2134_v22 = vsel %vm875_vm3, %v2125_v30, %v2133_v3  ;;  %v12815_v2 = vld [vmem:[#allocation2 + $0x50] sm:$0xff] }
  0x8b   : > { %3059 = vmatmul.bf16.gmra.mxu0 %v2366_v13  ;;  %3099 = vmatmul.bf16.gmra.mxu2 %v2710_v14  ;;  %v2409_v13 = vsel %vm875_vm3, %v2400_v62, %v2408_v59  ;;  %v2761_v14 = vor.u32 %v2760_v1, %v2757_v0  ;;  %v905_v59 = vrot.slane %v903_v40, 3  ;;  %v2049_v0 = vsel %vm826_vm7, %v2047_v55, %v2048_v39 }
  0x8c   : > { %3148 = vmatmul.bf16.gmra.mxu1 %v2374_v7  ;;  %v653_v7 = vrot.slane %v651_v60, 4  ;;  %v908_v60 = vrot.slane %v906_v41, 4  ;;  %v12313_v1 = vor.u32 %v12707_v57, %v12312_v47  ;;  %v1710_v11 = vld [vmem:[#allocation2 + $0x58] sm:$0x1]  ;;  %v892_v29 = vsel %vm875_vm3, %v883_v36, %v891_v44 }
  0x8d   : > { %v2014_v26 = vunpack.c.l.b16 %v1710_v11  ;;  %v13353_v34 = vrot.slane %v2165_v9, 4  ;;  %v832_v41 = vsel %vm826_vm7, %v13346_v15, %v831_v16  ;;  %v665_v45 = vor.u32 %v664_v20, %v661_v19 }
  0x8e   : > { %3188 = vmatmul.bf16.gmra.mxu3 %v2718_v8  ;;  %v656_v8 = vrot.slane %v654_v54, 5  ;;  %v913_v54 = vrot.slane %v911_v42, 3  ;;  %v909_v6 = vor.u32 %v908_v60, %v905_v59  ;;  %v920_v18 = vshrl.u32 %v12313_v1, 16 }
  0x8f   : > { %v2030_v38 = vpack.c.b16 %v2014_v26, %v2014_v26  ;;  %v949_v39 = vshll.u32 %v13346_v15, 16  ;;  %v954_v33 = vshrl.u32 %v832_v41, 16  ;;  %v957_v24 = vshll.u32 %v832_v41, 16 }
  0x90   : > { %v657_v23 = vor.u32 %v656_v8, %v653_v7  ;;  %v917_v7 = vor.u32 %v916_v56, %v913_v54  ;;  %v2162_v8 = vshrl.u32 %v2047_v55, 16  ;;  %v13363_v43 = vrot.slane %v920_v18, 3 }
  0x91   : > { %v946_v55 = vshrl.u32 %v13346_v15, 16  ;;  %v670_v59 = vshll.u32 %v12196_v46, 16  ;;  %v796_v60 = vunpack.c.l.b16 %v492_v48  ;;  %v2050_v3 = vrot.slane %v12815_v2, 5  ;;  %v11560_v15 = vld [vmem:[%s15996_s1 + $0x230] sm:$0xff] }
  0x92   : > { %v894_v49 = vshrl.u32 %v657_v23, 16  ;;  %v897_v50 = vshll.u32 %v657_v23, 16  ;;  %v923_v23 = vshll.u32 %v12313_v1, 16  ;;  %v918_v31 = vsel %vm875_vm3, %v909_v6, %v917_v7  ;;  %5240 = vmatpush.bf16.msra.mxu0 %v11560_v15  ;;  %v12709_v2 = vld [vmem:[#allocation2 + $0x4c] sm:$0xf0]  }
  0x93   : > { %v13351_v32 = vrot.slane %v2162_v8, 3  ;;  %v2051_v36 = vrot.slane %v2030_v38, 5  ;;  %v11725_v44 = vunpack.c.h.b16 %v12196_v46  ;;  %v948_v6 = vrot.slane %v946_v55, 3 }
  0x94   : > { %v896_v61 = vrot.slane %v894_v49, 3  ;;  %v899_v62 = vrot.slane %v897_v50, 4  ;;  %v340_v49 = vsel %vm13265_vm6, 0, %v339_v27  ;;  %v13367_v50 = vrot.slane %v923_v23, 4 }
  0x95   : > { %341 = vst [vmem:[#allocation2 + $0x70] sm:$0x1] %v340_v49  ;;  %v2168_v56 = vor.u32 %v13353_v34, %v13351_v32  ;;  %v951_v7 = vrot.slane %v949_v39, 4  ;;  %v956_v8 = vrot.slane %v954_v33, 3  ;;  %v959_v9 = vrot.slane %v957_v24, 4  ;;  %v13407_v24 = vld [vmem:[#allocation2 + $0x50] sm:$0xff]  }
  0x96   : > { %v812_v16 = vpack.c.b16 %v796_v60, %v796_v60  ;;  %v672_v20 = vrot.slane %v670_v59, 5  ;;  %v2205_v23 = vshrl.u32 %v2050_v3, 16  ;;  %v833_v34 = vrot.slane %v12196_v46, 5 }
  0x97   : > { %v952_v26 = vor.u32 %v951_v7, %v948_v6  ;;  %v960_v27 = vor.u32 %v959_v9, %v956_v8 }
  0x98   : > { %v13401_v38 = vrot.slane %v2205_v23, 3 }
  0x99   : > { %v961_v55 = vsel %vm875_vm3, %v952_v26, %v960_v27 }
  0x9b   : > { %3064 = vmatmul.bf16.gmra.mxu0 %v2409_v13  ;;  %3104 = vmatmul.bf16.gmra.mxu2 %v2753_v17  ;;  %v900_v13 = vor.u32 %v899_v62, %v896_v61  ;;  %v2173_v17 = vshll.u32 %v2049_v0, 16  ;;  %v937_v61 = vshrl.u32 %v665_v45, 16  ;;  %v940_v62 = vshll.u32 %v665_v45, 16 }
  0x9c   : > { %3153 = vmatmul.bf16.gmra.mxu1 %v2417_v4  ;;  %v605_v4 = vpack.c.b16 %v11721_v58, %v11721_v58  ;;  %v667_v58 = vshrl.u32 %v12196_v46, 16 }
  0x9d   : > { %v13361_v42 = vrot.slane %v2173_v17, 4  ;;  %v939_v17 = vrot.slane %v937_v61, 3  ;;  %v942_v18 = vrot.slane %v940_v62, 4  ;;  %v493_v62 = vld [vmem:[#allocation2 + $0x58] sm:$0x1] }
  0x9e   : > { %3193 = vmatmul.bf16.gmra.mxu3 %v2761_v14  ;;  %v2170_v14 = vshrl.u32 %v2049_v0, 16  ;;  %v928_v25 = vshrl.u32 %v605_v4, 16  ;;  %v931_v40 = vshll.u32 %v605_v4, 16  ;;  %v12708_v0 = vld [vmem:[#allocation2 + $0x34] sm:$0xf0]   ;;  %v669_v19 = vrot.slane %v667_v58, 4 }
  0x9f   : > { %v797_v15 = vunpack.c.l.b16 %v493_v62 }
  0xa0   : > { %v13357_v37 = vrot.slane %v2170_v14, 3  ;;  %v13369_v51 = vrot.slane %v928_v25, 3  ;;  %v933_v57 = vrot.slane %v931_v40, 4  ;;  %v13389_v14 = vor.u32 %v12708_v0, %v12316_v63  ;;  %v1711_v40 = vld [vmem:[#allocation2 + $0x70] sm:$0x1] }
  0xa1   : > { %v2208_v25 = vshll.u32 %v2050_v3, 16  ;;  %v673_v48 = vor.u32 %v672_v20, %v669_v19  ;;  %v2015_v33 = vunpack.c.l.b16 %v1711_v40  ;;  %v989_v0 = vshrl.u32 %v833_v34, 16 }
  0xa2   : > { %v2176_v30 = vor.u32 %v13361_v42, %v13357_v37  ;;  %v963_v32 = vshrl.u32 %v13389_v14, 16  ;;  %v834_v37 = vrot.slane %v812_v16, 5  ;;  %v943_v42 = vor.u32 %v942_v18, %v939_v17 }
  0xa3   : > { %v13403_v10 = vrot.slane %v2208_v25, 4  ;;  %v966_v46 = vshll.u32 %v13389_v14, 16  ;;  %v983_v61 = vshll.u32 %v673_v48, 16  ;;  %v2031_v7 = vpack.c.b16 %v2015_v33, %v2015_v33  ;;  %v12816_v25 = vld [vmem:[#allocation2 + $0x68] sm:$0xff] }
  0xa4   : > { %v13411_v58 = vrot.slane %v963_v32, 3  ;;  %v835_v60 = vsel %vm826_vm7, %v833_v34, %v834_v37  ;;  %v991_v23 = vrot.slane %v989_v0, 3  ;;  %v2053_v26 = vrot.slane %v12816_v25, 5 }
  0xa5   : > { %v2211_v63 = vor.u32 %v13403_v10, %v13401_v38  ;;  %v1000_v6 = vshll.u32 %v835_v60, 16  ;;  %v968_v9 = vrot.slane %v966_v46, 4  ;;  %v985_v19 = vrot.slane %v983_v61, 4 }
  0xa6   : > { %v675_v40 = vshrl.u32 %v13407_v24, 16  ;;  %v2251_v61 = vshll.u32 %v2053_v26, 16 }
  0xa7   : > { %v1002_v32 = vrot.slane %v1000_v6, 4 }
  0xa8   : > { %v3030_v21 = vpop.f32.mrf.mxu0 }
  0xa9   : > { %v3119_v28 = vpop.f32.mrf.mxu1 }
  0xaa   : > { %v13355_v35 = vadd.f32 %v3119_v28, %v3030_v21  ;;  %v934_v21 = vor.u32 %v933_v57, %v13369_v51  ;;  %v607_v28 = vpack.c.b16 %v11725_v44, %v11725_v44  ;;  %v992_v44 = vshll.u32 %v833_v34, 16 }
  0xab   : > { %3207 = vmatmul.bf16.vlgmr.msrb.gmra.mxu2 %v2134_v22  ;;  %3529 = vmatmul.bf16.vlgmr.msrb.gmra.mxu0 %v900_v13  ;;  %v926_v13 = vor.u32 %v13367_v50, %v13363_v43  ;;  %v2052_v22 = vsel %vm826_vm7, %v2050_v3, %v2051_v36  ;;  %v11729_v3 = vunpack.c.h.b16 %v13407_v24  ;;  %v2054_v34 = vrot.slane %v2031_v7, 5 }
  0xac   : > { %3618 = vmatmul.bf16.vlgmr.msrb.gmra.mxu1 %v918_v31  ;;  %v2177_v31 = vsel %vm875_vm3, %v2168_v56, %v2176_v30  ;;  %v2213_v43 = vshrl.u32 %v2052_v22, 16  ;;  %v2216_v45 = vshll.u32 %v2052_v22, 16  ;;  %v971_v39 = vshrl.u32 %v607_v28, 16 }
  0xad   : > { %v935_v51 = vsel %vm875_vm3, %v926_v13, %v934_v21  ;;  %v974_v59 = vshll.u32 %v607_v28, 16  ;;  %v980_v30 = vshrl.u32 %v673_v48, 16  ;;  %v609_v27 = vpack.c.b16 %v11729_v3, %v11729_v3 }
  0xae   : > { %3440 = vmatmul.bf16.vlgmr.msrb.gmra.mxu3 %v892_v29  ;;  %v3070_v47 = vpop.f32.mrf.mxu2  ;;  %v2218_v56 = vrot.slane %v2216_v45, 4  ;;  %v973_v13 = vrot.slane %v971_v39, 3  ;;  %v2055_v33 = vsel %vm826_vm7, %v2053_v26, %v2054_v34  ;;  %v12710_v34 = vld [vmem:[#allocation2 + $0x64] sm:$0xf0]  }
  0xaf   : > { %v976_v14 = vrot.slane %v974_v59, 4  ;;  %v982_v18 = vrot.slane %v980_v30, 3  ;;  %v1014_v38 = vshrl.u32 %v609_v27, 16  ;;  %v1017_v10 = vshll.u32 %v609_v27, 16 }
  0xb0   : > { %v3032_v52 = vpop.f32.mrf.mxu0  ;;  %v677_v59 = vrot.slane %v675_v40, 4  ;;  %v2248_v30 = vshrl.u32 %v2053_v26, 16  ;;  %v2256_v7 = vshrl.u32 %v2055_v33, 16  ;;  %v12324_v26 = vld [vmem:[#allocation2 + $0x64] sm:$0x8] }
  0xb1   : > { %v3159_v54 = vpop.f32.mrf.mxu3  ;;  %v3121_v4 = vpop.f32.mrf.mxu1  ;;  %v977_v45 = vor.u32 %v976_v14, %v973_v13 }
  0xb2   : > { %v13383_v1 = vadd.f32 %v3159_v54, %v3070_v47  ;;  %v13385_v11 = vadd.f32 %v3121_v4, %v3032_v52  ;;  %v342_v47 = vld [vmem:[#allocation2 + $0x88] sm:$0x1]  ;;  %v2215_v54 = vrot.slane %v2213_v43, 3  ;;  %v12320_v52 = vld [vmem:[#allocation2 + $0x4c] sm:$0x8]  ;;  %v997_v4 = vshrl.u32 %v835_v60, 16 }
  0xb3   : > { %v343_v36 = vsel %vm13265_vm6, 0, %v342_v47  ;;  %v12321_v20 = vor.u32 %v12709_v2, %v12320_v52  ;;  %v969_v43 = vor.u32 %v968_v9, %v13411_v58  ;;  %v2259_v9 = vshll.u32 %v2055_v33, 16 }
  0xb4   : > { %344 = vst [vmem:[#allocation2 + $0x88] sm:$0x1] %v343_v36  ;;  %v2219_v17 = vor.u32 %v2218_v56, %v2215_v54  ;;  %v836_v54 = vrot.slane %v13407_v24, 5  ;;  %v1019_v36 = vrot.slane %v1017_v10, 4 }
  0xb5   : > { %v1006_v48 = vshrl.u32 %v12321_v20, 16 }
  0xb6   : > { %v3072_v29 = vpop.f32.mrf.mxu2 }
  0xb7   : > { %v1008_v62 = vrot.slane %v1006_v48, 3 }
  0xb8   : > { %v3035_v50 = vpop.f32.mrf.mxu0 }
  0xb9   : > { %v3161_v41 = vpop.f32.mrf.mxu3  ;;  %v3124_v53 = vpop.f32.mrf.mxu1 }
  0xba   : > { %v13398_v49 = vadd.f32 %v3161_v41, %v3072_v29  ;;  %v13409_v57 = vadd.f32 %v3124_v53, %v3035_v50  ;;  %v994_v29 = vrot.slane %v992_v44, 4  ;;  %v678_v41 = vshll.u32 %v13407_v24, 16 }
  0xbb   : > { %3212 = vmatmul.bf16.gmra.mxu2 %v2177_v31  ;;  %3534 = vmatmul.bf16.gmra.mxu0 %v943_v42  ;;  %v999_v31 = vrot.slane %v997_v4, 3  ;;  %v813_v42 = vpack.c.b16 %v797_v15, %v797_v15  ;;  %v986_v50 = vor.u32 %v985_v19, %v982_v18  ;;  %v1712_v53 = vld [vmem:[#allocation2 + $0x88] sm:$0x1]  ;;  %v978_v4 = vsel %vm875_vm3, %v969_v43, %v977_v45  ;;  %v494_v15 = vld [vmem:[#allocation2 + $0x70] sm:$0x1] }
  0xbc   : > { %3623 = vmatmul.bf16.gmra.mxu1 %v961_v55  ;;  %v2220_v55 = vsel %vm875_vm3, %v2211_v63, %v2219_v17  ;;  %v995_v46 = vor.u32 %v994_v29, %v991_v23  ;;  %v680_v60 = vrot.slane %v678_v41, 5  ;;  %v2016_v0 = vunpack.c.l.b16 %v1712_v53  ;;  %v11551_v29 = vld [vmem:[%s15996_s1 + $0x1e8] sm:$0xff]  ;;  %v12817_v53 = vld [vmem:[#allocation2 + $0x80] sm:$0xff] }
  0xbd   : > { %v1003_v39 = vor.u32 %v1002_v32, %v999_v31  ;;  %v837_v56 = vrot.slane %v813_v42, 5  ;;  %v1016_v63 = vrot.slane %v1014_v38, 3  ;;  %v13438_v17 = vrot.slane %v2248_v30, 3  ;;  %5152 = vmatpush.bf16.msra.mxu3 %v11551_v29 }
  0xbe   : > { %3445 = vmatmul.bf16.gmra.mxu3 %v935_v51  ;;  %v3075_v8 = vpop.f32.mrf.mxu2  ;;  %v1009_v51 = vshll.u32 %v12321_v20, 16  ;;  %v681_v13 = vor.u32 %v680_v60, %v677_v59  ;;  %v1032_v18 = vshrl.u32 %v836_v54, 16  ;;  %v1035_v19 = vshll.u32 %v836_v54, 16 }
  0xbf   : > { %v1004_v6 = vsel %vm875_vm3, %v995_v46, %v1003_v39  ;;  %v838_v14 = vsel %vm826_vm7, %v836_v54, %v837_v56  ;;  %v2032_v20 = vpack.c.b16 %v2016_v0, %v2016_v0  ;;  %v1020_v25 = vor.u32 %v1019_v36, %v1016_v63  ;;  %v11559_v63 = vld [vmem:[%s15996_s1 + $0x228] sm:$0xff] }
  0xc0   : > { %v3037_v22 = vpop.f32.mrf.mxu0  ;;  %v1011_v3 = vrot.slane %v1009_v51, 4  ;;  %v1040_v31 = vshrl.u32 %v838_v14, 16  ;;  %v1043_v32 = vshll.u32 %v838_v14, 16  ;;  %v798_v40 = vunpack.c.l.b16 %v494_v15  ;;  %5241 = vmatpush.bf16.msra.mxu0 %v11559_v63  ;;  %v12328_v63 = vld [vmem:[#allocation2 + $0x7c] sm:$0x8] }
  0xc1   : > { %v3164_v16 = vpop.f32.mrf.mxu3  ;;  %v3126_v28 = vpop.f32.mrf.mxu1  ;;  %v2258_v43 = vrot.slane %v2256_v7, 3  ;;  %v2261_v45 = vrot.slane %v2259_v9, 4  ;;  %v1023_v48 = vshrl.u32 %v681_v13, 16  ;;  %v1034_v38 = vrot.slane %v1032_v18, 3 }
  0xc2   : > { %v13419_v21 = vadd.f32 %v3164_v16, %v3075_v8  ;;  %v13421_v37 = vadd.f32 %v3126_v28, %v3037_v22  ;;  %v13433_v8 = vld [vmem:[#allocation2 + $0x68] sm:$0xff]   ;;  %v345_v16 = vld [vmem:[#allocation2 + $0xa0] sm:$0x1]  ;;  %v2253_v22 = vrot.slane %v2251_v61, 4  ;;  %v1012_v23 = vor.u32 %v1011_v3, %v1008_v62 }
  0xc3   : > { %v11733_v27 = vunpack.c.h.b16 %v13433_v8  ;;  %v11543_v28 = vld [vmem:[%s15996_s1 + $0x1a8] sm:$0xff]  ;;  %v346_v41 = vsel %vm13265_vm6, 0, %v345_v16  ;;  %v1037_v10 = vrot.slane %v1035_v19, 4  ;;  %v2057_v46 = vrot.slane %v2032_v20, 5 }
  0xc4   : > { %5063 = vmatpush.bf16.msra.mxu2 %v11543_v28  ;;  %347 = vst [vmem:[#allocation2 + $0xa0] sm:$0x1] %v346_v41  ;;  %v1021_v59 = vsel %vm875_vm3, %v1012_v23, %v1020_v25  ;;  %v12325_v60 = vor.u32 %v12710_v34, %v12324_v26  ;;  %v1042_v56 = vrot.slane %v1040_v31, 3  ;;  %v814_v61 = vpack.c.b16 %v798_v40, %v798_v40 }
  0xc5   : > { %v611_v30 = vpack.c.b16 %v11733_v27, %v11733_v27  ;;  %v2262_v0 = vor.u32 %v2261_v45, %v2258_v43  ;;  %v1038_v36 = vor.u32 %v1037_v10, %v1034_v38  ;;  %v12199_v38 = vld [vmem:[#allocation2 + $0x80] sm:$0xff]   ;;  %v348_v10 = vld [vmem:[#allocation2 + $0xb8] sm:$0x1] }
  0xc6   : > { %v3077_v47 = vpop.f32.mrf.mxu2  ;;  %v1052_v14 = vshll.u32 %v12325_v60, 16  ;;  %v840_v18 = vrot.slane %v814_v61, 5 }
  0xc7   : > { %v1057_v16 = vshrl.u32 %v611_v30, 16  ;;  %v1060_v25 = vshll.u32 %v611_v30, 16 }
  0xc8   : > { %v3040_v2 = vpop.f32.mrf.mxu0 }
  0xc9   : > { %v3166_v58 = vpop.f32.mrf.mxu3  ;;  %v3129_v44 = vpop.f32.mrf.mxu1 }
  0xca   : > { %v13429_v52 = vadd.f32 %v3166_v58, %v3077_v47  ;;  %v13435_v24 = vadd.f32 %v3129_v44, %v3040_v2  ;;  %v2254_v47 = vor.u32 %v2253_v22, %v13438_v17  ;;  %v1045_v58 = vrot.slane %v1043_v32, 4 }
  0xcb   : > { %3217 = vmatmul.bf16.gmra.mxu2 %v2220_v55  ;;  %3539 = vmatmul.bf16.gmra.mxu0 %v986_v50  ;;  %v1026_v50 = vshll.u32 %v681_v13, 16  ;;  %v2056_v55 = vrot.slane %v12817_v53, 5  ;;  %v1025_v2 = vrot.slane %v1023_v48, 3  ;;  %v1049_v13 = vshrl.u32 %v12325_v60, 16  ;;  %v1713_v19 = vld [vmem:[#allocation2 + $0xa0] sm:$0x1] }
  0xcc   : > { %3628 = vmatmul.bf16.gmra.mxu1 %v1004_v6  ;;  %v686_v6 = vshll.u32 %v13433_v8, 16  ;;  %v1046_v15 = vor.u32 %v1045_v58, %v1042_v56  ;;  %v839_v17 = vrot.slane %v13433_v8, 5  ;;  %v2263_v22 = vsel %vm875_vm3, %v2254_v47, %v2262_v0  ;;  %v495_v58 = vld [vmem:[#allocation2 + $0x88] sm:$0x1] }
  0xcd   : > { %v1028_v3 = vrot.slane %v1026_v50, 4  ;;  %v2058_v44 = vsel %vm826_vm7, %v2056_v55, %v2057_v46  ;;  %v2291_v7 = vshrl.u32 %v2056_v55, 16  ;;  %v2294_v9 = vshll.u32 %v2056_v55, 16 }
  0xce   : > { %3450 = vmatmul.bf16.gmra.mxu3 %v978_v4  ;;  %v3080_v42 = vpop.f32.mrf.mxu2  ;;  %v683_v4 = vshrl.u32 %v13433_v8, 16  ;;  %v2299_v23 = vshrl.u32 %v2058_v44, 16  ;;  %v2017_v26 = vunpack.c.l.b16 %v1713_v19  ;;  %v2302_v29 = vshll.u32 %v2058_v44, 16 }
  0xcf   : > { %v1029_v28 = vor.u32 %v1028_v3, %v1025_v2  ;;  %v688_v32 = vrot.slane %v686_v6, 5  ;;  %v13465_v41 = vrot.slane %v2291_v7, 3  ;;  %v13469_v8 = vrot.slane %v1049_v13, 3 }
  0xd0   : > { %v3042_v33 = vpop.f32.mrf.mxu0  ;;  %v685_v31 = vrot.slane %v683_v4, 4  ;;  %v1047_v45 = vsel %vm875_vm3, %v1038_v36, %v1046_v15  ;;  %v13472_v48 = vrot.slane %v1052_v14, 4  ;;  %v13474_v50 = vrot.slane %v1057_v16, 3  ;;  %v12711_v36 = vld [vmem:[#allocation2 + $0x7c] sm:$0xf0]   ;;  %v12818_v4 = vld [vmem:[#allocation2 + $0x98] sm:$0xff] }
  0xd1   : > { %v3169_v51 = vpop.f32.mrf.mxu3  ;;  %v3131_v54 = vpop.f32.mrf.mxu1  ;;  %v13479_v55 = vrot.slane %v2299_v23, 3  ;;  %v13481_v46 = vrot.slane %v1060_v25, 4  ;;  %v2304_v47 = vrot.slane %v2302_v29, 4  ;;  %v1078_v56 = vshll.u32 %v839_v17, 16 }
  0xd2   : > { %v13449_v39 = vadd.f32 %v3169_v51, %v3080_v42  ;;  %v13453_v62 = vadd.f32 %v3131_v54, %v3042_v33  ;;  %v13467_v42 = vrot.slane %v2294_v9, 4  ;;  %v841_v51 = vsel %vm826_vm7, %v839_v17, %v840_v18 }
  0xd3   : > { %v2033_v33 = vpack.c.b16 %v2017_v26, %v2017_v26  ;;  %v689_v60 = vor.u32 %v688_v32, %v685_v31  ;;  %v1075_v54 = vshrl.u32 %v839_v17, 16  ;;  %v1083_v30 = vshrl.u32 %v841_v51, 16 }
  0xd4   : > { %v1086_v61 = vshll.u32 %v841_v51, 16  ;;  %v691_v0 = vshrl.u32 %v12199_v38, 16  ;;  %v349_v2 = vsel %vm13265_vm6, 0, %v348_v10  ;;  %v2297_v3 = vor.u32 %v13467_v42, %v13465_v41 }
  0xd5   : > { %350 = vst [vmem:[#allocation2 + $0xb8] sm:$0x1] %v349_v2  ;;  %v2059_v6 = vrot.slane %v12818_v4, 5  ;;  %v2060_v7 = vrot.slane %v2033_v33, 5  ;;  %v694_v9 = vshll.u32 %v12199_v38, 16  ;;  %v799_v13 = vunpack.c.l.b16 %v495_v58 }
  0xd6   : > { %v3082_v20 = vpop.f32.mrf.mxu2  ;;  %v1066_v14 = vshrl.u32 %v689_v60, 16  ;;  %v1069_v15 = vshll.u32 %v689_v60, 16  ;;  %v1077_v16 = vrot.slane %v1075_v54, 3  ;;  %v1080_v17 = vrot.slane %v1078_v56, 4 }
  0xd7   : > { %v12329_v23 = vor.u32 %v12711_v36, %v12328_v63  ;;  %v1055_v26 = vor.u32 %v13472_v48, %v13469_v8  ;;  %v693_v29 = vrot.slane %v691_v0, 4  ;;  %v2061_v32 = vsel %vm826_vm7, %v2059_v6, %v2060_v7 }
  0xd8   : > { %v3045_v40 = vpop.f32.mrf.mxu0  ;;  %v815_v41 = vpack.c.b16 %v799_v13, %v799_v13  ;;  %v2305_v42 = vor.u32 %v2304_v47, %v13479_v55  ;;  %v2334_v51 = vshrl.u32 %v2059_v6, 16  ;;  %v1081_v10 = vor.u32 %v1080_v17, %v1077_v16 }
  0xd9   : > { %v3171_v27 = vpop.f32.mrf.mxu3  ;;  %v3134_v43 = vpop.f32.mrf.mxu1  ;;  %v2337_v60 = vshll.u32 %v2059_v6, 16  ;;  %v1092_v8 = vshrl.u32 %v12329_v23, 16  ;;  %v2342_v48 = vshrl.u32 %v2061_v32, 16  ;;  %v2345_v56 = vshll.u32 %v2061_v32, 16  ;;  %v11542_v32 = vld [vmem:[%s15996_s1 + $0x1a0] sm:$0xff] }
  0xda   : > { %v13463_v34 = vadd.f32 %v3171_v27, %v3082_v20  ;;  %v13477_v53 = vadd.f32 %v3134_v43, %v3045_v40  ;;  %v1085_v20 = vrot.slane %v1083_v30, 3  ;;  %v1063_v27 = vor.u32 %v13481_v46, %v13474_v50  ;;  %5064 = vmatpush.bf16.msra.mxu2 %v11542_v32 }
  0xdb   : > { %3222 = vmatmul.bf16.gmra.mxu2 %v2263_v22  ;;  %3544 = vmatmul.bf16.gmra.mxu0 %v1029_v28  ;;  %v1088_v22 = vrot.slane %v1086_v61, 4  ;;  %v11737_v28 = vunpack.c.h.b16 %v12199_v38  ;;  %v696_v40 = vrot.slane %v694_v9, 5  ;;  %v1068_v43 = vrot.slane %v1066_v14, 3 }
  0xdc   : > { %3633 = vmatmul.bf16.gmra.mxu1 %v1047_v45  ;;  %v1071_v45 = vrot.slane %v1069_v15, 4  ;;  %v1095_v50 = vshll.u32 %v12329_v23, 16  ;;  %v842_v30 = vrot.slane %v12199_v38, 5  ;;  %v843_v61 = vrot.slane %v815_v41, 5  ;;  %v1714_v9 = vld [vmem:[#allocation2 + $0xb8] sm:$0x1] }
  0xdd   : > { %v1089_v33 = vor.u32 %v1088_v22, %v1085_v20  ;;  %v613_v54 = vpack.c.b16 %v11737_v28, %v11737_v28  ;;  %v697_v58 = vor.u32 %v696_v40, %v693_v29  ;;  %v2306_v2 = vsel %vm875_vm3, %v2297_v3, %v2305_v42  ;;  %v351_v15 = vld [vmem:[#allocation2 + $0xd0] sm:$0x1]  ;;  %v12712_v29 = vld [vmem:[#allocation2 + $0x94] sm:$0xf0]   ;;  %v11550_v40 = vld [vmem:[%s15996_s1 + $0x1e0] sm:$0xff] }
  0xde   : > { %3455 = vmatmul.bf16.gmra.mxu3 %v1021_v59  ;;  %v3085_v44 = vpop.f32.mrf.mxu2  ;;  %v1064_v55 = vsel %vm875_vm3, %v1055_v26, %v1063_v27  ;;  %v1072_v47 = vor.u32 %v1071_v45, %v1068_v43  ;;  %v13499_v63 = vrot.slane %v2334_v51, 3  ;;  %v13504_v6 = vrot.slane %v2337_v60, 4  ;;  %v12200_v26 = vld [vmem:[#allocation2 + $0x98] sm:$0xff]   ;;  %v496_v27 = vld [vmem:[#allocation2 + $0xa0] sm:$0x1]  ;;  %v12819_v51 = vld [vmem:[#allocation2 + $0xb0] sm:$0xff] }
  0xdf   : > { %v1090_v4 = vsel %vm875_vm3, %v1081_v10, %v1089_v33  ;;  %v13506_v7 = vrot.slane %v1092_v8, 3  ;;  %v2344_v13 = vrot.slane %v2342_v48, 3  ;;  %v1100_v3 = vshrl.u32 %v613_v54, 16  ;;  %5153 = vmatpush.bf16.msra.mxu3 %v11550_v40 }
  0xe0   : > { %v3047_v19 = vpop.f32.mrf.mxu0  ;;  %v1103_v14 = vshll.u32 %v613_v54, 16  ;;  %v2347_v17 = vrot.slane %v2345_v56, 4  ;;  %v844_v20 = vsel %vm826_vm7, %v842_v30, %v843_v61  ;;  %v1112_v22 = vshll.u32 %v697_v58, 16 }
  0xe1   : > { %v3174_v59 = vpop.f32.mrf.mxu3  ;;  %v3136_v25 = vpop.f32.mrf.mxu1  ;;  %v2018_v23 = vunpack.c.l.b16 %v1714_v9  ;;  %v1118_v28 = vshrl.u32 %v842_v30, 16  ;;  %v352_v41 = vsel %vm13265_vm6, 0, %v351_v15  ;;  %v1121_v42 = vshll.u32 %v842_v30, 16 }
  0xe2   : > { %v13487_v18 = vadd.f32 %v3174_v59, %v3085_v44  ;;  %v13493_v31 = vadd.f32 %v3136_v25, %v3047_v19  ;;  %v13508_v59 = vrot.slane %v1095_v50, 4  ;;  %v1109_v19 = vshrl.u32 %v697_v58, 16  ;;  %v12332_v25 = vld [vmem:[#allocation2 + $0x94] sm:$0x8]  ;;  %353 = vst [vmem:[#allocation2 + $0xd0] sm:$0x1] %v352_v41 }
  0xe3   : > { %v1126_v43 = vshrl.u32 %v844_v20, 16  ;;  %v1129_v45 = vshll.u32 %v844_v20, 16  ;;  %v2062_v10 = vrot.slane %v12819_v51, 5  ;;  %v2340_v60 = vor.u32 %v13504_v6, %v13499_v63 }
  0xe4   : > { %v1102_v8 = vrot.slane %v1100_v3, 3  ;;  %v1105_v48 = vrot.slane %v1103_v14, 4  ;;  %v800_v54 = vunpack.c.l.b16 %v496_v27  ;;  %v2034_v56 = vpack.c.b16 %v2018_v23, %v2018_v23 }
  0xe5   : > { %v11741_v58 = vunpack.c.h.b16 %v12200_v26  ;;  %v12333_v61 = vor.u32 %v12712_v29, %v12332_v25  ;;  %v1128_v9 = vrot.slane %v1126_v43, 3  ;;  %v1131_v63 = vrot.slane %v1129_v45, 4 }
  0xe6   : > { %v3087_v46 = vpop.f32.mrf.mxu2  ;;  %v2377_v6 = vshrl.u32 %v2062_v10, 16  ;;  %v699_v3 = vshrl.u32 %v12200_v26, 16  ;;  %v702_v14 = vshll.u32 %v12200_v26, 16  ;;  %v816_v15 = vpack.c.b16 %v800_v54, %v800_v54 }
  0xe7   : > { %v2380_v20 = vshll.u32 %v2062_v10, 16  ;;  %v615_v23 = vpack.c.b16 %v11741_v58, %v11741_v58  ;;  %v1098_v25 = vor.u32 %v13508_v59, %v13506_v7  ;;  %v1106_v27 = vor.u32 %v1105_v48, %v1102_v8 }
  0xe8   : > { %v3050_v44 = vpop.f32.mrf.mxu0  ;;  %v1132_v40 = vor.u32 %v1131_v63, %v1128_v9  ;;  %v13533_v41 = vrot.slane %v2377_v6, 3  ;;  %v701_v45 = vrot.slane %v699_v3, 4  ;;  %v704_v51 = vrot.slane %v702_v14, 5  ;;  %v354_v9 = vld [vmem:[#allocation2 + $0xe8] sm:$0x1] }
  0xe9   : > { %v3176_v0 = vpop.f32.mrf.mxu3  ;;  %v3139_v38 = vpop.f32.mrf.mxu1  ;;  %v846_v54 = vrot.slane %v816_v15, 5  ;;  %v1143_v59 = vshrl.u32 %v615_v23, 16  ;;  %v1146_v58 = vshll.u32 %v615_v23, 16 }
  0xea   : > { %v13501_v36 = vadd.f32 %v3176_v0, %v3087_v46  ;;  %v13510_v16 = vadd.f32 %v3139_v38, %v3050_v44  ;;  %v2348_v46 = vor.u32 %v2347_v17, %v2344_v13  ;;  %v11558_v13 = vld [vmem:[%s15996_s1 + $0x220] sm:$0xff]  ;;  %v2063_v17 = vrot.slane %v2034_v56, 5 }
  0xeb   : > { %3227 = vmatmul.bf16.gmra.mxu2 %v2306_v2  ;;  %3549 = vmatmul.bf16.gmra.mxu0 %v1072_v47  ;;  %v1111_v2 = vrot.slane %v1109_v19, 3  ;;  %v1120_v47 = vrot.slane %v1118_v28, 3  ;;  %v1135_v19 = vshrl.u32 %v12333_v61, 16  ;;  %v1138_v28 = vshll.u32 %v12333_v61, 16 }
  0xec   : > { %3638 = vmatmul.bf16.gmra.mxu1 %v1090_v4  ;;  %v1123_v4 = vrot.slane %v1121_v42, 4  ;;  %5242 = vmatpush.bf16.msra.mxu0 %v11558_v13  ;;  %v1715_v42 = vld [vmem:[#allocation2 + $0xd0] sm:$0x1]  ;;  %v13551_v3 = vrot.slane %v1143_v59, 3  ;;  %v497_v13 = vld [vmem:[#allocation2 + $0xb8] sm:$0x1] }
  0xed   : > { %v13538_v7 = vrot.slane %v1135_v19, 3  ;;  %v13542_v56 = vrot.slane %v1138_v28, 4  ;;  %v2019_v61 = vunpack.c.l.b16 %v1715_v42  ;;  %v12336_v19 = vld [vmem:[#allocation2 + $0xac] sm:$0x8] }
  0xee   : > { %3460 = vmatmul.bf16.gmra.mxu3 %v1064_v55  ;;  %v3090_v33 = vpop.f32.mrf.mxu2  ;;  %v1114_v55 = vrot.slane %v1112_v22, 4  ;;  %v2349_v22 = vsel %vm875_vm3, %v2340_v60, %v2348_v46  ;;  %v1124_v32 = vor.u32 %v1123_v4, %v1120_v47  ;;  %v2064_v60 = vsel %vm826_vm7, %v2062_v10, %v2063_v17  ;;  %v12201_v4 = vld [vmem:[#allocation2 + $0xb0] sm:$0xff]  }
  0xef   : > { %v13536_v46 = vrot.slane %v2380_v20, 4  ;;  %v2385_v10 = vshrl.u32 %v2064_v60, 16  ;;  %v705_v47 = vor.u32 %v704_v51, %v701_v45  ;;  %v2388_v6 = vshll.u32 %v2064_v60, 16  ;;  %v12820_v60 = vld [vmem:[#allocation2 + $0xc8] sm:$0xff] }
  0xf0   : > { %v3052_v0 = vpop.f32.mrf.mxu0  ;;  %v1115_v29 = vor.u32 %v1114_v55, %v1111_v2  ;;  %v1107_v2 = vsel %vm875_vm3, %v1098_v25, %v1106_v27  ;;  %v13555_v17 = vrot.slane %v1146_v58, 4  ;;  %v2035_v23 = vpack.c.b16 %v2019_v61, %v2019_v61  ;;  %v12713_v27 = vld [vmem:[#allocation2 + $0xac] sm:$0xf0]  }
  0xf1   : > { %v3179_v50 = vpop.f32.mrf.mxu3  ;;  %v3141_v44 = vpop.f32.mrf.mxu1  ;;  %v11745_v28 = vunpack.c.h.b16 %v12201_v4  ;;  %v1152_v42 = vshrl.u32 %v705_v47, 16  ;;  %v801_v45 = vunpack.c.l.b16 %v497_v13  ;;  %v707_v59 = vshrl.u32 %v12201_v4, 16 }
  0xf2   : > { %v13523_v30 = vadd.f32 %v3179_v50, %v3090_v33  ;;  %v13525_v38 = vadd.f32 %v3141_v44, %v3052_v0  ;;  %v845_v33 = vrot.slane %v12200_v26, 5  ;;  %v1133_v26 = vsel %vm875_vm3, %v1124_v32, %v1132_v40 }
  0xf3   : > { %v2387_v40 = vrot.slane %v2385_v10, 3  ;;  %v617_v10 = vpack.c.b16 %v11745_v28, %v11745_v28  ;;  %v710_v15 = vshll.u32 %v12201_v4, 16  ;;  %v1154_v13 = vrot.slane %v1152_v42, 3 }
  0xf4   : > { %16011 = vst [vmem:[#allocation6_spill] sm:$0xff] %v13523_v30  ;;  %v847_v44 = vsel %vm826_vm7, %v845_v33, %v846_v54  ;;  %v1161_v14 = vshrl.u32 %v845_v33, 16  ;;  %v1164_v20 = vshll.u32 %v845_v33, 16  ;;  %v2390_v54 = vrot.slane %v2388_v6, 4 }
  0xf5   : > { %v1172_v25 = vshll.u32 %v847_v44, 16  ;;  %v2065_v33 = vrot.slane %v12820_v60, 5  ;;  %v817_v6 = vpack.c.b16 %v801_v45, %v801_v45  ;;  %v1149_v60 = vor.u32 %v13555_v17, %v13551_v3 }
  0xf6   : > { %v3092_v43 = vpop.f32.mrf.mxu2  ;;  %v1166_v61 = vrot.slane %v1164_v20, 4  ;;  %v712_v28 = vrot.slane %v710_v15, 5  ;;  %v1189_v42 = vshll.u32 %v617_v10, 16 }
  0xf7   : > { %v849_v45 = vrot.slane %v817_v6, 5 }
  0xf8   : > { %v3055_v48 = vpop.f32.mrf.mxu0 }
  0xf9   : > { %v3181_v50 = vpop.f32.mrf.mxu3  ;;  %v3144_v0 = vpop.f32.mrf.mxu1 }
  0xfa   : > { %v13540_v8 = vadd.f32 %v3181_v50, %v3092_v43  ;;  %v13546_v55 = vadd.f32 %v3144_v0, %v3055_v48  ;;  %v1155_v43 = vshll.u32 %v705_v47, 16  ;;  %v1163_v50 = vrot.slane %v1161_v14, 3 }
  0xfb   : > { %3232 = vmatmul.bf16.gmra.mxu2 %v2349_v22  ;;  %3554 = vmatmul.bf16.gmra.mxu0 %v1115_v29  ;;  %v1169_v22 = vshrl.u32 %v847_v44, 16  ;;  %v355_v29 = vsel %vm13265_vm6, 0, %v354_v9  ;;  %v2066_v0 = vrot.slane %v2035_v23, 5  ;;  %v1174_v9 = vrot.slane %v1172_v25, 4 }
  0xfc   : > { %16012 = vst [vmem:[#allocation7_spill] sm:$0xff] %v13540_v8  ;;  %3643 = vmatmul.bf16.gmra.mxu1 %v1133_v26  ;;  %v2391_v14 = vor.u32 %v2390_v54, %v2387_v40  ;;  %v1167_v63 = vor.u32 %v1166_v61, %v1163_v50  ;;  %v1186_v25 = vshrl.u32 %v617_v10, 16 }
  0xfd   : > { %356 = vst [vmem:[#allocation2 + $0xe8] sm:$0x1] %v355_v29  ;;  %v1171_v44 = vrot.slane %v1169_v22, 3  ;;  %v1157_v29 = vrot.slane %v1155_v43, 4  ;;  %v2067_v20 = vsel %vm826_vm7, %v2065_v33, %v2066_v0  ;;  %v848_v43 = vrot.slane %v12201_v4, 5 }
  0xfe   : > { %3465 = vmatmul.bf16.gmra.mxu3 %v1107_v2  ;;  %v3095_v32 = vpop.f32.mrf.mxu2  ;;  %v12337_v2 = vor.u32 %v12713_v27, %v12336_v19  ;;  %v709_v27 = vrot.slane %v707_v59, 4  ;;  %v2428_v17 = vshrl.u32 %v2067_v20, 16  ;;  %v2431_v50 = vshll.u32 %v2067_v20, 16 }
  0xff   : > { %v1175_v22 = vor.u32 %v1174_v9, %v1171_v44  ;;  %v16015_v59 = vor.u32 %v13536_v46, %v13533_v41  ;;  %v16016_v9 = vor.u32 %v13542_v56, %v13538_v7  ;;  %v498_v41 = vld [vmem:[#allocation2 + $0xd0] sm:$0x1]  ;;  %v357_v46 = vld [vmem:[#allocation2 + $0x100] sm:$0x1]  ;;  %v850_v20 = vsel %vm826_vm7, %v848_v43, %v849_v45 }
 0x100   : > { %v3057_v58 = vpop.f32.mrf.mxu0  ;;  %v1178_v23 = vshrl.u32 %v12337_v2, 16  ;;  %v1181_v19 = vshll.u32 %v12337_v2, 16  ;;  %v713_v6 = vor.u32 %v712_v28, %v709_v27  ;;  %v2430_v56 = vrot.slane %v2428_v17, 3  ;;  %v11541_v28 = vld [vmem:[%s15996_s1 + $0x198] sm:$0xff] }
 0x101   : > { %v3184_v51 = vpop.f32.mrf.mxu3  ;;  %v3146_v26 = vpop.f32.mrf.mxu1  ;;  %v2392_v15 = vsel %vm875_vm3, %v16015_v59, %v2391_v14  ;;  %v1150_v10 = vsel %vm875_vm3, %v16016_v9, %v1149_v60  ;;  %v1204_v60 = vshrl.u32 %v848_v43, 16  ;;  %5065 = vmatpush.bf16.msra.mxu2 %v11541_v28 }
 0x102   : > { %v13559_v48 = vadd.f32 %v3184_v51, %v3095_v32  ;;  %v13561_v47 = vadd.f32 %v3146_v26, %v3057_v58  ;;  %v2420_v32 = vshrl.u32 %v2065_v33, 16  ;;  %v2423_v51 = vshll.u32 %v2065_v33, 16 }
 0x103   : > { %v1158_v26 = vor.u32 %v1157_v29, %v1154_v13  ;;  %v13576_v2 = vrot.slane %v1178_v23, 3  ;;  %v13578_v4 = vrot.slane %v1181_v19, 4  ;;  %v1176_v13 = vsel %vm875_vm3, %v1167_v63, %v1175_v22  ;;  %v12340_v19 = vld [vmem:[#allocation2 + $0xc4] sm:$0x8] }
 0x104   : > { %16013 = vst [vmem:[#allocation8_spill] sm:$0xff] %v13559_v48  ;;  %v13566_v54 = vrot.slane %v2420_v32, 3  ;;  %v13568_v3 = vrot.slane %v2423_v51, 4  ;;  %v1716_v61 = vld [vmem:[#allocation2 + $0xe8] sm:$0x1]  ;;  %v13585_v29 = vrot.slane %v1186_v25, 3 }
 0x105   : > { %v13587_v32 = vld [vmem:[#allocation2 + $0xc8] sm:$0xff]   ;;  %v13591_v51 = vrot.slane %v1189_v42, 4  ;;  %v2020_v23 = vunpack.c.l.b16 %v1716_v61  ;;  %v2433_v63 = vrot.slane %v2431_v50, 4  ;;  %v1207_v22 = vshll.u32 %v848_v43, 16 }
 0x106   : > { %v3097_v58 = vpop.f32.mrf.mxu2  ;;  %v2426_v7 = vor.u32 %v13568_v3, %v13566_v54  ;;  %v12714_v25 = vld [vmem:[#allocation2 + $0xc4] sm:$0xf0]   ;;  %v11749_v27 = vunpack.c.h.b16 %v13587_v32  ;;  %v358_v42 = vsel %vm13265_vm6, 0, %v357_v46  ;;  %v1195_v45 = vshrl.u32 %v713_v6, 16 }
 0x107   : > { %v1212_v54 = vshrl.u32 %v850_v20, 16  ;;  %v1215_v3 = vshll.u32 %v850_v20, 16  ;;  %359 = vst [vmem:[#allocation2 + $0x100] sm:$0x1] %v358_v42  ;;  %v1184_v17 = vor.u32 %v13578_v4, %v13576_v2  ;;  %v1192_v50 = vor.u32 %v13591_v51, %v13585_v29  ;;  %v11557_v51 = vld [vmem:[%s15996_s1 + $0x218] sm:$0xff] }
 0x108   : > { %v3060_v0 = vpop.f32.mrf.mxu0  ;;  %v2036_v61 = vpack.c.b16 %v2020_v23, %v2020_v23  ;;  %v2434_v59 = vor.u32 %v2433_v63, %v2430_v56  ;;  %v619_v46 = vpack.c.b16 %v11749_v27, %v11749_v27  ;;  %v1197_v2 = vrot.slane %v1195_v45, 3  ;;  %5243 = vmatpush.bf16.msra.mxu0 %v11557_v51 }
 0x109   : > { %v3186_v40 = vpop.f32.mrf.mxu3  ;;  %v3149_v44 = vpop.f32.mrf.mxu1  ;;  %v1214_v5 = vrot.slane %v1212_v54, 3  ;;  %v1217_v29 = vrot.slane %v1215_v3, 4  ;;  %v715_v63 = vshrl.u32 %v13587_v32, 16 }
 0x10a   : > { %v13570_v33 = vadd.f32 %v3186_v40, %v3097_v58  ;;  %v13589_v14 = vadd.f32 %v3149_v44, %v3060_v0  ;;  %v11549_v58 = vld [vmem:[%s15996_s1 + $0x1d8] sm:$0xff]  ;;  %v1198_v40 = vshll.u32 %v713_v6, 16  ;;  %v12821_v44 = vld [vmem:[#allocation2 + $0xe0] sm:$0xff]  ;;  %v2069_v56 = vrot.slane %v2036_v61, 5 }
 0x10b   : > { %3237 = vmatmul.bf16.gmra.mxu2 %v2392_v15  ;;  %3559 = vmatmul.bf16.gmra.mxu0 %v1158_v26  ;;  %v802_v26 = vunpack.c.l.b16 %v498_v41  ;;  %v1206_v15 = vrot.slane %v1204_v60, 3  ;;  %v2068_v9 = vrot.slane %v12821_v44, 5  ;;  %v1209_v41 = vrot.slane %v1207_v22, 4 }
 0x10c   : > { %16014 = vst [vmem:[#allocation9_spill] sm:$0xff] %v13570_v33  ;;  %3648 = vmatmul.bf16.gmra.mxu1 %v1176_v13  ;;  %5154 = vmatpush.bf16.msra.mxu3 %v11549_v58  ;;  %v1200_v4 = vrot.slane %v1198_v40, 4  ;;  %v718_v60 = vshll.u32 %v13587_v32, 16  ;;  %v1229_v28 = vshrl.u32 %v619_v46, 16  ;;  %v1232_v58 = vshll.u32 %v619_v46, 16 }
 0x10d   : > { %v818_v20 = vpack.c.b16 %v802_v26, %v802_v26  ;;  %v2466_v22 = vshll.u32 %v2068_v9, 16  ;;  %v851_v26 = vrot.slane %v13587_v32, 5  ;;  %v2435_v54 = vsel %vm875_vm3, %v2426_v7, %v2434_v59 }
 0x10e   : > { %3470 = vmatmul.bf16.gmra.mxu3 %v1150_v10  ;;  %v3100_v43 = vpop.f32.mrf.mxu2  ;;  %v12341_v10 = vor.u32 %v12714_v25, %v12340_v19  ;;  %v2463_v19 = vshrl.u32 %v2068_v9, 16  ;;  %v1717_v40 = vld [vmem:[#allocation2 + $0x100] sm:$0x1]  ;;  %v1201_v3 = vor.u32 %v1200_v4, %v1197_v2  ;;  %v1218_v61 = vor.u32 %v1217_v29, %v1214_v5 }
 0x10f   : > { %v852_v45 = vrot.slane %v818_v20, 5  ;;  %v2070_v44 = vsel %vm826_vm7, %v2068_v9, %v2069_v56  ;;  %v13623_v51 = vrot.slane %v2466_v22, 4  ;;  %v13629_v20 = vld [vmem:[#allocation2 + $0xe0] sm:$0xff]   ;;  %v13633_v59 = vrot.slane %v1229_v28, 3  ;;  %v360_v28 = vld [vmem:[#allocation2 + $0x118] sm:$0x1] }
 0x110   : > { %v3062_v6 = vpop.f32.mrf.mxu0  ;;  %v1221_v25 = vshrl.u32 %v12341_v10, 16  ;;  %v1224_v27 = vshll.u32 %v12341_v10, 16  ;;  %v13621_v10 = vrot.slane %v2463_v19, 3  ;;  %v1193_v2 = vsel %vm875_vm3, %v1184_v17, %v1192_v50 }
 0x111   : > { %v3189_v0 = vpop.f32.mrf.mxu3  ;;  %v3151_v42 = vpop.f32.mrf.mxu1  ;;  %v853_v9 = vsel %vm826_vm7, %v851_v26, %v852_v45  ;;  %v2471_v29 = vshrl.u32 %v2070_v44, 16  ;;  %v2474_v56 = vshll.u32 %v2070_v44, 16  ;;  %v1247_v17 = vshrl.u32 %v851_v26, 16 }
 0x112   : > { %v13609_v13 = vadd.f32 %v3189_v0, %v3100_v43  ;;  %v13614_v23 = vadd.f32 %v3151_v42, %v3062_v6  ;;  %v1210_v43 = vor.u32 %v1209_v41, %v1206_v15  ;;  %v717_v6 = vrot.slane %v715_v63, 4  ;;  %v12344_v63 = vld [vmem:[#allocation2 + $0xdc] sm:$0x8] }
 0x113   : > { %v720_v42 = vrot.slane %v718_v60, 5  ;;  %v13625_v46 = vrot.slane %v1221_v25, 3  ;;  %v13627_v32 = vrot.slane %v1224_v27, 4  ;;  %v13635_v15 = vrot.slane %v1232_v58, 4  ;;  %v12715_v60 = vld [vmem:[#allocation2 + $0xdc] sm:$0xf0]  }
 0x114   : > { %16017 = vst [vmem:[#allocation10_spill] sm:$0xff] %v13609_v13  ;;  %v2021_v13 = vunpack.c.l.b16 %v1717_v40  ;;  %v1219_v4 = vsel %vm875_vm3, %v1210_v43, %v1218_v61  ;;  %v11753_v25 = vunpack.c.h.b16 %v13629_v20  ;;  %v499_v27 = vld [vmem:[#allocation2 + $0xe8] sm:$0x1]  ;;  %v2469_v58 = vor.u32 %v13623_v51, %v13621_v10 }
 0x115   : > { %v1250_v50 = vshll.u32 %v851_v26, 16  ;;  %v1255_v45 = vshrl.u32 %v853_v9, 16  ;;  %v1227_v40 = vor.u32 %v13627_v32, %v13625_v46  ;;  %v1258_v43 = vshll.u32 %v853_v9, 16  ;;  %v12822_v26 = vld [vmem:[#allocation2 + $0xf8] sm:$0xff] }
 0x116   : > { %v3102_v0 = vpop.f32.mrf.mxu2  ;;  %v2037_v22 = vpack.c.b16 %v2021_v13, %v2021_v13  ;;  %v1235_v13 = vor.u32 %v13635_v15, %v13633_v59  ;;  %v12345_v61 = vor.u32 %v12715_v60, %v12344_v63  ;;  %v2476_v44 = vrot.slane %v2474_v56, 4 }
 0x117   : > { %v2071_v10 = vrot.slane %v12822_v26, 5  ;;  %v1249_v32 = vrot.slane %v1247_v17, 3  ;;  %v1257_v59 = vrot.slane %v1255_v45, 3 }
 0x118   : > { %v3065_v5 = vpop.f32.mrf.mxu0  ;;  %v2072_v51 = vrot.slane %v2037_v22, 5  ;;  %v1267_v56 = vshll.u32 %v12345_v61, 16 }
 0x119   : > { %v3191_v33 = vpop.f32.mrf.mxu3  ;;  %v3154_v41 = vpop.f32.mrf.mxu1  ;;  %v2509_v26 = vshll.u32 %v2071_v10, 16 }
 0x11a   : > { %v13631_v7 = vadd.f32 %v3191_v33, %v3102_v0  ;;  %v13640_v19 = vadd.f32 %v3154_v41, %v3065_v5  ;;  %v721_v33 = vor.u32 %v720_v42, %v717_v6  ;;  %v2473_v0 = vrot.slane %v2471_v29, 3 }
 0x11b   : > { %3242 = vmatmul.bf16.gmra.mxu2 %v2435_v54  ;;  %3564 = vmatmul.bf16.gmra.mxu0 %v1201_v3  ;;  %v803_v54 = vunpack.c.l.b16 %v499_v27  ;;  %v361_v3 = vsel %vm13265_vm6, 0, %v360_v28  ;;  %v621_v5 = vpack.c.b16 %v11753_v25, %v11753_v25  ;;  %v1264_v29 = vshrl.u32 %v12345_v61, 16 }
 0x11c   : > { %16018 = vst [vmem:[#allocation11_spill] sm:$0xff] %v13631_v7  ;;  %3653 = vmatmul.bf16.gmra.mxu1 %v1219_v4  ;;  %v1238_v42 = vshrl.u32 %v721_v33, 16  ;;  %v1241_v46 = vshll.u32 %v721_v33, 16  ;;  %v1260_v4 = vrot.slane %v1258_v43, 4  ;;  %v2477_v60 = vor.u32 %v2476_v44, %v2473_v0 }
 0x11d   : > { %362 = vst [vmem:[#allocation2 + $0x118] sm:$0x1] %v361_v3  ;;  %v723_v27 = vshrl.u32 %v13629_v20, 16  ;;  %v726_v28 = vshll.u32 %v13629_v20, 16  ;;  %v819_v22 = vpack.c.b16 %v803_v54, %v803_v54  ;;  %v2073_v33 = vsel %vm826_vm7, %v2071_v10, %v2072_v51 }
 0x11e   : > { %3475 = vmatmul.bf16.gmra.mxu3 %v1193_v2  ;;  %v3105_v6 = vpop.f32.mrf.mxu2  ;;  %v1252_v2 = vrot.slane %v1250_v50, 4  ;;  %v1272_v17 = vshrl.u32 %v621_v5, 16  ;;  %v1275_v50 = vshll.u32 %v621_v5, 16  ;;  %v1240_v45 = vrot.slane %v1238_v42, 3 }
 0x11f   : > { %v1243_v3 = vrot.slane %v1241_v46, 4  ;;  %v1266_v61 = vrot.slane %v1264_v29, 3  ;;  %v2514_v0 = vshrl.u32 %v2073_v33, 16  ;;  %v2517_v44 = vshll.u32 %v2073_v33, 16  ;;  %v363_v29 = vld [vmem:[#allocation2 + $0x130] sm:$0x1] }
 0x120   : > { %v3067_v9 = vpop.f32.mrf.mxu0  ;;  %v1253_v43 = vor.u32 %v1252_v2, %v1249_v32  ;;  %v854_v7 = vrot.slane %v13629_v20, 5  ;;  %v855_v48 = vrot.slane %v819_v22, 5  ;;  %v725_v8 = vrot.slane %v723_v27, 4 }
 0x121   : > { %v3194_v41 = vpop.f32.mrf.mxu3  ;;  %v3156_v63 = vpop.f32.mrf.mxu1  ;;  %v728_v51 = vrot.slane %v726_v28, 5  ;;  %v2478_v42 = vsel %vm875_vm3, %v2469_v58, %v2477_v60  ;;  %v1236_v5 = vsel %vm875_vm3, %v1227_v40, %v1235_v13  ;;  %v2511_v20 = vrot.slane %v2509_v26, 4  ;;  %v13667_v58 = vld [vmem:[#allocation2 + $0xf8] sm:$0xff]  }
 0x122   : > { %v13651_v15 = vadd.f32 %v3194_v41, %v3105_v6  ;;  %v13655_v25 = vadd.f32 %v3156_v63, %v3067_v9  ;;  %v2506_v6 = vshrl.u32 %v2071_v10, 16  ;;  %v1261_v41 = vor.u32 %v1260_v4, %v1257_v59 }
 0x123   : > { %v1274_v9 = vrot.slane %v1272_v17, 3  ;;  %v1277_v63 = vrot.slane %v1275_v50, 4  ;;  %v1244_v10 = vor.u32 %v1243_v3, %v1240_v45  ;;  %v2516_v22 = vrot.slane %v2514_v0, 3  ;;  %v500_v17 = vld [vmem:[#allocation2 + $0x100] sm:$0x1] }
 0x124   : > { %16019 = vst [vmem:[#allocation12_spill] sm:$0xff] %v13651_v15  ;;  %v1269_v15 = vrot.slane %v1267_v56, 4  ;;  %v1718_v46 = vld [vmem:[#allocation2 + $0x118] sm:$0x1]  ;;  %v1262_v59 = vsel %vm875_vm3, %v1253_v43, %v1261_v41  ;;  %v2508_v4 = vrot.slane %v2506_v6, 3  ;;  %v2519_v27 = vrot.slane %v2517_v44, 4 }
 0x125   : > { %v856_v33 = vsel %vm826_vm7, %v854_v7, %v855_v48  ;;  %v1278_v40 = vor.u32 %v1277_v63, %v1274_v9  ;;  %v729_v13 = vor.u32 %v728_v51, %v725_v8  ;;  %v1290_v60 = vshrl.u32 %v854_v7, 16  ;;  %v12348_v45 = vld [vmem:[#allocation2 + $0xf4] sm:$0x8]  ;;  %v12716_v3 = vld [vmem:[#allocation2 + $0xf4] sm:$0xf0]  }
 0x126   : > { %v3107_v54 = vpop.f32.mrf.mxu2  ;;  %v1270_v28 = vor.u32 %v1269_v15, %v1266_v61  ;;  %v1293_v50 = vshll.u32 %v854_v7, 16  ;;  %v364_v6 = vsel %vm13265_vm6, 0, %v363_v29  ;;  %v1298_v15 = vshrl.u32 %v856_v33, 16  ;;  %v11540_v8 = vld [vmem:[%s15996_s1 + $0x190] sm:$0xff] }
 0x127   : > { %v1301_v26 = vshll.u32 %v856_v33, 16  ;;  %v11757_v48 = vunpack.c.h.b16 %v13667_v58  ;;  %v11548_v43 = vld [vmem:[%s15996_s1 + $0x1d0] sm:$0xff]  ;;  %365 = vst [vmem:[#allocation2 + $0x130] sm:$0x1] %v364_v6  ;;  %v2512_v7 = vor.u32 %v2511_v20, %v2508_v4  ;;  %v2520_v41 = vor.u32 %v2519_v27, %v2516_v22  ;;  %5066 = vmatpush.bf16.msra.mxu2 %v11540_v8 }
 0x128   : > { %v3530_v2 = vpop.f32.mrf.mxu0  ;;  %v804_v61 = vunpack.c.l.b16 %v500_v17  ;;  %v13679_v44 = vsel %vm875_vm3, %v1270_v28, %v1278_v40  ;;  %5155 = vmatpush.bf16.msra.mxu3 %v11548_v43  ;;  %v1300_v29 = vrot.slane %v1298_v15, 3  ;;  %v12823_v33 = vld [vmem:[#allocation2 + $0x110] sm:$0xff] }
 0x129   : > { %v3196_v30 = vpop.f32.mrf.mxu3  ;;  %v13664_v56 = vpop.f32.mrf.mxu1  ;;  %v1303_v4 = vrot.slane %v1301_v26, 4  ;;  %v623_v20 = vpack.c.b16 %v11757_v48, %v11757_v48  ;;  %v2521_v27 = vsel %vm875_vm3, %v2512_v7, %v2520_v41  ;;  %v2074_v40 = vrot.slane %v12823_v33, 5 }
 0x12a   : > { %v13661_v32 = vadd.f32 %v3196_v30, %v3107_v54  ;;  %v2022_v30 = vunpack.c.l.b16 %v1718_v46  ;;  %v1281_v54 = vshrl.u32 %v729_v13, 16 }
 0x12b   : > { %3247 = vmatmul.bf16.gmra.mxu2 %v2478_v42  ;;  %3569 = vmatmul.bf16.gmra.mxu0 %v1244_v10  ;;  %v1284_v42 = vshll.u32 %v729_v13, 16  ;;  %v12349_v10 = vor.u32 %v12716_v3, %v12348_v45  ;;  %v1304_v48 = vor.u32 %v1303_v4, %v1300_v29  ;;  %v1315_v8 = vshrl.u32 %v623_v20, 16 }
 0x12c   : > { %3658 = vmatmul.bf16.gmra.mxu1 %v1262_v59  ;;  %v2038_v9 = vpack.c.b16 %v2022_v30, %v2022_v30  ;;  %v1295_v59 = vrot.slane %v1293_v50, 4  ;;  %v11556_v30 = vld [vmem:[%s15996_s1 + $0x210] sm:$0xff]  ;;  %v1283_v17 = vrot.slane %v1281_v54, 3  ;;  %v734_v50 = vshll.u32 %v13667_v58, 16 }
 0x12d   : > { %v1286_v3 = vrot.slane %v1284_v42, 4  ;;  %v1307_v6 = vshrl.u32 %v12349_v10, 16  ;;  %v1310_v15 = vshll.u32 %v12349_v10, 16  ;;  %5244 = vmatpush.bf16.msra.mxu0 %v11556_v30  ;;  %v1318_v43 = vshll.u32 %v623_v20, 16 }
 0x12e   : > { %3480 = vmatmul.bf16.gmra.mxu3 %v1236_v5  ;;  %v3208_v0 = vpop.f32.mrf.mxu2  ;;  %v1292_v5 = vrot.slane %v1290_v60, 3  ;;  %v2075_v13 = vrot.slane %v2038_v9, 5  ;;  %v731_v60 = vshrl.u32 %v13667_v58, 16  ;;  %v2549_v41 = vshrl.u32 %v2074_v40, 16  ;;  %v1719_v54 = vld [vmem:[#allocation2 + $0x130] sm:$0x1] }
 0x12f   : > { %v3209_v63 = vadd.f32 %v3208_v0, %v13355_v35  ;;  %v820_v35 = vpack.c.b16 %v804_v61, %v804_v61  ;;  %v857_v61 = vrot.slane %v13667_v58, 5  ;;  %v736_v42 = vrot.slane %v734_v50, 5 }
 0x130   : > { %v3532_v46 = vpop.f32.mrf.mxu0  ;;  %v1296_v26 = vor.u32 %v1295_v59, %v1292_v5  ;;  %v1287_v59 = vor.u32 %v1286_v3, %v1283_v17  ;;  %v1309_v29 = vrot.slane %v1307_v6, 3  ;;  %v1312_v4 = vrot.slane %v1310_v15, 4  ;;  %v501_v3 = vld [vmem:[#allocation2 + $0x118] sm:$0x1] }
 0x131   : > { %v3441_v51 = vpop.f32.mrf.mxu3  ;;  %v3621_v28 = vpop.f32.mrf.mxu1  ;;  %v858_v0 = vrot.slane %v820_v35, 5  ;;  %v1320_v33 = vrot.slane %v1318_v43, 4  ;;  %v2023_v58 = vunpack.c.l.b16 %v1719_v54  ;;  %v13701_v17 = vrot.slane %v2549_v41, 3  ;;  %v366_v41 = vld [vmem:[#allocation2 + $0x148] sm:$0x1] }
 0x132   : > { %v3442_v22 = vadd.f32 %v3441_v51, %v3209_v63  ;;  %v2076_v63 = vsel %vm826_vm7, %v2074_v40, %v2075_v13  ;;  %v733_v51 = vrot.slane %v731_v60, 4  ;;  %v1313_v15 = vor.u32 %v1312_v4, %v1309_v29 }
 0x133   : > { %v2560_v13 = vshll.u32 %v2076_v63, 16 }
 0x134   : > { %v3531_v45 = vadd.f32 %v3530_v2, %v3442_v22  ;;  %v2552_v2 = vshll.u32 %v2074_v40, 16  ;;  %v1317_v22 = vrot.slane %v1315_v8, 3  ;;  %v11593_v40 = vld [vmem:[%s15998_s3 + $0xf8] sm:$0xff]  ;;  %v737_v50 = vor.u32 %v736_v42, %v733_v51  ;;  %v12205_v8 = vld [vmem:[#allocation2 + $0x110] sm:$0xff]  }
 0x135   : > { %v2562_v51 = vrot.slane %v2560_v13, 4  ;;  %8183 = vmatpush.bf16.msra.mxu1 %v11593_v40 }
 0x136   : > { %v13689_v7 = vadd.f32 %v13664_v56, %v3531_v45  ;;  %v3210_v9 = vpop.f32.mrf.mxu2  ;;  %v1305_v56 = vsel %vm875_vm3, %v1296_v26, %v1304_v48  ;;  %v2557_v45 = vshrl.u32 %v2076_v63, 16  ;;  %v13703_v60 = vrot.slane %v2552_v2, 4 }
 0x137   : > { %v3211_v10 = vadd.f32 %v3210_v9, %v13385_v11  ;;  %v859_v11 = vsel %vm826_vm7, %v857_v61, %v858_v0  ;;  %v1333_v26 = vshrl.u32 %v857_v61, 16  ;;  %v1336_v48 = vshll.u32 %v857_v61, 16 }
 0x138   : > { %16020 = vst [vmem:[#allocation13_spill] sm:$0xff] %v13689_v7  ;;  %v3535_v20 = vpop.f32.mrf.mxu0  ;;  %v1321_v43 = vor.u32 %v1320_v33, %v1317_v22  ;;  %v1341_v54 = vshrl.u32 %v859_v11, 16  ;;  %v1344_v9 = vshll.u32 %v859_v11, 16  ;;  %v2039_v0 = vpack.c.b16 %v2023_v58, %v2023_v58 }
 0x139   : > { %v3443_v5 = vpop.f32.mrf.mxu3  ;;  %v13695_v35 = vpop.f32.mrf.mxu1  ;;  %v2559_v2 = vrot.slane %v2557_v45, 3  ;;  %v1324_v61 = vshrl.u32 %v737_v50, 16  ;;  %v1338_v22 = vrot.slane %v1336_v48, 4  ;;  %v12824_v45 = vld [vmem:[#allocation2 + $0x128] sm:$0xff]  ;;  %v742_v48 = vshll.u32 %v12205_v8, 16 }
 0x13a   : > { %v3444_v30 = vadd.f32 %v3443_v5, %v3211_v10  ;;  %v1327_v10 = vshll.u32 %v737_v50, 16  ;;  %v12352_v5 = vld [vmem:[#allocation2 + $0x10c] sm:$0x8]  ;;  %v1343_v58 = vrot.slane %v1341_v54, 3  ;;  %v2077_v13 = vrot.slane %v12824_v45, 5 }
 0x13b   : > { %3252 = vmatmul.bf16.gmra.mxu2 %v2521_v27  ;;  %3574 = vmatmul.bf16.gmra.mxu0 %v1287_v59  ;;  %v805_v27 = vunpack.c.l.b16 %v501_v3  ;;  %v11761_v59 = vunpack.c.h.b16 %v12205_v8  ;;  %v2078_v40 = vrot.slane %v2039_v0, 5 }
 0x13c   : > { %v3533_v6 = vadd.f32 %v3532_v46, %v3444_v30  ;;  %3663 = vmatmul.bf16.gmra.mxu1 %v1305_v56  ;;  %v2555_v46 = vor.u32 %v13703_v60, %v13701_v17  ;;  %v1335_v56 = vrot.slane %v1333_v26, 3  ;;  %v1346_v30 = vrot.slane %v1344_v9, 4 }
 0x13d   : > { %v1322_v17 = vsel %vm875_vm3, %v1313_v15, %v1321_v43  ;;  %v821_v3 = vpack.c.b16 %v805_v27, %v805_v27  ;;  %v739_v26 = vshrl.u32 %v12205_v8, 16  ;;  %v2079_v9 = vsel %vm826_vm7, %v2077_v13, %v2078_v40 }
 0x13e   : > { %3485 = vmatmul.bf16.gmra.mxu3 %v13679_v44  ;;  %v13706_v63 = vadd.f32 %v3621_v28, %v3533_v6  ;;  %v3213_v42 = vpop.f32.mrf.mxu2  ;;  %v12717_v44 = vld [vmem:[#allocation2 + $0x10c] sm:$0xf0]   ;;  %v367_v28 = vsel %vm13265_vm6, 0, %v366_v41  ;;  %v625_v6 = vpack.c.b16 %v11761_v59, %v11761_v59  ;;  %v1329_v41 = vrot.slane %v1327_v10, 4 }
 0x13f   : > { %v3214_v29 = vadd.f32 %v3213_v42, %v13409_v57  ;;  %368 = vst [vmem:[#allocation2 + $0x148] sm:$0x1] %v367_v28  ;;  %v12353_v50 = vor.u32 %v12717_v44, %v12352_v5  ;;  %v2563_v57 = vor.u32 %v2562_v51, %v2559_v2  ;;  %v1339_v7 = vor.u32 %v1338_v22, %v1335_v56 }
 0x140   : > { %16021 = vst [vmem:[#allocation14_spill] sm:$0xff] %v13706_v63  ;;  %v3537_v33 = vpop.f32.mrf.mxu0  ;;  %v1326_v63 = vrot.slane %v1324_v61, 3  ;;  %v1347_v54 = vor.u32 %v1346_v30, %v1343_v58  ;;  %v2592_v45 = vshrl.u32 %v2077_v13, 16  ;;  %v2595_v0 = vshll.u32 %v2077_v13, 16 }
 0x141   : > { %v3446_v4 = vpop.f32.mrf.mxu3  ;;  %v3626_v60 = vpop.f32.mrf.mxu1  ;;  %v1350_v15 = vshrl.u32 %v12353_v50, 16  ;;  %v13718_v43 = vrot.slane %v12205_v8, 5  ;;  %v861_v27 = vrot.slane %v821_v3, 5  ;;  %v1353_v51 = vshll.u32 %v12353_v50, 16 }
 0x142   : > { %v3447_v11 = vadd.f32 %v3446_v4, %v3214_v29  ;;  %v1358_v5 = vshrl.u32 %v625_v6, 16  ;;  %v741_v44 = vrot.slane %v739_v26, 4  ;;  %v1330_v59 = vor.u32 %v1329_v41, %v1326_v63 }
 0x143   : > { %v2600_v4 = vshrl.u32 %v2079_v9, 16  ;;  %v1361_v56 = vshll.u32 %v625_v6, 16  ;;  %v1348_v28 = vsel %vm875_vm3, %v1339_v7, %v1347_v54  ;;  %v13725_v8 = vrot.slane %v2592_v45, 3  ;;  %v502_v7 = vld [vmem:[#allocation2 + $0x130] sm:$0x1] }
 0x144   : > { %v3536_v42 = vadd.f32 %v3535_v20, %v3447_v11  ;;  %v744_v20 = vrot.slane %v742_v48, 5  ;;  %v13727_v58 = vrot.slane %v2595_v0, 4  ;;  %v2603_v11 = vshll.u32 %v2079_v9, 16  ;;  %v12206_v0 = vld [vmem:[#allocation2 + $0x128] sm:$0xff]  }
 0x145   : > { %v862_v63 = vsel %vm826_vm7, %v13718_v43, %v861_v27  ;;  %v13735_v50 = vrot.slane %v1353_v51, 4  ;;  %v13737_v3 = vrot.slane %v1358_v5, 3  ;;  %v13739_v26 = vrot.slane %v2600_v4, 3  ;;  %v12356_v4 = vld [vmem:[#allocation2 + $0x124] sm:$0x8] }
 0x146   : > { %v13716_v29 = vadd.f32 %v13695_v35, %v3536_v42  ;;  %v3215_v2 = vpop.f32.mrf.mxu2  ;;  %v2564_v35 = vsel %vm875_vm3, %v2555_v46, %v2563_v57  ;;  %v1720_v30 = vld [vmem:[#allocation2 + $0x148] sm:$0x1]  ;;  %v745_v46 = vor.u32 %v744_v20, %v741_v44  ;;  %v369_v57 = vld [vmem:[#allocation2 + $0x160] sm:$0x1]  ;;  %v13741_v48 = vrot.slane %v1361_v56, 4 }
 0x147   : > { %v3216_v61 = vadd.f32 %v3215_v2, %v13421_v37  ;;  %v13731_v37 = vrot.slane %v1350_v15, 3  ;;  %v2024_v42 = vunpack.c.l.b16 %v1720_v30  ;;  %v1376_v54 = vshrl.u32 %v13718_v43, 16  ;;  %v11547_v15 = vld [vmem:[%s15996_s1 + $0x1c8] sm:$0xff] }
 0x148   : > { %16022 = vst [vmem:[#allocation15_spill] sm:$0xff] %v13716_v29  ;;  %v13721_v22 = vpop.f32.mrf.mxu0  ;;  %v1379_v9 = vshll.u32 %v13718_v43, 16  ;;  %v1384_v45 = vshrl.u32 %v862_v63, 16  ;;  %v806_v2 = vunpack.c.l.b16 %v502_v7  ;;  %v370_v51 = vsel %vm13265_vm6, 0, %v369_v57  ;;  %5156 = vmatpush.bf16.msra.mxu3 %v11547_v15  ;;  %v12718_v56 = vld [vmem:[#allocation2 + $0x124] sm:$0xf0]  }
 0x149   : > { %v3448_v10 = vpop.f32.mrf.mxu3  ;;  %v13729_v40 = vpop.f32.mrf.mxu1  ;;  %v2605_v44 = vrot.slane %v2603_v11, 4  ;;  %v1356_v43 = vor.u32 %v13735_v50, %v13731_v37  ;;  %v1367_v20 = vshrl.u32 %v745_v46, 16  ;;  %371 = vst [vmem:[#allocation2 + $0x160] sm:$0x1] %v370_v51  ;;  %v12825_v11 = vld [vmem:[#allocation2 + $0x140] sm:$0xff]  ;;  %v11765_v57 = vunpack.c.h.b16 %v12206_v0 }
 0x14a   : > { %v3449_v13 = vadd.f32 %v3448_v10, %v3216_v61  ;;  %v1370_v61 = vshll.u32 %v745_v46, 16  ;;  %v2080_v7 = vrot.slane %v12825_v11, 5  ;;  %v1386_v46 = vrot.slane %v1384_v45, 3 }
 0x14b   : > { %3257 = vmatmul.bf16.gmra.mxu2 %v2564_v35  ;;  %3579 = vmatmul.bf16.gmra.mxu0 %v1330_v59  ;;  %v747_v35 = vshrl.u32 %v12206_v0, 16  ;;  %v1369_v15 = vrot.slane %v1367_v20, 3  ;;  %v2606_v45 = vor.u32 %v2605_v44, %v13739_v26  ;;  %v863_v29 = vrot.slane %v12206_v0, 5 }
 0x14c   : > { %v3538_v6 = vadd.f32 %v3537_v33, %v3449_v13  ;;  %3668 = vmatmul.bf16.gmra.mxu1 %v1348_v28  ;;  %v11539_v33 = vld [vmem:[%s15996_s1 + $0x188] sm:$0xff]  ;;  %v750_v28 = vshll.u32 %v12206_v0, 16  ;;  %v1378_v13 = vrot.slane %v1376_v54, 3  ;;  %v1372_v51 = vrot.slane %v1370_v61, 4 }
 0x14d   : > { %5067 = vmatpush.bf16.msra.mxu2 %v11539_v33  ;;  %v822_v33 = vpack.c.b16 %v806_v2, %v806_v2  ;;  %v749_v11 = vrot.slane %v747_v35, 4  ;;  %v2638_v61 = vshll.u32 %v2080_v7, 16 }
 0x14e   : > { %3490 = vmatmul.bf16.gmra.mxu3 %v1322_v17  ;;  %v13753_v27 = vadd.f32 %v3626_v60, %v3538_v6  ;;  %v1387_v17 = vshll.u32 %v862_v63, 16  ;;  %v3218_v5 = vpop.f32.mrf.mxu2  ;;  %v2040_v60 = vpack.c.b16 %v2024_v42, %v2024_v42  ;;  %v1381_v63 = vrot.slane %v1379_v9, 4 }
 0x14f   : > { %v3219_v10 = vadd.f32 %v3218_v5, %v13435_v24  ;;  %v11555_v24 = vld [vmem:[%s15996_s1 + $0x208] sm:$0xff]  ;;  %v1364_v42 = vor.u32 %v13741_v48, %v13737_v3  ;;  %v12357_v5 = vor.u32 %v12718_v56, %v12356_v4  ;;  %v752_v41 = vrot.slane %v750_v28, 5 }
 0x150   : > { %16023 = vst [vmem:[#allocation16_spill] sm:$0xff] %v13753_v27  ;;  %v3542_v30 = vpop.f32.mrf.mxu0  ;;  %v1389_v6 = vrot.slane %v1387_v17, 4  ;;  %v2081_v9 = vrot.slane %v2040_v60, 5  ;;  %5245 = vmatpush.bf16.msra.mxu0 %v11555_v24  ;;  %v1382_v17 = vor.u32 %v1381_v63, %v1378_v13  ;;  %v864_v3 = vrot.slane %v822_v33, 5  ;;  %v1721_v24 = vld [vmem:[#allocation2 + $0x160] sm:$0x1] }
 0x151   : > { %v3451_v59 = vpop.f32.mrf.mxu3  ;;  %v3631_v50 = vpop.f32.mrf.mxu1  ;;  %v1373_v20 = vor.u32 %v1372_v51, %v1369_v15  ;;  %v1393_v4 = vshrl.u32 %v12357_v5, 16  ;;  %v1396_v35 = vshll.u32 %v12357_v5, 16  ;;  %v753_v26 = vor.u32 %v752_v41, %v749_v11  ;;  %v11592_v41 = vld [vmem:[%s15998_s3 + $0xf0] sm:$0xff]  ;;  %v503_v5 = vld [vmem:[#allocation2 + $0x148] sm:$0x1] }
 0x152   : > { %v3452_v37 = vadd.f32 %v3451_v59, %v3219_v10  ;;  %v2635_v10 = vshrl.u32 %v2080_v7, 16  ;;  %v627_v59 = vpack.c.b16 %v11765_v57, %v11765_v57  ;;  %v1390_v2 = vor.u32 %v1389_v6, %v1386_v46  ;;  %8184 = vmatpush.bf16.msra.mxu1 %v11592_v41 }
 0x153   : > { %v2082_v56 = vsel %vm826_vm7, %v2080_v7, %v2081_v9  ;;  %v1365_v0 = vsel %vm875_vm3, %v1356_v43, %v1364_v42  ;;  %v865_v46 = vsel %vm826_vm7, %v863_v29, %v864_v3  ;;  %v13790_v43 = vrot.slane %v1393_v4, 3  ;;  %v372_v3 = vld [vmem:[#allocation2 + $0x178] sm:$0x1]  ;;  %v12360_v4 = vld [vmem:[#allocation2 + $0x13c] sm:$0x8] }
 0x154   : > { %v3541_v54 = vadd.f32 %v13721_v22, %v3452_v37  ;;  %v13779_v13 = vrot.slane %v2635_v10, 3  ;;  %v1401_v63 = vshrl.u32 %v627_v59, 16  ;;  %v1404_v7 = vshll.u32 %v627_v59, 16 }
 0x155   : > { %v2646_v6 = vshll.u32 %v2082_v56, 16  ;;  %v13792_v42 = vrot.slane %v1396_v35, 4  ;;  %v1410_v15 = vshrl.u32 %v753_v26, 16  ;;  %v1413_v51 = vshll.u32 %v753_v26, 16  ;;  %v12826_v26 = vld [vmem:[#allocation2 + $0x158] sm:$0xff] }
 0x156   : > { %v13768_v27 = vadd.f32 %v13729_v40, %v3541_v54  ;;  %v3220_v48 = vpop.f32.mrf.mxu2  ;;  %v16024_v40 = vor.u32 %v13727_v58, %v13725_v8  ;;  %v13788_v8 = vrot.slane %v2638_v61, 4  ;;  %v2643_v58 = vshrl.u32 %v2082_v56, 16 }
 0x157   : > { %v3221_v22 = vadd.f32 %v3220_v48, %v13453_v62  ;;  %v1391_v62 = vsel %vm875_vm3, %v1382_v17, %v1390_v2  ;;  %v13794_v54 = vrot.slane %v1401_v63, 3  ;;  %v1419_v9 = vshrl.u32 %v863_v29, 16 }
 0x158   : > { %v13772_v44 = vpop.f32.mrf.mxu0  ;;  %v2607_v28 = vsel %vm875_vm3, %v16024_v40, %v2606_v45  ;;  %v1422_v11 = vshll.u32 %v863_v29, 16  ;;  %v1427_v45 = vshrl.u32 %v865_v46, 16  ;;  %v1406_v10 = vrot.slane %v1404_v7, 4 }
 0x159   : > { %v3453_v60 = vpop.f32.mrf.mxu3  ;;  %v13781_v37 = vpop.f32.mrf.mxu1  ;;  %v1430_v59 = vshll.u32 %v865_v46, 16  ;;  %v2025_v2 = vunpack.c.l.b16 %v1721_v24  ;;  %v2641_v48 = vor.u32 %v13788_v8, %v13779_v13  ;;  %v2648_v61 = vrot.slane %v2646_v6, 4 }
 0x15a   : > { %v3454_v57 = vadd.f32 %v3453_v60, %v3221_v22  ;;  %v12719_v22 = vld [vmem:[#allocation2 + $0x13c] sm:$0xf0]   ;;  %v807_v60 = vunpack.c.l.b16 %v503_v5  ;;  %v1412_v35 = vrot.slane %v1410_v15, 3  ;;  %v2083_v40 = vrot.slane %v12826_v26, 5 }
 0x15b   : > { %3262 = vmatmul.bf16.gmra.mxu2 %v2607_v28  ;;  %3584 = vmatmul.bf16.gmra.mxu0 %v1373_v20  ;;  %v2645_v20 = vrot.slane %v2643_v58, 3  ;;  %v12207_v28 = vld [vmem:[#allocation2 + $0x140] sm:$0xff]   ;;  %v1421_v63 = vrot.slane %v1419_v9, 3  ;;  %v373_v13 = vsel %vm13265_vm6, 0, %v372_v3  ;;  %v1432_v46 = vrot.slane %v1430_v59, 4 }
 0x15c   : > { %v3543_v33 = vadd.f32 %v3542_v30, %v3454_v57  ;;  %3673 = vmatmul.bf16.gmra.mxu1 %v1391_v62  ;;  %v1424_v57 = vrot.slane %v1422_v11, 4  ;;  %v1429_v62 = vrot.slane %v1427_v45, 3  ;;  %v2041_v8 = vpack.c.b16 %v2025_v2, %v2025_v2  ;;  %374 = vst [vmem:[#allocation2 + $0x178] sm:$0x1] %v373_v13 }
 0x15d   : > { %v13803_v58 = vor.u32 %v12719_v22, %v12360_v4  ;;  %v755_v6 = vshrl.u32 %v12207_v28, 16  ;;  %v758_v24 = vshll.u32 %v12207_v28, 16  ;;  %v2681_v5 = vshll.u32 %v2083_v40, 16 }
 0x15e   : > { %3495 = vmatmul.bf16.gmra.mxu3 %v1365_v0  ;;  %v13796_v17 = vadd.f32 %v3631_v50, %v3543_v33  ;;  %v3223_v30 = vpop.f32.mrf.mxu2  ;;  %v1415_v50 = vrot.slane %v1413_v51, 4  ;;  %v823_v33 = vpack.c.b16 %v807_v60, %v807_v60  ;;  %v2678_v51 = vshrl.u32 %v2083_v40, 16 }
 0x15f   : > { %v3224_v56 = vadd.f32 %v3223_v30, %v13477_v53  ;;  %v1399_v53 = vor.u32 %v13792_v42, %v13790_v43  ;;  %v11769_v9 = vunpack.c.h.b16 %v12207_v28  ;;  %v2649_v11 = vor.u32 %v2648_v61, %v2645_v20 }
 0x160   : > { %v3547_v0 = vpop.f32.mrf.mxu0  ;;  %v1407_v45 = vor.u32 %v1406_v10, %v13794_v54  ;;  %v1416_v3 = vor.u32 %v1415_v50, %v1412_v35  ;;  %v1425_v59 = vor.u32 %v1424_v57, %v1421_v63  ;;  %v1433_v30 = vor.u32 %v1432_v46, %v1429_v62 }
 0x161   : > { %v3456_v29 = vpop.f32.mrf.mxu3  ;;  %v3636_v41 = vpop.f32.mrf.mxu1  ;;  %v2084_v4 = vrot.slane %v2041_v8, 5  ;;  %v1436_v43 = vshrl.u32 %v13803_v58, 16  ;;  %v757_v22 = vrot.slane %v755_v6, 4  ;;  %v760_v60 = vrot.slane %v758_v24, 5  ;;  %v504_v24 = vld [vmem:[#allocation2 + $0x160] sm:$0x1] }
 0x162   : > { %v3457_v7 = vadd.f32 %v3456_v29, %v3224_v56  ;;  %v866_v56 = vrot.slane %v12207_v28, 5  ;;  %v13814_v20 = vrot.slane %v2678_v51, 3  ;;  %v13816_v54 = vrot.slane %v2681_v5, 4  ;;  %v11538_v5 = vld [vmem:[%s15996_s1 + $0x180] sm:$0xff] }
 0x163   : > { %v629_v10 = vpack.c.b16 %v11769_v9, %v11769_v9  ;;  %v1408_v50 = vsel %vm875_vm3, %v1399_v53, %v1407_v45  ;;  %v1434_v28 = vsel %vm875_vm3, %v1425_v59, %v1433_v30  ;;  %v2085_v57 = vsel %vm826_vm7, %v2083_v40, %v2084_v4  ;;  %v1722_v46 = vld [vmem:[#allocation2 + $0x178] sm:$0x1]  ;;  %5068 = vmatpush.bf16.msra.mxu2 %v11538_v5 }
 0x164   : > { %v3546_v15 = vadd.f32 %v13772_v44, %v3457_v7  ;;  %v867_v44 = vrot.slane %v823_v33, 5  ;;  %v1439_v62 = vshll.u32 %v13803_v58, 16  ;;  %v761_v13 = vor.u32 %v760_v60, %v757_v22  ;;  %v375_v33 = vld [vmem:[#allocation2 + $0x190] sm:$0x1] }
 0x165   : > { %v1444_v53 = vshrl.u32 %v629_v10, 16  ;;  %v1447_v6 = vshll.u32 %v629_v10, 16  ;;  %v2686_v40 = vshrl.u32 %v2085_v57, 16  ;;  %v1462_v51 = vshrl.u32 %v866_v56, 16 }
 0x166   : > { %v13810_v2 = vadd.f32 %v13781_v37, %v3546_v15  ;;  %v3225_v42 = vpop.f32.mrf.mxu2  ;;  %v2650_v37 = vsel %vm875_vm3, %v2641_v48, %v2649_v11  ;;  %v868_v7 = vsel %vm826_vm7, %v866_v56, %v867_v44  ;;  %v2689_v15 = vshll.u32 %v2085_v57, 16 }
 0x167   : > { %v3226_v29 = vadd.f32 %v3225_v42, %v13493_v31  ;;  %v13826_v31 = vrot.slane %v1436_v43, 3  ;;  %v1465_v58 = vshll.u32 %v866_v56, 16  ;;  %v1470_v11 = vshrl.u32 %v868_v7, 16 }
 0x168   : > { %v13818_v61 = vpop.f32.mrf.mxu0  ;;  %v1473_v45 = vshll.u32 %v868_v7, 16  ;;  %v1453_v30 = vshrl.u32 %v761_v13, 16  ;;  %v1456_v4 = vshll.u32 %v761_v13, 16  ;;  %v808_v43 = vunpack.c.l.b16 %v504_v24 }
 0x169   : > { %v3458_v26 = vpop.f32.mrf.mxu3  ;;  %v13822_v63 = vpop.f32.mrf.mxu1  ;;  %v376_v42 = vsel %vm13265_vm6, 0, %v375_v33  ;;  %v1441_v56 = vrot.slane %v1439_v62, 4  ;;  %v1446_v44 = vrot.slane %v1444_v53, 3  ;;  %v2688_v10 = vrot.slane %v2686_v40, 3  ;;  %v12364_v53 = vld [vmem:[#allocation2 + $0x154] sm:$0x8] }
 0x16a   : > { %v3459_v35 = vadd.f32 %v3458_v26, %v3226_v29  ;;  %v1449_v29 = vrot.slane %v1447_v6, 4  ;;  %377 = vst [vmem:[#allocation2 + $0x190] sm:$0x1] %v376_v42  ;;  %v1472_v13 = vrot.slane %v1470_v11, 3  ;;  %v1475_v7 = vrot.slane %v1473_v45, 4 }
 0x16b   : > { %3267 = vmatmul.bf16.gmra.mxu2 %v2650_v37  ;;  %3589 = vmatmul.bf16.gmra.mxu0 %v1416_v3  ;;  %v2026_v3 = vunpack.c.l.b16 %v1722_v46  ;;  %v2691_v37 = vrot.slane %v2689_v15, 4  ;;  %v1455_v62 = vrot.slane %v1453_v30, 3  ;;  %v12720_v6 = vld [vmem:[#allocation2 + $0x154] sm:$0xf0]   ;;  %v824_v33 = vpack.c.b16 %v808_v43, %v808_v43  ;;  %v12827_v15 = vld [vmem:[#allocation2 + $0x170] sm:$0xff] }
 0x16c   : > { %v3548_v48 = vadd.f32 %v3547_v0, %v3459_v35  ;;  %3678 = vmatmul.bf16.gmra.mxu1 %v1434_v28  ;;  %v11546_v0 = vld [vmem:[%s15996_s1 + $0x1c0] sm:$0xff]  ;;  %v1464_v35 = vrot.slane %v1462_v51, 3  ;;  %v2086_v51 = vrot.slane %v12827_v15, 5  ;;  %v1442_v11 = vor.u32 %v1441_v56, %v13826_v31 }
 0x16d   : > { %5157 = vmatpush.bf16.msra.mxu3 %v11546_v0  ;;  %v2042_v46 = vpack.c.b16 %v2026_v3, %v2026_v3  ;;  %v2692_v0 = vor.u32 %v2691_v37, %v2688_v10  ;;  %v1450_v45 = vor.u32 %v1449_v29, %v1446_v44  ;;  %v1476_v30 = vor.u32 %v1475_v7, %v1472_v13  ;;  %v11591_v7 = vld [vmem:[%s15998_s3 + $0xe8] sm:$0xff] }
 0x16e   : > { %3500 = vmatmul.bf16.gmra.mxu3 %v1408_v50  ;;  %v13838_v9 = vadd.f32 %v3636_v41, %v3548_v48  ;;  %v3228_v59 = vpop.f32.mrf.mxu2  ;;  %v12208_v41 = vld [vmem:[#allocation2 + $0x158] sm:$0xff]   ;;  %v1467_v50 = vrot.slane %v1465_v58, 4  ;;  %v1458_v48 = vrot.slane %v1456_v4, 4  ;;  %v12365_v42 = vor.u32 %v12720_v6, %v12364_v53  ;;  %8185 = vmatpush.bf16.msra.mxu1 %v11591_v7  ;;  %v12368_v7 = vld [vmem:[#allocation2 + $0x16c] sm:$0x8] }
 0x16f   : > { %v3229_v22 = vadd.f32 %v3228_v59, %v13510_v16  ;;  %v11554_v16 = vld [vmem:[%s15996_s1 + $0x200] sm:$0xff]  ;;  %v11773_v24 = vunpack.c.h.b16 %v12208_v41  ;;  %v763_v58 = vshrl.u32 %v12208_v41, 16  ;;  %v766_v5 = vshll.u32 %v12208_v41, 16 }
 0x170   : > { %v3552_v26 = vpop.f32.mrf.mxu0  ;;  %5246 = vmatpush.bf16.msra.mxu0 %v11554_v16  ;;  %v1468_v3 = vor.u32 %v1467_v50, %v1464_v35  ;;  %v2087_v4 = vrot.slane %v2042_v46, 5  ;;  %v1459_v43 = vor.u32 %v1458_v48, %v1455_v62  ;;  %v2721_v16 = vshrl.u32 %v2086_v51, 16 }
 0x171   : > { %v3461_v60 = vpop.f32.mrf.mxu3  ;;  %v13843_v57 = vpop.f32.mrf.mxu1  ;;  %v765_v10 = vrot.slane %v763_v58, 4  ;;  %v768_v37 = vrot.slane %v766_v5, 5  ;;  %v16025_v56 = vor.u32 %v13816_v54, %v13814_v20  ;;  %v1451_v44 = vsel %vm875_vm3, %v1442_v11, %v1450_v45  ;;  %v1723_v48 = vld [vmem:[#allocation2 + $0x190] sm:$0x1]  ;;  %v505_v58 = vld [vmem:[#allocation2 + $0x178] sm:$0x1] }
 0x172   : > { %v3462_v28 = vadd.f32 %v3461_v60, %v3229_v22  ;;  %v631_v60 = vpack.c.b16 %v11773_v24, %v11773_v24  ;;  %v2724_v29 = vshll.u32 %v2086_v51, 16  ;;  %v1479_v13 = vshrl.u32 %v12365_v42, 16 }
 0x173   : > { %v1482_v46 = vshll.u32 %v12365_v42, 16  ;;  %v13869_v53 = vrot.slane %v2721_v16, 3  ;;  %v769_v6 = vor.u32 %v768_v37, %v765_v10  ;;  %v2027_v45 = vunpack.c.l.b16 %v1723_v48 }
 0x174   : > { %v3551_v40 = vadd.f32 %v13818_v61, %v3462_v28  ;;  %v869_v61 = vrot.slane %v12208_v41, 5  ;;  %v870_v28 = vrot.slane %v824_v33, 5  ;;  %v1477_v41 = vsel %vm875_vm3, %v1468_v3, %v1476_v30 }
 0x175   : > { %v1487_v62 = vshrl.u32 %v631_v60, 16  ;;  %v1490_v20 = vshll.u32 %v631_v60, 16  ;;  %v2726_v5 = vrot.slane %v2724_v29, 4  ;;  %v1481_v30 = vrot.slane %v1479_v13, 3 }
 0x176   : > { %v13851_v59 = vadd.f32 %v13822_v63, %v3551_v40  ;;  %v3230_v22 = vpop.f32.mrf.mxu2  ;;  %v2693_v63 = vsel %vm875_vm3, %v16025_v56, %v2692_v0  ;;  %v871_v54 = vsel %vm826_vm7, %v869_v61, %v870_v28  ;;  %v1505_v40 = vshrl.u32 %v869_v61, 16 }
 0x177   : > { %v3231_v15 = vadd.f32 %v3230_v22, %v13525_v38  ;;  %v2088_v38 = vsel %vm826_vm7, %v2086_v51, %v2087_v4  ;;  %v1508_v51 = vshll.u32 %v869_v61, 16  ;;  %v1513_v0 = vshrl.u32 %v871_v54, 16 }
 0x178   : > { %v3555_v31 = vpop.f32.mrf.mxu0  ;;  %v2729_v24 = vshrl.u32 %v2088_v38, 16  ;;  %v2732_v33 = vshll.u32 %v2088_v38, 16  ;;  %v1516_v11 = vshll.u32 %v871_v54, 16  ;;  %v1484_v4 = vrot.slane %v1482_v46, 4 }
 0x179   : > { %v3463_v8 = vpop.f32.mrf.mxu3  ;;  %v13859_v50 = vpop.f32.mrf.mxu1  ;;  %v1492_v42 = vrot.slane %v1490_v20, 4  ;;  %v1496_v60 = vshrl.u32 %v769_v6, 16  ;;  %v1499_v28 = vshll.u32 %v769_v6, 16  ;;  %v809_v16 = vunpack.c.l.b16 %v505_v58  ;;  %v12721_v6 = vld [vmem:[#allocation2 + $0x16c] sm:$0xf0]   ;;  %v12828_v58 = vld [vmem:[#allocation2 + $0x188] sm:$0xff] }
 0x17a   : > { %v3464_v35 = vadd.f32 %v3463_v8, %v3231_v15  ;;  %v12209_v15 = vld [vmem:[#allocation2 + $0x170] sm:$0xff]   ;;  %v2731_v61 = vrot.slane %v2729_v24, 3  ;;  %v2734_v37 = vrot.slane %v2732_v33, 4  ;;  %v1507_v56 = vrot.slane %v1505_v40, 3 }
 0x17b   : > { %3272 = vmatmul.bf16.gmra.mxu2 %v2693_v63  ;;  %3594 = vmatmul.bf16.gmra.mxu0 %v1459_v43  ;;  %v1510_v63 = vrot.slane %v1508_v51, 4  ;;  %v2043_v38 = vpack.c.b16 %v2027_v45, %v2027_v45  ;;  %v2727_v13 = vor.u32 %v2726_v5, %v13869_v53  ;;  %v771_v46 = vshrl.u32 %v12209_v15, 16 }
 0x17c   : > { %v13867_v8 = vadd.f32 %v3552_v26, %v3464_v35  ;;  %3683 = vmatmul.bf16.gmra.mxu1 %v1477_v41  ;;  %v1489_v26 = vrot.slane %v1487_v62, 3  ;;  %v1515_v35 = vrot.slane %v1513_v0, 3  ;;  %v1518_v41 = vrot.slane %v1516_v11, 4 }
 0x17d   : > { %v825_v62 = vpack.c.b16 %v809_v16, %v809_v16  ;;  %v1498_v54 = vrot.slane %v1496_v60, 3  ;;  %v1501_v48 = vrot.slane %v1499_v28, 4  ;;  %v774_v24 = vshll.u32 %v12209_v15, 16 }
 0x17e   : > { %3505 = vmatmul.bf16.gmra.mxu3 %v1451_v44  ;;  %v3233_v3 = vpop.f32.mrf.mxu2  ;;  %v2735_v33 = vor.u32 %v2734_v37, %v2731_v61  ;;  %v1485_v40 = vor.u32 %v1484_v4, %v1481_v30  ;;  %v1493_v51 = vor.u32 %v1492_v42, %v1489_v26  ;;  %v1511_v11 = vor.u32 %v1510_v63, %v1507_v56 }
 0x17f   : > { %v3234_v22 = vadd.f32 %v3233_v3, %v13546_v55  ;;  %v11777_v55 = vunpack.c.h.b16 %v12209_v15  ;;  %v2089_v3 = vrot.slane %v12828_v58, 5  ;;  %v1519_v45 = vor.u32 %v1518_v41, %v1515_v35 }
 0x180   : > { %v3557_v10 = vpop.f32.mrf.mxu0  ;;  %v2090_v53 = vrot.slane %v2043_v38, 5  ;;  %v872_v16 = vrot.slane %v12209_v15, 5  ;;  %v773_v61 = vrot.slane %v771_v46, 4  ;;  %v776_v30 = vrot.slane %v774_v24, 5 }
 0x181   : > { %v3466_v43 = vpop.f32.mrf.mxu3  ;;  %v13872_v29 = vpop.f32.mrf.mxu1  ;;  %v2736_v26 = vsel %vm875_vm3, %v2727_v13, %v2735_v33  ;;  %v2764_v42 = vshrl.u32 %v2089_v3, 16  ;;  %v1520_v63 = vsel %vm875_vm3, %v1511_v11, %v1519_v45  ;;  %v2767_v15 = vshll.u32 %v2089_v3, 16 }
 0x182   : > { %v3467_v44 = vadd.f32 %v3466_v43, %v3234_v22  ;;  %v12369_v22 = vor.u32 %v12721_v6, %v12368_v7  ;;  %v633_v43 = vpack.c.b16 %v11777_v55, %v11777_v55  ;;  %v2091_v35 = vsel %vm826_vm7, %v2089_v3, %v2090_v53  ;;  %v3748_v55 = vld [vmem:[#allocation2 + $0x40] sm:$0x1] }
 0x183   : > { %v1551_v6 = vshll.u32 %v872_v16, 16  ;;  %v2766_v24 = vrot.slane %v2764_v42, 3  ;;  %v2769_v3 = vrot.slane %v2767_v15, 4 }
 0x184   : > { %v3556_v20 = vadd.f32 %v3555_v31, %v3467_v44  ;;  %v873_v31 = vrot.slane %v825_v62, 5  ;;  %v1502_v44 = vor.u32 %v1501_v48, %v1498_v54  ;;  %v1522_v41 = vshrl.u32 %v12369_v22, 16 }
 0x185   : > { %v1525_v38 = vshll.u32 %v12369_v22, 16  ;;  %v1533_v13 = vshll.u32 %v633_v43, 16  ;;  %v777_v62 = vor.u32 %v776_v30, %v773_v61  ;;  %v2775_v54 = vshll.u32 %v2091_v35, 16 }
 0x186   : > { %v13876_v0 = vadd.f32 %v13859_v50, %v3556_v20  ;;  %v3235_v5 = vpop.f32.mrf.mxu2  ;;  %v1494_v50 = vsel %vm875_vm3, %v1485_v40, %v1493_v51  ;;  %v874_v7 = vsel %vm826_vm7, %v872_v16, %v873_v31  ;;  %v2772_v20 = vshrl.u32 %v2091_v35, 16 }
 0x187   : > { %v3236_v60 = vadd.f32 %v3235_v5, %v13561_v47  ;;  %v1530_v47 = vshrl.u32 %v633_v43, 16  ;;  %v1548_v48 = vshrl.u32 %v872_v16, 16  ;;  %v1556_v33 = vshrl.u32 %v874_v7, 16 }
 0x188   : > { %v3560_v4 = vpop.f32.mrf.mxu0  ;;  %v1559_v40 = vshll.u32 %v874_v7, 16  ;;  %v4052_v51 = vunpack.c.l.b16 %v3748_v55  ;;  %v1524_v11 = vrot.slane %v1522_v41, 3  ;;  %v1527_v45 = vrot.slane %v1525_v38, 4  ;;  %v12436_v55 = vld [vmem:[#allocation2 + $0x34] sm:$0x8] }
 0x189   : > { %v3468_v28 = vpop.f32.mrf.mxu3  ;;  %v3649_v56 = vpop.f32.mrf.mxu1  ;;  %v1532_v53 = vrot.slane %v1530_v47, 3  ;;  %v1535_v22 = vrot.slane %v1533_v13, 4  ;;  %v1539_v43 = vshrl.u32 %v777_v62, 16  ;;  %v1542_v31 = vshll.u32 %v777_v62, 16  ;;  %v12738_v13 = vld [vmem:[#allocation2 + $0x34] sm:$0xf0]  }
 0x18a   : > { %v3469_v37 = vadd.f32 %v3468_v28, %v3236_v60  ;;  %v12226_v60 = vld [vmem:[#allocation2 + $0x38] sm:$0xff]   ;;  %v2777_v61 = vrot.slane %v2775_v54, 4  ;;  %v1550_v16 = vrot.slane %v1548_v48, 3  ;;  %v1553_v30 = vrot.slane %v1551_v6, 4 }
 0x18b   : > { %3277 = vmatmul.bf16.gmra.mxu2 %v2736_v26  ;;  %3599 = vmatmul.bf16.gmra.mxu0 %v1502_v44  ;;  %v2774_v44 = vrot.slane %v2772_v20, 3  ;;  %v1558_v42 = vrot.slane %v1556_v33, 3  ;;  %v2770_v35 = vor.u32 %v2769_v3, %v2766_v24  ;;  %v1528_v15 = vor.u32 %v1527_v45, %v1524_v11 }
 0x18c   : > { %v13884_v46 = vadd.f32 %v3557_v10, %v3469_v37  ;;  %3688 = vmatmul.bf16.gmra.mxu1 %v1520_v63  ;;  %v1561_v37 = vrot.slane %v1559_v40, 4  ;;  %v4068_v63 = vpack.c.b16 %v4052_v51, %v4052_v51  ;;  %v11845_v41 = vunpack.c.h.b16 %v12226_v60 }
 0x18d   : > { %v1536_v38 = vor.u32 %v1535_v22, %v1532_v53  ;;  %v1541_v47 = vrot.slane %v1539_v43, 3  ;;  %v1544_v7 = vrot.slane %v1542_v31, 4  ;;  %v2778_v62 = vor.u32 %v2777_v61, %v2774_v44  ;;  %v11590_v61 = vld [vmem:[%s15998_s3 + $0xe0] sm:$0xff] }
 0x18e   : > { %3510 = vmatmul.bf16.gmra.mxu3 %v1494_v50  ;;  %v3238_v58 = vpop.f32.mrf.mxu2  ;;  %v1554_v20 = vor.u32 %v1553_v30, %v1550_v16  ;;  %v3909_v54 = vshrl.u32 %v12226_v60, 16  ;;  %v3912_v48 = vshll.u32 %v12226_v60, 16  ;;  %v4085_v33 = vrot.slane %v4068_v63, 5  ;;  %8186 = vmatpush.bf16.msra.mxu1 %v11590_v61 }
 0x18f   : > { %v3239_v10 = vadd.f32 %v3238_v58, %v13589_v14  ;;  %v1562_v58 = vor.u32 %v1561_v37, %v1558_v42  ;;  %v12437_v51 = vor.u32 %v12738_v13, %v12436_v55  ;;  %v3861_v24 = vpack.c.b16 %v11845_v41, %v11845_v41 }
 0x190   : > { %v3562_v28 = vpop.f32.mrf.mxu0  ;;  %v1545_v11 = vor.u32 %v1544_v7, %v1541_v47  ;;  %v2779_v53 = vsel %vm875_vm3, %v2770_v35, %v2778_v62  ;;  %v3914_v22 = vrot.slane %v3912_v48, 5  ;;  %v1537_v31 = vsel %vm875_vm3, %v1528_v15, %v1536_v38 }
 0x191   : > { %v3471_v5 = vpop.f32.mrf.mxu3  ;;  %v13887_v50 = vpop.f32.mrf.mxu1  ;;  %v1563_v44 = vsel %vm875_vm3, %v1554_v20, %v1562_v58  ;;  %v4136_v16 = vshll.u32 %v12437_v51, 16  ;;  %v4141_v30 = vshrl.u32 %v3861_v24, 16  ;;  %v4144_v37 = vshll.u32 %v3861_v24, 16  ;;  %v12227_v58 = vld [vmem:[#allocation2 + $0x50] sm:$0xff]  }
 0x192   : > { %v3472_v26 = vadd.f32 %v3471_v5, %v3239_v10  ;;  %v4084_v10 = vrot.slane %v12226_v60, 5  ;;  %v3911_v5 = vrot.slane %v3909_v54, 4 }
 0x193   : > { %v4138_v55 = vrot.slane %v4136_v16, 4  ;;  %v4143_v13 = vrot.slane %v4141_v30, 3  ;;  %v4146_v54 = vrot.slane %v4144_v37, 4  ;;  %v12440_v16 = vld [vmem:[#allocation2 + $0x4c] sm:$0x8]  ;;  %v4087_v37 = vrot.slane %v12227_v58, 5 }
 0x194   : > { %v3561_v14 = vadd.f32 %v3560_v4, %v3472_v26  ;;  %v4086_v60 = vsel %vm826_vm7, %v4084_v10, %v4085_v33  ;;  %v3749_v26 = vld [vmem:[#allocation2 + $0x58] sm:$0x1]  ;;  %v4159_v63 = vshrl.u32 %v4084_v10, 16  ;;  %v4162_v35 = vshll.u32 %v4084_v10, 16  ;;  %v12739_v30 = vld [vmem:[#allocation2 + $0x4c] sm:$0xf0]  }
 0x195   : > { %v3915_v15 = vor.u32 %v3914_v22, %v3911_v5  ;;  %v4167_v41 = vshrl.u32 %v4086_v60, 16  ;;  %v4053_v38 = vunpack.c.l.b16 %v3749_v26  ;;  %v3917_v5 = vshrl.u32 %v12227_v58, 16 }
 0x196   : > { %v13889_v6 = vadd.f32 %v3649_v56, %v3561_v14  ;;  %v3240_v40 = vpop.f32.mrf.mxu2  ;;  %v4170_v14 = vshll.u32 %v4086_v60, 16  ;;  %v4164_v48 = vrot.slane %v4162_v35, 4  ;;  %v3920_v22 = vshll.u32 %v12227_v58, 16 }
 0x197   : > { %v3241_v3 = vadd.f32 %v3240_v40, %v13614_v23  ;;  %v4133_v23 = vshrl.u32 %v12437_v51, 16  ;;  %v4150_v10 = vshrl.u32 %v3915_v15, 16  ;;  %v4153_v40 = vshll.u32 %v3915_v15, 16 }
 0x198   : > { %v3565_v45 = vpop.f32.mrf.mxu0  ;;  %v4169_v51 = vrot.slane %v4167_v41, 3  ;;  %v4172_v24 = vrot.slane %v4170_v14, 4  ;;  %v3919_v41 = vrot.slane %v3917_v5, 4  ;;  %v3922_v14 = vrot.slane %v3920_v22, 5 }
 0x199   : > { %v3473_v4 = vpop.f32.mrf.mxu3  ;;  %v3654_v56 = vpop.f32.mrf.mxu1  ;;  %v4135_v7 = vrot.slane %v4133_v23, 3  ;;  %v4155_v60 = vrot.slane %v4153_v40, 4 }
 0x19a   : > { %v3474_v43 = vadd.f32 %v3473_v4, %v3241_v3  ;;  %v4173_v23 = vor.u32 %v4172_v24, %v4169_v51  ;;  %v4202_v24 = vshrl.u32 %v4087_v37, 16 }
 0x19b   : > { %3282 = vmatmul.bf16.gmra.mxu2 %v2779_v53  ;;  %3604 = vmatmul.bf16.gmra.mxu0 %v1545_v11  ;;  %v4069_v11 = vpack.c.b16 %v4053_v38, %v4053_v38  ;;  %v11849_v53 = vunpack.c.h.b16 %v12227_v58  ;;  %v3923_v58 = vor.u32 %v3922_v14, %v3919_v41 }
 0x19c   : > { %v13899_v42 = vadd.f32 %v3562_v28, %v3474_v43  ;;  %3693 = vmatmul.bf16.gmra.mxu1 %v1563_v44  ;;  %v4161_v28 = vrot.slane %v4159_v63, 3  ;;  %v4152_v44 = vrot.slane %v4150_v10, 3  ;;  %v3750_v10 = vld [vmem:[#allocation2 + $0x70] sm:$0x1] }
 0x19d   : > { %v4088_v63 = vrot.slane %v4069_v11, 5  ;;  %v3863_v15 = vpack.c.b16 %v11849_v53, %v11849_v53  ;;  %v4054_v5 = vunpack.c.l.b16 %v3750_v10 }
 0x19e   : > { %3515 = vmatmul.bf16.gmra.mxu3 %v1537_v31  ;;  %v3243_v47 = vpop.f32.mrf.mxu2  ;;  %v4139_v31 = vor.u32 %v4138_v55, %v4135_v7  ;;  %v4165_v61 = vor.u32 %v4164_v48, %v4161_v28 }
 0x19f   : > { %v3244_v62 = vadd.f32 %v3243_v47, %v13640_v19  ;;  %v4147_v19 = vor.u32 %v4146_v54, %v4143_v13  ;;  %v4156_v13 = vor.u32 %v4155_v60, %v4152_v44  ;;  %v4184_v28 = vshrl.u32 %v3863_v15, 16 }
 0x1a0   : > { %v3567_v33 = vpop.f32.mrf.mxu0  ;;  %v4187_v48 = vshll.u32 %v3863_v15, 16 }
 0x1a1   : > { %v3476_v20 = vpop.f32.mrf.mxu3  ;;  %v13902_v4 = vpop.f32.mrf.mxu1  ;;  %v4148_v55 = vsel %vm875_vm3, %v4139_v31, %v4147_v19  ;;  %v4193_v19 = vshrl.u32 %v3923_v58, 16 }
 0x1a2   : > { %v3477_v3 = vadd.f32 %v3476_v20, %v3244_v62  ;;  %v4174_v62 = vsel %vm875_vm3, %v4165_v61, %v4173_v23  ;;  %v4189_v31 = vrot.slane %v4187_v48, 4 }
 0x1a4   : > { %v3566_v43 = vadd.f32 %v3565_v45, %v3477_v3  ;;  %v12441_v45 = vor.u32 %v12739_v30, %v12440_v16  ;;  %v4205_v3 = vshll.u32 %v4087_v37, 16  ;;  %v4196_v16 = vshll.u32 %v3923_v58, 16 }
 0x1a6   : > { %v13904_v26 = vadd.f32 %v3654_v56, %v3566_v43  ;;  %v3245_v35 = vpop.f32.mrf.mxu2  ;;  %v4089_v56 = vsel %vm826_vm7, %v4087_v37, %v4088_v63  ;;  %v4179_v51 = vshll.u32 %v12441_v45, 16  ;;  %v4186_v43 = vrot.slane %v4184_v28, 3 }
 0x1a7   : > { %v3246_v38 = vadd.f32 %v3245_v35, %v13655_v25  ;;  %v4176_v25 = vshrl.u32 %v12441_v45, 16  ;;  %v4210_v11 = vshrl.u32 %v4089_v56, 16  ;;  %v4213_v53 = vshll.u32 %v4089_v56, 16 }
 0x1a8   : > { %v3570_v7 = vpop.f32.mrf.mxu0  ;;  %v4181_v23 = vrot.slane %v4179_v51, 4  ;;  %v4204_v63 = vrot.slane %v4202_v24, 3  ;;  %v4207_v35 = vrot.slane %v4205_v3, 4  ;;  %v4198_v48 = vrot.slane %v4196_v16, 4  ;;  %v11589_v16 = vld [vmem:[%s15998_s3 + $0xd8] sm:$0xff] }
 0x1a9   : > { %v3478_v47 = vpop.f32.mrf.mxu3  ;;  %v3659_v54 = vpop.f32.mrf.mxu1  ;;  %v4178_v61 = vrot.slane %v4176_v25, 3  ;;  %v4212_v15 = vrot.slane %v4210_v11, 3  ;;  %v4215_v41 = vrot.slane %v4213_v53, 4  ;;  %8187 = vmatpush.bf16.msra.mxu1 %v11589_v16  ;;  %v12741_v16 = vld [vmem:[#allocation2 + $0x7c] sm:$0xf0]  }
 0x1aa   : > { %v3479_v20 = vadd.f32 %v3478_v47, %v3246_v38  ;;  %v4070_v38 = vpack.c.b16 %v4054_v5, %v4054_v5  ;;  %v4208_v58 = vor.u32 %v4207_v35, %v4204_v63  ;;  %v3751_v35 = vld [vmem:[#allocation2 + $0x88] sm:$0x1] }
 0x1ab   : > { %5069 = vmatmul.bf16.vlgmr.msra.gmra.mxu2 %v4148_v55  ;;  %5247 = vmatmul.bf16.vlgmr.msra.gmra.mxu0 %v4174_v62  ;;  %v4195_v62 = vrot.slane %v4193_v19, 3  ;;  %v4182_v28 = vor.u32 %v4181_v23, %v4178_v61  ;;  %v4216_v10 = vor.u32 %v4215_v41, %v4212_v15 }
 0x1ac   : > { %v13910_v40 = vadd.f32 %v3567_v33, %v3479_v20  ;;  %v12228_v33 = vld [vmem:[#allocation2 + $0x68] sm:$0xff]   ;;  %v4091_v24 = vrot.slane %v4070_v38, 5 }
 0x1ad   : > { %v3925_v47 = vshrl.u32 %v12228_v33, 16  ;;  %v3928_v45 = vshll.u32 %v12228_v33, 16  ;;  %v12740_v20 = vld [vmem:[#allocation2 + $0x64] sm:$0xf0]   ;;  %v11853_v56 = vunpack.c.h.b16 %v12228_v33  ;;  %v4090_v51 = vrot.slane %v12228_v33, 5 }
 0x1ae   : > { %5158 = vmatmul.bf16.vlgmr.msra.gmra.mxu3 %v4156_v13  ;;  %v3248_v22 = vpop.f32.mrf.mxu2  ;;  %v4190_v13 = vor.u32 %v4189_v31, %v4186_v43 }
 0x1af   : > { %v3249_v44 = vadd.f32 %v3248_v22, %v13383_v1  ;;  %v12444_v1 = vld [vmem:[#allocation2 + $0x64] sm:$0x8]  ;;  %v3927_v53 = vrot.slane %v3925_v47, 4  ;;  %v3930_v5 = vrot.slane %v3928_v45, 5  ;;  %v3865_v43 = vpack.c.b16 %v11853_v56, %v11853_v56 }
 0x1b0   : > { %v3572_v30 = vpop.f32.mrf.mxu0  ;;  %v12445_v11 = vor.u32 %v12740_v20, %v12444_v1  ;;  %v4191_v19 = vsel %vm875_vm3, %v4182_v28, %v4190_v13  ;;  %v4245_v38 = vshrl.u32 %v4090_v51, 16  ;;  %v4248_v47 = vshll.u32 %v4090_v51, 16 }
 0x1b1   : > { %v3481_v60 = vpop.f32.mrf.mxu3  ;;  %v13913_v14 = vpop.f32.mrf.mxu1  ;;  %v3931_v63 = vor.u32 %v3930_v5, %v3927_v53  ;;  %v4227_v41 = vshrl.u32 %v3865_v43, 16  ;;  %v4055_v13 = vunpack.c.l.b16 %v3751_v35 }
 0x1b2   : > { %v3482_v37 = vadd.f32 %v3481_v60, %v3249_v44  ;;  %v4199_v44 = vor.u32 %v4198_v48, %v4195_v62  ;;  %v4217_v60 = vsel %vm875_vm3, %v4208_v58, %v4216_v10  ;;  %v4219_v33 = vshrl.u32 %v12445_v11, 16 }
 0x1b3   : > { %v4222_v15 = vshll.u32 %v12445_v11, 16  ;;  %v4236_v20 = vshrl.u32 %v3931_v63, 16  ;;  %v4239_v56 = vshll.u32 %v3931_v63, 16  ;;  %v4247_v11 = vrot.slane %v4245_v38, 3 }
 0x1b4   : > { %v3571_v55 = vadd.f32 %v3570_v7, %v3482_v37  ;;  %v4230_v37 = vshll.u32 %v3865_v43, 16  ;;  %v4221_v1 = vrot.slane %v4219_v33, 3  ;;  %v4250_v53 = vrot.slane %v4248_v47, 4 }
 0x1b5   : > { %v4224_v58 = vrot.slane %v4222_v15, 4  ;;  %v4071_v43 = vpack.c.b16 %v4055_v13, %v4055_v13 }
 0x1b6   : > { %v13915_v25 = vadd.f32 %v3659_v54, %v3571_v55  ;;  %v3250_v3 = vpop.f32.mrf.mxu2  ;;  %v4092_v54 = vsel %vm826_vm7, %v4090_v51, %v4091_v24  ;;  %v4232_v10 = vrot.slane %v4230_v37, 4  ;;  %v12229_v24 = vld [vmem:[#allocation2 + $0x80] sm:$0xff]   ;;  %v4251_v15 = vor.u32 %v4250_v53, %v4247_v11 }
 0x1b7   : > { %v3251_v22 = vadd.f32 %v3250_v3, %v13398_v49  ;;  %v4253_v45 = vshrl.u32 %v4092_v54, 16  ;;  %v4256_v55 = vshll.u32 %v4092_v54, 16  ;;  %v4241_v54 = vrot.slane %v4239_v56, 4  ;;  %v3752_v11 = vld [vmem:[#allocation2 + $0xa0] sm:$0x1] }
 0x1b8   : > { %16026 = vst [vmem:[#allocation17_spill] sm:$0xff] %v13915_v25  ;;  %v3575_v31 = vpop.f32.mrf.mxu0  ;;  %v11857_v33 = vunpack.c.h.b16 %v12229_v24  ;;  %v4225_v63 = vor.u32 %v4224_v58, %v4221_v1  ;;  %v4093_v38 = vrot.slane %v12229_v24, 5  ;;  %v4094_v47 = vrot.slane %v4071_v43, 5 }
 0x1b9   : > { %v3483_v7 = vpop.f32.mrf.mxu3  ;;  %v3664_v23 = vpop.f32.mrf.mxu1  ;;  %v4255_v5 = vrot.slane %v4253_v45, 3  ;;  %v4258_v51 = vrot.slane %v4256_v55, 4 }
 0x1ba   : > { %v3484_v61 = vadd.f32 %v3483_v7, %v3251_v22  ;;  %v4288_v43 = vshrl.u32 %v4093_v38, 16 }
 0x1bb   : > { %5074 = vmatmul.bf16.gmra.mxu2 %v4191_v19  ;;  %5252 = vmatmul.bf16.gmra.mxu0 %v4217_v60  ;;  %v3933_v19 = vshrl.u32 %v12229_v24, 16 }
 0x1bc   : > { %v13924_v49 = vadd.f32 %v3572_v30, %v3484_v61  ;;  %v4229_v30 = vrot.slane %v4227_v41, 3  ;;  %v4238_v61 = vrot.slane %v4236_v20, 3  ;;  %v4259_v41 = vor.u32 %v4258_v51, %v4255_v5 }
 0x1bd   : > { %v3867_v20 = vpack.c.b16 %v11857_v33, %v11857_v33 }
 0x1be   : > { %5163 = vmatmul.bf16.gmra.mxu3 %v4199_v44  ;;  %v3253_v62 = vpop.f32.mrf.mxu2  ;;  %v3936_v44 = vshll.u32 %v12229_v24, 16  ;;  %v4233_v35 = vor.u32 %v4232_v10, %v4229_v30  ;;  %v4260_v1 = vsel %vm875_vm3, %v4251_v15, %v4259_v41 }
 0x1bf   : > { %v3254_v28 = vadd.f32 %v3253_v62, %v13419_v21  ;;  %v12448_v21 = vld [vmem:[#allocation2 + $0x7c] sm:$0x8]  ;;  %v3935_v62 = vrot.slane %v3933_v19, 4  ;;  %v4270_v5 = vshrl.u32 %v3867_v20, 16  ;;  %v4273_v51 = vshll.u32 %v3867_v20, 16 }
 0x1c0   : > { %v3577_v3 = vpop.f32.mrf.mxu0  ;;  %v12449_v55 = vor.u32 %v12741_v16, %v12448_v21  ;;  %v3938_v13 = vrot.slane %v3936_v44, 5  ;;  %v4291_v19 = vshll.u32 %v4093_v38, 16 }
 0x1c1   : > { %v3486_v48 = vpop.f32.mrf.mxu3  ;;  %v13927_v7 = vpop.f32.mrf.mxu1  ;;  %v4272_v41 = vrot.slane %v4270_v5, 3 }
 0x1c2   : > { %v3487_v22 = vadd.f32 %v3486_v48, %v3254_v28  ;;  %v4234_v48 = vsel %vm875_vm3, %v4225_v63, %v4233_v35  ;;  %v4262_v10 = vshrl.u32 %v12449_v55, 16  ;;  %v3939_v24 = vor.u32 %v3938_v13, %v3935_v62 }
 0x1c3   : > { %v4293_v62 = vrot.slane %v4291_v19, 4 }
 0x1c4   : > { %v3576_v60 = vadd.f32 %v3575_v31, %v3487_v22  ;;  %v4242_v22 = vor.u32 %v4241_v54, %v4238_v61  ;;  %v4056_v61 = vunpack.c.l.b16 %v3752_v11  ;;  %v4264_v21 = vrot.slane %v4262_v10, 3  ;;  %v12742_v10 = vld [vmem:[#allocation2 + $0x94] sm:$0xf0]  }
 0x1c5   : > { %v4279_v16 = vshrl.u32 %v3939_v24, 16  ;;  %v4282_v33 = vshll.u32 %v3939_v24, 16 }
 0x1c6   : > { %v13929_v37 = vadd.f32 %v3664_v23, %v3576_v60  ;;  %v3255_v45 = vpop.f32.mrf.mxu2  ;;  %v4095_v23 = vsel %vm826_vm7, %v4093_v38, %v4094_v47  ;;  %v12230_v47 = vld [vmem:[#allocation2 + $0x98] sm:$0xff]   ;;  %v4072_v20 = vpack.c.b16 %v4056_v61, %v4056_v61 }
 0x1c7   : > { %v3256_v28 = vadd.f32 %v3255_v45, %v13429_v52  ;;  %v4265_v52 = vshll.u32 %v12449_v55, 16  ;;  %v4296_v44 = vshrl.u32 %v4095_v23, 16  ;;  %v4299_v60 = vshll.u32 %v4095_v23, 16 }
 0x1c8   : > { %16027 = vst [vmem:[#allocation18_spill] sm:$0xff] %v13929_v37  ;;  %v3580_v56 = vpop.f32.mrf.mxu0  ;;  %v4290_v55 = vrot.slane %v4288_v43, 3  ;;  %v4284_v23 = vrot.slane %v4282_v33, 4  ;;  %v11861_v24 = vunpack.c.h.b16 %v12230_v47  ;;  %v4096_v19 = vrot.slane %v12230_v47, 5 }
 0x1c9   : > { %v3488_v31 = vpop.f32.mrf.mxu3  ;;  %v3669_v30 = vpop.f32.mrf.mxu1  ;;  %v4267_v15 = vrot.slane %v4265_v52, 4  ;;  %v4298_v13 = vrot.slane %v4296_v44, 3  ;;  %v4097_v44 = vrot.slane %v4072_v20, 5 }
 0x1ca   : > { %v3489_v58 = vadd.f32 %v3488_v31, %v3256_v28  ;;  %v4301_v28 = vrot.slane %v4299_v60, 4  ;;  %v4294_v5 = vor.u32 %v4293_v62, %v4290_v55  ;;  %v3753_v62 = vld [vmem:[#allocation2 + $0xb8] sm:$0x1] }
 0x1cb   : > { %5079 = vmatmul.bf16.gmra.mxu2 %v4234_v48  ;;  %5257 = vmatmul.bf16.gmra.mxu0 %v4260_v1  ;;  %v3941_v48 = vshrl.u32 %v12230_v47, 16  ;;  %v4268_v11 = vor.u32 %v4267_v15, %v4264_v21 }
 0x1cc   : > { %v13935_v53 = vadd.f32 %v3577_v3, %v3489_v58  ;;  %v4275_v3 = vrot.slane %v4273_v51, 4  ;;  %v4281_v58 = vrot.slane %v4279_v16, 3  ;;  %v4302_v51 = vor.u32 %v4301_v28, %v4298_v13 }
 0x1cd   : > { %v3869_v16 = vpack.c.b16 %v11861_v24, %v11861_v24 }
 0x1ce   : > { %5168 = vmatmul.bf16.gmra.mxu3 %v4242_v22  ;;  %v3258_v54 = vpop.f32.mrf.mxu2  ;;  %v3944_v22 = vshll.u32 %v12230_v47, 16  ;;  %v4276_v52 = vor.u32 %v4275_v3, %v4272_v41  ;;  %v4285_v37 = vor.u32 %v4284_v23, %v4281_v58  ;;  %v4303_v21 = vsel %vm875_vm3, %v4294_v5, %v4302_v51  ;;  %v11588_v3 = vld [vmem:[%s15998_s3 + $0xd0] sm:$0xff] }
 0x1cf   : > { %v3259_v63 = vadd.f32 %v3258_v54, %v13449_v39  ;;  %v12452_v39 = vld [vmem:[#allocation2 + $0x94] sm:$0x8]  ;;  %v4313_v28 = vshrl.u32 %v3869_v16, 16  ;;  %v4316_v20 = vshll.u32 %v3869_v16, 16  ;;  %8188 = vmatpush.bf16.msra.mxu1 %v11588_v3  ;;  %v4057_v23 = vunpack.c.l.b16 %v3753_v62 }
 0x1d0   : > { %v3582_v45 = vpop.f32.mrf.mxu0  ;;  %v12453_v54 = vor.u32 %v12742_v10, %v12452_v39  ;;  %v3946_v61 = vrot.slane %v3944_v22, 5  ;;  %v4334_v22 = vshll.u32 %v4096_v19, 16 }
 0x1d1   : > { %v3491_v35 = vpop.f32.mrf.mxu3  ;;  %v13938_v31 = vpop.f32.mrf.mxu1  ;;  %v4073_v16 = vpack.c.b16 %v4057_v23, %v4057_v23 }
 0x1d2   : > { %v3492_v38 = vadd.f32 %v3491_v35, %v3259_v63  ;;  %v3943_v63 = vrot.slane %v3941_v48, 4  ;;  %v4305_v47 = vshrl.u32 %v12453_v54, 16  ;;  %v4308_v13 = vshll.u32 %v12453_v54, 16 }
 0x1d3   : > { %v4331_v48 = vshrl.u32 %v4096_v19, 16 }
 0x1d4   : > { %v3581_v1 = vadd.f32 %v3580_v56, %v3492_v38  ;;  %v4277_v38 = vsel %vm875_vm3, %v4268_v11, %v4276_v52  ;;  %v3947_v55 = vor.u32 %v3946_v61, %v3943_v63  ;;  %v4307_v10 = vrot.slane %v4305_v47, 3  ;;  %v12743_v47 = vld [vmem:[#allocation2 + $0xac] sm:$0xf0]  }
 0x1d5   : > { %v4310_v51 = vrot.slane %v4308_v13, 4  ;;  %v4333_v63 = vrot.slane %v4331_v48, 3 }
 0x1d6   : > { %v13940_v43 = vadd.f32 %v3669_v30, %v3581_v1  ;;  %v3260_v60 = vpop.f32.mrf.mxu2  ;;  %v4098_v30 = vsel %vm826_vm7, %v4096_v19, %v4097_v44  ;;  %v4322_v24 = vshrl.u32 %v3947_v55, 16  ;;  %v4325_v11 = vshll.u32 %v3947_v55, 16 }
 0x1d7   : > { %v3261_v35 = vadd.f32 %v3260_v60, %v13463_v34  ;;  %v4339_v1 = vshrl.u32 %v4098_v30, 16  ;;  %v4342_v58 = vshll.u32 %v4098_v30, 16  ;;  %v4318_v44 = vrot.slane %v4316_v20, 4  ;;  %v12231_v60 = vld [vmem:[#allocation2 + $0xb0] sm:$0xff]  }
 0x1d8   : > { %16028 = vst [vmem:[#allocation19_spill] sm:$0xff] %v13940_v43  ;;  %v3585_v33 = vpop.f32.mrf.mxu0  ;;  %v4324_v30 = vrot.slane %v4322_v24, 3  ;;  %v4327_v3 = vrot.slane %v4325_v11, 4  ;;  %v11865_v55 = vunpack.c.h.b16 %v12231_v60  ;;  %v4311_v62 = vor.u32 %v4310_v51, %v4307_v10 }
 0x1d9   : > { %v3493_v56 = vpop.f32.mrf.mxu3  ;;  %v3674_v41 = vpop.f32.mrf.mxu1  ;;  %v4341_v61 = vrot.slane %v4339_v1, 3  ;;  %v4344_v19 = vrot.slane %v4342_v58, 4  ;;  %v4100_v1 = vrot.slane %v4073_v16, 5 }
 0x1da   : > { %v3494_v15 = vadd.f32 %v3493_v56, %v3261_v35  ;;  %v3871_v24 = vpack.c.b16 %v11865_v55, %v11865_v55  ;;  %v4328_v43 = vor.u32 %v4327_v3, %v4324_v30 }
 0x1db   : > { %5084 = vmatmul.bf16.gmra.mxu2 %v4277_v38  ;;  %5262 = vmatmul.bf16.gmra.mxu0 %v4303_v21  ;;  %v3949_v38 = vshrl.u32 %v12231_v60, 16  ;;  %v3952_v21 = vshll.u32 %v12231_v60, 16  ;;  %v4345_v20 = vor.u32 %v4344_v19, %v4341_v61 }
 0x1dc   : > { %v13949_v34 = vadd.f32 %v3582_v45, %v3494_v15  ;;  %v4315_v45 = vrot.slane %v4313_v28, 3  ;;  %v4359_v19 = vshll.u32 %v3871_v24, 16 }
 0x1dd   : > { %v3954_v23 = vrot.slane %v3952_v21, 5 }
 0x1de   : > { %5173 = vmatmul.bf16.gmra.mxu3 %v4285_v37  ;;  %v3263_v39 = vpop.f32.mrf.mxu2  ;;  %v4336_v37 = vrot.slane %v4334_v22, 4  ;;  %v4319_v13 = vor.u32 %v4318_v44, %v4315_v45  ;;  %v4099_v22 = vrot.slane %v12231_v60, 5  ;;  %v3754_v44 = vld [vmem:[#allocation2 + $0xd0] sm:$0x1] }
 0x1df   : > { %v3264_v52 = vadd.f32 %v3263_v39, %v13487_v18  ;;  %v12456_v18 = vld [vmem:[#allocation2 + $0xac] sm:$0x8]  ;;  %v4058_v30 = vunpack.c.l.b16 %v3754_v44  ;;  %v12744_v44 = vld [vmem:[#allocation2 + $0xc4] sm:$0xf0]  }
 0x1e0   : > { %v3587_v54 = vpop.f32.mrf.mxu0  ;;  %v4337_v28 = vor.u32 %v4336_v37, %v4333_v63  ;;  %v12457_v39 = vor.u32 %v12743_v47, %v12456_v18  ;;  %v4374_v16 = vshrl.u32 %v4099_v22, 16 }
 0x1e1   : > { %v3496_v5 = vpop.f32.mrf.mxu3  ;;  %v13952_v56 = vpop.f32.mrf.mxu1 }
 0x1e2   : > { %v3497_v35 = vadd.f32 %v3496_v5, %v3264_v52  ;;  %16029 = vst [vmem:[#allocation20_spill] sm:$0xff] %v13952_v56  ;;  %v3951_v52 = vrot.slane %v3949_v38, 4  ;;  %v4346_v10 = vsel %vm875_vm3, %v4337_v28, %v4345_v20  ;;  %v4348_v60 = vshrl.u32 %v12457_v39, 16  ;;  %v16032_v28 = vld [vmem:[#allocation6_spill] sm:$0xff] }
 0x1e3   : > { %v4351_v63 = vshll.u32 %v12457_v39, 16  ;;  %v4377_v38 = vshll.u32 %v4099_v22, 16  ;;  %v4376_v39 = vrot.slane %v4374_v16, 3 }
 0x1e4   : > { %v3586_v15 = vadd.f32 %v3585_v33, %v3497_v35  ;;  %v4320_v35 = vsel %vm875_vm3, %v4311_v62, %v4319_v13  ;;  %v3955_v37 = vor.u32 %v3954_v23, %v3951_v52  ;;  %v4350_v18 = vrot.slane %v4348_v60, 3  ;;  %v12232_v13 = vld [vmem:[#allocation2 + $0xc8] sm:$0xff]  }
 0x1e5   : > { %v4353_v47 = vrot.slane %v4351_v63, 4  ;;  %v4379_v23 = vrot.slane %v4377_v38, 4  ;;  %v11869_v60 = vunpack.c.h.b16 %v12232_v13 }
 0x1e6   : > { %v13954_v48 = vadd.f32 %v3674_v41, %v3586_v15  ;;  %v3265_v58 = vpop.f32.mrf.mxu2  ;;  %v4101_v41 = vsel %vm826_vm7, %v4099_v22, %v4100_v1  ;;  %v4365_v55 = vshrl.u32 %v3955_v37, 16  ;;  %v4368_v62 = vshll.u32 %v3955_v37, 16 }
 0x1e7   : > { %v3266_v5 = vadd.f32 %v3265_v58, %v13501_v36  ;;  %v4356_v36 = vshrl.u32 %v3871_v24, 16  ;;  %v4382_v21 = vshrl.u32 %v4101_v41, 16  ;;  %v4385_v15 = vshll.u32 %v4101_v41, 16  ;;  %v12460_v41 = vld [vmem:[#allocation2 + $0xc4] sm:$0x8] }
 0x1e8   : > { %16030 = vst [vmem:[#allocation21_spill] sm:$0xff] %v13954_v48  ;;  %v3590_v11 = vpop.f32.mrf.mxu0  ;;  %v4074_v22 = vpack.c.b16 %v4058_v30, %v4058_v30  ;;  %v4354_v37 = vor.u32 %v4353_v47, %v4350_v18  ;;  %v3873_v48 = vpack.c.b16 %v11869_v60, %v11869_v60 }
 0x1e9   : > { %v3498_v33 = vpop.f32.mrf.mxu3  ;;  %v3679_v45 = vpop.f32.mrf.mxu1  ;;  %v4358_v58 = vrot.slane %v4356_v36, 3  ;;  %v4370_v36 = vrot.slane %v4368_v62, 4 }
 0x1ea   : > { %v3499_v51 = vadd.f32 %v3498_v33, %v3266_v5  ;;  %v4384_v5 = vrot.slane %v4382_v21, 3  ;;  %v4103_v38 = vrot.slane %v4074_v22, 5  ;;  %v4402_v22 = vshll.u32 %v3873_v48, 16 }
 0x1eb   : > { %5089 = vmatmul.bf16.gmra.mxu2 %v4320_v35  ;;  %5267 = vmatmul.bf16.gmra.mxu0 %v4346_v10  ;;  %v3957_v35 = vshrl.u32 %v12232_v13, 16  ;;  %v3960_v10 = vshll.u32 %v12232_v13, 16 }
 0x1ec   : > { %v13960_v61 = vadd.f32 %v3587_v54, %v3499_v51  ;;  %v4361_v54 = vrot.slane %v4359_v19, 4  ;;  %v4367_v51 = vrot.slane %v4365_v55, 3  ;;  %v4380_v19 = vor.u32 %v4379_v23, %v4376_v39  ;;  %v11587_v39 = vld [vmem:[%s15998_s3 + $0xc8] sm:$0xff] }
 0x1ed   : > { %v3959_v30 = vrot.slane %v3957_v35, 4  ;;  %v3755_v23 = vld [vmem:[#allocation2 + $0xe8] sm:$0x1]  ;;  %8189 = vmatpush.bf16.msra.mxu1 %v11587_v39 }
 0x1ee   : > { %16031 = vst [vmem:[#allocation22_spill] sm:$0xff] %v13960_v61  ;;  %5178 = vmatmul.bf16.gmra.mxu3 %v4328_v43  ;;  %v3268_v3 = vpop.f32.mrf.mxu2  ;;  %v4387_v43 = vrot.slane %v4385_v15, 4  ;;  %v12461_v15 = vor.u32 %v12744_v44, %v12460_v41  ;;  %v4371_v18 = vor.u32 %v4370_v36, %v4367_v51  ;;  %v4059_v41 = vunpack.c.l.b16 %v3755_v23 }
 0x1ef   : > { %v3269_v20 = vadd.f32 %v3268_v3, %v16032_v28  ;;  %v4362_v3 = vor.u32 %v4361_v54, %v4358_v58  ;;  %v4102_v28 = vrot.slane %v12232_v13, 5 }
 0x1f0   : > { %v3592_v52 = vpop.f32.mrf.mxu0  ;;  %v4388_v16 = vor.u32 %v4387_v43, %v4384_v5  ;;  %v4391_v58 = vshrl.u32 %v12461_v15, 16  ;;  %v4399_v43 = vshrl.u32 %v3873_v48, 16 }
 0x1f1   : > { %v3501_v1 = vpop.f32.mrf.mxu3  ;;  %v13963_v24 = vpop.f32.mrf.mxu1  ;;  %v4104_v62 = vsel %vm826_vm7, %v4102_v28, %v4103_v38 }
 0x1f2   : > { %v3502_v33 = vadd.f32 %v3501_v1, %v3269_v20  ;;  %16033 = vst [vmem:[#allocation6_spill] sm:$0xff] %v13963_v24  ;;  %v3962_v20 = vrot.slane %v3960_v10, 5  ;;  %v16035_v24 = vld [vmem:[#allocation7_spill] sm:$0xff]  ;;  %v4389_v47 = vsel %vm875_vm3, %v4380_v19, %v4388_v16  ;;  %v4425_v10 = vshrl.u32 %v4104_v62, 16 }
 0x1f3   : > { %v4428_v51 = vshll.u32 %v4104_v62, 16  ;;  %v4393_v44 = vrot.slane %v4391_v58, 3  ;;  %v4401_v36 = vrot.slane %v4399_v43, 3  ;;  %v4404_v19 = vrot.slane %v4402_v22, 4  ;;  %v12745_v62 = vld [vmem:[#allocation2 + $0xdc] sm:$0xf0]  }
 0x1f4   : > { %v3591_v63 = vadd.f32 %v3590_v11, %v3502_v33  ;;  %v4363_v11 = vsel %vm875_vm3, %v4354_v37, %v4362_v3  ;;  %v3963_v54 = vor.u32 %v3962_v20, %v3959_v30  ;;  %v4417_v33 = vshrl.u32 %v4102_v28, 16 }
 0x1f5   : > { %v4430_v30 = vrot.slane %v4428_v51, 4 }
 0x1f6   : > { %v13965_v21 = vadd.f32 %v3679_v45, %v3591_v63  ;;  %v3270_v1 = vpop.f32.mrf.mxu2  ;;  %v4394_v45 = vshll.u32 %v12461_v15, 16  ;;  %v4408_v63 = vshrl.u32 %v3963_v54, 16  ;;  %v4411_v37 = vshll.u32 %v3963_v54, 16 }
 0x1f7   : > { %v3271_v55 = vadd.f32 %v3270_v1, %v16035_v24  ;;  %v4420_v24 = vshll.u32 %v4102_v28, 16  ;;  %v4419_v48 = vrot.slane %v4417_v33, 3  ;;  %v16037_v28 = vld [vmem:[#allocation8_spill] sm:$0xff] }
 0x1f8   : > { %16034 = vst [vmem:[#allocation23_spill] sm:$0xff] %v13965_v21  ;;  %v3595_v61 = vpop.f32.mrf.mxu0  ;;  %v4396_v60 = vrot.slane %v4394_v45, 4  ;;  %v4405_v45 = vor.u32 %v4404_v19, %v4401_v36  ;;  %v4410_v54 = vrot.slane %v4408_v63, 3  ;;  %v4413_v39 = vrot.slane %v4411_v37, 4 }
 0x1f9   : > { %v3503_v56 = vpop.f32.mrf.mxu3  ;;  %v3684_v5 = vpop.f32.mrf.mxu1  ;;  %v4422_v16 = vrot.slane %v4420_v24, 4 }
 0x1fa   : > { %v3504_v13 = vadd.f32 %v3503_v56, %v3271_v55  ;;  %v12233_v56 = vld [vmem:[#allocation2 + $0xe0] sm:$0xff]   ;;  %v4397_v58 = vor.u32 %v4396_v60, %v4393_v44  ;;  %v4414_v63 = vor.u32 %v4413_v39, %v4410_v54 }
 0x1fb   : > { %5094 = vmatmul.bf16.gmra.mxu2 %v4363_v11  ;;  %5272 = vmatmul.bf16.gmra.mxu0 %v4389_v47  ;;  %v3965_v20 = vshrl.u32 %v12233_v56, 16  ;;  %v3968_v55 = vshll.u32 %v12233_v56, 16  ;;  %v4075_v11 = vpack.c.b16 %v4059_v41, %v4059_v41  ;;  %v12464_v47 = vld [vmem:[#allocation2 + $0xdc] sm:$0x8]  ;;  %v4423_v43 = vor.u32 %v4422_v16, %v4419_v48 }
 0x1fc   : > { %v13974_v35 = vadd.f32 %v3592_v52, %v3504_v13  ;;  %v4427_v52 = vrot.slane %v4425_v10, 3  ;;  %v11873_v13 = vunpack.c.h.b16 %v12233_v56  ;;  %v12465_v10 = vor.u32 %v12745_v62, %v12464_v47 }
 0x1fd   : > { %v3967_v33 = vrot.slane %v3965_v20, 4  ;;  %v3970_v51 = vrot.slane %v3968_v55, 5  ;;  %v4406_v60 = vsel %vm875_vm3, %v4397_v58, %v4405_v45  ;;  %v12234_v20 = vld [vmem:[#allocation2 + $0xf8] sm:$0xff]  }
 0x1fe   : > { %16036 = vst [vmem:[#allocation7_spill] sm:$0xff] %v13974_v35  ;;  %5183 = vmatmul.bf16.gmra.mxu3 %v4371_v18  ;;  %v3273_v3 = vpop.f32.mrf.mxu2  ;;  %v4431_v22 = vor.u32 %v4430_v30, %v4427_v52  ;;  %v3875_v41 = vpack.c.b16 %v11873_v13, %v11873_v13  ;;  %v4434_v19 = vshrl.u32 %v12465_v10, 16  ;;  %v4437_v52 = vshll.u32 %v12465_v10, 16 }
 0x1ff   : > { %v3274_v38 = vadd.f32 %v3273_v3, %v16037_v28  ;;  %v4105_v3 = vrot.slane %v12233_v56, 5  ;;  %v4106_v28 = vrot.slane %v4075_v11, 5  ;;  %v3971_v48 = vor.u32 %v3970_v51, %v3967_v33 }
 0x200   : > { %v3597_v1 = vpop.f32.mrf.mxu0  ;;  %v4432_v36 = vsel %vm875_vm3, %v4423_v43, %v4431_v22  ;;  %v4445_v30 = vshll.u32 %v3875_v41, 16  ;;  %v3973_v54 = vshrl.u32 %v12234_v20, 16  ;;  %v3976_v39 = vshll.u32 %v12234_v20, 16 }
 0x201   : > { %v3506_v15 = vpop.f32.mrf.mxu3  ;;  %v13977_v24 = vpop.f32.mrf.mxu1  ;;  %v4107_v16 = vsel %vm826_vm7, %v4105_v3, %v4106_v28  ;;  %v4460_v55 = vshrl.u32 %v4105_v3, 16  ;;  %v4463_v11 = vshll.u32 %v4105_v3, 16  ;;  %v4451_v58 = vshrl.u32 %v3971_v48, 16 }
 0x202   : > { %v3507_v18 = vadd.f32 %v3506_v15, %v3274_v38  ;;  %16038 = vst [vmem:[#allocation8_spill] sm:$0xff] %v13977_v24  ;;  %v16040_v15 = vld [vmem:[#allocation9_spill] sm:$0xff]  ;;  %v4468_v62 = vshrl.u32 %v4107_v16, 16  ;;  %v4471_v13 = vshll.u32 %v4107_v16, 16  ;;  %v4454_v45 = vshll.u32 %v3971_v48, 16 }
 0x203   : > { %v4447_v22 = vrot.slane %v4445_v30, 4  ;;  %v4462_v51 = vrot.slane %v4460_v55, 3  ;;  %v4465_v3 = vrot.slane %v4463_v11, 4  ;;  %v4453_v48 = vrot.slane %v4451_v58, 3 }
 0x204   : > { %v3596_v23 = vadd.f32 %v3595_v61, %v3507_v18  ;;  %v3756_v61 = vld [vmem:[#allocation2 + $0x100] sm:$0x1]  ;;  %v3975_v16 = vrot.slane %v3973_v54, 4  ;;  %v4456_v30 = vrot.slane %v4454_v45, 4  ;;  %v4108_v55 = vrot.slane %v12234_v20, 5  ;;  %v12235_v54 = vld [vmem:[#allocation2 + $0x110] sm:$0xff]  }
 0x205   : > { %v4060_v18 = vunpack.c.l.b16 %v3756_v61  ;;  %v11877_v61 = vunpack.c.h.b16 %v12234_v20  ;;  %v4466_v24 = vor.u32 %v4465_v3, %v4462_v51  ;;  %v16044_v20 = vld [vmem:[#allocation11_spill] sm:$0xff] }
 0x206   : > { %v13979_v21 = vadd.f32 %v3684_v5, %v3596_v23  ;;  %v3275_v38 = vpop.f32.mrf.mxu2  ;;  %v4442_v5 = vshrl.u32 %v3875_v41, 16  ;;  %v4436_v23 = vrot.slane %v4434_v19, 3  ;;  %v16042_v41 = vld [vmem:[#allocation10_spill] sm:$0xff]  ;;  %v3978_v19 = vrot.slane %v3976_v39, 5 }
 0x207   : > { %v3276_v35 = vadd.f32 %v3275_v38, %v16040_v15  ;;  %v4076_v28 = vpack.c.b16 %v4060_v18, %v4060_v18  ;;  %v4470_v15 = vrot.slane %v4468_v62, 3  ;;  %v3757_v62 = vld [vmem:[#allocation2 + $0x118] sm:$0x1]  ;;  %v4457_v58 = vor.u32 %v4456_v30, %v4453_v48 }
 0x208   : > { %16039 = vst [vmem:[#allocation24_spill] sm:$0xff] %v13979_v21  ;;  %v3600_v37 = vpop.f32.mrf.mxu0  ;;  %v4444_v43 = vrot.slane %v4442_v5, 3 }
 0x209   : > { %v3508_v44 = vpop.f32.mrf.mxu3  ;;  %v3689_v10 = vpop.f32.mrf.mxu1  ;;  %v4109_v11 = vrot.slane %v4076_v28, 5 }
 0x20a   : > { %v3509_v56 = vadd.f32 %v3508_v44, %v3276_v35  ;;  %v4439_v35 = vrot.slane %v4437_v52, 4  ;;  %v4473_v44 = vrot.slane %v4471_v13, 4  ;;  %v4448_v5 = vor.u32 %v4447_v22, %v4444_v43 }
 0x20b   : > { %5099 = vmatmul.bf16.gmra.mxu2 %v4406_v60  ;;  %5277 = vmatmul.bf16.gmra.mxu0 %v4432_v36  ;;  %v12468_v60 = vld [vmem:[#allocation2 + $0xf4] sm:$0x8]  ;;  %v3979_v13 = vor.u32 %v3978_v19, %v3975_v16  ;;  %v4110_v45 = vsel %vm826_vm7, %v4108_v55, %v4109_v11  ;;  %v12472_v11 = vld [vmem:[#allocation2 + $0x10c] sm:$0x8] }
 0x20c   : > { %v13985_v47 = vadd.f32 %v3597_v1, %v3509_v56  ;;  %v4440_v52 = vor.u32 %v4439_v35, %v4436_v23  ;;  %v4061_v35 = vunpack.c.l.b16 %v3757_v62  ;;  %v4514_v48 = vshll.u32 %v4110_v45, 16 }
 0x20e   : > { %16041 = vst [vmem:[#allocation9_spill] sm:$0xff] %v13985_v47  ;;  %5188 = vmatmul.bf16.gmra.mxu3 %v4414_v63  ;;  %v3278_v33 = vpop.f32.mrf.mxu2  ;;  %v12746_v63 = vld [vmem:[#allocation2 + $0xf4] sm:$0xf0]   ;;  %v4449_v25 = vsel %vm875_vm3, %v4440_v52, %v4448_v5  ;;  %v4077_v52 = vpack.c.b16 %v4061_v35, %v4061_v35 }
 0x20f   : > { %v3279_v38 = vadd.f32 %v3278_v33, %v16042_v41  ;;  %v12469_v21 = vor.u32 %v12746_v63, %v12468_v60  ;;  %v4474_v33 = vor.u32 %v4473_v44, %v4470_v15  ;;  %v3877_v41 = vpack.c.b16 %v11877_v61, %v11877_v61 }
 0x210   : > { %v3602_v36 = vpop.f32.mrf.mxu0  ;;  %v4503_v15 = vshrl.u32 %v4108_v55, 16  ;;  %v3981_v44 = vshrl.u32 %v12235_v54, 16  ;;  %v3984_v60 = vshll.u32 %v12235_v54, 16  ;;  %v4506_v61 = vshll.u32 %v4108_v55, 16 }
 0x211   : > { %v3511_v1 = vpop.f32.mrf.mxu3  ;;  %v4480_v23 = vshll.u32 %v12469_v21, 16  ;;  %v4475_v22 = vsel %vm875_vm3, %v4466_v24, %v4474_v33  ;;  %v4485_v51 = vshrl.u32 %v3877_v41, 16  ;;  %v4488_v3 = vshll.u32 %v3877_v41, 16 }
 0x212   : > { %v3512_v56 = vadd.f32 %v3511_v1, %v3279_v38  ;;  %v4477_v38 = vshrl.u32 %v12469_v21, 16  ;;  %v4494_v1 = vshrl.u32 %v3979_v13, 16  ;;  %v4511_v21 = vshrl.u32 %v4110_v45, 16 }
 0x213   : > { %v4482_v19 = vrot.slane %v4480_v23, 4  ;;  %v4487_v5 = vrot.slane %v4485_v51, 3  ;;  %v4490_v30 = vrot.slane %v4488_v3, 4  ;;  %v11881_v41 = vunpack.c.h.b16 %v12235_v54 }
 0x214   : > { %v3601_v18 = vadd.f32 %v3600_v37, %v3512_v56  ;;  %v4479_v16 = vrot.slane %v4477_v38, 3  ;;  %v4497_v56 = vshll.u32 %v3979_v13, 16  ;;  %v13998_v33 = vrot.slane %v4494_v1, 3 }
 0x215   : > { %v3983_v62 = vrot.slane %v3981_v44, 4  ;;  %v3986_v55 = vrot.slane %v3984_v60, 5  ;;  %v4508_v45 = vrot.slane %v4506_v61, 4  ;;  %v4513_v38 = vrot.slane %v4511_v21, 3  ;;  %v3758_v60 = vld [vmem:[#allocation2 + $0x130] sm:$0x1] }
 0x216   : > { %v13988_v47 = vadd.f32 %v3689_v10, %v3601_v18  ;;  %v3280_v39 = vpop.f32.mrf.mxu2  ;;  %v13994_v10 = vpop.f32.mrf.mxu1  ;;  %v12747_v18 = vld [vmem:[#allocation2 + $0x10c] sm:$0xf0]   ;;  %v4516_v23 = vrot.slane %v4514_v48, 4  ;;  %v14000_v35 = vrot.slane %v4497_v56, 4  ;;  %v14017_v1 = vadd.f32 %v13902_v4, %v13910_v40 }
 0x217   : > { %v3281_v43 = vadd.f32 %v3280_v39, %v16044_v20  ;;  %v4505_v39 = vrot.slane %v4503_v15, 3  ;;  %v4112_v20 = vrot.slane %v4077_v52, 5  ;;  %v4483_v15 = vor.u32 %v4482_v19, %v4479_v16  ;;  %v5446_v52 = vld [vmem:[#allocation3 + $0x1c] sm:$0x8] }
 0x218   : > { %16043 = vst [vmem:[#allocation10_spill] sm:$0xff] %v13988_v47  ;;  %v3605_v28 = vpop.f32.mrf.mxu0  ;;  %v3879_v44 = vpack.c.b16 %v11881_v41, %v11881_v41  ;;  %v4517_v61 = vor.u32 %v4516_v23, %v4513_v38  ;;  %v4062_v19 = vunpack.c.l.b16 %v3758_v60  ;;  %v12488_v47 = vld [vmem:[#allocation2 + $0x16c] sm:$0x8] }
 0x219   : > { %v3513_v37 = vpop.f32.mrf.mxu3 }
 0x21a   : > { %v3514_v63 = vadd.f32 %v3513_v37, %v3281_v43  ;;  %v14004_v43 = vadd.f32 %v13843_v57, %v13867_v8  ;;  %v14012_v37 = vadd.f32 %v13887_v50, %v13899_v42  ;;  %v14019_v57 = vor.u32 %v3986_v55, %v3983_v62  ;;  %v12236_v8 = vld [vmem:[#allocation2 + $0x128] sm:$0xff]  }
 0x21b   : > { %5104 = vmatmul.bf16.gmra.mxu2 %v4449_v25  ;;  %5282 = vmatmul.bf16.gmra.mxu0 %v4475_v22  ;;  %v12473_v25 = vor.u32 %v12747_v18, %v12472_v11  ;;  %v16045_v22 = vld [vmem:[#allocation12_spill] sm:$0xff]  ;;  %v4500_v42 = vor.u32 %v14000_v35, %v13998_v33  ;;  %v3989_v56 = vshrl.u32 %v12236_v8, 16  ;;  %v3992_v16 = vshll.u32 %v12236_v8, 16 }
 0x21c   : > { %v13996_v24 = vadd.f32 %v3602_v36, %v3514_v63  ;;  %v4111_v36 = vrot.slane %v12235_v54, 5  ;;  %v4509_v63 = vor.u32 %v4508_v45, %v4505_v39  ;;  %v11586_v11 = vld [vmem:[%s15998_s3 + $0xc0] sm:$0xff]  ;;  %v4537_v18 = vshrl.u32 %v14019_v57, 16  ;;  %v12748_v45 = vld [vmem:[#allocation2 + $0x124] sm:$0xf0]  }
 0x21d   : > { %v4520_v21 = vshrl.u32 %v12473_v25, 16  ;;  %v4523_v48 = vshll.u32 %v12473_v25, 16  ;;  %v5447_v33 = vsel %vm12963_vm2, 0, %v5446_v52  ;;  %v12476_v39 = vld [vmem:[#allocation2 + $0x124] sm:$0x8]  ;;  %v11885_v38 = vunpack.c.h.b16 %v12236_v8  ;;  %8190 = vmatpush.bf16.msra.mxu1 %v11586_v11 }
 0x21e   : > { %5193 = vmatmul.bf16.gmra.mxu3 %v4457_v58  ;;  %v3283_v13 = vpop.f32.mrf.mxu2  ;;  %v14008_v58 = vadd.f32 %v13872_v29, %v13884_v46  ;;  %v4491_v46 = vor.u32 %v4490_v30, %v4487_v5  ;;  %v3694_v50 = vpop.f32.mrf.mxu1  ;;  %v4113_v4 = vsel %vm826_vm7, %v4111_v36, %v4112_v20  ;;  %v4528_v5 = vshrl.u32 %v3879_v44, 16  ;;  %5448 = vst [vmem:[#allocation3 + $0x1c] sm:$0x8] %v5447_v33 }
 0x21f   : > { %v3284_v51 = vadd.f32 %v3283_v13, %v16045_v22  ;;  %v4531_v30 = vshll.u32 %v3879_v44, 16  ;;  %v4546_v13 = vshrl.u32 %v4111_v36, 16  ;;  %v4549_v35 = vshll.u32 %v4111_v36, 16 }
 0x220   : > { %v3607_v54 = vpop.f32.mrf.mxu0  ;;  %v4492_v55 = vsel %vm875_vm3, %v4483_v15, %v4491_v46  ;;  %v4554_v25 = vshrl.u32 %v4113_v4, 16  ;;  %v4557_v20 = vshll.u32 %v4113_v4, 16  ;;  %v3994_v44 = vrot.slane %v3992_v16, 5 }
 0x221   : > { %v3516_v3 = vpop.f32.mrf.mxu3  ;;  %v4078_v60 = vpack.c.b16 %v4062_v19, %v4062_v19  ;;  %v14035_v15 = vrot.slane %v4520_v21, 3  ;;  %v14037_v46 = vrot.slane %v4523_v48, 4  ;;  %v4533_v52 = vrot.slane %v4531_v30, 4 }
 0x222   : > { %v3517_v29 = vadd.f32 %v3516_v3, %v3284_v51  ;;  %v3991_v3 = vrot.slane %v3989_v56, 4  ;;  %v3881_v36 = vpack.c.b16 %v11885_v38, %v11885_v38  ;;  %v4548_v11 = vrot.slane %v4546_v13, 3 }
 0x223   : > { %v4551_v4 = vrot.slane %v4549_v35, 4  ;;  %v4556_v33 = vrot.slane %v4554_v25, 3  ;;  %v4114_v21 = vrot.slane %v12236_v8, 5  ;;  %v4115_v19 = vrot.slane %v4078_v60, 5  ;;  %v12237_v35 = vld [vmem:[#allocation2 + $0x140] sm:$0xff]  }
 0x224   : > { %v3606_v40 = vadd.f32 %v3605_v28, %v3517_v29  ;;  %v4518_v28 = vsel %vm875_vm3, %v4509_v63, %v4517_v61  ;;  %v4540_v63 = vshll.u32 %v14019_v57, 16  ;;  %v12477_v61 = vor.u32 %v12748_v45, %v12476_v39  ;;  %v3759_v39 = vld [vmem:[#allocation2 + $0x148] sm:$0x1] }
 0x225   : > { %v3995_v16 = vor.u32 %v3994_v44, %v3991_v3  ;;  %v14044_v48 = vadd.f32 %v13913_v14, %v13924_v49  ;;  %v14048_v57 = vadd.f32 %v13927_v7, %v13935_v53  ;;  %v4571_v8 = vshrl.u32 %v3881_v36, 16 }
 0x226   : > { %v14030_v62 = vadd.f32 %v3694_v50, %v3606_v40  ;;  %v3285_v23 = vpop.f32.mrf.mxu2  ;;  %v4530_v40 = vrot.slane %v4528_v5, 3  ;;  %v14050_v5 = vrot.slane %v4537_v18, 3  ;;  %v4563_v30 = vshrl.u32 %v12477_v61, 16 }
 0x227   : > { %v3286_v22 = vadd.f32 %v3285_v23, %v13661_v32  ;;  %v4559_v32 = vrot.slane %v4557_v20, 4  ;;  %v4552_v14 = vor.u32 %v4551_v4, %v4548_v11  ;;  %v4063_v23 = vunpack.c.l.b16 %v3759_v39 }
 0x228   : > { %16047 = vst [vmem:[#allocation11_spill] sm:$0xff] %v14030_v62  ;;  %v5248_v29 = vpop.f32.mrf.mxu0  ;;  %v4534_v38 = vor.u32 %v4533_v52, %v4530_v40  ;;  %v4574_v7 = vshll.u32 %v3881_v36, 16  ;;  %v4580_v53 = vshrl.u32 %v3995_v16, 16  ;;  %v4116_v18 = vsel %vm826_vm7, %v4114_v21, %v4115_v19  ;;  %v12749_v40 = vld [vmem:[#allocation2 + $0x13c] sm:$0xf0]  }
 0x229   : > { %v3518_v51 = vpop.f32.mrf.mxu3  ;;  %v4560_v49 = vor.u32 %v4559_v32, %v4556_v33  ;;  %v4000_v3 = vshll.u32 %v12237_v35, 16  ;;  %v14061_v60 = vrot.slane %v4571_v8, 3  ;;  %v4589_v4 = vshrl.u32 %v4114_v21, 16  ;;  %v5452_v62 = vld [vmem:[#allocation3 + $0x4c] sm:$0x8] }
 0x22a   : > { %v3519_v50 = vadd.f32 %v3518_v51, %v3286_v22  ;;  %v14057_v22 = vrot.slane %v4563_v30, 3  ;;  %v3997_v51 = vshrl.u32 %v12237_v35, 16  ;;  %v14065_v11 = vrot.slane %v4574_v7, 4 }
 0x22b   : > { %5109 = vmatmul.bf16.gmra.mxu2 %v4492_v55  ;;  %5287 = vmatmul.bf16.gmra.mxu0 %v4518_v28  ;;  %v4526_v55 = vor.u32 %v14037_v46, %v14035_v15  ;;  %v4566_v28 = vshll.u32 %v12477_v61, 16  ;;  %v11889_v15 = vunpack.c.h.b16 %v12237_v35  ;;  %v4079_v46 = vpack.c.b16 %v4063_v23, %v4063_v23 }
 0x22c   : > { %v14040_v56 = vadd.f32 %v3607_v54, %v3519_v50  ;;  %v14054_v54 = vrot.slane %v4540_v63, 4  ;;  %v12480_v50 = vld [vmem:[#allocation2 + $0x13c] sm:$0x8]  ;;  %v3999_v52 = vrot.slane %v3997_v51, 4  ;;  %v4002_v36 = vrot.slane %v4000_v3, 5 }
 0x22d   : > { %v14059_v44 = vrot.slane %v4566_v28, 4  ;;  %v4592_v33 = vshll.u32 %v4114_v21, 16  ;;  %v4597_v32 = vshrl.u32 %v4116_v18, 16  ;;  %v4600_v19 = vshll.u32 %v4116_v18, 16  ;;  %v14075_v21 = vld [vmem:[%s15997_s2] ss:$0 sm:$0xff] }
 0x22e   : > { %16048 = vst [vmem:[#allocation12_spill] sm:$0xff] %v14040_v56  ;;  %5198 = vmatmul.bf16.gmra.mxu3 %v4500_v42  ;;  %v5070_v45 = vpop.f32.mrf.mxu2  ;;  %v4583_v42 = vshll.u32 %v3995_v16, 16  ;;  %v4543_v61 = vor.u32 %v14054_v54, %v14050_v5  ;;  %v5449_v16 = vld [vmem:[#allocation3 + $0x34] sm:$0x8]  ;;  %v4117_v30 = vrot.slane %v12237_v35, 5  ;;  %v4118_v28 = vrot.slane %v4079_v46, 5 }
 0x22f   : > { %v5450_v8 = vsel %vm12963_vm2, 0, %v5449_v16  ;;  %v4561_v5 = vsel %vm875_vm3, %v4552_v14, %v4560_v49  ;;  %v12481_v54 = vor.u32 %v12749_v40, %v12480_v50  ;;  %v3883_v39 = vpack.c.b16 %v11889_v15, %v11889_v15  ;;  %v11601_v46 = vld [vmem:[%s15998_s3 + $0x138] sm:$0xff] }
 0x230   : > { %v5250_v20 = vpop.f32.mrf.mxu0  ;;  %5451 = vst [vmem:[#allocation3 + $0x34] sm:$0x8] %v5450_v8  ;;  %v14077_v7 = vrot.slane %v4580_v53, 3  ;;  %v14079_v18 = vrot.slane %v4583_v42, 4  ;;  %v4003_v35 = vor.u32 %v4002_v36, %v3999_v52  ;;  %v14085_v14 = vrot.slane %v4589_v4, 3  ;;  %v11609_v42 = vld [vmem:[%s15998_s3 + $0x178] sm:$0xff]  ;;  %8272 = vmatpush.bf16.msrb.mxu2 %v11601_v46 }
 0x231   : > { %v5159_v13 = vpop.f32.mrf.mxu3  ;;  %v14087_v49 = vrot.slane %v4592_v33, 4  ;;  %v14089_v15 = vrot.slane %v4597_v32, 3  ;;  %v14091_v53 = vrot.slane %v4600_v19, 4  ;;  %v4119_v50 = vsel %vm826_vm7, %v4117_v30, %v4118_v28  ;;  %8361 = vmatpush.bf16.msrb.mxu3 %v11609_v42  ;;  %v16050_v28 = vld [vmem:[#allocation14_spill] sm:$0xff] }
 0x232   : > { %v5160_v25 = vadd.f32 %v5159_v13, %v5070_v45  ;;  %v16049_v45 = vld [vmem:[#allocation13_spill] sm:$0xff]  ;;  %v4606_v40 = vshrl.u32 %v12481_v54, 16  ;;  %v4609_v52 = vshll.u32 %v12481_v54, 16  ;;  %v4614_v36 = vshrl.u32 %v3883_v39, 16 }
 0x233   : > { %v4617_v4 = vshll.u32 %v3883_v39, 16  ;;  %v4623_v19 = vshrl.u32 %v4003_v35, 16  ;;  %v4626_v8 = vshll.u32 %v4003_v35, 16  ;;  %v4595_v54 = vor.u32 %v14087_v49, %v14085_v14 }
 0x234   : > { %v5249_v63 = vadd.f32 %v5248_v29, %v5160_v25  ;;  %v4535_v29 = vsel %vm875_vm3, %v4526_v55, %v4534_v38  ;;  %v4643_v39 = vshll.u32 %v4119_v50, 16 }
 0x235   : > { %v14120_v46 = vrot.slane %v4623_v19, 3 }
 0x236   : > { %v5328_v23 = vadd.f32 %v5249_v63, %v16049_v45  ;;  %v5072_v13 = vpop.f32.mrf.mxu2  ;;  %v11569_v63 = vld [vmem:[%s15998_s3 + $0x38] sm:$0xff]  ;;  %v4632_v45 = vshrl.u32 %v4117_v30, 16 }
 0x237   : > { %8594 = vmatpush.bf16.msrb.mxu0 %v11569_v63 }
 0x238   : > { %v5253_v3 = vpop.f32.mrf.mxu0  ;;  %v5364_v33 = vadd.f32 %v14075_v21, %v5328_v23  ;;  %v14111_v23 = vrot.slane %v4606_v40, 3  ;;  %v12238_v40 = vld [vmem:[#allocation2 + $0x158] sm:$0xff]  }
 0x239   : > { %v5161_v25 = vpop.f32.mrf.mxu3  ;;  %v11893_v19 = vunpack.c.h.b16 %v12238_v40 }
 0x23a   : > { %v5162_v51 = vadd.f32 %v5161_v25, %v5072_v13  ;;  %v4635_v13 = vshll.u32 %v4117_v30, 16  ;;  %v4640_v25 = vshrl.u32 %v4119_v50, 16  ;;  %v3760_v30 = vld [vmem:[#allocation2 + $0x160] sm:$0x1]  ;;  %v5396_v35 = vmax.f32 %v5364_v33, 0.0 }
 0x23b   : > { %5114 = vmatmul.bf16.gmra.mxu2 %v4535_v29  ;;  %5292 = vmatmul.bf16.gmra.mxu0 %v4561_v5  ;;  %v14115_v29 = vrot.slane %v4614_v36, 3  ;;  %v14117_v5 = vrot.slane %v4617_v4, 4  ;;  %v4064_v14 = vunpack.c.l.b16 %v3760_v30  ;;  %v4645_v4 = vrot.slane %v4643_v39, 4 }
 0x23c   : > { %v5251_v32 = vadd.f32 %v5250_v20, %v5162_v51  ;;  %v4603_v20 = vor.u32 %v14091_v53, %v14089_v15  ;;  %v14113_v51 = vrot.slane %v4609_v52, 4  ;;  %v14122_v15 = vrot.slane %v4626_v8, 4 }
 0x23d   : > { %v4634_v53 = vrot.slane %v4632_v45, 3  ;;  %v4637_v63 = vrot.slane %v4635_v13, 4  ;;  %v4642_v50 = vrot.slane %v4640_v25, 3  ;;  %v4008_v30 = vshll.u32 %v12238_v40, 16  ;;  %v12484_v45 = vld [vmem:[#allocation2 + $0x154] sm:$0x8] }
 0x23e   : > { %v5329_v55 = vadd.f32 %v5251_v32, %v16050_v28  ;;  %5203 = vmatmul.bf16.gmra.mxu3 %v4543_v61  ;;  %v5075_v42 = vpop.f32.mrf.mxu2  ;;  %v4005_v28 = vshrl.u32 %v12238_v40, 16  ;;  %v4612_v33 = vor.u32 %v14113_v51, %v14111_v23  ;;  %v12750_v13 = vld [vmem:[#allocation2 + $0x154] sm:$0xf0]   ;;  %v4080_v38 = vpack.c.b16 %v4064_v14, %v4064_v14 }
 0x23f   : > { %v4010_v39 = vrot.slane %v4008_v30, 5  ;;  %v16051_v23 = vld [vmem:[#allocation15_spill] sm:$0xff]  ;;  %v4120_v30 = vrot.slane %v12238_v40, 5 }
 0x240   : > { %v5365_v61 = vadd.f32 %v14075_v21, %v5329_v55  ;;  %v5255_v32 = vpop.f32.mrf.mxu0  ;;  %v4620_v55 = vor.u32 %v14117_v5, %v14115_v29  ;;  %v4007_v25 = vrot.slane %v4005_v28, 4  ;;  %v11577_v5 = vld [vmem:[%s15998_s3 + $0x78] sm:$0xff] }
 0x241   : > { %v5164_v49 = vpop.f32.mrf.mxu3  ;;  %8683 = vmatpush.bf16.msrb.mxu1 %v11577_v5 }
 0x242   : > { %v5397_v52 = vmax.f32 %v5365_v61, 0.0  ;;  %v5165_v36 = vadd.f32 %v5164_v49, %v5075_v42  ;;  %v4638_v61 = vor.u32 %v4637_v63, %v4634_v53  ;;  %v12485_v42 = vor.u32 %v12750_v13, %v12484_v45 }
 0x243   : > { %v3885_v49 = vpack.c.b16 %v11893_v19, %v11893_v19  ;;  %v14138_v19 = vor.u32 %v4010_v39, %v4007_v25 }
 0x244   : > { %v14128_v16 = vpack.c.bf16 %v5397_v52, %v5396_v35  ;;  %v5254_v8 = vadd.f32 %v5253_v3, %v5165_v36  ;;  %v4646_v3 = vor.u32 %v4645_v4, %v4642_v50  ;;  %v5453_v35 = vsel %vm12963_vm2, 0, %v5452_v62 }
 0x245   : > { %v4649_v14 = vshrl.u32 %v12485_v42, 16  ;;  %v4652_v53 = vshll.u32 %v12485_v42, 16  ;;  %v4657_v63 = vshrl.u32 %v3885_v49, 16  ;;  %v4660_v52 = vshll.u32 %v3885_v49, 16  ;;  %5454 = vst [vmem:[#allocation3 + $0x4c] sm:$0x8] %v5453_v35 }
 0x246   : > { %12242 = vst [vmem:[#allocation3 + $0x20] sm:$0xff] %v14128_v16   ;;  %v5330_v51 = vadd.f32 %v5254_v8, %v16051_v23  ;;  %v12053_v29 = vunpack.c.h.b16 %v14128_v16  ;;  %v5077_v36 = vpop.f32.mrf.mxu2  ;;  %v4121_v8 = vrot.slane %v4080_v38, 5  ;;  %v16052_v50 = vor.u32 %v14065_v11, %v14061_v60 }
 0x247   : > { %v16053_v62 = vor.u32 %v14059_v44, %v14057_v22  ;;  %v4604_v42 = vsel %vm875_vm3, %v4595_v54, %v4603_v20  ;;  %v14149_v49 = vrot.slane %v4649_v14, 3  ;;  %v14151_v38 = vrot.slane %v4652_v53, 4 }
 0x248   : > { %v6983_v28 = vpack.c.b16 %v12053_v29, %v12053_v29  ;;  %v5366_v45 = vadd.f32 %v14075_v21, %v5330_v51  ;;  %v5258_v25 = vpop.f32.mrf.mxu0  ;;  %v12564_v51 = vld [vmem:[#allocation3 + $0x1c] sm:$0x8]  ;;  %v14154_v29 = vsel %vm875_vm3, %v4612_v33, %v4620_v55  ;;  %v14158_v22 = vrot.slane %v4657_v63, 3  ;;  %v16054_v63 = vld [vmem:[#allocation16_spill] sm:$0xff] }
 0x249   : > { %v5166_v13 = vpop.f32.mrf.mxu3  ;;  %v4578_v4 = vsel %vm875_vm3, %v16053_v62, %v16052_v50  ;;  %v14160_v44 = vrot.slane %v4660_v52, 4  ;;  %v14163_v54 = vsel %vm875_vm3, %v4638_v61, %v4646_v3  ;;  %v4666_v20 = vshrl.u32 %v14138_v19, 16 }
 0x24a   : > { %v5167_v23 = vadd.f32 %v5166_v13, %v5077_v36  ;;  %v7263_v39 = vshrl.u32 %v6983_v28, 16  ;;  %v7266_v40 = vshll.u32 %v6983_v28, 16  ;;  %v4122_v5 = vsel %vm826_vm7, %v4120_v30, %v4121_v8 }
 0x24b   : > { %5119 = vmatmul.bf16.gmra.mxu2 %v4578_v4  ;;  %5297 = vmatmul.bf16.gmra.mxu0 %v4604_v42  ;;  %v4675_v14 = vshrl.u32 %v4120_v30, 16  ;;  %v4678_v53 = vshll.u32 %v4120_v30, 16  ;;  %v5398_v36 = vmax.f32 %v5366_v45, 0.0  ;;  %v4669_v8 = vshll.u32 %v14138_v19, 16 }
 0x24c   : > { %v5256_v11 = vadd.f32 %v5255_v32, %v5167_v23  ;;  %v7265_v33 = vrot.slane %v7263_v39, 3  ;;  %v7268_v55 = vrot.slane %v7266_v40, 4  ;;  %v16055_v32 = vor.u32 %v14079_v18, %v14077_v7 }
 0x24d   : > { %v12770_v35 = vld [vmem:[#allocation3 + $0x1c] sm:$0xf0]   ;;  %v4683_v13 = vshrl.u32 %v4122_v5, 16  ;;  %v4686_v50 = vshll.u32 %v4122_v5, 16  ;;  %v14177_v42 = vrot.slane %v4666_v20, 3  ;;  %v4677_v23 = vrot.slane %v4675_v14, 3 }
 0x24e   : > { %v5331_v28 = vadd.f32 %v5256_v11, %v16054_v63  ;;  %5208 = vmatmul.bf16.gmra.mxu3 %v16055_v32  ;;  %v12565_v61 = vor.u32 %v12770_v35, %v12564_v51  ;;  %v5080_v45 = vpop.f32.mrf.mxu2  ;;  %v7269_v18 = vor.u32 %v7268_v55, %v7265_v33  ;;  %v4680_v39 = vrot.slane %v4678_v53, 4  ;;  %v12239_v51 = vld [vmem:[#allocation2 + $0x170] sm:$0xff]   ;;  %v3761_v11 = vld [vmem:[#allocation2 + $0x178] sm:$0x1] }
 0x24f   : > { %v4685_v40 = vrot.slane %v4683_v13, 3  ;;  %v4688_v5 = vrot.slane %v4686_v50, 4  ;;  %v11897_v3 = vunpack.c.h.b16 %v12239_v51  ;;  %v4016_v52 = vshll.u32 %v12239_v51, 16  ;;  %v12751_v33 = vld [vmem:[#allocation2 + $0x16c] sm:$0xf0]  }
 0x250   : > { %v5367_v30 = vadd.f32 %v14075_v21, %v5331_v28  ;;  %v7255_v62 = vshrl.u32 %v12565_v61, 16  ;;  %v7258_v4 = vshll.u32 %v12565_v61, 16  ;;  %v5260_v32 = vpop.f32.mrf.mxu0  ;;  %v4013_v28 = vshrl.u32 %v12239_v51, 16 }
 0x251   : > { %v5169_v7 = vpop.f32.mrf.mxu3  ;;  %v4065_v55 = vunpack.c.l.b16 %v3761_v11  ;;  %v14181_v14 = vrot.slane %v4669_v8, 4  ;;  %v12489_v53 = vor.u32 %v12751_v33, %v12488_v47  ;;  %v3887_v13 = vpack.c.b16 %v11897_v3, %v11897_v3 }
 0x252   : > { %v5399_v35 = vmax.f32 %v5367_v30, 0.0  ;;  %v5170_v63 = vadd.f32 %v5169_v7, %v5080_v45  ;;  %v7257_v19 = vrot.slane %v7255_v62, 3  ;;  %v7260_v60 = vrot.slane %v7258_v4, 4 }
 0x253   : > { %v4015_v30 = vrot.slane %v4013_v28, 4  ;;  %v4692_v4 = vshrl.u32 %v12489_v53, 16  ;;  %v4695_v7 = vshll.u32 %v12489_v53, 16  ;;  %v4703_v47 = vshll.u32 %v3887_v13, 16 }
 0x254   : > { %v14179_v56 = vpack.c.bf16 %v5399_v35, %v5398_v36  ;;  %v5259_v20 = vadd.f32 %v5258_v25, %v5170_v63  ;;  %v7261_v61 = vor.u32 %v7260_v60, %v7257_v19  ;;  %v4018_v36 = vrot.slane %v4016_v52, 5 }
 0x255   : > { %v4681_v25 = vor.u32 %v4680_v39, %v4677_v23  ;;  %v4689_v60 = vor.u32 %v4688_v5, %v4685_v40  ;;  %v4700_v35 = vshrl.u32 %v3887_v13, 16  ;;  %v4081_v3 = vpack.c.b16 %v4065_v55, %v4065_v55  ;;  %v11608_v40 = vld [vmem:[%s15998_s3 + $0x170] sm:$0xff]  ;;  %v12568_v55 = vld [vmem:[#allocation3 + $0x34] sm:$0x8] }
 0x256   : > { %12243 = vst [vmem:[#allocation3 + $0x38] sm:$0xff] %v14179_v56   ;;  %v5332_v45 = vadd.f32 %v5259_v20, %v13768_v27  ;;  %v7270_v50 = vsel %vm875_vm3, %v7261_v61, %v7269_v18  ;;  %v12057_v62 = vunpack.c.h.b16 %v14179_v56  ;;  %v5082_v11 = vpop.f32.mrf.mxu2  ;;  %v14190_v27 = vrot.slane %v4692_v4, 3  ;;  %v11600_v5 = vld [vmem:[%s15998_s3 + $0x130] sm:$0xff]  ;;  %8362 = vmatpush.bf16.msrb.mxu3 %v11608_v40 }
 0x257   : > { %8191 = vmatmul.bf16.vlgmr.msra.gmra.mxu1 %v7270_v50  ;;  %v14192_v18 = vor.u32 %v4018_v36, %v4015_v30  ;;  %v4123_v28 = vrot.slane %v12239_v51, 5  ;;  %v11568_v61 = vld [vmem:[%s15998_s3 + $0x30] sm:$0xff]  ;;  %v14203_v33 = vrot.slane %v4695_v7, 4  ;;  %v16056_v51 = vor.u32 %v14160_v44, %v14158_v22  ;;  %8273 = vmatpush.bf16.msrb.mxu2 %v11600_v5 }
 0x258   : > { %v6985_v8 = vpack.c.b16 %v12057_v62, %v12057_v62  ;;  %v14188_v63 = vadd.f32 %v14075_v21, %v5332_v45  ;;  %v5263_v20 = vpop.f32.mrf.mxu0  ;;  %v16057_v53 = vor.u32 %v14151_v38, %v14149_v49  ;;  %v14217_v45 = vsel %vm875_vm3, %v4681_v25, %v4689_v60  ;;  %v5455_v49 = vld [vmem:[#allocation3 + $0x64] sm:$0x8]  ;;  %8595 = vmatpush.bf16.msrb.mxu0 %v11568_v61 }
 0x259   : > { %v5171_v19 = vpop.f32.mrf.mxu3  ;;  %v14220_v36 = vrot.slane %v4700_v35, 3  ;;  %v14222_v22 = vrot.slane %v4703_v47, 4  ;;  %v4124_v44 = vrot.slane %v4081_v3, 5  ;;  %v4718_v7 = vshrl.u32 %v4123_v28, 16 }
 0x25a   : > { %v5172_v52 = vadd.f32 %v5171_v19, %v5082_v11  ;;  %v7306_v23 = vshrl.u32 %v6985_v8, 16  ;;  %v7309_v39 = vshll.u32 %v6985_v8, 16  ;;  %v14212_v13 = vsel %vm875_vm3, %v16057_v53, %v16056_v51 }
 0x25b   : > { %v5400_v38 = vmax.f32 %v14188_v63, 0.0  ;;  %5124 = vmatmul.bf16.gmra.mxu2 %v14154_v29  ;;  %5302 = vmatmul.bf16.gmra.mxu0 %v14163_v54  ;;  %v16058_v11 = vor.u32 %v14122_v15, %v14120_v46  ;;  %v4709_v47 = vshrl.u32 %v14192_v18, 16  ;;  %v4712_v29 = vshll.u32 %v14192_v18, 16 }
 0x25c   : > { %v5261_v62 = vadd.f32 %v5260_v32, %v5172_v52  ;;  %v7308_v25 = vrot.slane %v7306_v23, 3  ;;  %v7311_v60 = vrot.slane %v7309_v39, 4  ;;  %v4125_v54 = vsel %vm826_vm7, %v4123_v28, %v4124_v44  ;;  %v3762_v23 = vld [vmem:[#allocation2 + $0x190] sm:$0x1] }
 0x25d   : > { %v12771_v4 = vld [vmem:[#allocation3 + $0x34] sm:$0xf0]   ;;  %v4721_v3 = vshll.u32 %v4123_v28, 16  ;;  %v5456_v63 = vsel %vm12963_vm2, 0, %v5455_v49  ;;  %v4706_v52 = vor.u32 %v14222_v22, %v14220_v36  ;;  %v14241_v5 = vrot.slane %v4718_v7, 3 }
 0x25e   : > { %v5333_v32 = vadd.f32 %v5261_v62, %v13796_v17  ;;  %5213 = vmatmul.bf16.gmra.mxu3 %v16058_v11  ;;  %v12569_v8 = vor.u32 %v12771_v4, %v12568_v55  ;;  %v5085_v19 = vpop.f32.mrf.mxu2  ;;  %5457 = vst [vmem:[#allocation3 + $0x64] sm:$0x8] %v5456_v63  ;;  %v7312_v40 = vor.u32 %v7311_v60, %v7308_v25  ;;  %v4726_v18 = vshrl.u32 %v4125_v54, 16  ;;  %v12240_v28 = vld [vmem:[#allocation2 + $0x188] sm:$0xff]   ;;  %v12492_v25 = vld [vmem:[#allocation2 + $0x184] sm:$0x8] }
 0x25f   : > { %v4729_v61 = vshll.u32 %v4125_v54, 16  ;;  %v4723_v49 = vrot.slane %v4721_v3, 4  ;;  %v4066_v11 = vunpack.c.l.b16 %v3762_v23  ;;  %v12752_v60 = vld [vmem:[#allocation2 + $0x184] sm:$0xf0]   ;;  %v4021_v54 = vshrl.u32 %v12240_v28, 16 }
 0x260   : > { %v5369_v17 = vadd.f32 %v14075_v21, %v5333_v32  ;;  %v7298_v46 = vshrl.u32 %v12569_v8, 16  ;;  %v7301_v15 = vshll.u32 %v12569_v8, 16  ;;  %v5265_v53 = vpop.f32.mrf.mxu0  ;;  %v4728_v4 = vrot.slane %v4726_v18, 3 }
 0x261   : > { %v5174_v39 = vpop.f32.mrf.mxu3  ;;  %v11901_v32 = vunpack.c.h.b16 %v12240_v28  ;;  %v4731_v63 = vrot.slane %v4729_v61, 4  ;;  %v12493_v7 = vor.u32 %v12752_v60, %v12492_v25  ;;  %v4024_v50 = vshll.u32 %v12240_v28, 16 }
 0x262   : > { %v5401_v55 = vmax.f32 %v5369_v17, 0.0  ;;  %v5175_v51 = vadd.f32 %v5174_v39, %v5085_v19  ;;  %v7300_v62 = vrot.slane %v7298_v46, 3  ;;  %v7303_v44 = vrot.slane %v7301_v15, 4 }
 0x263   : > { %v3889_v30 = vpack.c.b16 %v11901_v32, %v11901_v32  ;;  %v14254_v46 = vrot.slane %v4712_v29, 4  ;;  %v4735_v15 = vshrl.u32 %v12493_v7, 16  ;;  %v4738_v23 = vshll.u32 %v12493_v7, 16  ;;  %v12572_v7 = vld [vmem:[#allocation3 + $0x4c] sm:$0x8] }
 0x264   : > { %v14243_v8 = vpack.c.bf16 %v5401_v55, %v5400_v38  ;;  %v5264_v36 = vadd.f32 %v5263_v20, %v5175_v51  ;;  %v7304_v22 = vor.u32 %v7303_v44, %v7300_v62  ;;  %v11576_v20 = vld [vmem:[%s15998_s3 + $0x70] sm:$0xff]  ;;  %v14252_v38 = vrot.slane %v4709_v47, 3 }
 0x265   : > { %v4743_v39 = vshrl.u32 %v3889_v30, 16  ;;  %8684 = vmatpush.bf16.msrb.mxu1 %v11576_v20  ;;  %v4746_v55 = vshll.u32 %v3889_v30, 16  ;;  %v4023_v44 = vrot.slane %v4021_v54, 4  ;;  %v4026_v32 = vrot.slane %v4024_v50, 5 }
 0x266   : > { %12244 = vst [vmem:[#allocation3 + $0x50] sm:$0xff] %v14243_v8   ;;  %v5334_v17 = vadd.f32 %v5264_v36, %v13810_v2  ;;  %v7313_v3 = vsel %vm875_vm3, %v7304_v22, %v7312_v40  ;;  %v12061_v19 = vunpack.c.h.b16 %v14243_v8  ;;  %v5087_v18 = vpop.f32.mrf.mxu2  ;;  %v4724_v2 = vor.u32 %v4723_v49, %v14241_v5 }
 0x267   : > { %8196 = vmatmul.bf16.gmra.mxu1 %v7313_v3  ;;  %v4732_v40 = vor.u32 %v4731_v63, %v4728_v4  ;;  %v4082_v47 = vpack.c.b16 %v4066_v11, %v4066_v11  ;;  %v4737_v60 = vrot.slane %v4735_v15, 3  ;;  %v4740_v3 = vrot.slane %v4738_v23, 4 }
 0x268   : > { %v6987_v61 = vpack.c.b16 %v12061_v19, %v12061_v19  ;;  %v5370_v51 = vadd.f32 %v14075_v21, %v5334_v17  ;;  %v5268_v22 = vpop.f32.mrf.mxu0  ;;  %v4745_v35 = vrot.slane %v4743_v39, 3  ;;  %v4748_v19 = vrot.slane %v4746_v55, 4 }
 0x269   : > { %v5176_v62 = vpop.f32.mrf.mxu3  ;;  %v14258_v20 = vrot.slane %v12240_v28, 5  ;;  %v16059_v30 = vor.u32 %v14203_v33, %v14190_v27  ;;  %v4127_v50 = vrot.slane %v4082_v47, 5  ;;  %v16060_v4 = vshrl.u32 %v14128_v16, 16 }
 0x26a   : > { %v5177_v36 = vadd.f32 %v5176_v62, %v5087_v18  ;;  %v7349_v29 = vshrl.u32 %v6987_v61, 16  ;;  %v7352_v25 = vshll.u32 %v6987_v61, 16  ;;  %v14274_v17 = vor.u32 %v4026_v32, %v4023_v44 }
 0x26b   : > { %v14264_v49 = vsel %vm875_vm3, %v16059_v30, %v4706_v52  ;;  %v14268_v11 = vrot.slane %v16060_v4, 4  ;;  %5129 = vmatmul.bf16.gmra.mxu2 %v14212_v13  ;;  %5307 = vmatmul.bf16.gmra.mxu0 %v14217_v45  ;;  %v16061_v33 = vor.u32 %v14181_v14, %v14177_v42  ;;  %v14281_v15 = vsel %vm875_vm3, %v4724_v2, %v4732_v40  ;;  %v5458_v13 = vld [vmem:[#allocation3 + $0x7c] sm:$0x8]  ;;  %v273_v14 = vld [vmem:[#allocation2 + $0x19c] sm:$0x8] }
 0x26c   : > { %v5266_v5 = vadd.f32 %v5265_v53, %v5177_v36  ;;  %v7351_v54 = vrot.slane %v7349_v29, 3  ;;  %v7354_v28 = vrot.slane %v7352_v25, 4  ;;  %v4715_v53 = vor.u32 %v14254_v46, %v14252_v38 }
 0x26d   : > { %v12772_v63 = vld [vmem:[#allocation3 + $0x4c] sm:$0xf0]   ;;  %v7034_v45 = vshll.u32 %v14128_v16, 16  ;;  %v5402_v23 = vmax.f32 %v5370_v51, 0.0  ;;  %v4741_v39 = vor.u32 %v4740_v3, %v4737_v60  ;;  %v4749_v18 = vor.u32 %v4748_v19, %v4745_v35 }
 0x26e   : > { %v5335_v27 = vadd.f32 %v5266_v5, %v13838_v9  ;;  %5218 = vmatmul.bf16.gmra.mxu3 %v16061_v33  ;;  %v12573_v52 = vor.u32 %v12772_v63, %v12572_v7  ;;  %v4761_v61 = vshrl.u32 %v14258_v20, 16  ;;  %v5090_v62 = vpop.f32.mrf.mxu2  ;;  %v4128_v42 = vsel %vm826_vm7, %v14258_v20, %v4127_v50  ;;  %v14292_v51 = vld [vmem:[#allocation2 + $0x1a0] sm:$0xff]  }
 0x26f   : > { %v7355_v2 = vor.u32 %v7354_v28, %v7351_v54  ;;  %v4752_v40 = vshrl.u32 %v14274_v17, 16  ;;  %v4755_v47 = vshll.u32 %v14274_v17, 16  ;;  %v5459_v35 = vsel %vm12963_vm2, 0, %v5458_v13  ;;  %v278_v28 = vld [vmem:[#allocation2 + $0x1a8] sm:$0x1] }
 0x270   : > { %v5371_v55 = vadd.f32 %v14075_v21, %v5335_v27  ;;  %v7341_v9 = vshrl.u32 %v12573_v52, 16  ;;  %v7344_v44 = vshll.u32 %v12573_v52, 16  ;;  %v14294_v25 = vpop.f32.mrf.mxu0  ;;  %5460 = vst [vmem:[#allocation3 + $0x7c] sm:$0x8] %v5459_v35  ;;  %v14296_v3 = vrot.slane %v4761_v61, 3  ;;  %v11599_v52 = vld [vmem:[%s15998_s3 + $0x128] sm:$0xff] }
 0x271   : > { %v5179_v32 = vpop.f32.mrf.mxu3  ;;  %v4764_v19 = vshll.u32 %v14258_v20, 16  ;;  %v4769_v5 = vshrl.u32 %v4128_v42, 16  ;;  %v274_v30 = vsel %vm12963_vm2, 0, %v273_v14  ;;  %v11905_v54 = vunpack.c.h.b16 %v14292_v51  ;;  %v11607_v20 = vld [vmem:[%s15998_s3 + $0x168] sm:$0xff]  ;;  %8274 = vmatpush.bf16.msrb.mxu2 %v11599_v52 }
 0x272   : > { %v5403_v36 = vmax.f32 %v5371_v55, 0.0  ;;  %v5180_v29 = vadd.f32 %v5179_v32, %v5090_v62  ;;  %v7343_v60 = vrot.slane %v7341_v9, 3  ;;  %v7346_v7 = vrot.slane %v7344_v44, 4  ;;  %275 = vst [vmem:[#allocation2 + $0x19c] sm:$0x8] %v274_v30  ;;  %8363 = vmatpush.bf16.msrb.mxu3 %v11607_v20  ;;  %v11598_v30 = vld [vmem:[%s15998_s3 + $0x120] sm:$0xff] }
 0x273   : > { %v14305_v27 = vsel %vm875_vm3, %v4741_v39, %v4749_v18  ;;  %v4772_v33 = vshll.u32 %v4128_v42, 16  ;;  %v4029_v13 = vshrl.u32 %v14292_v51, 16  ;;  %v3891_v55 = vpack.c.b16 %v11905_v54, %v11905_v54  ;;  %v5461_v62 = vld [vmem:[#allocation3 + $0x94] sm:$0x8] }
 0x274   : > { %v14301_v50 = vpack.c.bf16 %v5403_v36, %v5402_v23  ;;  %v5269_v4 = vadd.f32 %v5268_v22, %v5180_v29  ;;  %v7347_v63 = vor.u32 %v7346_v7, %v7343_v60  ;;  %v11567_v22 = vld [vmem:[%s15998_s3 + $0x28] sm:$0xff]  ;;  %v4032_v23 = vshll.u32 %v14292_v51, 16  ;;  %v12576_v7 = vld [vmem:[#allocation3 + $0x64] sm:$0x8] }
 0x275   : > { %v14322_v9 = vrot.slane %v4764_v19, 4  ;;  %v4031_v44 = vrot.slane %v4029_v13, 4  ;;  %v279_v14 = vsel %vm13265_vm6, 0, %v278_v28  ;;  %v14326_v36 = vrot.slane %v4769_v5, 3  ;;  %8596 = vmatpush.bf16.msrb.mxu0 %v11567_v22  ;;  %v11606_v5 = vld [vmem:[%s15998_s3 + $0x160] sm:$0xff]  ;;  %8275 = vmatpush.bf16.msrb.mxu2 %v11598_v30 }
 0x276   : > { %12245 = vst [vmem:[#allocation3 + $0x68] sm:$0xff] %v14301_v50   ;;  %v5336_v39 = vadd.f32 %v5269_v4, %v13851_v59  ;;  %v7356_v18 = vsel %vm875_vm3, %v7347_v63, %v7355_v2  ;;  %v12065_v61 = vunpack.c.h.b16 %v14301_v50  ;;  %v4034_v42 = vrot.slane %v4032_v23, 5  ;;  %v5092_v32 = vpop.f32.mrf.mxu2  ;;  %v12753_v4 = vld [vmem:[#allocation2 + $0x19c] sm:$0xf0]   ;;  %8364 = vmatpush.bf16.msrb.mxu3 %v11606_v5 }
 0x277   : > { %8201 = vmatmul.bf16.gmra.mxu1 %v7356_v18  ;;  %v4786_v59 = vshrl.u32 %v3891_v55, 16  ;;  %v4789_v2 = vshll.u32 %v3891_v55, 16  ;;  %280 = vst [vmem:[#allocation2 + $0x1a8] sm:$0x1] %v279_v14  ;;  %v14331_v19 = vrot.slane %v4772_v33, 4  ;;  %v5462_v54 = vsel %vm12963_vm2, 0, %v5461_v62 }
 0x278   : > { %v6989_v35 = vpack.c.b16 %v12065_v61, %v12065_v61  ;;  %v14329_v29 = vadd.f32 %v14075_v21, %v5336_v39  ;;  %v14339_v63 = vor.u32 %v4034_v42, %v4031_v44  ;;  %v14343_v20 = vpop.f32.mrf.mxu0  ;;  %v14345_v22 = vrot.slane %v4752_v40, 3  ;;  %v11566_v13 = vld [vmem:[%s15998_s3 + $0x20] sm:$0xff]  ;;  %5463 = vst [vmem:[#allocation3 + $0x94] sm:$0x8] %v5462_v54  ;;  %v5494_v54 = vld [vmem:[#allocation3 + $0x28] sm:$0x1] }
 0x279   : > { %v5181_v60 = vpop.f32.mrf.mxu3  ;;  %v12496_v23 = vld [vmem:[#allocation2 + $0x19c] sm:$0x8]  ;;  %v14350_v39 = vrot.slane %v4786_v59, 3  ;;  %v14352_v18 = vrot.slane %v4789_v2, 4  ;;  %v14356_v55 = vrot.slane %v14292_v51, 5  ;;  %v14361_v40 = vrot.slane %v4755_v47, 4  ;;  %8597 = vmatpush.bf16.msrb.mxu0 %v11566_v13 }
 0x27a   : > { %v5182_v28 = vadd.f32 %v5181_v60, %v5092_v32  ;;  %v7392_v52 = vshrl.u32 %v6989_v35, 16  ;;  %v7395_v33 = vshll.u32 %v6989_v35, 16  ;;  %v4795_v61 = vshrl.u32 %v14339_v63, 16  ;;  %v11597_v47 = vld [vmem:[%s15998_s3 + $0x118] sm:$0xff] }
 0x27b   : > { %v12497_v42 = vor.u32 %v12753_v4, %v12496_v23  ;;  %v5404_v14 = vmax.f32 %v14329_v29, 0.0  ;;  %5134 = vmatmul.bf16.gmra.mxu2 %v14264_v49  ;;  %5312 = vmatmul.bf16.gmra.mxu0 %v14281_v15  ;;  %v4798_v17 = vshll.u32 %v14339_v63, 16  ;;  %v11605_v2 = vld [vmem:[%s15998_s3 + $0x158] sm:$0xff]  ;;  %v4804_v38 = vshrl.u32 %v14356_v55, 16  ;;  %v11596_v23 = vld [vmem:[%s15998_s3 + $0x110] sm:$0xff] }
 0x27c   : > { %v5271_v62 = vadd.f32 %v14294_v25, %v5182_v28  ;;  %v7394_v32 = vrot.slane %v7392_v52, 3  ;;  %v7397_v59 = vrot.slane %v7395_v33, 4  ;;  %v11565_v29 = vld [vmem:[%s15998_s3 + $0x18] sm:$0xff]  ;;  %v4807_v63 = vshll.u32 %v14356_v55, 16  ;;  %8276 = vmatpush.bf16.msrb.mxu2 %v11597_v47  ;;  %8365 = vmatpush.bf16.msrb.mxu3 %v11605_v2 }
 0x27d   : > { %v12773_v51 = vld [vmem:[#allocation3 + $0x64] sm:$0xf0]   ;;  %v4778_v15 = vshrl.u32 %v12497_v42, 16  ;;  %v4781_v60 = vshll.u32 %v12497_v42, 16  ;;  %8598 = vmatpush.bf16.msrb.mxu0 %v11565_v29  ;;  %v7036_v42 = vrot.slane %v7034_v45, 5  ;;  %v14406_v29 = vrot.slane %v4798_v17, 4 }
 0x27e   : > { %v5337_v35 = vadd.f32 %v5271_v62, %v14004_v43  ;;  %5223 = vmatmul.bf16.gmra.mxu3 %v4715_v53  ;;  %v12577_v49 = vor.u32 %v12773_v51, %v12576_v7  ;;  %v14386_v43 = vrot.slane %v4795_v61, 3  ;;  %v3763_v5 = vld [vmem:[#allocation2 + $0x1a8] sm:$0x1]  ;;  %v5095_v53 = vpop.f32.mrf.mxu2  ;;  %v11604_v61 = vld [vmem:[%s15998_s3 + $0x150] sm:$0xff]  ;;  %v7398_v2 = vor.u32 %v7397_v59, %v7394_v32 }
 0x27f   : > { %v14391_v52 = vrot.slane %v4778_v15, 3  ;;  %v14393_v33 = vrot.slane %v4781_v60, 4  ;;  %v4067_v13 = vunpack.c.l.b16 %v3763_v5  ;;  %v11564_v62 = vld [vmem:[%s15998_s3 + $0x10] sm:$0xff]  ;;  %v7037_v5 = vor.u32 %v7036_v42, %v14268_v11  ;;  %v11595_v11 = vld [vmem:[%s15998_s3 + $0x108] sm:$0xff] }
 0x280   : > { %v5373_v46 = vadd.f32 %v14075_v21, %v5337_v35  ;;  %v7384_v7 = vshrl.u32 %v12577_v49, 16  ;;  %v7387_v4 = vshll.u32 %v12577_v49, 16  ;;  %v5275_v35 = vpop.f32.mrf.mxu0  ;;  %8277 = vmatpush.bf16.msrb.mxu2 %v11596_v23  ;;  %8366 = vmatpush.bf16.msrb.mxu3 %v11604_v61  ;;  %v5495_v45 = vsel %vm13265_vm6, 0, %v5494_v54 }
 0x281   : > { %v5184_v28 = vpop.f32.mrf.mxu3  ;;  %v4083_v60 = vpack.c.b16 %v4067_v13, %v4067_v13  ;;  %v14416_v32 = vrot.slane %v4804_v38, 3  ;;  %v14418_v17 = vrot.slane %v4807_v63, 4  ;;  %8599 = vmatpush.bf16.msrb.mxu0 %v11564_v62  ;;  %v7272_v63 = vshrl.u32 %v7037_v5, 16  ;;  %5496 = vst [vmem:[#allocation3 + $0x28] sm:$0x1] %v5495_v45  ;;  %v11602_v45 = vld [vmem:[%s15998_s3 + $0x140] sm:$0xff] }
 0x282   : > { %v5405_v51 = vmax.f32 %v5373_v46, 0.0  ;;  %v5185_v47 = vadd.f32 %v5184_v28, %v5095_v53  ;;  %v7386_v49 = vrot.slane %v7384_v7, 3  ;;  %v7389_v15 = vrot.slane %v7387_v4, 4  ;;  %v11575_v4 = vld [vmem:[%s15998_s3 + $0x68] sm:$0xff] }
 0x283   : > { %v4784_v46 = vor.u32 %v14393_v33, %v14391_v52  ;;  %v4130_v53 = vrot.slane %v4083_v60, 5  ;;  %v4758_v54 = vor.u32 %v14361_v40, %v14345_v22  ;;  %v7275_v52 = vshll.u32 %v7037_v5, 16  ;;  %8685 = vmatpush.bf16.msrb.mxu1 %v11575_v4 }
 0x284   : > { %v14409_v30 = vpack.c.bf16 %v5405_v51, %v5404_v14  ;;  %v5274_v44 = vadd.f32 %v14343_v20, %v5185_v47  ;;  %v7390_v25 = vor.u32 %v7389_v15, %v7386_v49  ;;  %v11603_v20 = vld [vmem:[%s15998_s3 + $0x148] sm:$0xff]  ;;  %v16062_v33 = vor.u32 %v14331_v19, %v14326_v36  ;;  %8278 = vmatpush.bf16.msrb.mxu2 %v11595_v11 }
 0x285   : > { %v11563_v14 = vld [vmem:[%s15998_s3 + $0x8] sm:$0xff]  ;;  %v4131_v28 = vsel %vm826_vm7, %v14356_v55, %v4130_v53  ;;  %v16063_v13 = vor.u32 %v14322_v9, %v14296_v3  ;;  %v7039_v55 = vshrl.u32 %v14179_v56, 16  ;;  %v4810_v61 = vor.u32 %v14418_v17, %v14416_v32  ;;  %8367 = vmatpush.bf16.msrb.mxu3 %v11603_v20  ;;  %v11594_v3 = vld [vmem:[%s15998_s3 + $0x100] sm:$0xff]  ;;  %v5497_v9 = vld [vmem:[#allocation3 + $0x40] sm:$0x1] }
 0x286   : > { %12246 = vst [vmem:[#allocation3 + $0x80] sm:$0xff] %v14409_v30   ;;  %v5338_v59 = vadd.f32 %v5274_v44, %v13876_v0  ;;  %v7399_v38 = vsel %vm875_vm3, %v7390_v25, %v7398_v2  ;;  %v12069_v7 = vunpack.c.h.b16 %v14409_v30  ;;  %v14441_v0 = vrot.slane %v14128_v16, 5  ;;  %v5097_v25 = vpop.f32.mrf.mxu2  ;;  %8600 = vmatpush.bf16.msrb.mxu0 %v11563_v14  ;;  %v12580_v51 = vld [vmem:[#allocation3 + $0x7c] sm:$0x8]  ;;  %v11562_v2 = vld [vmem:[%s15998_s3] sm:$0xff] }
 0x287   : > { %8206 = vmatmul.bf16.gmra.mxu1 %v7399_v38  ;;  %v4776_v22 = vsel %vm875_vm3, %v16063_v13, %v16062_v33  ;;  %v4801_v16 = vor.u32 %v14406_v29, %v14386_v43  ;;  %v4812_v62 = vshrl.u32 %v4131_v28, 16  ;;  %v4815_v42 = vshll.u32 %v4131_v28, 16  ;;  %v5428_v17 = vld [vmem:[#allocation3 + $0x4] sm:$0x8] }
 0x288   : > { %v14444_v44 = vadd.f32 %v14075_v21, %v5338_v59  ;;  %v6991_v40 = vpack.c.b16 %v12069_v7, %v12069_v7  ;;  %v5278_v19 = vpop.f32.mrf.mxu0  ;;  %v16064_v49 = vor.u32 %v14352_v18, %v14350_v39  ;;  %v14470_v60 = vrot.slane %v7272_v63, 3  ;;  %8279 = vmatpush.bf16.msrb.mxu2 %v11594_v3 }
 0x289   : > { %v5186_v23 = vpop.f32.mrf.mxu3  ;;  %v14475_v53 = vrot.slane %v7275_v52, 4  ;;  %v7281_v11 = vshrl.u32 %v14441_v0, 16  ;;  %v7284_v39 = vshll.u32 %v14441_v0, 16  ;;  %v7041_v20 = vrot.slane %v7039_v55, 4  ;;  %8368 = vmatpush.bf16.msrb.mxu3 %v11602_v45  ;;  %v12755_v45 = vld [vmem:[#allocation3 + $0x1c] sm:$0xf0]  }
 0x28a   : > { %v5187_v36 = vadd.f32 %v5186_v23, %v5097_v25  ;;  %v7435_v47 = vshrl.u32 %v6991_v40, 16  ;;  %v14465_v15 = vsel %vm875_vm3, %v4784_v46, %v16064_v49  ;;  %v7438_v5 = vshll.u32 %v6991_v40, 16  ;;  %8601 = vmatpush.bf16.msrb.mxu0 %v11562_v2 }
 0x28b   : > { %v5406_v18 = vmax.f32 %v14444_v44, 0.0  ;;  %v7042_v14 = vshll.u32 %v14179_v56, 16  ;;  %5139 = vmatmul.bf16.gmra.mxu2 %v14305_v27  ;;  %5317 = vmatmul.bf16.gmra.mxu0 %v4776_v22  ;;  %v4814_v38 = vrot.slane %v4812_v62, 3  ;;  %v4817_v7 = vrot.slane %v4815_v42, 4  ;;  %v6870_v44 = vld [vmem:[#allocation3 + $0x28] sm:$0x1] }
 0x28c   : > { %v5276_v46 = vadd.f32 %v5275_v35, %v5187_v36  ;;  %v5498_v4 = vsel %vm13265_vm6, 0, %v5497_v9  ;;  %v14485_v63 = vrot.slane %v14179_v56, 5  ;;  %v7437_v52 = vrot.slane %v7435_v47, 3  ;;  %v12504_v36 = vld [vmem:[#allocation3 + $0x1c] sm:$0x8] }
 0x28d   : > { %v12774_v59 = vld [vmem:[#allocation3 + $0x7c] sm:$0xf0]   ;;  %v7044_v25 = vrot.slane %v7042_v14, 5  ;;  %v7440_v33 = vrot.slane %v7438_v5, 4  ;;  %v7174_v27 = vunpack.c.l.b16 %v6870_v44  ;;  %5499 = vst [vmem:[#allocation3 + $0x40] sm:$0x1] %v5498_v4  ;;  %v4818_v62 = vor.u32 %v4817_v7, %v4814_v38 }
 0x28e   : > { %v5339_v28 = vadd.f32 %v5276_v46, %v14008_v58  ;;  %5228 = vmatmul.bf16.gmra.mxu3 %v4758_v54  ;;  %v12581_v35 = vor.u32 %v12774_v59, %v12580_v51  ;;  %v7324_v13 = vshrl.u32 %v14485_v63, 16  ;;  %v7327_v22 = vshll.u32 %v14485_v63, 16  ;;  %v5100_v56 = vpop.f32.mrf.mxu2 }
 0x28f   : > { %v7045_v58 = vor.u32 %v7044_v25, %v7041_v20  ;;  %v7190_v42 = vpack.c.b16 %v7174_v27, %v7174_v27  ;;  %v14491_v3 = vrot.slane %v7281_v11, 3  ;;  %v14493_v9 = vrot.slane %v7284_v39, 4  ;;  %v12259_v39 = vld [vmem:[#allocation3 + $0x20] sm:$0xff]  }
 0x290   : > { %v5375_v40 = vadd.f32 %v14075_v21, %v5339_v28  ;;  %v7427_v55 = vshrl.u32 %v12581_v35, 16  ;;  %v7430_v23 = vshll.u32 %v12581_v35, 16  ;;  %v5280_v49 = vpop.f32.mrf.mxu0  ;;  %v7441_v46 = vor.u32 %v7440_v33, %v7437_v52 }
 0x291   : > { %v5189_v54 = vpop.f32.mrf.mxu3  ;;  %v7207_v21 = vrot.slane %v7190_v42, 5  ;;  %v14495_v14 = vrot.slane %v7324_v13, 3  ;;  %v14497_v59 = vrot.slane %v7327_v22, 4  ;;  %v7315_v7 = vshrl.u32 %v7045_v58, 16 }
 0x292   : > { %v5407_v51 = vmax.f32 %v5375_v40, 0.0  ;;  %v5190_v47 = vadd.f32 %v5189_v54, %v5100_v56  ;;  %v7429_v2 = vrot.slane %v7427_v55, 3  ;;  %v7432_v5 = vrot.slane %v7430_v23, 4 }
 0x293   : > { %v4819_v4 = vsel %vm875_vm3, %v4810_v61, %v4818_v62  ;;  %v7278_v28 = vor.u32 %v14475_v53, %v14470_v60  ;;  %v7287_v35 = vor.u32 %v14493_v9, %v14491_v3  ;;  %v14509_v52 = vor.u32 %v12755_v45, %v12504_v36  ;;  %v12258_v61 = vld [vmem:[#allocation3 + $0x8] sm:$0xff]  }
 0x294   : > { %v14499_v20 = vpack.c.bf16 %v5407_v51, %v5406_v18  ;;  %v5279_v38 = vadd.f32 %v5278_v19, %v5190_v47  ;;  %v7433_v11 = vor.u32 %v7432_v5, %v7429_v2  ;;  %v7208_v32 = vsel %vm826_vm7, %v14441_v0, %v7207_v21  ;;  %v6871_v13 = vld [vmem:[#allocation3 + $0x40] sm:$0x1]  ;;  %v14526_v0 = vld [vmem:[%s15997_s2] ss:$0 sm:$0xff] }
 0x295   : > { %v5429_v25 = vsel %vm12963_vm2, 0, %v5428_v17  ;;  %v11989_v33 = vunpack.c.h.b16 %v12258_v61  ;;  %v7318_v27 = vshll.u32 %v7045_v58, 16  ;;  %v11993_v22 = vunpack.c.h.b16 %v12259_v39 }
 0x296   : > { %12247 = vst [vmem:[#allocation3 + $0x98] sm:$0xff] %v14499_v20   ;;  %v5340_v19 = vadd.f32 %v5279_v38, %v13889_v6  ;;  %v7442_v18 = vsel %vm875_vm3, %v7433_v11, %v7441_v46  ;;  %v12073_v44 = vunpack.c.h.b16 %v14499_v20  ;;  %v5102_v40 = vpop.f32.mrf.mxu2  ;;  %v14519_v6 = vrot.slane %v7315_v7, 3  ;;  %v12584_v46 = vld [vmem:[#allocation3 + $0x94] sm:$0x8] }
 0x297   : > { %8211 = vmatmul.bf16.gmra.mxu1 %v7442_v18  ;;  %5430 = vst [vmem:[#allocation3 + $0x4] sm:$0x8] %v5429_v25  ;;  %v7175_v55 = vunpack.c.l.b16 %v6871_v13  ;;  %v7330_v23 = vor.u32 %v14497_v59, %v14495_v14  ;;  %v7289_v58 = vshrl.u32 %v7208_v32, 16  ;;  %v7292_v42 = vshll.u32 %v7208_v32, 16 }
 0x298   : > { %v6993_v56 = vpack.c.b16 %v12073_v44, %v12073_v44  ;;  %v5376_v54 = vadd.f32 %v14526_v0, %v5340_v19  ;;  %v5767_v36 = vpack.c.b16 %v11989_v33, %v11989_v33  ;;  %v5283_v47 = vpop.f32.mrf.mxu0  ;;  %v6082_v45 = vshrl.u32 %v14509_v52, 16  ;;  %v12754_v19 = vld [vmem:[#allocation3 + $0x4] sm:$0xf0]  }
 0x299   : > { %v5191_v62 = vpop.f32.mrf.mxu3  ;;  %v14530_v11 = vrot.slane %v7318_v27, 4  ;;  %v7191_v7 = vpack.c.b16 %v7175_v55, %v7175_v55  ;;  %v5769_v17 = vpack.c.b16 %v11993_v22, %v11993_v22  ;;  %v14533_v61 = vrot.slane %v7289_v58, 3 }
 0x29a   : > { %v5192_v51 = vadd.f32 %v5191_v62, %v5102_v40  ;;  %v7478_v2 = vshrl.u32 %v6993_v56, 16  ;;  %v7481_v5 = vshll.u32 %v6993_v56, 16  ;;  %v6047_v21 = vshrl.u32 %v5767_v36, 16 }
 0x29b   : > { %v6050_v38 = vshll.u32 %v5767_v36, 16  ;;  %5144 = vmatmul.bf16.gmra.mxu2 %v14465_v15  ;;  %5322 = vmatmul.bf16.gmra.mxu0 %v4819_v4  ;;  %v14535_v25 = vrot.slane %v7292_v42, 4  ;;  %v7210_v33 = vrot.slane %v7191_v7, 5  ;;  %v6085_v13 = vshll.u32 %v14509_v52, 16 }
 0x29c   : > { %v5281_v39 = vadd.f32 %v5280_v49, %v5192_v51  ;;  %v7480_v18 = vrot.slane %v7478_v2, 3  ;;  %v7483_v44 = vrot.slane %v7481_v5, 4  ;;  %v5408_v40 = vmax.f32 %v5376_v54, 0.0 }
 0x29d   : > { %v12775_v32 = vld [vmem:[#allocation3 + $0x94] sm:$0xf0]   ;;  %v14542_v22 = vrot.slane %v6082_v45, 3  ;;  %v6049_v56 = vrot.slane %v6047_v21, 3  ;;  %v6052_v55 = vrot.slane %v6050_v38, 4  ;;  %v7211_v62 = vsel %vm826_vm7, %v14485_v63, %v7210_v33 }
 0x29e   : > { %v5341_v27 = vadd.f32 %v5281_v39, %v14012_v37  ;;  %5233 = vmatmul.bf16.gmra.mxu3 %v4801_v16  ;;  %v12585_v49 = vor.u32 %v12775_v32, %v12584_v46  ;;  %v7484_v15 = vor.u32 %v7483_v44, %v7480_v18  ;;  %v12500_v4 = vld [vmem:[#allocation3 + $0x4] sm:$0x8]  ;;  %v5105_v52 = vpop.f32.mrf.mxu2  ;;  %v7332_v51 = vshrl.u32 %v7211_v62, 16 }
 0x29f   : > { %v12501_v37 = vor.u32 %v12754_v19, %v12500_v4  ;;  %v7335_v43 = vshll.u32 %v7211_v62, 16  ;;  %v6090_v29 = vshrl.u32 %v5769_v17, 16  ;;  %v6093_v16 = vshll.u32 %v5769_v17, 16  ;;  %v5500_v4 = vld [vmem:[#allocation3 + $0x58] sm:$0x1] }
 0x2a0   : > { %v5377_v58 = vadd.f32 %v14526_v0, %v5341_v27  ;;  %v7470_v54 = vshrl.u32 %v12585_v49, 16  ;;  %v7473_v42 = vshll.u32 %v12585_v49, 16  ;;  %v5285_v45 = vpop.f32.mrf.mxu0  ;;  %v14547_v39 = vrot.slane %v7332_v51, 3 }
 0x2a1   : > { %v5194_v36 = vpop.f32.mrf.mxu3  ;;  %v6039_v38 = vshrl.u32 %v12501_v37, 16  ;;  %v6042_v7 = vshll.u32 %v12501_v37, 16  ;;  %v14549_v63 = vrot.slane %v6085_v13, 4  ;;  %v7337_v32 = vrot.slane %v7335_v43, 4  ;;  %v5464_v13 = vld [vmem:[#allocation3 + $0xac] sm:$0x8] }
 0x2a2   : > { %v5409_v2 = vmax.f32 %v5377_v58, 0.0  ;;  %v5195_v5 = vadd.f32 %v5194_v36, %v5105_v52  ;;  %v7472_v46 = vrot.slane %v7470_v54, 3  ;;  %v7475_v21 = vrot.slane %v7473_v42, 4  ;;  %v12260_v54 = vld [vmem:[#allocation3 + $0x38] sm:$0xff]  }
 0x2a3   : > { %v6041_v33 = vrot.slane %v6039_v38, 3  ;;  %v6044_v27 = vrot.slane %v6042_v7, 4  ;;  %v6092_v49 = vrot.slane %v6090_v29, 3  ;;  %v6095_v17 = vrot.slane %v6093_v16, 4 }
 0x2a4   : > { %v14551_v18 = vpack.c.bf16 %v5409_v2, %v5408_v40  ;;  %v5284_v44 = vadd.f32 %v5283_v47, %v5195_v5  ;;  %v7476_v19 = vor.u32 %v7475_v21, %v7472_v46  ;;  %v7295_v58 = vor.u32 %v14535_v25, %v14533_v61  ;;  %v11574_v47 = vld [vmem:[%s15998_s3 + $0x60] sm:$0xff]  ;;  %v12756_v5 = vld [vmem:[#allocation3 + $0x34] sm:$0xf0]  }
 0x2a5   : > { %v6053_v52 = vor.u32 %v6052_v55, %v6049_v56  ;;  %v6045_v37 = vor.u32 %v6044_v27, %v6041_v33  ;;  %v5465_v36 = vsel %vm12963_vm2, 0, %v5464_v13  ;;  %8686 = vmatpush.bf16.msrb.mxu1 %v11574_v47  ;;  %v7338_v25 = vor.u32 %v7337_v32, %v14547_v39  ;;  %v12508_v2 = vld [vmem:[#allocation3 + $0x34] sm:$0x8] }
 0x2a6   : > { %12248 = vst [vmem:[#allocation3 + $0xb0] sm:$0xff] %v14551_v18   ;;  %v7485_v62 = vsel %vm875_vm3, %v7476_v19, %v7484_v15  ;;  %v12077_v40 = vunpack.c.h.b16 %v14551_v18  ;;  %v5342_v42 = vadd.f32 %v5284_v44, %v13904_v26  ;;  %v7047_v15 = vshrl.u32 %v14243_v8, 16  ;;  %v5107_v51 = vpop.f32.mrf.mxu2 }
 0x2a7   : > { %8216 = vmatmul.bf16.gmra.mxu1 %v7485_v62  ;;  %5466 = vst [vmem:[#allocation3 + $0xac] sm:$0x8] %v5465_v36  ;;  %v6088_v56 = vor.u32 %v14549_v63, %v14542_v22  ;;  %v7050_v55 = vshll.u32 %v14243_v8, 16  ;;  %v6096_v26 = vor.u32 %v6095_v17, %v6092_v49  ;;  %v5501_v29 = vsel %vm13265_vm6, 0, %v5500_v4 }
 0x2a8   : > { %v6995_v61 = vpack.c.b16 %v12077_v40, %v12077_v40  ;;  %v14572_v16 = vrot.slane %v14243_v8, 5  ;;  %v11997_v46 = vunpack.c.h.b16 %v12260_v54  ;;  %v5288_v38 = vpop.f32.mrf.mxu0  ;;  %v6054_v7 = vsel %vm875_vm3, %v6045_v37, %v6053_v52  ;;  %5502 = vst [vmem:[#allocation3 + $0x58] sm:$0x1] %v5501_v29 }
 0x2a9   : > { %v5196_v43 = vpop.f32.mrf.mxu3  ;;  %v5378_v22 = vadd.f32 %v14526_v0, %v5342_v42  ;;  %v7049_v63 = vrot.slane %v7047_v15, 4  ;;  %v7052_v19 = vrot.slane %v7050_v55, 5  ;;  %v12509_v27 = vor.u32 %v12756_v5, %v12508_v2  ;;  %v5503_v2 = vld [vmem:[#allocation3 + $0x70] sm:$0x1] }
 0x2aa   : > { %v5197_v21 = vadd.f32 %v5196_v43, %v5107_v51  ;;  %v7521_v39 = vshrl.u32 %v6995_v61, 16  ;;  %v7524_v44 = vshll.u32 %v6995_v61, 16  ;;  %v7367_v32 = vshrl.u32 %v14572_v16, 16 }
 0x2ab   : > { %v7370_v8 = vshll.u32 %v14572_v16, 16  ;;  %v5771_v49 = vpack.c.b16 %v11997_v46, %v11997_v46  ;;  %v14580_v17 = vadd.f32 %v13938_v31, %v13949_v34  ;;  %8280 = vmatmul.bf16.vlgmr.msrb.gmra.mxu2 %v7278_v28  ;;  %v7296_v4 = vsel %vm875_vm3, %v7287_v35, %v7295_v58  ;;  %8602 = vmatmul.bf16.vlgmr.msrb.gmra.mxu0 %v6054_v7 }
 0x2ac   : > { %v5286_v33 = vadd.f32 %v5285_v45, %v5197_v21  ;;  %v7523_v45 = vrot.slane %v7521_v39, 3  ;;  %v7526_v52 = vrot.slane %v7524_v44, 4  ;;  %v7321_v31 = vor.u32 %v14530_v11, %v14519_v6 }
 0x2ad   : > { %v12776_v62 = vld [vmem:[#allocation3 + $0xac] sm:$0xf0]   ;;  %v14596_v34 = vsel %vm875_vm3, %v7330_v23, %v7338_v25  ;;  %v14599_v60 = vsel %vm875_vm3, %v6088_v56, %v6096_v26  ;;  %v5410_v53 = vmax.f32 %v5378_v22, 0.0  ;;  %v7053_v9 = vor.u32 %v7052_v19, %v7049_v63 }
 0x2ae   : > { %v5343_v13 = vadd.f32 %v5286_v33, %v14017_v1  ;;  %8369 = vmatmul.bf16.vlgmr.msrb.gmra.mxu3 %v7296_v4  ;;  %v12588_v3 = vld [vmem:[#allocation3 + $0xac] sm:$0x8]  ;;  %v14601_v28 = vrot.slane %v7367_v32, 3  ;;  %v6133_v35 = vshrl.u32 %v5771_v49, 16  ;;  %v5110_v58 = vpop.f32.mrf.mxu2  ;;  %v14604_v47 = vrot.slane %v7370_v8, 4 }
 0x2af   : > { %v12589_v40 = vor.u32 %v12776_v62, %v12588_v3  ;;  %v6125_v54 = vshrl.u32 %v12509_v27, 16  ;;  %v7527_v59 = vor.u32 %v7526_v52, %v7523_v45  ;;  %v6872_v23 = vld [vmem:[#allocation3 + $0x58] sm:$0x1]  ;;  %v6128_v42 = vshll.u32 %v12509_v27, 16  ;;  %v5467_v32 = vld [vmem:[#allocation3 + $0xc4] sm:$0x8] }
 0x2b0   : > { %v5379_v1 = vadd.f32 %v14526_v0, %v5343_v13  ;;  %v6136_v37 = vshll.u32 %v5771_v49, 16  ;;  %v7055_v36 = vshrl.u32 %v14301_v50, 16  ;;  %v5290_v61 = vpop.f32.mrf.mxu0  ;;  %v7358_v55 = vshrl.u32 %v7053_v9, 16  ;;  %v16065_v45 = vld [vmem:[#allocation17_spill] sm:$0xff] }
 0x2b1   : > { %v5199_v14 = vpop.f32.mrf.mxu3  ;;  %v7513_v25 = vshrl.u32 %v12589_v40, 16  ;;  %v7516_v56 = vshll.u32 %v12589_v40, 16  ;;  %v7361_v43 = vshll.u32 %v7053_v9, 16  ;;  %v7176_v26 = vunpack.c.l.b16 %v6872_v23  ;;  %v12512_v23 = vld [vmem:[#allocation3 + $0x4c] sm:$0x8] }
 0x2b2   : > { %v5411_v15 = vmax.f32 %v5379_v1, 0.0  ;;  %v5200_v51 = vadd.f32 %v5199_v14, %v5110_v58  ;;  %v6135_v29 = vrot.slane %v6133_v35, 3  ;;  %v6138_v44 = vrot.slane %v6136_v37, 4  ;;  %v12261_v35 = vld [vmem:[#allocation3 + $0x50] sm:$0xff]  }
 0x2b3   : > { %v7515_v21 = vrot.slane %v7513_v25, 3  ;;  %v7518_v7 = vrot.slane %v7516_v56, 4  ;;  %v7192_v39 = vpack.c.b16 %v7176_v26, %v7176_v26  ;;  %v7057_v22 = vrot.slane %v7055_v36, 4 }
 0x2b4   : > { %v14607_v5 = vpack.c.bf16 %v5411_v15, %v5410_v53  ;;  %v5289_v46 = vadd.f32 %v5288_v38, %v5200_v51  ;;  %v7058_v63 = vshll.u32 %v14301_v50, 16  ;;  %v6127_v8 = vrot.slane %v6125_v54, 3  ;;  %v12757_v51 = vld [vmem:[#allocation3 + $0x4c] sm:$0xf0]  }
 0x2b5   : > { %v7519_v19 = vor.u32 %v7518_v7, %v7515_v21  ;;  %v5504_v27 = vsel %vm13265_vm6, 0, %v5503_v2  ;;  %v5468_v38 = vsel %vm12963_vm2, 0, %v5467_v32  ;;  %v7213_v49 = vrot.slane %v7192_v39, 5 }
 0x2b6   : > { %12249 = vst [vmem:[#allocation3 + $0xc8] sm:$0xff] %v14607_v5   ;;  %v12081_v33 = vunpack.c.h.b16 %v14607_v5  ;;  %v6130_v4 = vrot.slane %v6128_v42, 4  ;;  %v7060_v62 = vrot.slane %v7058_v63, 5  ;;  %v5344_v52 = vadd.f32 %v5289_v46, %v16065_v45  ;;  %v5112_v13 = vpop.f32.mrf.mxu2 }
 0x2b7   : > { %5505 = vst [vmem:[#allocation3 + $0x70] sm:$0x1] %v5504_v27  ;;  %v7528_v53 = vsel %vm875_vm3, %v7519_v19, %v7527_v59  ;;  %v14618_v9 = vrot.slane %v7358_v55, 3  ;;  %v14620_v58 = vrot.slane %v7361_v43, 4  ;;  %v7214_v40 = vsel %vm826_vm7, %v14572_v16, %v7213_v49 }
 0x2b8   : > { %5469 = vst [vmem:[#allocation3 + $0xc4] sm:$0x8] %v5468_v38  ;;  %v6997_v3 = vpack.c.b16 %v12081_v33, %v12081_v33  ;;  %8221 = vmatmul.bf16.gmra.mxu1 %v7528_v53  ;;  %v6139_v54 = vor.u32 %v6138_v44, %v6135_v29  ;;  %v7061_v14 = vor.u32 %v7060_v62, %v7057_v22  ;;  %v5293_v37 = vpop.f32.mrf.mxu0  ;;  %v7215_v59 = vrot.slane %v14301_v50, 5 }
 0x2b9   : > { %v5201_v1 = vpop.f32.mrf.mxu3  ;;  %v7375_v25 = vshrl.u32 %v7214_v40, 16  ;;  %v7378_v56 = vshll.u32 %v7214_v40, 16  ;;  %v6131_v55 = vor.u32 %v6130_v4, %v6127_v8  ;;  %v12001_v26 = vunpack.c.h.b16 %v12261_v35 }
 0x2ba   : > { %v5202_v42 = vadd.f32 %v5201_v1, %v5112_v13  ;;  %v7564_v36 = vshrl.u32 %v6997_v3, 16  ;;  %v7567_v15 = vshll.u32 %v6997_v3, 16  ;;  %v5380_v43 = vadd.f32 %v14526_v0, %v5344_v52 }
 0x2bb   : > { %v7373_v16 = vor.u32 %v14604_v47, %v14601_v28  ;;  %v7401_v29 = vshrl.u32 %v7061_v14, 16  ;;  %8285 = vmatmul.bf16.gmra.mxu2 %v7321_v31  ;;  %8607 = vmatmul.bf16.gmra.mxu0 %v14599_v60  ;;  %v7364_v50 = vor.u32 %v14620_v58, %v14618_v9  ;;  %v14635_v21 = vsel %vm875_vm3, %v6131_v55, %v6139_v54  ;;  %v12516_v47 = vld [vmem:[#allocation3 + $0x64] sm:$0x8] }
 0x2bc   : > { %v5291_v2 = vadd.f32 %v5290_v61, %v5202_v42  ;;  %v7404_v7 = vshll.u32 %v7061_v14, 16  ;;  %v14637_v39 = vor.u32 %v12757_v51, %v12512_v23  ;;  %v7566_v44 = vrot.slane %v7564_v36, 3 }
 0x2bd   : > { %v12777_v46 = vld [vmem:[#allocation3 + $0xc4] sm:$0xf0]   ;;  %v7569_v22 = vrot.slane %v7567_v15, 4  ;;  %v7410_v11 = vshrl.u32 %v7215_v59, 16  ;;  %v7377_v60 = vrot.slane %v7375_v25, 3  ;;  %v7380_v63 = vrot.slane %v7378_v56, 4 }
 0x2be   : > { %v5345_v61 = vadd.f32 %v5291_v2, %v14044_v48  ;;  %8374 = vmatmul.bf16.gmra.mxu3 %v14596_v34  ;;  %v6873_v6 = vld [vmem:[#allocation3 + $0x70] sm:$0x1]  ;;  %v5773_v32 = vpack.c.b16 %v12001_v26, %v12001_v26  ;;  %v5412_v33 = vmax.f32 %v5380_v43, 0.0  ;;  %v5115_v27 = vpop.f32.mrf.mxu2  ;;  %v14642_v49 = vrot.slane %v7401_v29, 3  ;;  %v5470_v43 = vld [vmem:[#allocation3 + $0xdc] sm:$0x8] }
 0x2bf   : > { %v12592_v31 = vld [vmem:[#allocation3 + $0xc4] sm:$0x8]  ;;  %v7177_v19 = vunpack.c.l.b16 %v6873_v6  ;;  %v14644_v48 = vrot.slane %v7404_v7, 4  ;;  %v7413_v62 = vshll.u32 %v7215_v59, 16  ;;  %v7570_v1 = vor.u32 %v7569_v22, %v7566_v44  ;;  %v11573_v29 = vld [vmem:[%s15998_s3 + $0x58] sm:$0xff] }
 0x2c0   : > { %v5381_v8 = vadd.f32 %v14526_v0, %v5345_v61  ;;  %v12593_v38 = vor.u32 %v12777_v46, %v12592_v31  ;;  %v6176_v45 = vshrl.u32 %v5773_v32, 16  ;;  %v5295_v53 = vpop.f32.mrf.mxu0  ;;  %v7381_v40 = vor.u32 %v7380_v63, %v7377_v60  ;;  %v16066_v7 = vld [vmem:[#allocation18_spill] sm:$0xff]  ;;  %8687 = vmatpush.bf16.msrb.mxu1 %v11573_v29 }
 0x2c1   : > { %v5204_v4 = vpop.f32.mrf.mxu3  ;;  %v7193_v34 = vpack.c.b16 %v7177_v19, %v7177_v19  ;;  %v14646_v14 = vrot.slane %v7410_v11, 3  ;;  %v14651_v25 = vrot.slane %v7413_v62, 4  ;;  %v6168_v56 = vshrl.u32 %v14637_v39, 16  ;;  %v5506_v19 = vld [vmem:[#allocation3 + $0x88] sm:$0x1] }
 0x2c2   : > { %v5413_v52 = vmax.f32 %v5381_v8, 0.0  ;;  %v5205_v13 = vadd.f32 %v5204_v4, %v5115_v27  ;;  %v7556_v3 = vshrl.u32 %v12593_v38, 16  ;;  %v7559_v35 = vshll.u32 %v12593_v38, 16 }
 0x2c3   : > { %v7216_v54 = vrot.slane %v7193_v34, 5  ;;  %v6179_v55 = vshll.u32 %v5773_v32, 16  ;;  %v6178_v46 = vrot.slane %v6176_v45, 3  ;;  %v5471_v61 = vsel %vm12963_vm2, 0, %v5470_v43  ;;  %v16068_v43 = vld [vmem:[#allocation20_spill] sm:$0xff] }
 0x2c4   : > { %v14648_v23 = vpack.c.bf16 %v5413_v52, %v5412_v33  ;;  %v5294_v42 = vadd.f32 %v5293_v37, %v5205_v13  ;;  %v7558_v36 = vrot.slane %v7556_v3, 3  ;;  %v7561_v15 = vrot.slane %v7559_v35, 4  ;;  %5472 = vst [vmem:[#allocation3 + $0xdc] sm:$0x8] %v5471_v61  ;;  %v12262_v52 = vld [vmem:[#allocation3 + $0x68] sm:$0xff]  }
 0x2c5   : > { %v7217_v51 = vsel %vm826_vm7, %v7215_v59, %v7216_v54  ;;  %v6171_v37 = vshll.u32 %v14637_v39, 16  ;;  %v7063_v22 = vshrl.u32 %v14409_v30, 16  ;;  %v6181_v63 = vrot.slane %v6179_v55, 4 }
 0x2c6   : > { %12250 = vst [vmem:[#allocation3 + $0xe0] sm:$0xff] %v14648_v23   ;;  %v7562_v26 = vor.u32 %v7561_v15, %v7558_v36  ;;  %v12085_v2 = vunpack.c.h.b16 %v14648_v23  ;;  %v5346_v59 = vadd.f32 %v5294_v42, %v16066_v7  ;;  %v7418_v44 = vshrl.u32 %v7217_v51, 16  ;;  %v5117_v6 = vpop.f32.mrf.mxu2  ;;  %v12758_v36 = vld [vmem:[#allocation3 + $0x64] sm:$0xf0]  }
 0x2c7   : > { %v7421_v60 = vshll.u32 %v7217_v51, 16  ;;  %v7382_v39 = vsel %vm875_vm3, %v7373_v16, %v7381_v40  ;;  %v6170_v33 = vrot.slane %v6168_v56, 3  ;;  %v7065_v8 = vrot.slane %v7063_v22, 4  ;;  %v14675_v16 = vpop.f32.mrf.mxu1 }
 0x2c8   : > { %v7571_v11 = vsel %vm875_vm3, %v7562_v26, %v7570_v1  ;;  %v6999_v31 = vpack.c.b16 %v12085_v2, %v12085_v2  ;;  %v7066_v27 = vshll.u32 %v14409_v30, 16  ;;  %v5298_v4 = vpop.f32.mrf.mxu0  ;;  %v6173_v45 = vrot.slane %v6171_v37, 4  ;;  %v16067_v26 = vld [vmem:[#allocation22_spill] sm:$0xff] }
 0x2c9   : > { %v5206_v32 = vpop.f32.mrf.mxu3  ;;  %8226 = vmatmul.bf16.gmra.mxu1 %v7571_v11  ;;  %v5382_v13 = vadd.f32 %v14526_v0, %v5346_v59  ;;  %v14671_v3 = vrot.slane %v7418_v44, 3  ;;  %v5507_v28 = vsel %vm13265_vm6, 0, %v5506_v19  ;;  %v14679_v54 = vrot.slane %v7421_v60, 4 }
 0x2ca   : > { %v5207_v38 = vadd.f32 %v5206_v32, %v5117_v6  ;;  %v7607_v34 = vshrl.u32 %v6999_v31, 16  ;;  %v7610_v62 = vshll.u32 %v6999_v31, 16  ;;  %v7068_v35 = vrot.slane %v7066_v27, 5  ;;  %5508 = vst [vmem:[#allocation3 + $0x88] sm:$0x1] %v5507_v28 }
 0x2cb   : > { %v6182_v42 = vor.u32 %v6181_v63, %v6178_v46  ;;  %8290 = vmatmul.bf16.gmra.mxu2 %v7364_v50  ;;  %8612 = vmatmul.bf16.gmra.mxu0 %v14635_v21  ;;  %v14688_v55 = vrot.slane %v14409_v30, 5  ;;  %v14692_v2 = vadd.f32 %v16068_v43, %v16067_v26  ;;  %v7407_v9 = vor.u32 %v14644_v48, %v14642_v49  ;;  %v12596_v21 = vld [vmem:[#allocation3 + $0xdc] sm:$0x8] }
 0x2cc   : > { %v5296_v1 = vadd.f32 %v5295_v53, %v5207_v38  ;;  %v14677_v40 = vrot.slane %v7607_v34, 3  ;;  %v7612_v51 = vrot.slane %v7610_v62, 4  ;;  %v14685_v56 = vor.u32 %v7068_v35, %v7065_v8 }
 0x2cd   : > { %v12778_v15 = vld [vmem:[#allocation3 + $0xdc] sm:$0xf0]   ;;  %v12005_v53 = vunpack.c.h.b16 %v12262_v52  ;;  %v6174_v58 = vor.u32 %v6173_v45, %v6170_v33  ;;  %v5414_v50 = vmax.f32 %v5382_v13, 0.0  ;;  %v7416_v37 = vor.u32 %v14651_v25, %v14646_v14  ;;  %v16070_v25 = vld [vmem:[#allocation7_spill] sm:$0xff] }
 0x2ce   : > { %v5347_v29 = vadd.f32 %v5296_v1, %v14048_v57  ;;  %8379 = vmatmul.bf16.gmra.mxu3 %v7382_v39  ;;  %v12517_v46 = vor.u32 %v12758_v36, %v12516_v47  ;;  %v5120_v59 = vpop.f32.mrf.mxu2  ;;  %v12597_v61 = vor.u32 %v12778_v15, %v12596_v21  ;;  %v7424_v44 = vor.u32 %v14679_v54, %v14671_v3  ;;  %v16069_v54 = vld [vmem:[#allocation19_spill] sm:$0xff]  ;;  %v5473_v15 = vld [vmem:[#allocation3 + $0xf4] sm:$0x8]  ;;  %v12263_v14 = vld [vmem:[#allocation3 + $0x80] sm:$0xff]  }
 0x2cf   : > { %v5775_v30 = vpack.c.b16 %v12005_v53, %v12005_v53  ;;  %v14703_v57 = vsel %vm875_vm3, %v6174_v58, %v6182_v42  ;;  %v7613_v6 = vor.u32 %v7612_v51, %v14677_v40  ;;  %v7444_v11 = vshrl.u32 %v14685_v56, 16 }
 0x2d0   : > { %v5383_v7 = vadd.f32 %v14526_v0, %v5347_v29  ;;  %v7453_v31 = vshrl.u32 %v14688_v55, 16  ;;  %v7456_v60 = vshll.u32 %v14688_v55, 16  ;;  %v5300_v32 = vpop.f32.mrf.mxu0  ;;  %v7599_v39 = vshrl.u32 %v12597_v61, 16 }
 0x2d1   : > { %v5209_v22 = vpop.f32.mrf.mxu3  ;;  %v7602_v33 = vshll.u32 %v12597_v61, 16  ;;  %v7447_v8 = vshll.u32 %v14685_v56, 16  ;;  %v6874_v27 = vld [vmem:[#allocation3 + $0x88] sm:$0x1]  ;;  %v6211_v38 = vshrl.u32 %v12517_v46, 16  ;;  %v6214_v34 = vshll.u32 %v12517_v46, 16 }
 0x2d2   : > { %v5415_v63 = vmax.f32 %v5383_v7, 0.0  ;;  %v5210_v19 = vadd.f32 %v5209_v22, %v5120_v59  ;;  %v6219_v62 = vshrl.u32 %v5775_v30, 16  ;;  %v7601_v3 = vrot.slane %v7599_v39, 3 }
 0x2d3   : > { %v7604_v35 = vrot.slane %v7602_v33, 4  ;;  %v14714_v28 = vrot.slane %v7444_v11, 3  ;;  %v7178_v47 = vunpack.c.l.b16 %v6874_v27  ;;  %v6222_v40 = vshll.u32 %v5775_v30, 16 }
 0x2d4   : > { %v14710_v45 = vpack.c.bf16 %v5415_v63, %v5414_v50  ;;  %v5299_v52 = vadd.f32 %v5298_v4, %v5210_v19  ;;  %v14712_v13 = vpop.f32.mrf.mxu1  ;;  %v6221_v1 = vrot.slane %v6219_v62, 3  ;;  %v7071_v56 = vshrl.u32 %v14499_v20, 16  ;;  %v5509_v4 = vld [vmem:[#allocation3 + $0xa0] sm:$0x1] }
 0x2d5   : > { %v7605_v36 = vor.u32 %v7604_v35, %v7601_v3  ;;  %v5474_v53 = vsel %vm12963_vm2, 0, %v5473_v15  ;;  %v7194_v26 = vpack.c.b16 %v7178_v47, %v7178_v47  ;;  %v6224_v43 = vrot.slane %v6222_v40, 4 }
 0x2d6   : > { %12251 = vst [vmem:[#allocation3 + $0xf8] sm:$0xff] %v14710_v45   ;;  %v5348_v42 = vadd.f32 %v5299_v52, %v16069_v54  ;;  %v12089_v51 = vunpack.c.h.b16 %v14710_v45  ;;  %v7074_v29 = vshll.u32 %v14499_v20, 16  ;;  %v5122_v58 = vpop.f32.mrf.mxu2  ;;  %v6213_v46 = vrot.slane %v6211_v38, 3  ;;  %v16073_v54 = vld [vmem:[#allocation8_spill] sm:$0xff] }
 0x2d7   : > { %v7614_v50 = vsel %vm875_vm3, %v7605_v36, %v7613_v6  ;;  %5475 = vst [vmem:[#allocation3 + $0xf4] sm:$0x8] %v5474_v53  ;;  %v6216_v30 = vrot.slane %v6214_v34, 4  ;;  %v7219_v59 = vrot.slane %v7194_v26, 5  ;;  %v7073_v61 = vrot.slane %v7071_v56, 4 }
 0x2d8   : > { %v7001_v21 = vpack.c.b16 %v12089_v51, %v12089_v51  ;;  %v7076_v22 = vrot.slane %v7074_v29, 5  ;;  %v5510_v11 = vsel %vm13265_vm6, 0, %v5509_v4  ;;  %v5303_v19 = vpop.f32.mrf.mxu0  ;;  %v14726_v27 = vrot.slane %v7447_v8, 4  ;;  %v12520_v26 = vld [vmem:[#allocation3 + $0x7c] sm:$0x8] }
 0x2d9   : > { %v5211_v7 = vpop.f32.mrf.mxu3  ;;  %8231 = vmatmul.bf16.gmra.mxu1 %v7614_v50  ;;  %5511 = vst [vmem:[#allocation3 + $0xa0] sm:$0x1] %v5510_v11  ;;  %v5384_v6 = vadd.f32 %v14526_v0, %v5348_v42  ;;  %v14729_v62 = vrot.slane %v7453_v31, 3  ;;  %v14731_v38 = vrot.slane %v7456_v60, 4  ;;  %v6225_v34 = vor.u32 %v6224_v43, %v6221_v1 }
 0x2da   : > { %v5212_v63 = vadd.f32 %v5211_v7, %v5122_v58  ;;  %v7650_v39 = vshrl.u32 %v7001_v21, 16  ;;  %v7653_v33 = vshll.u32 %v7001_v21, 16  ;;  %v7425_v35 = vsel %vm875_vm3, %v7416_v37, %v7424_v44  ;;  %v16071_v37 = vld [vmem:[#allocation6_spill] sm:$0xff] }
 0x2db   : > { %v7220_v8 = vsel %vm826_vm7, %v14688_v55, %v7219_v59  ;;  %v6217_v47 = vor.u32 %v6216_v30, %v6213_v46  ;;  %8295 = vmatmul.bf16.gmra.mxu2 %v7407_v9  ;;  %8617 = vmatmul.bf16.gmra.mxu0 %v14703_v57  ;;  %v7077_v1 = vor.u32 %v7076_v22, %v7073_v61  ;;  %v14746_v40 = vrot.slane %v14499_v20, 5  ;;  %v16072_v55 = vld [vmem:[#allocation9_spill] sm:$0xff] }
 0x2dc   : > { %v5301_v52 = vadd.f32 %v5300_v32, %v5212_v63  ;;  %v14733_v3 = vpop.f32.mrf.mxu1  ;;  %v7652_v60 = vrot.slane %v7650_v39, 3  ;;  %v7655_v32 = vrot.slane %v7653_v33, 4  ;;  %v14750_v44 = vadd.f32 %v16071_v37, %v16070_v25  ;;  %v5476_v25 = vld [vmem:[#allocation3 + $0x10c] sm:$0x8] }
 0x2dd   : > { %v12779_v31 = vld [vmem:[#allocation3 + $0xf4] sm:$0xf0]   ;;  %v14754_v42 = vadd.f32 %v16073_v54, %v16072_v55  ;;  %v7450_v48 = vor.u32 %v14726_v27, %v14714_v28  ;;  %v5416_v9 = vmax.f32 %v5384_v6, 0.0  ;;  %v7459_v20 = vor.u32 %v14731_v38, %v14729_v62  ;;  %v11572_v55 = vld [vmem:[%s15998_s3 + $0x50] sm:$0xff] }
 0x2de   : > { %v5349_v49 = vadd.f32 %v5301_v52, %v14580_v17  ;;  %8384 = vmatmul.bf16.gmra.mxu3 %v7425_v35  ;;  %v12600_v57 = vld [vmem:[#allocation3 + $0xf4] sm:$0x8]  ;;  %v7461_v36 = vshrl.u32 %v7220_v8, 16  ;;  %v14762_v15 = vsel %vm875_vm3, %v6217_v47, %v6225_v34  ;;  %v5125_v56 = vpop.f32.mrf.mxu2  ;;  %v7464_v53 = vshll.u32 %v7220_v8, 16  ;;  %v12759_v17 = vld [vmem:[#allocation3 + $0x7c] sm:$0xf0]   ;;  %8688 = vmatpush.bf16.msrb.mxu1 %v11572_v55 }
 0x2df   : > { %v12601_v4 = vor.u32 %v12779_v31, %v12600_v57  ;;  %v12009_v43 = vunpack.c.h.b16 %v12263_v14  ;;  %v7656_v58 = vor.u32 %v7655_v32, %v7652_v60  ;;  %v7487_v50 = vshrl.u32 %v7077_v1, 16  ;;  %v12524_v55 = vld [vmem:[#allocation3 + $0x94] sm:$0x8]  ;;  %v12760_v62 = vld [vmem:[#allocation3 + $0x94] sm:$0xf0]  }
 0x2e0   : > { %v5385_v51 = vadd.f32 %v14526_v0, %v5349_v49  ;;  %v7490_v21 = vshll.u32 %v7077_v1, 16  ;;  %v6875_v46 = vld [vmem:[#allocation3 + $0xa0] sm:$0x1]  ;;  %v7496_v30 = vshrl.u32 %v14746_v40, 16  ;;  %v5305_v61 = vpop.f32.mrf.mxu0  ;;  %v7463_v63 = vrot.slane %v7461_v36, 3 }
 0x2e1   : > { %v5214_v29 = vpop.f32.mrf.mxu3  ;;  %v7642_v22 = vshrl.u32 %v12601_v4, 16  ;;  %v7645_v11 = vshll.u32 %v12601_v4, 16  ;;  %v7179_v39 = vunpack.c.l.b16 %v6875_v46  ;;  %v7499_v33 = vshll.u32 %v14746_v40, 16 }
 0x2e2   : > { %v5417_v7 = vmax.f32 %v5385_v51, 0.0  ;;  %v5215_v59 = vadd.f32 %v5214_v29, %v5125_v56  ;;  %v5777_v6 = vpack.c.b16 %v12009_v43, %v12009_v43  ;;  %v12521_v47 = vor.u32 %v12759_v17, %v12520_v26  ;;  %v16074_v17 = vld [vmem:[#allocation21_spill] sm:$0xff] }
 0x2e3   : > { %v7644_v35 = vrot.slane %v7642_v22, 3  ;;  %v7647_v8 = vrot.slane %v7645_v11, 4  ;;  %v7466_v60 = vrot.slane %v7464_v53, 4  ;;  %v14771_v32 = vrot.slane %v7487_v50, 3 }
 0x2e4   : > { %v14767_v34 = vpack.c.bf16 %v5417_v7, %v5416_v9  ;;  %v14769_v52 = vpop.f32.mrf.mxu1  ;;  %v5304_v31 = vadd.f32 %v5303_v19, %v5215_v59  ;;  %v7195_v1 = vpack.c.b16 %v7179_v39, %v7179_v39  ;;  %v6262_v54 = vshrl.u32 %v5777_v6, 16 }
 0x2e5   : > { %v7648_v14 = vor.u32 %v7647_v8, %v7644_v35  ;;  %v6265_v49 = vshll.u32 %v5777_v6, 16  ;;  %v5477_v9 = vsel %vm12963_vm2, 0, %v5476_v25  ;;  %v14780_v19 = vrot.slane %v7490_v21, 4 }
 0x2e6   : > { %12252 = vst [vmem:[#allocation3 + $0x110] sm:$0xff] %v14767_v34   ;;  %v12093_v37 = vunpack.c.h.b16 %v14767_v34  ;;  %v7222_v57 = vrot.slane %v7195_v1, 5  ;;  %v14782_v36 = vrot.slane %v7496_v30, 3  ;;  %v5127_v51 = vpop.f32.mrf.mxu2  ;;  %v6254_v53 = vshrl.u32 %v12521_v47, 16  ;;  %v5512_v30 = vld [vmem:[#allocation3 + $0xb8] sm:$0x1] }
 0x2e7   : > { %v7657_v56 = vsel %vm875_vm3, %v7648_v14, %v7656_v58  ;;  %5478 = vst [vmem:[#allocation3 + $0x10c] sm:$0x8] %v5477_v9  ;;  %v6257_v26 = vshll.u32 %v12521_v47, 16  ;;  %v5350_v43 = vadd.f32 %v5304_v31, %v16074_v17  ;;  %v7467_v50 = vor.u32 %v7466_v60, %v7463_v63 }
 0x2e8   : > { %v7003_v4 = vpack.c.b16 %v12093_v37, %v12093_v37  ;;  %v7223_v21 = vsel %vm826_vm7, %v14746_v40, %v7222_v57  ;;  %v14788_v46 = vrot.slane %v7499_v33, 4  ;;  %v5308_v59 = vpop.f32.mrf.mxu0  ;;  %v6264_v58 = vrot.slane %v6262_v54, 3  ;;  %v12264_v33 = vld [vmem:[#allocation3 + $0x98] sm:$0xff]  }
 0x2e9   : > { %v5216_v29 = vpop.f32.mrf.mxu3  ;;  %8236 = vmatmul.bf16.gmra.mxu1 %v7657_v56  ;;  %v6267_v11 = vrot.slane %v6265_v49, 4  ;;  %v7504_v6 = vshrl.u32 %v7223_v21, 16  ;;  %v7507_v35 = vshll.u32 %v7223_v21, 16  ;;  %v7079_v8 = vshrl.u32 %v14551_v18, 16 }
 0x2ea   : > { %v5217_v7 = vadd.f32 %v5216_v29, %v5127_v51  ;;  %v7693_v22 = vshrl.u32 %v7003_v4, 16  ;;  %v7696_v39 = vshll.u32 %v7003_v4, 16  ;;  %v6256_v63 = vrot.slane %v6254_v53, 3 }
 0x2eb   : > { %v6259_v60 = vrot.slane %v6257_v26, 4  ;;  %v5513_v40 = vsel %vm13265_vm6, 0, %v5512_v30  ;;  %v5386_v1 = vadd.f32 %v14526_v0, %v5350_v43  ;;  %8300 = vmatmul.bf16.gmra.mxu2 %v7450_v48  ;;  %v7468_v14 = vsel %vm875_vm3, %v7459_v20, %v7467_v50  ;;  %8622 = vmatmul.bf16.gmra.mxu0 %v14762_v15 }
 0x2ec   : > { %v5306_v47 = vadd.f32 %v5305_v61, %v5217_v7  ;;  %v14791_v31 = vpop.f32.mrf.mxu1  ;;  %v7493_v25 = vor.u32 %v14780_v19, %v14771_v32  ;;  %v7082_v37 = vshll.u32 %v14551_v18, 16  ;;  %v7695_v49 = vrot.slane %v7693_v22, 3  ;;  %5514 = vst [vmem:[#allocation3 + $0xb8] sm:$0x1] %v5513_v40 }
 0x2ed   : > { %v12780_v61 = vld [vmem:[#allocation3 + $0x10c] sm:$0xf0]   ;;  %v7502_v28 = vor.u32 %v14788_v46, %v14782_v36  ;;  %v6268_v27 = vor.u32 %v6267_v11, %v6264_v58  ;;  %v7698_v48 = vrot.slane %v7696_v39, 4  ;;  %v7506_v20 = vrot.slane %v7504_v6, 3 }
 0x2ee   : > { %v5351_v54 = vadd.f32 %v5306_v47, %v14692_v2  ;;  %8389 = vmatmul.bf16.gmra.mxu3 %v7468_v14  ;;  %v12604_v38 = vld [vmem:[#allocation3 + $0x10c] sm:$0x8]  ;;  %v7509_v15 = vrot.slane %v7507_v35, 4  ;;  %v12013_v9 = vunpack.c.h.b16 %v12264_v33  ;;  %v5130_v51 = vpop.f32.mrf.mxu2  ;;  %v6260_v4 = vor.u32 %v6259_v60, %v6256_v63 }
 0x2ef   : > { %v12605_v56 = vor.u32 %v12780_v61, %v12604_v38  ;;  %v7081_v53 = vrot.slane %v7079_v8, 4  ;;  %v5418_v2 = vmax.f32 %v5386_v1, 0.0  ;;  %v7084_v17 = vrot.slane %v7082_v37, 5  ;;  %v5479_v1 = vld [vmem:[#allocation3 + $0x124] sm:$0x8]  ;;  %v16075_v37 = vld [vmem:[#allocation23_spill] sm:$0xff] }
 0x2f0   : > { %v5387_v57 = vadd.f32 %v14526_v0, %v5351_v54  ;;  %v14812_v43 = vrot.slane %v14551_v18, 5  ;;  %v12525_v36 = vor.u32 %v12760_v62, %v12524_v55  ;;  %v5310_v21 = vpop.f32.mrf.mxu0  ;;  %v7699_v7 = vor.u32 %v7698_v48, %v7695_v49 }
 0x2f1   : > { %v5219_v26 = vpop.f32.mrf.mxu3  ;;  %v7685_v46 = vshrl.u32 %v12605_v56, 16  ;;  %v7688_v30 = vshll.u32 %v12605_v56, 16  ;;  %v7510_v22 = vor.u32 %v7509_v15, %v7506_v20  ;;  %v6269_v0 = vsel %vm875_vm3, %v6260_v4, %v6268_v27 }
 0x2f2   : > { %v5419_v29 = vmax.f32 %v5387_v57, 0.0  ;;  %v5220_v50 = vadd.f32 %v5219_v26, %v5130_v51  ;;  %v5779_v58 = vpack.c.b16 %v12013_v9, %v12013_v9  ;;  %v7085_v18 = vor.u32 %v7084_v17, %v7081_v53  ;;  %v5515_v9 = vld [vmem:[#allocation3 + $0xd0] sm:$0x1] }
 0x2f3   : > { %v7687_v35 = vrot.slane %v7685_v46, 3  ;;  %v7690_v8 = vrot.slane %v7688_v30, 4  ;;  %v6876_v47 = vld [vmem:[#allocation3 + $0xb8] sm:$0x1]  ;;  %v7539_v63 = vshrl.u32 %v14812_v43, 16  ;;  %v7542_v60 = vshll.u32 %v14812_v43, 16 }
 0x2f4   : > { %v14815_v11 = vpack.c.bf16 %v5419_v29, %v5418_v2  ;;  %v5309_v39 = vadd.f32 %v5308_v59, %v5220_v50  ;;  %v14817_v6 = vpop.f32.mrf.mxu1  ;;  %v7087_v40 = vshrl.u32 %v14607_v5, 16  ;;  %v7180_v61 = vunpack.c.l.b16 %v6876_v47 }
 0x2f5   : > { %v7691_v33 = vor.u32 %v7690_v8, %v7687_v35  ;;  %v6297_v59 = vshrl.u32 %v12525_v36, 16  ;;  %v7511_v54 = vsel %vm875_vm3, %v7502_v28, %v7510_v22  ;;  %v5480_v49 = vsel %vm12963_vm2, 0, %v5479_v1 }
 0x2f6   : > { %12253 = vst [vmem:[#allocation3 + $0x128] sm:$0xff] %v14815_v11   ;;  %v12097_v14 = vunpack.c.h.b16 %v14815_v11  ;;  %v5352_v55 = vadd.f32 %v5309_v39, %v16075_v37  ;;  %v6300_v27 = vshll.u32 %v12525_v36, 16  ;;  %v5132_v62 = vpop.f32.mrf.mxu2  ;;  %v7196_v20 = vpack.c.b16 %v7180_v61, %v7180_v61 }
 0x2f7   : > { %v7700_v38 = vsel %vm875_vm3, %v7691_v33, %v7699_v7  ;;  %5481 = vst [vmem:[#allocation3 + $0x124] sm:$0x8] %v5480_v49  ;;  %v6305_v15 = vshrl.u32 %v5779_v58, 16  ;;  %v7530_v51 = vshrl.u32 %v7085_v18, 16  ;;  %v7533_v56 = vshll.u32 %v7085_v18, 16 }
 0x2f8   : > { %v7005_v48 = vpack.c.b16 %v12097_v14, %v12097_v14  ;;  %v14829_v4 = vrot.slane %v7539_v63, 3  ;;  %v6308_v53 = vshll.u32 %v5779_v58, 16  ;;  %v5313_v2 = vpop.f32.mrf.mxu0  ;;  %v14831_v17 = vrot.slane %v7542_v60, 4  ;;  %v14841_v7 = vld [vmem:[%s15997_s2] ss:$0 sm:$0xff] }
 0x2f9   : > { %v5221_v57 = vpop.f32.mrf.mxu3  ;;  %8241 = vmatmul.bf16.gmra.mxu1 %v7700_v38  ;;  %v14833_v36 = vrot.slane %v6297_v59, 3  ;;  %v7225_v50 = vrot.slane %v7196_v20, 5  ;;  %v7090_v46 = vshll.u32 %v14607_v5, 16  ;;  %v5516_v30 = vsel %vm13265_vm6, 0, %v5515_v9  ;;  %v12528_v38 = vld [vmem:[#allocation3 + $0xac] sm:$0x8] }
 0x2fa   : > { %v5222_v28 = vadd.f32 %v5221_v57, %v5132_v62  ;;  %v7736_v26 = vshrl.u32 %v7005_v48, 16  ;;  %v7739_v29 = vshll.u32 %v7005_v48, 16  ;;  %v5388_v22 = vadd.f32 %v14841_v7, %v5352_v55  ;;  %5517 = vst [vmem:[#allocation3 + $0xd0] sm:$0x1] %v5516_v30 }
 0x2fb   : > { %v14846_v35 = vrot.slane %v6300_v27, 4  ;;  %v14848_v8 = vrot.slane %v6305_v15, 3  ;;  %8305 = vmatmul.bf16.gmra.mxu2 %v7493_v25  ;;  %8627 = vmatmul.bf16.gmra.mxu0 %v6269_v0  ;;  %v7226_v47 = vsel %vm826_vm7, %v14812_v43, %v7225_v50  ;;  %v14855_v63 = vrot.slane %v6308_v53, 4 }
 0x2fc   : > { %v5311_v58 = vadd.f32 %v5310_v21, %v5222_v28  ;;  %v14844_v39 = vpop.f32.mrf.mxu1  ;;  %v7089_v60 = vrot.slane %v7087_v40, 4  ;;  %v7092_v21 = vrot.slane %v7090_v46, 5  ;;  %v14859_v33 = vadd.f32 %v13994_v10, %v13996_v24 }
 0x2fd   : > { %v12781_v18 = vld [vmem:[#allocation3 + $0x124] sm:$0xf0]   ;;  %v14862_v14 = vrot.slane %v7530_v51, 3  ;;  %v14864_v32 = vrot.slane %v7533_v56, 4  ;;  %v7738_v25 = vrot.slane %v7736_v26, 3  ;;  %v7741_v0 = vrot.slane %v7739_v29, 4 }
 0x2fe   : > { %v5353_v1 = vadd.f32 %v5311_v58, %v14750_v44  ;;  %8394 = vmatmul.bf16.gmra.mxu3 %v7511_v54  ;;  %v12608_v19 = vld [vmem:[#allocation3 + $0x124] sm:$0x8]  ;;  %v7547_v61 = vshrl.u32 %v7226_v47, 16  ;;  %v7550_v43 = vshll.u32 %v7226_v47, 16  ;;  %v5135_v40 = vpop.f32.mrf.mxu2  ;;  %v7545_v10 = vor.u32 %v14831_v17, %v14829_v4  ;;  %v12265_v44 = vld [vmem:[#allocation3 + $0xb0] sm:$0xff]  }
 0x2ff   : > { %v12609_v37 = vor.u32 %v12781_v18, %v12608_v19  ;;  %v6303_v24 = vor.u32 %v14846_v35, %v14833_v36  ;;  %v5420_v55 = vmax.f32 %v5388_v22, 0.0  ;;  %v6311_v49 = vor.u32 %v14855_v63, %v14848_v8  ;;  %v12761_v51 = vld [vmem:[#allocation3 + $0xac] sm:$0xf0]   ;;  %v5482_v47 = vld [vmem:[#allocation3 + $0x13c] sm:$0x8] }
 0x300   : > { %v5389_v59 = vadd.f32 %v14841_v7, %v5353_v1  ;;  %v7093_v27 = vor.u32 %v7092_v21, %v7089_v60  ;;  %v14874_v62 = vrot.slane %v14607_v5, 5  ;;  %v5315_v15 = vpop.f32.mrf.mxu0  ;;  %v7742_v56 = vor.u32 %v7741_v0, %v7738_v25 }
 0x301   : > { %v5224_v54 = vpop.f32.mrf.mxu3  ;;  %v7728_v9 = vshrl.u32 %v12609_v37, 16  ;;  %v7731_v57 = vshll.u32 %v12609_v37, 16  ;;  %v7549_v53 = vrot.slane %v7547_v61, 3  ;;  %v7552_v28 = vrot.slane %v7550_v43, 4  ;;  %v6877_v26 = vld [vmem:[#allocation3 + $0xd0] sm:$0x1] }
 0x302   : > { %v5421_v48 = vmax.f32 %v5389_v59, 0.0  ;;  %v5225_v20 = vadd.f32 %v5224_v54, %v5135_v40  ;;  %v12017_v36 = vunpack.c.h.b16 %v12265_v44  ;;  %v7181_v22 = vunpack.c.l.b16 %v6877_v26  ;;  %v16076_v61 = vld [vmem:[#allocation24_spill] sm:$0xff] }
 0x303   : > { %v7730_v30 = vrot.slane %v7728_v9, 3  ;;  %v7733_v5 = vrot.slane %v7731_v57, 4  ;;  %v7582_v58 = vshrl.u32 %v14874_v62, 16  ;;  %v7585_v35 = vshll.u32 %v14874_v62, 16 }
 0x304   : > { %v14876_v29 = vpack.c.bf16 %v5421_v48, %v5420_v55  ;;  %v5314_v50 = vadd.f32 %v5313_v2, %v5225_v20  ;;  %v14878_v46 = vpop.f32.mrf.mxu1  ;;  %v12529_v8 = vor.u32 %v12761_v51, %v12528_v38  ;;  %v11571_v2 = vld [vmem:[%s15998_s3 + $0x48] sm:$0xff]  ;;  %v7573_v60 = vshrl.u32 %v7093_v27, 16 }
 0x305   : > { %v7734_v18 = vor.u32 %v7733_v5, %v7730_v30  ;;  %v7576_v21 = vshll.u32 %v7093_v27, 16  ;;  %v7553_v1 = vor.u32 %v7552_v28, %v7549_v53  ;;  %v5483_v19 = vsel %vm12963_vm2, 0, %v5482_v47  ;;  %8689 = vmatpush.bf16.msrb.mxu1 %v11571_v2 }
 0x306   : > { %12254 = vst [vmem:[#allocation3 + $0x140] sm:$0xff] %v14876_v29   ;;  %v12101_v63 = vunpack.c.h.b16 %v14876_v29  ;;  %v7197_v25 = vpack.c.b16 %v7181_v22, %v7181_v22  ;;  %v5781_v0 = vpack.c.b16 %v12017_v36, %v12017_v36  ;;  %v5354_v43 = vadd.f32 %v5314_v50, %v16076_v61  ;;  %v5137_v59 = vpop.f32.mrf.mxu2  ;;  %v5518_v36 = vld [vmem:[#allocation3 + $0xe8] sm:$0x1] }
 0x307   : > { %v7743_v40 = vsel %vm875_vm3, %v7734_v18, %v7742_v56  ;;  %5484 = vst [vmem:[#allocation3 + $0x13c] sm:$0x8] %v5483_v19  ;;  %v7536_v55 = vor.u32 %v14864_v32, %v14862_v14  ;;  %v6312_v54 = vsel %vm875_vm3, %v6303_v24, %v6311_v49  ;;  %v14894_v27 = vrot.slane %v7582_v58, 3 }
 0x308   : > { %v7007_v37 = vpack.c.b16 %v12101_v63, %v12101_v63  ;;  %v6340_v38 = vshrl.u32 %v12529_v8, 16  ;;  %v5318_v20 = vpop.f32.mrf.mxu0  ;;  %v7228_v9 = vrot.slane %v7197_v25, 5  ;;  %v14896_v57 = vrot.slane %v7585_v35, 4 }
 0x309   : > { %v5226_v44 = vpop.f32.mrf.mxu3  ;;  %8246 = vmatmul.bf16.gmra.mxu1 %v7743_v40  ;;  %v6343_v51 = vshll.u32 %v12529_v8, 16  ;;  %v14898_v56 = vrot.slane %v7573_v60, 3  ;;  %v14900_v53 = vrot.slane %v7576_v21, 4  ;;  %v6348_v28 = vshrl.u32 %v5781_v0, 16  ;;  %v12532_v40 = vld [vmem:[#allocation3 + $0xc4] sm:$0x8] }
 0x30a   : > { %v5227_v48 = vadd.f32 %v5226_v44, %v5137_v59  ;;  %v6351_v26 = vshll.u32 %v5781_v0, 16  ;;  %v5390_v14 = vadd.f32 %v14841_v7, %v5354_v43  ;;  %v7554_v49 = vsel %vm875_vm3, %v7545_v10, %v7553_v1 }
 0x30b   : > { %v7779_v50 = vshrl.u32 %v7007_v37, 16  ;;  %8310 = vmatmul.bf16.gmra.mxu2 %v7536_v55  ;;  %8632 = vmatmul.bf16.gmra.mxu0 %v6312_v54  ;;  %v7782_v5 = vshll.u32 %v7007_v37, 16  ;;  %v14909_v22 = vrot.slane %v6340_v38, 3  ;;  %v7095_v58 = vshrl.u32 %v14648_v23, 16 }
 0x30c   : > { %v5316_v32 = vadd.f32 %v5315_v15, %v5227_v48  ;;  %v14903_v24 = vpop.f32.mrf.mxu1  ;;  %v7098_v35 = vshll.u32 %v14648_v23, 16  ;;  %v7229_v8 = vsel %vm826_vm7, %v14874_v62, %v7228_v9  ;;  %v6345_v4 = vrot.slane %v6343_v51, 4  ;;  %v12762_v48 = vld [vmem:[#allocation3 + $0xc4] sm:$0xf0]  }
 0x30d   : > { %v12782_v30 = vld [vmem:[#allocation3 + $0x13c] sm:$0xf0]   ;;  %v5519_v17 = vsel %vm13265_vm6, 0, %v5518_v36  ;;  %v6350_v18 = vrot.slane %v6348_v28, 3  ;;  %v6353_v47 = vrot.slane %v6351_v26, 4  ;;  %v7097_v63 = vrot.slane %v7095_v58, 4 }
 0x30e   : > { %v5355_v15 = vadd.f32 %v5316_v32, %v14754_v42  ;;  %8399 = vmatmul.bf16.gmra.mxu3 %v7554_v49  ;;  %v12612_v10 = vld [vmem:[#allocation3 + $0x13c] sm:$0x8]  ;;  %v7100_v2 = vrot.slane %v7098_v35, 5  ;;  %v5422_v60 = vmax.f32 %v5390_v14, 0.0  ;;  %v5140_v1 = vpop.f32.mrf.mxu2  ;;  %v7781_v25 = vrot.slane %v7779_v50, 3  ;;  %v12266_v42 = vld [vmem:[#allocation3 + $0xc8] sm:$0xff]  }
 0x30f   : > { %v12613_v19 = vor.u32 %v12782_v30, %v12612_v10  ;;  %5520 = vst [vmem:[#allocation3 + $0xe8] sm:$0x1] %v5519_v17  ;;  %v7784_v61 = vrot.slane %v7782_v5, 4  ;;  %v7590_v62 = vshrl.u32 %v7229_v8, 16  ;;  %v7593_v43 = vshll.u32 %v7229_v8, 16  ;;  %v16077_v17 = vld [vmem:[#allocation10_spill] sm:$0xff] }
 0x310   : > { %v5391_v21 = vadd.f32 %v14841_v7, %v5355_v15  ;;  %v7101_v59 = vor.u32 %v7100_v2, %v7097_v63  ;;  %v5320_v55 = vpop.f32.mrf.mxu0  ;;  %v6346_v9 = vor.u32 %v6345_v4, %v14909_v22  ;;  %v6354_v51 = vor.u32 %v6353_v47, %v6350_v18  ;;  %v5485_v15 = vld [vmem:[#allocation3 + $0x154] sm:$0x8] }
 0x311   : > { %v5229_v0 = vpop.f32.mrf.mxu3  ;;  %v7771_v54 = vshrl.u32 %v12613_v19, 16  ;;  %v7774_v38 = vshll.u32 %v12613_v19, 16  ;;  %v14921_v28 = vrot.slane %v14648_v23, 5  ;;  %v12021_v26 = vunpack.c.h.b16 %v12266_v42 }
 0x312   : > { %v5423_v37 = vmax.f32 %v5391_v21, 0.0  ;;  %v5230_v44 = vadd.f32 %v5229_v0, %v5140_v1  ;;  %v7785_v30 = vor.u32 %v7784_v61, %v7781_v25  ;;  %v7592_v5 = vrot.slane %v7590_v62, 3  ;;  %v5488_v62 = vld [vmem:[#allocation3 + $0x16c] sm:$0x8] }
 0x313   : > { %v7773_v49 = vrot.slane %v7771_v54, 3  ;;  %v7776_v50 = vrot.slane %v7774_v38, 4  ;;  %v7595_v58 = vrot.slane %v7593_v43, 4  ;;  %v14927_v35 = vor.u32 %v12762_v48, %v12532_v40 }
 0x314   : > { %v14923_v36 = vpack.c.bf16 %v5423_v37, %v5422_v60  ;;  %v5319_v14 = vadd.f32 %v5318_v20, %v5230_v44  ;;  %v14925_v32 = vpop.f32.mrf.mxu1  ;;  %v7616_v8 = vshrl.u32 %v7101_v59, 16  ;;  %v7619_v4 = vshll.u32 %v7101_v59, 16 }
 0x315   : > { %v7777_v22 = vor.u32 %v7776_v50, %v7773_v49  ;;  %v5486_v20 = vsel %vm12963_vm2, 0, %v5485_v15  ;;  %v7625_v47 = vshrl.u32 %v14921_v28, 16  ;;  %v5783_v63 = vpack.c.b16 %v12021_v26, %v12021_v26  ;;  %v5521_v49 = vld [vmem:[#allocation3 + $0x100] sm:$0x1] }
 0x316   : > { %12255 = vst [vmem:[#allocation3 + $0x158] sm:$0xff] %v14923_v36   ;;  %v12105_v23 = vunpack.c.h.b16 %v14923_v36  ;;  %v5356_v10 = vadd.f32 %v5319_v14, %v16077_v17  ;;  %v6878_v18 = vld [vmem:[#allocation3 + $0xe8] sm:$0x1]  ;;  %v5142_v2 = vpop.f32.mrf.mxu2  ;;  %v7588_v21 = vor.u32 %v14896_v57, %v14894_v27  ;;  %v7579_v42 = vor.u32 %v14900_v53, %v14898_v56  ;;  %v11570_v53 = vld [vmem:[%s15998_s3 + $0x40] sm:$0xff] }
 0x317   : > { %v7786_v60 = vsel %vm875_vm3, %v7777_v22, %v7785_v30  ;;  %5487 = vst [vmem:[#allocation3 + $0x154] sm:$0x8] %v5486_v20  ;;  %v7182_v19 = vunpack.c.l.b16 %v6878_v18  ;;  %v7596_v0 = vor.u32 %v7595_v58, %v7592_v5  ;;  %v6355_v61 = vsel %vm875_vm3, %v6346_v9, %v6354_v51  ;;  %8690 = vmatpush.bf16.msrb.mxu1 %v11570_v53 }
 0x318   : > { %v7009_v1 = vpack.c.b16 %v12105_v23, %v12105_v23  ;;  %v7103_v43 = vshrl.u32 %v14710_v45, 16  ;;  %v5323_v40 = vpop.f32.mrf.mxu0  ;;  %v14942_v37 = vrot.slane %v7616_v8, 3  ;;  %v14944_v44 = vrot.slane %v7619_v4, 4 }
 0x319   : > { %v5231_v25 = vpop.f32.mrf.mxu3  ;;  %8251 = vmatmul.bf16.gmra.mxu1 %v7786_v60  ;;  %v6383_v27 = vshrl.u32 %v14927_v35, 16  ;;  %v5392_v57 = vadd.f32 %v14841_v7, %v5356_v10  ;;  %v7198_v54 = vpack.c.b16 %v7182_v19, %v7182_v19  ;;  %v14948_v38 = vrot.slane %v7625_v47, 3 }
 0x31a   : > { %v5232_v59 = vadd.f32 %v5231_v25, %v5142_v2  ;;  %v6391_v56 = vshrl.u32 %v5783_v63, 16  ;;  %v7822_v51 = vshrl.u32 %v7009_v1, 16  ;;  %v7825_v26 = vshll.u32 %v7009_v1, 16 }
 0x31b   : > { %v5489_v14 = vsel %vm12963_vm2, 0, %v5488_v62  ;;  %8315 = vmatmul.bf16.gmra.mxu2 %v7579_v42  ;;  %v7597_v50 = vsel %vm875_vm3, %v7588_v21, %v7596_v0  ;;  %8637 = vmatmul.bf16.gmra.mxu0 %v6355_v61  ;;  %v7231_v5 = vrot.slane %v7198_v54, 5  ;;  %v6394_v58 = vshll.u32 %v5783_v63, 16  ;;  %v12267_v62 = vld [vmem:[#allocation3 + $0xe0] sm:$0xff]  }
 0x31c   : > { %v5321_v48 = vadd.f32 %v5320_v55, %v5232_v59  ;;  %v14953_v9 = vpop.f32.mrf.mxu1  ;;  %5490 = vst [vmem:[#allocation3 + $0x16c] sm:$0x8] %v5489_v14  ;;  %v7628_v55 = vshll.u32 %v14921_v28, 16  ;;  %v14960_v15 = vrot.slane %v6383_v27, 3  ;;  %v6386_v23 = vshll.u32 %v14927_v35, 16 }
 0x31d   : > { %v12783_v30 = vld [vmem:[#allocation3 + $0x154] sm:$0xf0]   ;;  %v5424_v8 = vmax.f32 %v5392_v57, 0.0  ;;  %v7232_v17 = vsel %vm826_vm7, %v14921_v28, %v7231_v5  ;;  %v7106_v10 = vshll.u32 %v14710_v45, 16  ;;  %v5522_v20 = vsel %vm13265_vm6, 0, %v5521_v49 }
 0x31e   : > { %v5357_v22 = vadd.f32 %v5321_v48, %v14859_v33  ;;  %8404 = vmatmul.bf16.gmra.mxu3 %v7597_v50  ;;  %v12616_v4 = vld [vmem:[#allocation3 + $0x154] sm:$0x8]  ;;  %v5145_v18 = vpop.f32.mrf.mxu2  ;;  %v7824_v63 = vrot.slane %v7822_v51, 3  ;;  %v6393_v2 = vrot.slane %v6391_v56, 3  ;;  %5523 = vst [vmem:[#allocation3 + $0x100] sm:$0x1] %v5522_v20 }
 0x31f   : > { %v12617_v47 = vor.u32 %v12783_v30, %v12616_v4  ;;  %v7827_v35 = vrot.slane %v7825_v26, 4  ;;  %v7633_v21 = vshrl.u32 %v7232_v17, 16  ;;  %v7636_v1 = vshll.u32 %v7232_v17, 16 }
 0x320   : > { %v5393_v33 = vadd.f32 %v14841_v7, %v5357_v22  ;;  %v6396_v19 = vrot.slane %v6394_v58, 4  ;;  %v5325_v28 = vpop.f32.mrf.mxu0  ;;  %v6388_v59 = vrot.slane %v6386_v23, 4  ;;  %v7105_v27 = vrot.slane %v7103_v43, 4 }
 0x321   : > { %v5234_v60 = vpop.f32.mrf.mxu3  ;;  %v7814_v0 = vshrl.u32 %v12617_v47, 16  ;;  %v7817_v61 = vshll.u32 %v12617_v47, 16  ;;  %v7108_v57 = vrot.slane %v7106_v10, 5  ;;  %v14970_v54 = vrot.slane %v14710_v45, 5  ;;  %v16078_v45 = vld [vmem:[#allocation12_spill] sm:$0xff]  ;;  %v16079_v47 = vld [vmem:[#allocation11_spill] sm:$0xff] }
 0x322   : > { %v5425_v25 = vmax.f32 %v5393_v33, 0.0  ;;  %v5235_v42 = vadd.f32 %v5234_v60, %v5145_v18  ;;  %v7630_v26 = vrot.slane %v7628_v55, 4  ;;  %v7635_v49 = vrot.slane %v7633_v21, 3  ;;  %v12763_v21 = vld [vmem:[#allocation3 + $0xdc] sm:$0xf0]  }
 0x323   : > { %v7816_v48 = vrot.slane %v7814_v0, 3  ;;  %v7819_v51 = vrot.slane %v7817_v61, 4  ;;  %v7638_v50 = vrot.slane %v7636_v1, 4  ;;  %v12025_v30 = vunpack.c.h.b16 %v12267_v62  ;;  %v5491_v61 = vld [vmem:[#allocation3 + $0x184] sm:$0x8] }
 0x324   : > { %v14972_v53 = vpack.c.bf16 %v5425_v25, %v5424_v8  ;;  %v14974_v56 = vpop.f32.mrf.mxu1  ;;  %v5324_v14 = vadd.f32 %v5323_v40, %v5235_v42  ;;  %v7828_v58 = vor.u32 %v7827_v35, %v7824_v63  ;;  %v6397_v43 = vor.u32 %v6396_v19, %v6393_v2  ;;  %v12536_v35 = vld [vmem:[#allocation3 + $0xdc] sm:$0x8]  ;;  %v12620_v62 = vld [vmem:[#allocation3 + $0x16c] sm:$0x8] }
 0x325   : > { %v7820_v5 = vor.u32 %v7819_v51, %v7816_v48  ;;  %v3697_v23 = vadd.f32 %v14675_v16, %v16078_v45  ;;  %v6389_v8 = vor.u32 %v6388_v59, %v14960_v15  ;;  %v14981_v4 = vor.u32 %v7108_v57, %v7105_v27  ;;  %v6879_v17 = vld [vmem:[#allocation3 + $0x100] sm:$0x1] }
 0x326   : > { %12256 = vst [vmem:[#allocation3 + $0x170] sm:$0xff] %v14972_v53   ;;  %v12109_v22 = vunpack.c.h.b16 %v14972_v53  ;;  %v7668_v40 = vshrl.u32 %v14970_v54, 16  ;;  %v5147_v55 = vpop.f32.mrf.mxu2  ;;  %v7183_v33 = vunpack.c.l.b16 %v6879_v17  ;;  %v7671_v18 = vshll.u32 %v14970_v54, 16 }
 0x327   : > { %v7829_v10 = vsel %vm875_vm3, %v7820_v5, %v7828_v58  ;;  %v5358_v63 = vadd.f32 %v5324_v14, %v16079_v47  ;;  %v7622_v16 = vor.u32 %v14944_v44, %v14942_v37  ;;  %v7631_v15 = vor.u32 %v7630_v26, %v14948_v38  ;;  %v5524_v14 = vld [vmem:[#allocation3 + $0x118] sm:$0x1] }
 0x328   : > { %v7011_v20 = vpack.c.b16 %v12109_v22, %v12109_v22  ;;  %v7639_v60 = vor.u32 %v7638_v50, %v7635_v49  ;;  %v14990_v19 = vpop.f32.mrf.mxu0  ;;  %v6398_v25 = vsel %vm875_vm3, %v6389_v8, %v6397_v43  ;;  %v5785_v0 = vpack.c.b16 %v12025_v30, %v12025_v30 }
 0x329   : > { %v5236_v2 = vpop.f32.mrf.mxu3  ;;  %8256 = vmatmul.bf16.gmra.mxu1 %v7829_v10  ;;  %v7659_v27 = vshrl.u32 %v14981_v4, 16  ;;  %v7199_v57 = vpack.c.b16 %v7183_v33, %v7183_v33  ;;  %v14994_v48 = vrot.slane %v7668_v40, 3  ;;  %v7662_v38 = vshll.u32 %v14981_v4, 16 }
 0x32a   : > { %v5237_v1 = vadd.f32 %v5236_v2, %v5147_v55  ;;  %v7865_v42 = vshrl.u32 %v7011_v20, 16  ;;  %v7868_v59 = vshll.u32 %v7011_v20, 16  ;;  %v14999_v51 = vrot.slane %v7671_v18, 4 }
 0x32b   : > { %v12537_v26 = vor.u32 %v12763_v21, %v12536_v35  ;;  %v5394_v49 = vadd.f32 %v14841_v7, %v5358_v63  ;;  %8320 = vmatmul.bf16.gmra.mxu2 %v7622_v16  ;;  %v7640_v50 = vsel %vm875_vm3, %v7631_v15, %v7639_v60  ;;  %8642 = vmatmul.bf16.gmra.mxu0 %v6398_v25  ;;  %v7234_v5 = vrot.slane %v7199_v57, 5 }
 0x32c   : > { %v5326_v37 = vadd.f32 %v5325_v28, %v5237_v1  ;;  %v14996_v44 = vpop.f32.mrf.mxu1  ;;  %v5492_v58 = vsel %vm12963_vm2, 0, %v5491_v61  ;;  %v7867_v22 = vrot.slane %v7865_v42, 3  ;;  %v6434_v45 = vshrl.u32 %v5785_v0, 16 }
 0x32d   : > { %v12784_v30 = vld [vmem:[#allocation3 + $0x16c] sm:$0xf0]   ;;  %5493 = vst [vmem:[#allocation3 + $0x184] sm:$0x8] %v5492_v58  ;;  %v7870_v8 = vrot.slane %v7868_v59, 4  ;;  %v7235_v4 = vsel %vm826_vm7, %v14970_v54, %v7234_v5  ;;  %v6437_v17 = vshll.u32 %v5785_v0, 16 }
 0x32e   : > { %v5359_v28 = vadd.f32 %v5326_v37, %v3697_v23  ;;  %8409 = vmatmul.bf16.gmra.mxu3 %v7640_v50  ;;  %v12621_v43 = vor.u32 %v12784_v30, %v12620_v62  ;;  %v5525_v40 = vsel %vm13265_vm6, 0, %v5524_v14  ;;  %v8281_v10 = vpop.f32.mrf.mxu2  ;;  %v6426_v18 = vshrl.u32 %v12537_v26, 16  ;;  %v11617_v0 = vld [vmem:[%s15998_s3 + $0x1b8] sm:$0xff]  ;;  %v12268_v37 = vld [vmem:[#allocation3 + $0xf8] sm:$0xff]  }
 0x32f   : > { %5526 = vst [vmem:[#allocation3 + $0x118] sm:$0x1] %v5525_v40  ;;  %v8282_v23 = vadd.f32 %v8281_v10, %v14712_v13  ;;  %v7676_v63 = vshrl.u32 %v7235_v4, 16  ;;  %v7679_v2 = vshll.u32 %v7235_v4, 16  ;;  %v6429_v16 = vshll.u32 %v12537_v26, 16  ;;  %v11585_v13 = vld [vmem:[%s15998_s3 + $0xb8] sm:$0xff]  ;;  %10223 = vmatpush.bf16.msra.mxu3 %v11617_v0 }
 0x330   : > { %v5395_v55 = vadd.f32 %v14841_v7, %v5359_v28  ;;  %v7857_v20 = vshrl.u32 %v12621_v43, 16  ;;  %v7860_v33 = vshll.u32 %v12621_v43, 16  ;;  %v5426_v15 = vmax.f32 %v5394_v49, 0.0  ;;  %v15011_v54 = vpop.f32.mrf.mxu0  ;;  %8772 = vmatpush.bf16.msra.mxu2 %v11585_v13 }
 0x331   : > { %v8370_v47 = vpop.f32.mrf.mxu3  ;;  %v7871_v7 = vor.u32 %v7870_v8, %v7867_v22  ;;  %v6436_v25 = vrot.slane %v6434_v45, 3  ;;  %v6439_v42 = vrot.slane %v6437_v17, 4  ;;  %v7111_v59 = vshrl.u32 %v14767_v34, 16  ;;  %v11625_v22 = vld [vmem:[%s15998_s3 + $0x1f8] sm:$0xff] }
 0x332   : > { %v5427_v60 = vmax.f32 %v5395_v55, 0.0  ;;  %v7859_v35 = vrot.slane %v7857_v20, 3  ;;  %v7862_v21 = vrot.slane %v7860_v33, 4  ;;  %v15013_v1 = vadd.f32 %v8370_v47, %v8282_v23  ;;  %10312 = vmatpush.bf16.msra.mxu0 %v11625_v22  ;;  %v12540_v23 = vld [vmem:[#allocation3 + $0xf4] sm:$0x8] }
 0x333   : > { %v7114_v57 = vshll.u32 %v14767_v34, 16  ;;  %v7661_v26 = vrot.slane %v7659_v27, 3  ;;  %v7664_v14 = vrot.slane %v7662_v38, 4  ;;  %v7678_v49 = vrot.slane %v7676_v63, 3  ;;  %v12764_v47 = vld [vmem:[#allocation3 + $0xf4] sm:$0xf0]  }
 0x334   : > { %v15021_v61 = vpack.c.bf16 %v5427_v60, %v5426_v15  ;;  %v7863_v62 = vor.u32 %v7862_v21, %v7859_v35  ;;  %v7681_v50 = vrot.slane %v7679_v2, 4  ;;  %v6428_v58 = vrot.slane %v6426_v18, 3  ;;  %v12624_v21 = vld [vmem:[#allocation3 + $0x184] sm:$0x8] }
 0x335   : > { %v15026_v30 = vpop.f32.mrf.mxu1  ;;  %v6431_v28 = vrot.slane %v6429_v16, 4  ;;  %v6440_v27 = vor.u32 %v6439_v42, %v6436_v25  ;;  %v12029_v45 = vunpack.c.h.b16 %v12268_v37  ;;  %v7113_v17 = vrot.slane %v7111_v59, 4  ;;  %v15046_v59 = vld [vmem:[#allocation3 + $0x8] sm:$0xff]  }
 0x336   : > { %12257 = vst [vmem:[#allocation3 + $0x188] sm:$0xff] %v15021_v61   ;;  %v7872_v5 = vsel %vm875_vm3, %v7863_v62, %v7871_v7  ;;  %v12113_v43 = vunpack.c.h.b16 %v15021_v61  ;;  %v6880_v38 = vld [vmem:[#allocation3 + $0x118] sm:$0x1]  ;;  %v8283_v8 = vpop.f32.mrf.mxu2  ;;  %v7116_v40 = vrot.slane %v7114_v57, 5  ;;  %v7674_v33 = vor.u32 %v14999_v51, %v14994_v48  ;;  %v11633_v48 = vld [vmem:[%s15998_s3 + $0x238] sm:$0xff] }
 0x337   : > { %v7184_v55 = vunpack.c.l.b16 %v6880_v38  ;;  %v8284_v10 = vadd.f32 %v8283_v8, %v14733_v3  ;;  %v7682_v18 = vor.u32 %v7681_v50, %v7678_v49  ;;  %v7665_v2 = vor.u32 %v7664_v14, %v7661_v26  ;;  %10401 = vmatpush.bf16.msra.mxu1 %v11633_v48 }
 0x338   : > { %v7013_v4 = vpack.c.b16 %v12113_v43, %v12113_v43  ;;  %v15036_v63 = vpop.f32.mrf.mxu0  ;;  %v6432_v16 = vor.u32 %v6431_v28, %v6428_v58  ;;  %v7236_v60 = vrot.slane %v14767_v34, 5  ;;  %v5787_v3 = vpack.c.b16 %v12029_v45, %v12029_v45 }
 0x339   : > { %8261 = vmatmul.bf16.gmra.mxu1 %v7872_v5  ;;  %v8372_v20 = vpop.f32.mrf.mxu3  ;;  %v7200_v15 = vpack.c.b16 %v7184_v55, %v7184_v55  ;;  %v7117_v42 = vor.u32 %v7116_v40, %v7113_v17  ;;  %v12541_v13 = vor.u32 %v12764_v47, %v12540_v23  ;;  %v7683_v62 = vsel %vm875_vm3, %v7674_v33, %v7682_v18  ;;  %v5527_v18 = vld [vmem:[#allocation3 + $0x130] sm:$0x1] }
 0x33a   : > { %v15039_v35 = vadd.f32 %v8372_v20, %v8284_v10  ;;  %v7908_v7 = vshrl.u32 %v7013_v4, 16  ;;  %v7911_v25 = vshll.u32 %v7013_v4, 16  ;;  %v6441_v51 = vsel %vm875_vm3, %v6432_v16, %v6440_v27 }
 0x33b   : > { %v7237_v0 = vrot.slane %v7200_v15, 5  ;;  %8325 = vmatmul.bf16.gmra.mxu2 %v7665_v2  ;;  %8647 = vmatmul.bf16.gmra.mxu0 %v6441_v51  ;;  %v5815_v57 = vshrl.u32 %v15046_v59, 16  ;;  %v5818_v37 = vshll.u32 %v15046_v59, 16  ;;  %v7119_v26 = vshrl.u32 %v14815_v11, 16 }
 0x33c   : > { %v7711_v5 = vshrl.u32 %v7236_v60, 16  ;;  %v7714_v58 = vshll.u32 %v7236_v60, 16  ;;  %v7910_v28 = vrot.slane %v7908_v7, 3  ;;  %v7913_v43 = vrot.slane %v7911_v25, 4 }
 0x33d   : > { %v12785_v34 = vld [vmem:[#allocation3 + $0x184] sm:$0xf0]   ;;  %v15051_v14 = vpop.f32.mrf.mxu1  ;;  %v7238_v50 = vsel %vm826_vm7, %v7236_v60, %v7237_v0  ;;  %v6477_v22 = vshrl.u32 %v5787_v3, 16  ;;  %v6480_v27 = vshll.u32 %v5787_v3, 16  ;;  %v5817_v4 = vrot.slane %v5815_v57, 4  ;;  %v12269_v0 = vld [vmem:[#allocation3 + $0x110] sm:$0xff]  }
 0x33e   : > { %8414 = vmatmul.bf16.gmra.mxu3 %v7683_v62  ;;  %v12625_v49 = vor.u32 %v12785_v34, %v12624_v21  ;;  %v8286_v38 = vpop.f32.mrf.mxu2  ;;  %v5820_v17 = vrot.slane %v5818_v37, 5  ;;  %v7702_v10 = vshrl.u32 %v7117_v42, 16  ;;  %v7719_v20 = vshrl.u32 %v7238_v50, 16 }
 0x33f   : > { %v8287_v40 = vadd.f32 %v8286_v38, %v14769_v52  ;;  %v7722_v33 = vshll.u32 %v7238_v50, 16  ;;  %v6469_v16 = vshrl.u32 %v12541_v13, 16  ;;  %v6472_v15 = vshll.u32 %v12541_v13, 16 }
 0x340   : > { %v7900_v45 = vshrl.u32 %v12625_v49, 16  ;;  %v7903_v8 = vshll.u32 %v12625_v49, 16  ;;  %v15055_v23 = vpop.f32.mrf.mxu0  ;;  %v7914_v21 = vor.u32 %v7913_v43, %v7910_v28  ;;  %v7705_v7 = vshll.u32 %v7117_v42, 16 }
 0x341   : > { %v8375_v55 = vpop.f32.mrf.mxu3  ;;  %v6479_v25 = vrot.slane %v6477_v22, 3  ;;  %v6482_v48 = vrot.slane %v6480_v27, 4  ;;  %v5821_v51 = vor.u32 %v5820_v17, %v5817_v4  ;;  %v5528_v52 = vsel %vm13265_vm6, 0, %v5527_v18 }
 0x342   : > { %v7902_v47 = vrot.slane %v7900_v45, 3  ;;  %v7905_v2 = vrot.slane %v7903_v8, 4  ;;  %v15057_v60 = vadd.f32 %v8375_v55, %v8287_v40  ;;  %v7713_v62 = vrot.slane %v7711_v5, 3  ;;  %5529 = vst [vmem:[#allocation3 + $0x130] sm:$0x1] %v5528_v52 }
 0x343   : > { %v7716_v34 = vrot.slane %v7714_v58, 4  ;;  %v7721_v57 = vrot.slane %v7719_v20, 3  ;;  %v7724_v37 = vrot.slane %v7722_v33, 4  ;;  %v6471_v50 = vrot.slane %v6469_v16, 3  ;;  %v12765_v16 = vld [vmem:[#allocation3 + $0x10c] sm:$0xf0]  }
 0x344   : > { %v7906_v3 = vor.u32 %v7905_v2, %v7902_v47  ;;  %v6474_v28 = vrot.slane %v6472_v15, 4  ;;  %v7122_v42 = vshll.u32 %v14815_v11, 16  ;;  %v7704_v43 = vrot.slane %v7702_v10, 3  ;;  %v12544_v2 = vld [vmem:[#allocation3 + $0x10c] sm:$0x8] }
 0x345   : > { %v7707_v22 = vrot.slane %v7705_v7, 4  ;;  %v12033_v27 = vunpack.c.h.b16 %v12269_v0  ;;  %v6483_v45 = vor.u32 %v6482_v48, %v6479_v25  ;;  %v6056_v8 = vshrl.u32 %v5821_v51, 16 }
 0x346   : > { %v15061_v49 = vpop.f32.mrf.mxu1  ;;  %v7915_v13 = vsel %vm875_vm3, %v7906_v3, %v7914_v21  ;;  %v8288_v38 = vpop.f32.mrf.mxu2  ;;  %v6059_v4 = vshll.u32 %v5821_v51, 16  ;;  %v7717_v17 = vor.u32 %v7716_v34, %v7713_v62  ;;  %v7725_v40 = vor.u32 %v7724_v37, %v7721_v57  ;;  %v5530_v62 = vld [vmem:[#allocation3 + $0x148] sm:$0x1] }
 0x347   : > { %v8289_v5 = vadd.f32 %v8288_v38, %v14791_v31  ;;  %v6475_v20 = vor.u32 %v6474_v28, %v6471_v50  ;;  %v7121_v33 = vrot.slane %v7119_v26, 4  ;;  %v7124_v18 = vrot.slane %v7122_v42, 5  ;;  %v15084_v38 = vld [vmem:[#allocation3 + $0x20] sm:$0xff]  }
 0x348   : > { %v15066_v55 = vpop.f32.mrf.mxu0  ;;  %v7708_v10 = vor.u32 %v7707_v22, %v7704_v43  ;;  %v5789_v15 = vpack.c.b16 %v12033_v27, %v12033_v27  ;;  %v15071_v7 = vrot.slane %v6056_v8, 3  ;;  %v15073_v25 = vrot.slane %v6059_v4, 4 }
 0x349   : > { %8266 = vmatmul.bf16.gmra.mxu1 %v7915_v13  ;;  %v8377_v58 = vpop.f32.mrf.mxu3  ;;  %v6484_v21 = vsel %vm875_vm3, %v6475_v20, %v6483_v45  ;;  %v6881_v31 = vld [vmem:[#allocation3 + $0x130] sm:$0x1]  ;;  %v7239_v3 = vrot.slane %v14815_v11, 5  ;;  %v7726_v48 = vsel %vm875_vm3, %v7717_v17, %v7725_v40  ;;  %v7125_v52 = vor.u32 %v7124_v18, %v7121_v33 }
 0x34a   : > { %v15068_v47 = vadd.f32 %v8377_v58, %v8289_v5  ;;  %v7185_v26 = vunpack.c.l.b16 %v6881_v31  ;;  %v12545_v0 = vor.u32 %v12765_v16, %v12544_v2  ;;  %v6520_v57 = vshrl.u32 %v5789_v15, 16  ;;  %v11584_v2 = vld [vmem:[%s15998_s3 + $0xb0] sm:$0xff] }
 0x34b   : > { %8330 = vmatmul.bf16.gmra.mxu2 %v7708_v10  ;;  %8652 = vmatmul.bf16.gmra.mxu0 %v6484_v21  ;;  %v6523_v37 = vshll.u32 %v5789_v15, 16  ;;  %v5531_v13 = vsel %vm13265_vm6, 0, %v5530_v62  ;;  %v6062_v11 = vor.u32 %v15073_v25, %v15071_v7  ;;  %v7754_v28 = vshrl.u32 %v7239_v3, 16  ;;  %v11616_v10 = vld [vmem:[%s15998_s3 + $0x1b0] sm:$0xff]  ;;  %v12270_v25 = vld [vmem:[#allocation3 + $0x128] sm:$0xff]  }
 0x34c   : > { %v7201_v34 = vpack.c.b16 %v7185_v26, %v7185_v26  ;;  %v7757_v42 = vshll.u32 %v7239_v3, 16  ;;  %5532 = vst [vmem:[#allocation3 + $0x148] sm:$0x1] %v5531_v13  ;;  %v5823_v45 = vshrl.u32 %v15084_v38, 16  ;;  %v5826_v8 = vshll.u32 %v15084_v38, 16  ;;  %10224 = vmatpush.bf16.msra.mxu3 %v11616_v10  ;;  %8773 = vmatpush.bf16.msra.mxu2 %v11584_v2 }
 0x34d   : > { %v7745_v5 = vshrl.u32 %v7125_v52, 16  ;;  %v7748_v58 = vshll.u32 %v7125_v52, 16  ;;  %v6512_v17 = vshrl.u32 %v12545_v0, 16  ;;  %v6515_v40 = vshll.u32 %v12545_v0, 16 }
 0x34e   : > { %v15077_v51 = vpop.f32.mrf.mxu1  ;;  %8419 = vmatmul.bf16.gmra.mxu3 %v7726_v48  ;;  %v8291_v50 = vpop.f32.mrf.mxu2  ;;  %v7240_v27 = vrot.slane %v7201_v34, 5  ;;  %v6522_v18 = vrot.slane %v6520_v57, 3  ;;  %v7127_v21 = vshrl.u32 %v14876_v29, 16  ;;  %v7130_v7 = vshll.u32 %v14876_v29, 16 }
 0x34f   : > { %v8292_v43 = vadd.f32 %v8291_v50, %v14817_v6  ;;  %v6525_v6 = vrot.slane %v6523_v37, 4  ;;  %v7756_v31 = vrot.slane %v7754_v28, 3  ;;  %v7759_v48 = vrot.slane %v7757_v42, 4  ;;  %v11624_v37 = vld [vmem:[%s15998_s3 + $0x1f0] sm:$0xff] }
 0x350   : > { %v15088_v4 = vpop.f32.mrf.mxu0  ;;  %v7241_v33 = vsel %vm826_vm7, %v7239_v3, %v7240_v27  ;;  %v5825_v3 = vrot.slane %v5823_v45, 4  ;;  %v5828_v26 = vrot.slane %v5826_v8, 5  ;;  %v6514_v34 = vrot.slane %v6512_v17, 3  ;;  %10313 = vmatpush.bf16.msra.mxu0 %v11624_v37 }
 0x351   : > { %v8380_v22 = vpop.f32.mrf.mxu3  ;;  %16080 = vst [vmem:[#allocation13_spill] sm:$0xff] %v15088_v4  ;;  %v7762_v16 = vshrl.u32 %v7241_v33, 16  ;;  %v7765_v15 = vshll.u32 %v7241_v33, 16  ;;  %v6517_v57 = vrot.slane %v6515_v40, 4  ;;  %v7747_v13 = vrot.slane %v7745_v5, 3 }
 0x352   : > { %v15090_v20 = vadd.f32 %v8380_v22, %v8292_v43  ;;  %v7750_v50 = vrot.slane %v7748_v58, 4  ;;  %v12037_v22 = vunpack.c.h.b16 %v12270_v25  ;;  %v6526_v42 = vor.u32 %v6525_v6, %v6522_v18  ;;  %v12548_v6 = vld [vmem:[#allocation3 + $0x124] sm:$0x8] }
 0x353   : > { %v7764_v0 = vrot.slane %v7762_v16, 3  ;;  %v7767_v62 = vrot.slane %v7765_v15, 4  ;;  %v6882_v43 = vld [vmem:[#allocation3 + $0x148] sm:$0x1]  ;;  %v7129_v27 = vrot.slane %v7127_v21, 4  ;;  %v7132_v45 = vrot.slane %v7130_v7, 5 }
 0x354   : > { %v7186_v8 = vunpack.c.l.b16 %v6882_v43  ;;  %v7760_v17 = vor.u32 %v7759_v48, %v7756_v31  ;;  %v5829_v2 = vor.u32 %v5828_v26, %v5825_v3  ;;  %v6518_v15 = vor.u32 %v6517_v57, %v6514_v34  ;;  %v12766_v21 = vld [vmem:[#allocation3 + $0x124] sm:$0xf0]   ;;  %v5533_v57 = vld [vmem:[#allocation3 + $0x160] sm:$0x1] }
 0x355   : > { %v7768_v40 = vor.u32 %v7767_v62, %v7764_v0  ;;  %v7242_v58 = vrot.slane %v14876_v29, 5  ;;  %v7751_v18 = vor.u32 %v7750_v50, %v7747_v13  ;;  %v5791_v7 = vpack.c.b16 %v12037_v22, %v12037_v22 }
 0x356   : > { %v15101_v52 = vpop.f32.mrf.mxu1  ;;  %v8293_v28 = vpop.f32.mrf.mxu2  ;;  %v7202_v5 = vpack.c.b16 %v7186_v8, %v7186_v8  ;;  %v7133_v31 = vor.u32 %v7132_v45, %v7129_v27  ;;  %v6099_v26 = vshrl.u32 %v5829_v2, 16  ;;  %v6102_v0 = vshll.u32 %v5829_v2, 16 }
 0x357   : > { %v8294_v33 = vadd.f32 %v8293_v28, %v14844_v39  ;;  %v11632_v39 = vld [vmem:[%s15998_s3 + $0x230] sm:$0xff]  ;;  %v7769_v3 = vsel %vm875_vm3, %v7760_v17, %v7768_v40  ;;  %v12549_v34 = vor.u32 %v12766_v21, %v12548_v6  ;;  %v6563_v37 = vshrl.u32 %v5791_v7, 16 }
 0x358   : > { %v15107_v16 = vpop.f32.mrf.mxu0  ;;  %v7243_v48 = vrot.slane %v7202_v5, 5  ;;  %10402 = vmatpush.bf16.msra.mxu1 %v11632_v39  ;;  %v6566_v13 = vshll.u32 %v5791_v7, 16  ;;  %v5534_v50 = vsel %vm13265_vm6, 0, %v5533_v57  ;;  %v7788_v22 = vshrl.u32 %v7133_v31, 16 }
 0x359   : > { %v8382_v10 = vpop.f32.mrf.mxu3  ;;  %8691 = vmatmul.bf16.vlgmr.msrb.gmra.mxu1 %v6062_v11  ;;  %16081 = vst [vmem:[#allocation14_spill] sm:$0xff] %v15107_v16  ;;  %v6527_v11 = vsel %vm875_vm3, %v6518_v15, %v6526_v42  ;;  %v7791_v28 = vshll.u32 %v7133_v31, 16  ;;  %v7797_v42 = vshrl.u32 %v7242_v58, 16  ;;  %v7800_v27 = vshll.u32 %v7242_v58, 16 }
 0x35a   : > { %v15110_v25 = vadd.f32 %v8382_v10, %v8294_v33  ;;  %v7244_v62 = vsel %vm826_vm7, %v7242_v58, %v7243_v48  ;;  %5535 = vst [vmem:[#allocation3 + $0x160] sm:$0x1] %v5534_v50  ;;  %v6101_v33 = vrot.slane %v6099_v26, 3  ;;  %v6104_v2 = vrot.slane %v6102_v0, 4  ;;  %v12271_v0 = vld [vmem:[#allocation3 + $0x140] sm:$0xff]  }
 0x35b   : > { %8335 = vmatmul.bf16.gmra.mxu2 %v7751_v18  ;;  %8657 = vmatmul.bf16.gmra.mxu0 %v6527_v11  ;;  %v7805_v10 = vshrl.u32 %v7244_v62, 16  ;;  %v7808_v17 = vshll.u32 %v7244_v62, 16  ;;  %v6555_v15 = vshrl.u32 %v12549_v34, 16  ;;  %v6558_v5 = vshll.u32 %v12549_v34, 16  ;;  %v15125_v18 = vld [vmem:[#allocation3 + $0x38] sm:$0xff]  }
 0x35c   : > { %16082 = vst [vmem:[#allocation15_spill] sm:$0xff] %v15110_v25  ;;  %v5831_v6 = vshrl.u32 %v15125_v18, 16  ;;  %v6565_v7 = vrot.slane %v6563_v37, 3  ;;  %v6568_v58 = vrot.slane %v6566_v13, 4  ;;  %v5834_v39 = vshll.u32 %v15125_v18, 16 }
 0x35d   : > { %v7138_v11 = vshll.u32 %v14923_v36, 16  ;;  %v7799_v31 = vrot.slane %v7797_v42, 3  ;;  %v7802_v48 = vrot.slane %v7800_v27, 4  ;;  %v7810_v26 = vrot.slane %v7808_v17, 4 }
 0x35e   : > { %v15117_v29 = vpop.f32.mrf.mxu1  ;;  %8424 = vmatmul.bf16.gmra.mxu3 %v7769_v3  ;;  %v8296_v43 = vpop.f32.mrf.mxu2  ;;  %v7807_v3 = vrot.slane %v7805_v10, 3  ;;  %v7790_v34 = vrot.slane %v7788_v22, 3  ;;  %v7793_v57 = vrot.slane %v7791_v28, 4  ;;  %v6557_v50 = vrot.slane %v6555_v15, 3 }
 0x35f   : > { %v8297_v45 = vadd.f32 %v8296_v43, %v14878_v46  ;;  %v7135_v46 = vshrl.u32 %v14923_v36, 16  ;;  %v6560_v43 = vrot.slane %v6558_v5, 4  ;;  %v6569_v37 = vor.u32 %v6568_v58, %v6565_v7  ;;  %v12552_v7 = vld [vmem:[#allocation3 + $0x13c] sm:$0x8]  ;;  %v12767_v58 = vld [vmem:[#allocation3 + $0x13c] sm:$0xf0]  }
 0x360   : > { %v15123_v40 = vpop.f32.mrf.mxu0  ;;  %v5833_v13 = vrot.slane %v5831_v6, 4  ;;  %v12041_v42 = vunpack.c.h.b16 %v12271_v0  ;;  %v7803_v17 = vor.u32 %v7802_v48, %v7799_v31  ;;  %v7811_v25 = vor.u32 %v7810_v26, %v7807_v3  ;;  %v5536_v31 = vld [vmem:[#allocation3 + $0x178] sm:$0x1] }
 0x361   : > { %v8385_v8 = vpop.f32.mrf.mxu3  ;;  %16083 = vst [vmem:[#allocation16_spill] sm:$0xff] %v15123_v40  ;;  %v6883_v41 = vld [vmem:[#allocation3 + $0x160] sm:$0x1]  ;;  %v7137_v16 = vrot.slane %v7135_v46, 4  ;;  %v6561_v28 = vor.u32 %v6560_v43, %v6557_v50  ;;  %v7794_v5 = vor.u32 %v7793_v57, %v7790_v34  ;;  %v5537_v50 = vsel %vm13265_vm6, 0, %v5536_v31 }
 0x362   : > { %v15128_v21 = vadd.f32 %v8385_v8, %v8297_v45  ;;  %v6105_v45 = vor.u32 %v6104_v2, %v6101_v33  ;;  %v5836_v8 = vrot.slane %v5834_v39, 5  ;;  %v7187_v4 = vunpack.c.l.b16 %v6883_v41  ;;  %5538 = vst [vmem:[#allocation3 + $0x178] sm:$0x1] %v5537_v50 }
 0x363   : > { %v7245_v33 = vrot.slane %v14923_v36, 5  ;;  %v6570_v41 = vsel %vm875_vm3, %v6561_v28, %v6569_v37  ;;  %v7812_v46 = vsel %vm875_vm3, %v7803_v17, %v7811_v25  ;;  %v7146_v50 = vshll.u32 %v14972_v53, 16 }
 0x364   : > { %16084 = vst [vmem:[#allocation17_spill] sm:$0xff] %v15128_v21  ;;  %v7140_v21 = vrot.slane %v7138_v11, 5  ;;  %v7203_v15 = vpack.c.b16 %v7187_v4, %v7187_v4  ;;  %v5837_v6 = vor.u32 %v5836_v8, %v5833_v13  ;;  %v12553_v4 = vor.u32 %v12767_v58, %v12552_v7 }
 0x365   : > { %v7840_v26 = vshrl.u32 %v7245_v33, 16  ;;  %v7843_v0 = vshll.u32 %v7245_v33, 16 }
 0x366   : > { %v15133_v62 = vpop.f32.mrf.mxu1  ;;  %v8298_v40 = vpop.f32.mrf.mxu2  ;;  %v7141_v39 = vor.u32 %v7140_v21, %v7137_v16  ;;  %v6142_v48 = vshrl.u32 %v5837_v6, 16  ;;  %v6145_v3 = vshll.u32 %v5837_v6, 16  ;;  %v11583_v6 = vld [vmem:[%s15998_s3 + $0xa8] sm:$0xff] }
 0x367   : > { %v8299_v27 = vadd.f32 %v8298_v40, %v14903_v24  ;;  %v7246_v24 = vrot.slane %v7203_v15, 5  ;;  %v5793_v40 = vpack.c.b16 %v12041_v42, %v12041_v42  ;;  %v6598_v42 = vshrl.u32 %v12553_v4, 16  ;;  %8774 = vmatpush.bf16.msra.mxu2 %v11583_v6 }
 0x368   : > { %v15136_v22 = vpop.f32.mrf.mxu0  ;;  %v7831_v57 = vshrl.u32 %v7141_v39, 16  ;;  %v6144_v15 = vrot.slane %v6142_v48, 3  ;;  %v7842_v7 = vrot.slane %v7840_v26, 3  ;;  %v7845_v58 = vrot.slane %v7843_v0, 4  ;;  %v11623_v26 = vld [vmem:[%s15998_s3 + $0x1e8] sm:$0xff] }
 0x369   : > { %v8387_v10 = vpop.f32.mrf.mxu3  ;;  %8696 = vmatmul.bf16.gmra.mxu1 %v6105_v45  ;;  %16085 = vst [vmem:[#allocation18_spill] sm:$0xff] %v15136_v22  ;;  %v7247_v36 = vsel %vm826_vm7, %v7245_v33, %v7246_v24  ;;  %v6606_v16 = vshrl.u32 %v5793_v40, 16  ;;  %v6609_v21 = vshll.u32 %v5793_v40, 16  ;;  %v7834_v45 = vshll.u32 %v7141_v39, 16  ;;  %10314 = vmatpush.bf16.msra.mxu0 %v11623_v26 }
 0x36a   : > { %v15139_v2 = vadd.f32 %v8387_v10, %v8299_v27  ;;  %v7848_v37 = vshrl.u32 %v7247_v36, 16  ;;  %v7851_v13 = vshll.u32 %v7247_v36, 16  ;;  %v6601_v27 = vshll.u32 %v12553_v4, 16  ;;  %v15151_v10 = vld [vmem:[#allocation3 + $0x50] sm:$0xff]   ;;  %v12272_v4 = vld [vmem:[#allocation3 + $0x158] sm:$0xff]  }
 0x36b   : > { %8340 = vmatmul.bf16.gmra.mxu2 %v7794_v5  ;;  %8662 = vmatmul.bf16.gmra.mxu0 %v6570_v41  ;;  %v5839_v17 = vshrl.u32 %v15151_v10, 16  ;;  %v6147_v33 = vrot.slane %v6145_v3, 4  ;;  %v5842_v5 = vshll.u32 %v15151_v10, 16  ;;  %v6608_v41 = vrot.slane %v6606_v16, 3 }
 0x36c   : > { %16086 = vst [vmem:[#allocation22_spill] sm:$0xff] %v15139_v2  ;;  %v6611_v39 = vrot.slane %v6609_v21, 4  ;;  %v7833_v24 = vrot.slane %v7831_v57, 3  ;;  %v7836_v40 = vrot.slane %v7834_v45, 4  ;;  %v7853_v36 = vrot.slane %v7851_v13, 4 }
 0x36d   : > { %v6600_v48 = vrot.slane %v6598_v42, 3  ;;  %v6603_v3 = vrot.slane %v6601_v27, 4  ;;  %v6148_v0 = vor.u32 %v6147_v33, %v6144_v15  ;;  %v5841_v57 = vrot.slane %v5839_v17, 4  ;;  %v12556_v17 = vld [vmem:[#allocation3 + $0x154] sm:$0x8] }
 0x36e   : > { %v15143_v11 = vpop.f32.mrf.mxu1  ;;  %8429 = vmatmul.bf16.gmra.mxu3 %v7812_v46  ;;  %v8301_v34 = vpop.f32.mrf.mxu2  ;;  %v7850_v46 = vrot.slane %v7848_v37, 3  ;;  %v5844_v16 = vrot.slane %v5842_v5, 5  ;;  %v12045_v45 = vunpack.c.h.b16 %v12272_v4  ;;  %v7846_v42 = vor.u32 %v7845_v58, %v7842_v7  ;;  %v12768_v33 = vld [vmem:[#allocation3 + $0x154] sm:$0xf0]   ;;  %v11582_v7 = vld [vmem:[%s15998_s3 + $0xa0] sm:$0xff] }
 0x36f   : > { %v8302_v25 = vadd.f32 %v8301_v34, %v14925_v32  ;;  %v11615_v32 = vld [vmem:[%s15998_s3 + $0x1a8] sm:$0xff]  ;;  %v7143_v34 = vshrl.u32 %v14972_v53, 16  ;;  %v6604_v22 = vor.u32 %v6603_v3, %v6600_v48  ;;  %v7148_v15 = vrot.slane %v7146_v50, 5  ;;  %v11614_v58 = vld [vmem:[%s15998_s3 + $0x1a0] sm:$0xff]  ;;  %v15192_v50 = vld [vmem:[#allocation3 + $0x68] sm:$0xff]   ;;  %8775 = vmatpush.bf16.msra.mxu2 %v11582_v7 }
 0x370   : > { %v15149_v8 = vpop.f32.mrf.mxu0  ;;  %10225 = vmatpush.bf16.msra.mxu3 %v11615_v32  ;;  %v7854_v27 = vor.u32 %v7853_v36, %v7850_v46  ;;  %v7248_v4 = vrot.slane %v14972_v53, 5  ;;  %v11622_v46 = vld [vmem:[%s15998_s3 + $0x1e0] sm:$0xff]  ;;  %v5847_v26 = vshrl.u32 %v15192_v50, 16 }
 0x371   : > { %v8390_v43 = vpop.f32.mrf.mxu3  ;;  %16087 = vst [vmem:[#allocation20_spill] sm:$0xff] %v15149_v8  ;;  %v7837_v8 = vor.u32 %v7836_v40, %v7833_v24  ;;  %v5795_v40 = vpack.c.b16 %v12045_v45, %v12045_v45  ;;  %10315 = vmatpush.bf16.msra.mxu0 %v11622_v46  ;;  %v11612_v46 = vld [vmem:[%s15998_s3 + $0x190] sm:$0xff]  ;;  %v12769_v2 = vld [vmem:[#allocation3 + $0x16c] sm:$0xf0]  }
 0x372   : > { %v15154_v28 = vadd.f32 %v8390_v43, %v8302_v25  ;;  %v6612_v25 = vor.u32 %v6611_v39, %v6608_v41  ;;  %v6884_v43 = vld [vmem:[#allocation3 + $0x178] sm:$0x1]  ;;  %v5845_v41 = vor.u32 %v5844_v16, %v5841_v57  ;;  %v7855_v53 = vsel %vm875_vm3, %v7846_v42, %v7854_v27 }
 0x373   : > { %v7188_v32 = vunpack.c.l.b16 %v6884_v43  ;;  %v6649_v43 = vshrl.u32 %v5795_v40, 16  ;;  %v6652_v45 = vshll.u32 %v5795_v40, 16  ;;  %v7886_v27 = vshll.u32 %v7248_v4, 16  ;;  %v11580_v40 = vld [vmem:[%s15998_s3 + $0x90] sm:$0xff] }
 0x374   : > { %16088 = vst [vmem:[#allocation19_spill] sm:$0xff] %v15154_v28  ;;  %v7145_v28 = vrot.slane %v7143_v34, 4  ;;  %v6613_v24 = vsel %vm875_vm3, %v6604_v22, %v6612_v25  ;;  %v12557_v34 = vor.u32 %v12768_v33, %v12556_v17  ;;  %v5539_v22 = vld [vmem:[#allocation3 + $0x190] sm:$0x1]  ;;  %v6188_v57 = vshll.u32 %v5845_v41, 16  ;;  %10226 = vmatpush.bf16.msra.mxu3 %v11614_v58  ;;  %v11613_v17 = vld [vmem:[%s15998_s3 + $0x198] sm:$0xff] }
 0x375   : > { %v7204_v39 = vpack.c.b16 %v7188_v32, %v7188_v32  ;;  %v7883_v25 = vshrl.u32 %v7248_v4, 16  ;;  %v11621_v33 = vld [vmem:[%s15998_s3 + $0x1d8] sm:$0xff] }
 0x376   : > { %v15163_v31 = vpop.f32.mrf.mxu1  ;;  %v8303_v21 = vpop.f32.mrf.mxu2  ;;  %v7149_v3 = vor.u32 %v7148_v15, %v7145_v28  ;;  %v11581_v28 = vld [vmem:[%s15998_s3 + $0x98] sm:$0xff]  ;;  %v6641_v7 = vshrl.u32 %v12557_v34, 16  ;;  %v6644_v58 = vshll.u32 %v12557_v34, 16  ;;  %10316 = vmatpush.bf16.msra.mxu0 %v11621_v33  ;;  %v11620_v34 = vld [vmem:[%s15998_s3 + $0x1d0] sm:$0xff] }
 0x377   : > { %v8304_v37 = vadd.f32 %v8303_v21, %v14953_v9  ;;  %v11631_v9 = vld [vmem:[%s15998_s3 + $0x228] sm:$0xff]  ;;  %v7249_v36 = vrot.slane %v7204_v39, 5  ;;  %8776 = vmatpush.bf16.msra.mxu2 %v11581_v28  ;;  %v12273_v28 = vld [vmem:[#allocation3 + $0x170] sm:$0xff]  }
 0x378   : > { %v15171_v6 = vpop.f32.mrf.mxu0  ;;  %10403 = vmatpush.bf16.msra.mxu1 %v11631_v9  ;;  %v7874_v39 = vshrl.u32 %v7149_v3, 16  ;;  %v7877_v9 = vshll.u32 %v7149_v3, 16  ;;  %10227 = vmatpush.bf16.msra.mxu3 %v11613_v17  ;;  %v6643_v17 = vrot.slane %v6641_v7, 3 }
 0x379   : > { %v8392_v13 = vpop.f32.mrf.mxu3  ;;  %8701 = vmatmul.bf16.gmra.mxu1 %v6148_v0  ;;  %16089 = vst [vmem:[#allocation7_spill] sm:$0xff] %v15171_v6  ;;  %v6185_v0 = vshrl.u32 %v5845_v41, 16  ;;  %v7250_v16 = vsel %vm826_vm7, %v7248_v4, %v7249_v36  ;;  %v6190_v4 = vrot.slane %v6188_v57, 4  ;;  %v6654_v36 = vrot.slane %v6652_v45, 4 }
 0x37a   : > { %v15173_v5 = vadd.f32 %v8392_v13, %v8304_v37  ;;  %v5850_v37 = vshll.u32 %v15192_v50, 16  ;;  %v7891_v32 = vshrl.u32 %v7250_v16, 16  ;;  %v7894_v15 = vshll.u32 %v7250_v16, 16  ;;  %10317 = vmatpush.bf16.msra.mxu0 %v11620_v34 }
 0x37b   : > { %8345 = vmatmul.bf16.gmra.mxu2 %v7837_v8  ;;  %8667 = vmatmul.bf16.gmra.mxu0 %v6613_v24  ;;  %v5540_v8 = vsel %vm13265_vm6, 0, %v5539_v22  ;;  %v5849_v22 = vrot.slane %v5847_v26, 4  ;;  %v7888_v57 = vrot.slane %v7886_v27, 4  ;;  %v7151_v26 = vshrl.u32 %v15021_v61, 16  ;;  %v11611_v27 = vld [vmem:[%s15998_s3 + $0x188] sm:$0xff] }
 0x37c   : > { %16090 = vst [vmem:[#allocation6_spill] sm:$0xff] %v15173_v5  ;;  %v5852_v3 = vrot.slane %v5850_v37, 5  ;;  %v7893_v16 = vrot.slane %v7891_v32, 3  ;;  %v7154_v45 = vshll.u32 %v15021_v61, 16  ;;  %8777 = vmatpush.bf16.msra.mxu2 %v11580_v40  ;;  %10228 = vmatpush.bf16.msra.mxu3 %v11612_v46 }
 0x37d   : > { %5541 = vst [vmem:[#allocation3 + $0x190] sm:$0x1] %v5540_v8  ;;  %v7896_v8 = vrot.slane %v7894_v15, 4 }
 0x37e   : > { %v15190_v48 = vpop.f32.mrf.mxu1  ;;  %8434 = vmatmul.bf16.gmra.mxu3 %v7855_v53  ;;  %v8306_v21 = vpop.f32.mrf.mxu2  ;;  %v6651_v53 = vrot.slane %v6649_v43, 3  ;;  %v5853_v6 = vor.u32 %v5852_v3, %v5849_v22  ;;  %v7156_v5 = vrot.slane %v7154_v45, 5 }
 0x37f   : > { %v8307_v13 = vadd.f32 %v8306_v21, %v14974_v56  ;;  %v6187_v56 = vrot.slane %v6185_v0, 3  ;;  %v7885_v0 = vrot.slane %v7883_v25, 3  ;;  %v11579_v25 = vld [vmem:[%s15998_s3 + $0x88] sm:$0xff] }
 0x380   : > { %v15209_v41 = vpop.f32.mrf.mxu0  ;;  %v6655_v15 = vor.u32 %v6654_v36, %v6651_v53  ;;  %v7251_v53 = vrot.slane %v15021_v61, 5  ;;  %v12560_v36 = vld [vmem:[#allocation3 + $0x16c] sm:$0x8]  ;;  %8778 = vmatpush.bf16.msra.mxu2 %v11579_v25  ;;  %10229 = vmatpush.bf16.msra.mxu3 %v11611_v27 }
 0x381   : > { %v8395_v42 = vpop.f32.mrf.mxu3  ;;  %16091 = vst [vmem:[#allocation9_spill] sm:$0xff] %v15209_v41  ;;  %v6646_v41 = vrot.slane %v6644_v58, 4  ;;  %v6191_v43 = vor.u32 %v6190_v4, %v6187_v56  ;;  %v7889_v56 = vor.u32 %v7888_v57, %v7885_v0  ;;  %v7897_v4 = vor.u32 %v7896_v8, %v7893_v16  ;;  %v11618_v0 = vld [vmem:[%s15998_s3 + $0x1c0] sm:$0xff] }
 0x382   : > { %v15211_v24 = vadd.f32 %v8395_v42, %v8307_v13  ;;  %v7876_v13 = vrot.slane %v7874_v39, 3  ;;  %v7879_v42 = vrot.slane %v7877_v9, 4  ;;  %v12049_v39 = vunpack.c.h.b16 %v12273_v28  ;;  %v11619_v9 = vld [vmem:[%s15998_s3 + $0x1c8] sm:$0xff] }
 0x383   : > { %v6647_v46 = vor.u32 %v6646_v41, %v6643_v17  ;;  %v11610_v41 = vld [vmem:[%s15998_s3 + $0x180] sm:$0xff]  ;;  %10318 = vmatpush.bf16.msra.mxu0 %v11619_v9  ;;  %v7898_v57 = vsel %vm875_vm3, %v7889_v56, %v7897_v4  ;;  %v6228_v8 = vshrl.u32 %v5853_v6, 16  ;;  %v12561_v17 = vor.u32 %v12769_v2, %v12560_v36 }
 0x384   : > { %16092 = vst [vmem:[#allocation8_spill] sm:$0xff] %v15211_v24  ;;  %v6885_v37 = vld [vmem:[#allocation3 + $0x190] sm:$0x1]  ;;  %v7880_v34 = vor.u32 %v7879_v42, %v7876_v13  ;;  %v5797_v3 = vpack.c.b16 %v12049_v39, %v12049_v39  ;;  %v6231_v13 = vshll.u32 %v5853_v6, 16  ;;  %10230 = vmatpush.bf16.msra.mxu3 %v11610_v41  ;;  %v7929_v39 = vshll.u32 %v7251_v53, 16 }
 0x385   : > { %v7189_v33 = vunpack.c.l.b16 %v6885_v37  ;;  %v7153_v37 = vrot.slane %v7151_v26, 4  ;;  %v6656_v22 = vsel %vm875_vm3, %v6647_v46, %v6655_v15  ;;  %v15255_v26 = vld [vmem:[#allocation3 + $0x80] sm:$0xff]   ;;  %v6230_v56 = vrot.slane %v6228_v8, 3 }
 0x386   : > { %v15222_v21 = vpop.f32.mrf.mxu1  ;;  %v8308_v32 = vpop.f32.mrf.mxu2  ;;  %v5855_v45 = vshrl.u32 %v15255_v26, 16  ;;  %v6692_v15 = vshrl.u32 %v5797_v3, 16  ;;  %v5858_v6 = vshll.u32 %v15255_v26, 16  ;;  %v6233_v4 = vrot.slane %v6231_v13, 4 }
 0x387   : > { %v8309_v7 = vadd.f32 %v8308_v32, %v14996_v44  ;;  %v7205_v24 = vpack.c.b16 %v7189_v33, %v7189_v33  ;;  %v11578_v44 = vld [vmem:[%s15998_s3 + $0x80] sm:$0xff]  ;;  %v7926_v32 = vshrl.u32 %v7251_v53, 16  ;;  %v6695_v33 = vshll.u32 %v5797_v3, 16  ;;  %10319 = vmatpush.bf16.msra.mxu0 %v11618_v0  ;;  %v12290_v0 = vld [vmem:[#allocation3 + $0x38] sm:$0xff]  }
 0x388   : > { %v15236_v40 = vpop.f32.mrf.mxu0  ;;  %8779 = vmatpush.bf16.msra.mxu2 %v11578_v44  ;;  %v6684_v46 = vshrl.u32 %v12561_v17, 16  ;;  %v6687_v36 = vshll.u32 %v12561_v17, 16  ;;  %v6694_v41 = vrot.slane %v6692_v15, 3  ;;  %v5860_v3 = vrot.slane %v5858_v6, 5  ;;  %v12786_v17 = vld [vmem:[#allocation3 + $0x34] sm:$0xf0]  }
 0x389   : > { %v8397_v58 = vpop.f32.mrf.mxu3  ;;  %8706 = vmatmul.bf16.gmra.mxu1 %v6191_v43  ;;  %16093 = vst [vmem:[#allocation21_spill] sm:$0xff] %v15236_v40  ;;  %v7252_v61 = vrot.slane %v7205_v24, 5  ;;  %v5433_v43 = vld [vmem:[#allocation3 + $0x10] sm:$0x1]  ;;  %v7157_v24 = vor.u32 %v7156_v5, %v7153_v37  ;;  %v9074_v15 = vshll.u32 %v12290_v0, 16 }
 0x38a   : > { %v15239_v28 = vadd.f32 %v8397_v58, %v8309_v7  ;;  %v5434_v25 = vsel %vm13265_vm6, 0, %v5433_v43  ;;  %v6686_v8 = vrot.slane %v6684_v46, 3  ;;  %v6689_v13 = vrot.slane %v6687_v36, 4 }
 0x38b   : > { %8350 = vmatmul.bf16.gmra.mxu2 %v7880_v34  ;;  %8672 = vmatmul.bf16.gmra.mxu0 %v6656_v22  ;;  %v7253_v42 = vsel %vm826_vm7, %v7251_v53, %v7252_v61  ;;  %5435 = vst [vmem:[#allocation3 + $0x10] sm:$0x1] %v5434_v25  ;;  %v7917_v37 = vshrl.u32 %v7157_v24, 16  ;;  %v7920_v44 = vshll.u32 %v7157_v24, 16  ;;  %v6697_v22 = vrot.slane %v6695_v33, 4 }
 0x38c   : > { %v7934_v9 = vshrl.u32 %v7253_v42, 16  ;;  %v7937_v7 = vshll.u32 %v7253_v42, 16  ;;  %v5857_v61 = vrot.slane %v5855_v45, 4  ;;  %v6234_v25 = vor.u32 %v6233_v4, %v6230_v56 }
 0x38d   : > { %v9071_v24 = vshrl.u32 %v12290_v0, 16  ;;  %v6698_v45 = vor.u32 %v6697_v22, %v6694_v41  ;;  %v5990_v4 = vrot.slane %v15046_v59, 5  ;;  %v6690_v36 = vor.u32 %v6689_v13, %v6686_v8 }
 0x38e   : > { %v15252_v16 = vpop.f32.mrf.mxu1  ;;  %8439 = vmatmul.bf16.gmra.mxu3 %v7898_v57  ;;  %v8311_v27 = vpop.f32.mrf.mxu2  ;;  %v7931_v57 = vrot.slane %v7929_v39, 4  ;;  %v7936_v53 = vrot.slane %v7934_v9, 3  ;;  %v7939_v43 = vrot.slane %v7937_v7, 4  ;;  %v5861_v6 = vor.u32 %v5860_v3, %v5857_v61 }
 0x38f   : > { %v8312_v2 = vadd.f32 %v8311_v27, %v15026_v30  ;;  %v7928_v30 = vrot.slane %v7926_v32, 3  ;;  %v12628_v27 = vld [vmem:[#allocation3 + $0x34] sm:$0x8]  ;;  %v12117_v32 = vunpack.c.h.b16 %v12290_v0  ;;  %v9073_v41 = vrot.slane %v9071_v24, 4 }
 0x390   : > { %v15262_v58 = vpop.f32.mrf.mxu0  ;;  %v7940_v56 = vor.u32 %v7939_v43, %v7936_v53  ;;  %v9076_v22 = vrot.slane %v9074_v15, 5  ;;  %v6271_v0 = vshrl.u32 %v5861_v6, 16  ;;  %v6274_v8 = vshll.u32 %v5861_v6, 16 }
 0x391   : > { %v8400_v5 = vpop.f32.mrf.mxu3  ;;  %16094 = vst [vmem:[#allocation23_spill] sm:$0xff] %v15262_v58  ;;  %v7932_v7 = vor.u32 %v7931_v57, %v7928_v30  ;;  %v9023_v3 = vpack.c.b16 %v12117_v32, %v12117_v32  ;;  %v6068_v30 = vshll.u32 %v5990_v4, 16  ;;  %v5655_v57 = vld [vmem:[#allocation3 + $0x28] sm:$0x1] }
 0x392   : > { %v15264_v34 = vadd.f32 %v8400_v5, %v8312_v2  ;;  %v7919_v2 = vrot.slane %v7917_v37, 3  ;;  %v7922_v5 = vrot.slane %v7920_v44, 4  ;;  %v5654_v12 = vld [vmem:[#allocation3 + $0x10] sm:$0x1]  ;;  %v12629_v44 = vor.u32 %v12786_v17, %v12628_v27 }
 0x393   : > { %v5958_v58 = vunpack.c.l.b16 %v5654_v12  ;;  %v11630_v12 = vld [vmem:[%s15998_s3 + $0x220] sm:$0xff]  ;;  %v7941_v59 = vsel %vm875_vm3, %v7932_v7, %v7940_v56  ;;  %v9077_v17 = vor.u32 %v9076_v22, %v9073_v41  ;;  %v9306_v24 = vshll.u32 %v9023_v3, 16 }
 0x394   : > { %16095 = vst [vmem:[#allocation24_spill] sm:$0xff] %v15264_v34  ;;  %v7923_v34 = vor.u32 %v7922_v5, %v7919_v2  ;;  %10404 = vmatpush.bf16.msra.mxu1 %v11630_v12  ;;  %v9303_v5 = vshrl.u32 %v9023_v3, 16  ;;  %v5959_v15 = vunpack.c.l.b16 %v5655_v57  ;;  %v6273_v32 = vrot.slane %v6271_v0, 3 }
 0x395   : > { %v5974_v37 = vpack.c.b16 %v5958_v58, %v5958_v58  ;;  %v6065_v58 = vshrl.u32 %v5990_v4, 16  ;;  %v6276_v22 = vrot.slane %v6274_v8, 4  ;;  %v9312_v12 = vshrl.u32 %v9077_v17, 16 }
 0x396   : > { %v15266_v42 = vpop.f32.mrf.mxu1  ;;  %v8313_v33 = vpop.f32.mrf.mxu2  ;;  %v9305_v3 = vrot.slane %v9303_v5, 3 }
 0x397   : > { %v8314_v39 = vadd.f32 %v8313_v33, %v15051_v14  ;;  %v6699_v14 = vsel %vm875_vm3, %v6690_v36, %v6698_v45  ;;  %v5991_v61 = vrot.slane %v5974_v37, 5  ;;  %v15285_v36 = vld [vmem:[#allocation3 + $0x98] sm:$0xff]  }
 0x398   : > { %v15270_v46 = vpop.f32.mrf.mxu0  ;;  %v5863_v6 = vshrl.u32 %v15285_v36, 16  ;;  %v5866_v37 = vshll.u32 %v15285_v36, 16 }
 0x399   : > { %v8402_v9 = vpop.f32.mrf.mxu3  ;;  %8711 = vmatmul.bf16.gmra.mxu1 %v6234_v25  ;;  %16096 = vst [vmem:[#allocation10_spill] sm:$0xff] %v15270_v46  ;;  %v5992_v43 = vsel %vm826_vm7, %v5990_v4, %v5991_v61  ;;  %v9295_v25 = vshrl.u32 %v12629_v44, 16  ;;  %v9314_v46 = vrot.slane %v9312_v12, 3  ;;  %v5656_v12 = vld [vmem:[#allocation3 + $0x40] sm:$0x1] }
 0x39a   : > { %v15272_v40 = vadd.f32 %v8402_v9, %v8314_v39  ;;  %v6073_v13 = vshrl.u32 %v5992_v43, 16  ;;  %v6076_v27 = vshll.u32 %v5992_v43, 16  ;;  %v6067_v39 = vrot.slane %v6065_v58, 3 }
 0x39b   : > { %8355 = vmatmul.bf16.gmra.mxu2 %v7923_v34  ;;  %8677 = vmatmul.bf16.gmra.mxu0 %v6699_v14  ;;  %v9298_v34 = vshll.u32 %v12629_v44, 16  ;;  %v6070_v9 = vrot.slane %v6068_v30, 4  ;;  %v12291_v44 = vld [vmem:[#allocation3 + $0x50] sm:$0xff]   ;;  %v9297_v14 = vrot.slane %v9295_v25, 3  ;;  %v5975_v58 = vpack.c.b16 %v5959_v15, %v5959_v15 }
 0x39c   : > { %v6075_v56 = vrot.slane %v6073_v13, 3  ;;  %v6078_v4 = vrot.slane %v6076_v27, 4  ;;  %v9079_v30 = vshrl.u32 %v12291_v44, 16  ;;  %v5865_v13 = vrot.slane %v5863_v6, 4 }
 0x39d   : > { %v9300_v61 = vrot.slane %v9298_v34, 4  ;;  %v6071_v0 = vor.u32 %v6070_v9, %v6067_v39  ;;  %v5868_v27 = vrot.slane %v5866_v37, 5  ;;  %v5993_v34 = vrot.slane %v15084_v38, 5 }
 0x39e   : > { %v15279_v53 = vpop.f32.mrf.mxu1  ;;  %8444 = vmatmul.bf16.gmra.mxu3 %v7941_v59  ;;  %v8316_v2 = vpop.f32.mrf.mxu2  ;;  %v9308_v59 = vrot.slane %v9306_v24, 4  ;;  %v6079_v43 = vor.u32 %v6078_v4, %v6075_v56  ;;  %v5994_v5 = vrot.slane %v5975_v58, 5  ;;  %v12121_v24 = vunpack.c.h.b16 %v12291_v44  ;;  %v12632_v56 = vld [vmem:[#allocation3 + $0x4c] sm:$0x8] }
 0x39f   : > { %v8317_v33 = vadd.f32 %v8316_v2, %v15061_v49  ;;  %v9315_v49 = vshll.u32 %v9077_v17, 16  ;;  %v9082_v2 = vshll.u32 %v12291_v44, 16  ;;  %v9301_v8 = vor.u32 %v9300_v61, %v9297_v14 }
 0x3a0   : > { %v15283_v7 = vpop.f32.mrf.mxu0  ;;  %v6080_v39 = vsel %vm875_vm3, %v6071_v0, %v6079_v43  ;;  %v5869_v9 = vor.u32 %v5868_v27, %v5865_v13  ;;  %v9081_v4 = vrot.slane %v9079_v30, 4  ;;  %v5995_v38 = vsel %vm826_vm7, %v5993_v34, %v5994_v5 }
 0x3a1   : > { %v8405_v45 = vpop.f32.mrf.mxu3  ;;  %16097 = vst [vmem:[#allocation12_spill] sm:$0xff] %v15283_v7  ;;  %v6277_v7 = vor.u32 %v6276_v22, %v6273_v32  ;;  %v12787_v32 = vld [vmem:[#allocation3 + $0x4c] sm:$0xf0]   ;;  %v9084_v6 = vrot.slane %v9082_v2, 5  ;;  %v9025_v44 = vpack.c.b16 %v12121_v24, %v12121_v24  ;;  %v6111_v58 = vshll.u32 %v5993_v34, 16 }
 0x3a2   : > { %v15289_v41 = vadd.f32 %v8405_v45, %v8317_v33  ;;  %v9317_v33 = vrot.slane %v9315_v49, 4  ;;  %v6314_v14 = vshrl.u32 %v5869_v9, 16  ;;  %v6116_v30 = vshrl.u32 %v5995_v38, 16 }
 0x3a3   : > { %v9085_v61 = vor.u32 %v9084_v6, %v9081_v4  ;;  %v5960_v43 = vunpack.c.l.b16 %v5656_v12  ;;  %v9346_v2 = vshrl.u32 %v9025_v44, 16  ;;  %v6113_v4 = vrot.slane %v6111_v58, 4 }
 0x3a4   : > { %16098 = vst [vmem:[#allocation11_spill] sm:$0xff] %v15289_v41  ;;  %v9309_v41 = vor.u32 %v9308_v59, %v9305_v3  ;;  %v9318_v22 = vor.u32 %v9317_v33, %v9314_v46  ;;  %v6317_v3 = vshll.u32 %v5869_v9, 16  ;;  %v6108_v59 = vshrl.u32 %v5993_v34, 16  ;;  %v15309_v9 = vld [vmem:[#allocation3 + $0xb0] sm:$0xff]  }
 0x3a5   : > { %v6119_v46 = vshll.u32 %v5995_v38, 16  ;;  %v9349_v33 = vshll.u32 %v9025_v44, 16  ;;  %v9358_v5 = vshll.u32 %v9085_v61, 16  ;;  %v5871_v34 = vshrl.u32 %v15309_v9, 16 }
 0x3a6   : > { %v15291_v57 = vpop.f32.mrf.mxu1  ;;  %v8318_v45 = vpop.f32.mrf.mxu2  ;;  %v6118_v6 = vrot.slane %v6116_v30, 3  ;;  %v9348_v38 = vrot.slane %v9346_v2, 3  ;;  %v5996_v58 = vrot.slane %v15125_v18, 5  ;;  %v12636_v2 = vld [vmem:[#allocation3 + $0x64] sm:$0x8] }
 0x3a7   : > { %v8319_v25 = vadd.f32 %v8318_v45, %v15077_v51  ;;  %v9310_v51 = vsel %vm875_vm3, %v9301_v8, %v9309_v41  ;;  %v6316_v8 = vrot.slane %v6314_v14, 3  ;;  %v9351_v44 = vrot.slane %v9349_v33, 4  ;;  %v12788_v33 = vld [vmem:[#allocation3 + $0x64] sm:$0xf0]  }
 0x3a8   : > { %v15295_v15 = vpop.f32.mrf.mxu0 }
 0x3a9   : > { %v8407_v17 = vpop.f32.mrf.mxu3  ;;  %8716 = vmatmul.bf16.gmra.mxu1 %v6277_v7  ;;  %16099 = vst [vmem:[#allocation25_spill] sm:$0xff] %v15295_v15  ;;  %v12633_v7 = vor.u32 %v12787_v32, %v12632_v56  ;;  %v5874_v56 = vshll.u32 %v15309_v9, 16  ;;  %v6110_v32 = vrot.slane %v6108_v59, 3 }
 0x3aa   : > { %v15298_v37 = vadd.f32 %v8407_v17, %v8319_v25  ;;  %v9355_v17 = vshrl.u32 %v9085_v61, 16 }
 0x3ab   : > { %8780 = vmatmul.bf16.vlgmr.msra.gmra.mxu2 %v6080_v39  ;;  %10320 = vmatmul.bf16.vlgmr.msra.gmra.mxu0 %v9318_v22  ;;  %v9338_v27 = vshrl.u32 %v12633_v7, 16  ;;  %v9341_v25 = vshll.u32 %v12633_v7, 16  ;;  %v6319_v39 = vrot.slane %v6317_v3, 4  ;;  %v6121_v22 = vrot.slane %v6119_v46, 4 }
 0x3ac   : > { %16100 = vst [vmem:[#allocation26_spill] sm:$0xff] %v15298_v37  ;;  %v5976_v7 = vpack.c.b16 %v5960_v43, %v5960_v43  ;;  %v9357_v61 = vrot.slane %v9355_v17, 3  ;;  %v5876_v15 = vrot.slane %v5874_v56, 5  ;;  %v6114_v37 = vor.u32 %v6113_v4, %v6110_v32 }
 0x3ad   : > { %v9343_v14 = vrot.slane %v9341_v25, 4  ;;  %v6122_v59 = vor.u32 %v6121_v22, %v6118_v6  ;;  %v9352_v43 = vor.u32 %v9351_v44, %v9348_v38 }
 0x3ae   : > { %v15302_v49 = vpop.f32.mrf.mxu1  ;;  %10231 = vmatmul.bf16.vlgmr.msra.gmra.mxu3 %v9310_v51  ;;  %v8321_v0 = vpop.f32.mrf.mxu2  ;;  %v9340_v51 = vrot.slane %v9338_v27, 3  ;;  %v5997_v27 = vrot.slane %v5976_v7, 5  ;;  %v6154_v7 = vshll.u32 %v5996_v58, 16 }
 0x3af   : > { %v8322_v41 = vadd.f32 %v8321_v0, %v15101_v52  ;;  %v12292_v52 = vld [vmem:[#allocation3 + $0x68] sm:$0xff]   ;;  %v6123_v18 = vsel %vm875_vm3, %v6114_v37, %v6122_v59 }
 0x3b0   : > { %v15305_v45 = vpop.f32.mrf.mxu0  ;;  %v9087_v3 = vshrl.u32 %v12292_v52, 16  ;;  %v9090_v0 = vshll.u32 %v12292_v52, 16  ;;  %v12125_v25 = vunpack.c.h.b16 %v12292_v52  ;;  %v5998_v52 = vsel %vm826_vm7, %v5996_v58, %v5997_v27 }
 0x3b1   : > { %v8410_v13 = vpop.f32.mrf.mxu3  ;;  %16101 = vst [vmem:[#allocation27_spill] sm:$0xff] %v15305_v45  ;;  %v5873_v45 = vrot.slane %v5871_v34, 4  ;;  %v9344_v34 = vor.u32 %v9343_v14, %v9340_v51  ;;  %v6151_v51 = vshrl.u32 %v5996_v58, 16  ;;  %v6159_v37 = vshrl.u32 %v5998_v52, 16 }
 0x3b2   : > { %v15307_v24 = vadd.f32 %v8410_v13, %v8322_v41  ;;  %v6320_v41 = vor.u32 %v6319_v39, %v6316_v8  ;;  %v9360_v13 = vrot.slane %v9358_v5, 4  ;;  %v9089_v8 = vrot.slane %v9087_v3, 4 }
 0x3b3   : > { %v9092_v5 = vrot.slane %v9090_v0, 5  ;;  %v5877_v32 = vor.u32 %v5876_v15, %v5873_v45  ;;  %v9353_v4 = vsel %vm875_vm3, %v9344_v34, %v9352_v43  ;;  %v9027_v6 = vpack.c.b16 %v12125_v25, %v12125_v25  ;;  %v5657_v15 = vld [vmem:[#allocation3 + $0x58] sm:$0x1] }
 0x3b4   : > { %16102 = vst [vmem:[#allocation28_spill] sm:$0xff] %v15307_v24  ;;  %v9361_v56 = vor.u32 %v9360_v13, %v9357_v61  ;;  %v6162_v61 = vshll.u32 %v5998_v52, 16  ;;  %v6153_v27 = vrot.slane %v6151_v51, 3 }
 0x3b5   : > { %v9093_v38 = vor.u32 %v9092_v5, %v9089_v8  ;;  %v6357_v45 = vshrl.u32 %v5877_v32, 16  ;;  %v6360_v44 = vshll.u32 %v5877_v32, 16  ;;  %v9389_v59 = vshrl.u32 %v9027_v6, 16 }
 0x3b6   : > { %v15313_v12 = vpop.f32.mrf.mxu1  ;;  %v8323_v24 = vpop.f32.mrf.mxu2  ;;  %v6156_v32 = vrot.slane %v6154_v7, 4 }
 0x3b7   : > { %v8324_v30 = vadd.f32 %v8323_v24, %v15117_v29  ;;  %v11629_v29 = vld [vmem:[%s15998_s3 + $0x218] sm:$0xff]  ;;  %v12637_v24 = vor.u32 %v12788_v33, %v12636_v2  ;;  %v9398_v2 = vshrl.u32 %v9093_v38, 16  ;;  %v6359_v5 = vrot.slane %v6357_v45, 3 }
 0x3b8   : > { %v15317_v17 = vpop.f32.mrf.mxu0  ;;  %10405 = vmatpush.bf16.msra.mxu1 %v11629_v29  ;;  %v15332_v33 = vld [vmem:[#allocation3 + $0xc8] sm:$0xff]   ;;  %v6362_v34 = vrot.slane %v6360_v44, 4  ;;  %v6161_v29 = vrot.slane %v6159_v37, 3  ;;  %v9391_v52 = vrot.slane %v9389_v59, 3  ;;  %v6157_v7 = vor.u32 %v6156_v32, %v6153_v27 }
 0x3b9   : > { %v8412_v46 = vpop.f32.mrf.mxu3  ;;  %8721 = vmatmul.bf16.gmra.mxu1 %v6320_v41  ;;  %16103 = vst [vmem:[#allocation29_spill] sm:$0xff] %v15317_v17  ;;  %v9381_v3 = vshrl.u32 %v12637_v24, 16  ;;  %v9384_v0 = vshll.u32 %v12637_v24, 16  ;;  %v5879_v25 = vshrl.u32 %v15332_v33, 16  ;;  %v5882_v58 = vshll.u32 %v15332_v33, 16 }
 0x3ba   : > { %v15319_v39 = vadd.f32 %v8412_v46, %v8324_v30  ;;  %v9392_v30 = vshll.u32 %v9027_v6, 16  ;;  %v5961_v46 = vunpack.c.l.b16 %v5657_v15 }
 0x3bb   : > { %8785 = vmatmul.bf16.gmra.mxu2 %v6123_v18  ;;  %10325 = vmatmul.bf16.gmra.mxu0 %v9361_v56  ;;  %v9401_v56 = vshll.u32 %v9093_v38, 16  ;;  %v6164_v18 = vrot.slane %v6162_v61, 4  ;;  %v9383_v24 = vrot.slane %v9381_v3, 3  ;;  %v5999_v38 = vrot.slane %v15151_v10, 5 }
 0x3bc   : > { %16104 = vst [vmem:[#allocation30_spill] sm:$0xff] %v15319_v39  ;;  %v9394_v6 = vrot.slane %v9392_v30, 4  ;;  %v5977_v51 = vpack.c.b16 %v5961_v46, %v5961_v46  ;;  %v12640_v30 = vld [vmem:[#allocation3 + $0x7c] sm:$0x8]  ;;  %v12789_v46 = vld [vmem:[#allocation3 + $0x7c] sm:$0xf0]  }
 0x3bd   : > { %v9403_v45 = vrot.slane %v9401_v56, 4  ;;  %v6165_v37 = vor.u32 %v6164_v18, %v6161_v29  ;;  %v5658_v56 = vld [vmem:[#allocation3 + $0x70] sm:$0x1]  ;;  %v6194_v32 = vshrl.u32 %v5999_v38, 16  ;;  %v6197_v29 = vshll.u32 %v5999_v38, 16 }
 0x3be   : > { %v15327_v22 = vpop.f32.mrf.mxu1  ;;  %10236 = vmatmul.bf16.gmra.mxu3 %v9353_v4  ;;  %v8326_v14 = vpop.f32.mrf.mxu2  ;;  %v9386_v4 = vrot.slane %v9384_v0, 4  ;;  %v9395_v0 = vor.u32 %v9394_v6, %v9391_v52  ;;  %v6000_v59 = vrot.slane %v5977_v51, 5  ;;  %v12641_v18 = vor.u32 %v12789_v46, %v12640_v30 }
 0x3bf   : > { %v8327_v41 = vadd.f32 %v8326_v14, %v15133_v62  ;;  %v12293_v62 = vld [vmem:[#allocation3 + $0x80] sm:$0xff]   ;;  %v5881_v14 = vrot.slane %v5879_v25, 4  ;;  %v15351_v51 = vrot.slane %v6194_v32, 3  ;;  %v8604_v32 = vadd.f32 %v14990_v19, %v15013_v1 }
 0x3c0   : > { %v15330_v43 = vpop.f32.mrf.mxu0  ;;  %v9095_v17 = vshrl.u32 %v12293_v62, 16  ;;  %v9098_v39 = vshll.u32 %v12293_v62, 16  ;;  %v12129_v25 = vunpack.c.h.b16 %v12293_v62  ;;  %v6001_v62 = vsel %vm826_vm7, %v5999_v38, %v6000_v59 }
 0x3c1   : > { %v8415_v13 = vpop.f32.mrf.mxu3  ;;  %16105 = vst [vmem:[#allocation31_spill] sm:$0xff] %v15330_v43  ;;  %v5884_v43 = vrot.slane %v5882_v58, 5 }
 0x3c2   : > { %v15336_v8 = vadd.f32 %v8415_v13, %v8327_v41  ;;  %v6363_v41 = vor.u32 %v6362_v34, %v6359_v5  ;;  %v9400_v13 = vrot.slane %v9398_v2, 3  ;;  %v9097_v2 = vrot.slane %v9095_v17, 4 }
 0x3c3   : > { %v5885_v5 = vor.u32 %v5884_v43, %v5881_v14  ;;  %v9100_v34 = vrot.slane %v9098_v39, 5  ;;  %v9029_v6 = vpack.c.b16 %v12129_v25, %v12129_v25  ;;  %v6199_v14 = vrot.slane %v6197_v29, 4 }
 0x3c4   : > { %16106 = vst [vmem:[#allocation32_spill] sm:$0xff] %v15336_v8  ;;  %v9387_v8 = vor.u32 %v9386_v4, %v9383_v24  ;;  %v9404_v27 = vor.u32 %v9403_v45, %v9400_v13  ;;  %v5962_v24 = vunpack.c.l.b16 %v5658_v56  ;;  %v6202_v13 = vshrl.u32 %v6001_v62, 16 }
 0x3c5   : > { %v6400_v17 = vshrl.u32 %v5885_v5, 16  ;;  %v9101_v39 = vor.u32 %v9100_v34, %v9097_v2  ;;  %v6403_v4 = vshll.u32 %v5885_v5, 16  ;;  %v6205_v45 = vshll.u32 %v6001_v62, 16  ;;  %v15361_v34 = vld [vmem:[#allocation3 + $0xe0] sm:$0xff]  }
 0x3c6   : > { %v15338_v15 = vpop.f32.mrf.mxu1  ;;  %v8328_v44 = vpop.f32.mrf.mxu2  ;;  %v9396_v52 = vsel %vm875_vm3, %v9387_v8, %v9395_v0  ;;  %v9432_v38 = vshrl.u32 %v9029_v6, 16  ;;  %v15357_v25 = vrot.slane %v15192_v50, 5  ;;  %v5887_v56 = vshrl.u32 %v15361_v34, 16 }
 0x3c7   : > { %v8329_v61 = vadd.f32 %v8328_v44, %v15143_v11  ;;  %v6166_v11 = vsel %vm875_vm3, %v6157_v7, %v6165_v37  ;;  %v9424_v44 = vshrl.u32 %v12641_v18, 16  ;;  %v9427_v7 = vshll.u32 %v12641_v18, 16 }
 0x3c8   : > { %v15342_v58 = vpop.f32.mrf.mxu0  ;;  %v6402_v59 = vrot.slane %v6400_v17, 3  ;;  %v9441_v30 = vshrl.u32 %v9101_v39, 16  ;;  %v9444_v46 = vshll.u32 %v9101_v39, 16  ;;  %v6405_v2 = vrot.slane %v6403_v4, 4 }
 0x3c9   : > { %v8417_v3 = vpop.f32.mrf.mxu3  ;;  %8726 = vmatmul.bf16.gmra.mxu1 %v6363_v41  ;;  %16107 = vst [vmem:[#allocation33_spill] sm:$0xff] %v15342_v58  ;;  %v6204_v29 = vrot.slane %v6202_v13, 3  ;;  %v9426_v18 = vrot.slane %v9424_v44, 3  ;;  %v9434_v62 = vrot.slane %v9432_v38, 3  ;;  %v6200_v19 = vor.u32 %v6199_v14, %v15351_v51  ;;  %v12790_v38 = vld [vmem:[#allocation3 + $0x94] sm:$0xf0]  }
 0x3ca   : > { %v15344_v10 = vadd.f32 %v8417_v3, %v8329_v61  ;;  %v9435_v61 = vshll.u32 %v9029_v6, 16  ;;  %v5978_v3 = vpack.c.b16 %v5962_v24, %v5962_v24  ;;  %v9443_v17 = vrot.slane %v9441_v30, 3 }
 0x3cb   : > { %8790 = vmatmul.bf16.gmra.mxu2 %v6166_v11  ;;  %10330 = vmatmul.bf16.gmra.mxu0 %v9404_v27  ;;  %v12294_v27 = vld [vmem:[#allocation3 + $0x98] sm:$0xff]   ;;  %v6207_v11 = vrot.slane %v6205_v45, 4  ;;  %v9446_v39 = vrot.slane %v9444_v46, 4 }
 0x3cc   : > { %v9437_v50 = vrot.slane %v9435_v61, 4  ;;  %v6003_v6 = vrot.slane %v5978_v3, 5  ;;  %v9103_v4 = vshrl.u32 %v12294_v27, 16  ;;  %v12133_v61 = vunpack.c.h.b16 %v12294_v27  ;;  %v5659_v3 = vld [vmem:[#allocation3 + $0x88] sm:$0x1] }
 0x3cd   : > { %v6208_v1 = vor.u32 %v6207_v11, %v6204_v29  ;;  %v9447_v51 = vor.u32 %v9446_v39, %v9443_v17  ;;  %v5963_v11 = vunpack.c.l.b16 %v5659_v3 }
 0x3ce   : > { %v15349_v43 = vpop.f32.mrf.mxu1  ;;  %10241 = vmatmul.bf16.gmra.mxu3 %v9396_v52  ;;  %v8331_v41 = vpop.f32.mrf.mxu2  ;;  %v9429_v52 = vrot.slane %v9427_v7, 4  ;;  %v9438_v44 = vor.u32 %v9437_v50, %v9434_v62  ;;  %v12644_v7 = vld [vmem:[#allocation3 + $0x94] sm:$0x8] }
 0x3cf   : > { %v8332_v8 = vadd.f32 %v8331_v41, %v15163_v31  ;;  %v5890_v31 = vshll.u32 %v15361_v34, 16  ;;  %v9106_v41 = vshll.u32 %v12294_v27, 16  ;;  %v6209_v27 = vsel %vm875_vm3, %v6200_v19, %v6208_v1 }
 0x3d0   : > { %v15354_v0 = vpop.f32.mrf.mxu0  ;;  %v9430_v46 = vor.u32 %v9429_v52, %v9426_v18  ;;  %v12645_v29 = vor.u32 %v12790_v38, %v12644_v7  ;;  %v8606_v18 = vadd.f32 %v15011_v54, %v15039_v35  ;;  %v5979_v54 = vpack.c.b16 %v5963_v11, %v5963_v11 }
 0x3d1   : > { %v8420_v37 = vpop.f32.mrf.mxu3  ;;  %16108 = vst [vmem:[#allocation34_spill] sm:$0xff] %v15354_v0  ;;  %v5889_v0 = vrot.slane %v5887_v56, 4  ;;  %v5892_v58 = vrot.slane %v5890_v31, 5  ;;  %v9108_v56 = vrot.slane %v9106_v41, 5 }
 0x3d2   : > { %v15359_v5 = vadd.f32 %v8420_v37, %v8332_v8  ;;  %v6406_v37 = vor.u32 %v6405_v2, %v6402_v59  ;;  %v6237_v59 = vshrl.u32 %v15357_v25, 16  ;;  %v9105_v2 = vrot.slane %v9103_v4, 4 }
 0x3d3   : > { %v5893_v14 = vor.u32 %v5892_v58, %v5889_v0  ;;  %v9439_v52 = vsel %vm875_vm3, %v9430_v46, %v9438_v44  ;;  %v9031_v58 = vpack.c.b16 %v12133_v61, %v12133_v61  ;;  %v9470_v1 = vshll.u32 %v12645_v29, 16  ;;  %v15391_v61 = vld [vmem:[#allocation3 + $0xf8] sm:$0xff]  }
 0x3d4   : > { %16109 = vst [vmem:[#allocation35_spill] sm:$0xff] %v15359_v5  ;;  %v9109_v50 = vor.u32 %v9108_v56, %v9105_v2  ;;  %v5895_v3 = vshrl.u32 %v15391_v61, 16  ;;  %v5898_v46 = vshll.u32 %v15391_v61, 16 }
 0x3d5   : > { %v6446_v17 = vshll.u32 %v5893_v14, 16 }
 0x3d6   : > { %v8692_v24 = vpop.f32.mrf.mxu1  ;;  %v8333_v5 = vpop.f32.mrf.mxu2  ;;  %v9484_v38 = vshrl.u32 %v9109_v50, 16 }
 0x3d7   : > { %v15367_v8 = vadd.f32 %v8692_v24, %v8604_v32  ;;  %v8334_v13 = vadd.f32 %v8333_v5, %v15190_v48  ;;  %v6004_v48 = vsel %vm826_vm7, %v15357_v25, %v6003_v6  ;;  %v11628_v5 = vld [vmem:[%s15998_s3 + $0x210] sm:$0xff]  ;;  %v6240_v32 = vshll.u32 %v15357_v25, 16 }
 0x3d8   : > { %v15371_v30 = vpop.f32.mrf.mxu0  ;;  %v6245_v62 = vshrl.u32 %v6004_v48, 16  ;;  %10406 = vmatpush.bf16.msra.mxu1 %v11628_v5  ;;  %v6443_v24 = vshrl.u32 %v5893_v14, 16  ;;  %v6239_v25 = vrot.slane %v6237_v59, 3  ;;  %v6248_v41 = vshll.u32 %v6004_v48, 16 }
 0x3d9   : > { %v8422_v45 = vpop.f32.mrf.mxu3  ;;  %8731 = vmatmul.bf16.gmra.mxu1 %v6406_v37  ;;  %v6242_v4 = vrot.slane %v6240_v32, 4  ;;  %v9467_v37 = vshrl.u32 %v12645_v29, 16  ;;  %v6448_v56 = vrot.slane %v6446_v17, 4  ;;  %v8609_v14 = vadd.f32 %v15036_v63, %v15057_v60 }
 0x3da   : > { %v15374_v31 = vadd.f32 %v8422_v45, %v8334_v13  ;;  %v9475_v13 = vshrl.u32 %v9031_v58, 16  ;;  %v9478_v45 = vshll.u32 %v9031_v58, 16  ;;  %v6247_v7 = vrot.slane %v6245_v62, 3 }
 0x3db   : > { %8795 = vmatmul.bf16.gmra.mxu2 %v6209_v27  ;;  %10335 = vmatmul.bf16.gmra.mxu0 %v9447_v51  ;;  %v6445_v2 = vrot.slane %v6443_v24, 3  ;;  %v9487_v51 = vshll.u32 %v9109_v50, 16  ;;  %v6250_v48 = vrot.slane %v6248_v41, 4  ;;  %v6005_v5 = vrot.slane %v15255_v26, 5 }
 0x3dc   : > { %v6006_v27 = vrot.slane %v5979_v54, 5  ;;  %v9469_v32 = vrot.slane %v9467_v37, 3  ;;  %v9472_v29 = vrot.slane %v9470_v1, 4  ;;  %v9477_v11 = vrot.slane %v9475_v13, 3  ;;  %v12648_v54 = vld [vmem:[#allocation3 + $0xac] sm:$0x8] }
 0x3dd   : > { %v5897_v58 = vrot.slane %v5895_v3, 4  ;;  %v6449_v50 = vor.u32 %v6448_v56, %v6445_v2  ;;  %v9486_v17 = vrot.slane %v9484_v38, 3  ;;  %v6243_v63 = vor.u32 %v6242_v4, %v6239_v25  ;;  %v12791_v1 = vld [vmem:[#allocation3 + $0xac] sm:$0xf0]  }
 0x3de   : > { %v8694_v0 = vpop.f32.mrf.mxu1  ;;  %10246 = vmatmul.bf16.gmra.mxu3 %v9439_v52  ;;  %v8336_v39 = vpop.f32.mrf.mxu2  ;;  %v6251_v60 = vor.u32 %v6250_v48, %v6247_v7  ;;  %v9473_v25 = vor.u32 %v9472_v29, %v9469_v32  ;;  %v6280_v7 = vshrl.u32 %v6005_v5, 16  ;;  %v12649_v48 = vor.u32 %v12791_v1, %v12648_v54 }
 0x3df   : > { %v15386_v6 = vadd.f32 %v8694_v0, %v8606_v18  ;;  %v8337_v35 = vadd.f32 %v8336_v39, %v15222_v21  ;;  %v12295_v21 = vld [vmem:[#allocation3 + $0xb0] sm:$0xff]   ;;  %v9480_v18 = vrot.slane %v9478_v45, 4  ;;  %v5900_v0 = vrot.slane %v5898_v46, 5  ;;  %v5660_v45 = vld [vmem:[#allocation3 + $0xa0] sm:$0x1] }
 0x3e0   : > { %v15389_v44 = vpop.f32.mrf.mxu0  ;;  %v9111_v62 = vshrl.u32 %v12295_v21, 16  ;;  %v9114_v39 = vshll.u32 %v12295_v21, 16  ;;  %v12137_v13 = vunpack.c.h.b16 %v12295_v21  ;;  %v8611_v21 = vadd.f32 %v15055_v23, %v15068_v47 }
 0x3e1   : > { %v8425_v19 = vpop.f32.mrf.mxu3  ;;  %v9481_v37 = vor.u32 %v9480_v18, %v9477_v11  ;;  %v5901_v46 = vor.u32 %v5900_v0, %v5897_v58  ;;  %v5964_v11 = vunpack.c.l.b16 %v5660_v45 }
 0x3e2   : > { %v15395_v59 = vadd.f32 %v8425_v19, %v8337_v35  ;;  %v9489_v35 = vrot.slane %v9487_v51, 4  ;;  %v9113_v2 = vrot.slane %v9111_v62, 4  ;;  %v9116_v38 = vrot.slane %v9114_v39, 5 }
 0x3e3   : > { %v6283_v51 = vshll.u32 %v6005_v5, 16  ;;  %v9482_v18 = vsel %vm875_vm3, %v9473_v25, %v9481_v37  ;;  %v6486_v58 = vshrl.u32 %v5901_v46, 16  ;;  %v6489_v62 = vshll.u32 %v5901_v46, 16 }
 0x3e4   : > { %v9490_v4 = vor.u32 %v9489_v35, %v9486_v17  ;;  %v9117_v32 = vor.u32 %v9116_v38, %v9113_v2  ;;  %v6282_v39 = vrot.slane %v6280_v7, 3  ;;  %v9510_v35 = vshrl.u32 %v12649_v48, 16  ;;  %v15419_v2 = vld [vmem:[#allocation3 + $0x110] sm:$0xff]  }
 0x3e5   : > { %v6488_v37 = vrot.slane %v6486_v58, 3  ;;  %v6491_v46 = vrot.slane %v6489_v62, 4  ;;  %v5906_v38 = vshll.u32 %v15419_v2, 16  ;;  %v8614_v25 = vadd.f32 %v15066_v55, %v15090_v20 }
 0x3e6   : > { %v8697_v52 = vpop.f32.mrf.mxu1  ;;  %v8338_v19 = vpop.f32.mrf.mxu2  ;;  %v9527_v1 = vshrl.u32 %v9117_v32, 16  ;;  %v6008_v7 = vrot.slane %v15285_v36, 5 }
 0x3e7   : > { %v15400_v24 = vadd.f32 %v8697_v52, %v8609_v14  ;;  %v8339_v26 = vadd.f32 %v8338_v19, %v15252_v16  ;;  %v6007_v14 = vsel %vm826_vm7, %v6005_v5, %v6006_v27  ;;  %v6252_v16 = vsel %vm875_vm3, %v6243_v63, %v6251_v60 }
 0x3e8   : > { %v15403_v3 = vpop.f32.mrf.mxu0  ;;  %v9033_v27 = vpack.c.b16 %v12137_v13, %v12137_v13  ;;  %v6288_v0 = vshrl.u32 %v6007_v14, 16  ;;  %v6291_v17 = vshll.u32 %v6007_v14, 16  ;;  %v5980_v19 = vpack.c.b16 %v5964_v11, %v5964_v11 }
 0x3e9   : > { %v8427_v41 = vpop.f32.mrf.mxu3  ;;  %8736 = vmatmul.bf16.gmra.mxu1 %v6449_v50  ;;  %v6285_v50 = vrot.slane %v6283_v51, 4  ;;  %v9513_v63 = vshll.u32 %v12649_v48, 16  ;;  %v9530_v13 = vshll.u32 %v9117_v32, 16  ;;  %v5903_v14 = vshrl.u32 %v15419_v2, 16 }
 0x3ea   : > { %v15406_v56 = vadd.f32 %v8427_v41, %v8339_v26  ;;  %v9518_v60 = vshrl.u32 %v9033_v27, 16  ;;  %v9521_v26 = vshll.u32 %v9033_v27, 16  ;;  %v6290_v54 = vrot.slane %v6288_v0, 3 }
 0x3eb   : > { %8800 = vmatmul.bf16.gmra.mxu2 %v6252_v16  ;;  %10340 = vmatmul.bf16.gmra.mxu0 %v9490_v4  ;;  %v6293_v4 = vrot.slane %v6291_v17, 4  ;;  %v6009_v16 = vrot.slane %v5980_v19, 5  ;;  %v9512_v51 = vrot.slane %v9510_v35, 3  ;;  %v9515_v48 = vrot.slane %v9513_v63, 4  ;;  %v12652_v63 = vld [vmem:[#allocation3 + $0xc4] sm:$0x8] }
 0x3ec   : > { %v9520_v11 = vrot.slane %v9518_v60, 3  ;;  %v9529_v27 = vrot.slane %v9527_v1, 3  ;;  %v6492_v62 = vor.u32 %v6491_v46, %v6488_v37  ;;  %v6286_v20 = vor.u32 %v6285_v50, %v6282_v39  ;;  %v12792_v60 = vld [vmem:[#allocation3 + $0xc4] sm:$0xf0]  }
 0x3ed   : > { %v6294_v17 = vor.u32 %v6293_v4, %v6290_v54  ;;  %v6323_v4 = vshrl.u32 %v6008_v7, 16 }
 0x3ee   : > { %v8699_v52 = vpop.f32.mrf.mxu1  ;;  %10251 = vmatmul.bf16.gmra.mxu3 %v9482_v18  ;;  %v8341_v5 = vpop.f32.mrf.mxu2 }
 0x3ef   : > { %v15412_v29 = vadd.f32 %v8699_v52, %v8611_v21  ;;  %v8342_v23 = vadd.f32 %v8341_v5, %v15266_v42  ;;  %v12296_v42 = vld [vmem:[#allocation3 + $0xc8] sm:$0xff]   ;;  %v9523_v21 = vrot.slane %v9521_v26, 4  ;;  %v9532_v52 = vrot.slane %v9530_v13, 4 }
 0x3f0   : > { %v15415_v41 = vpop.f32.mrf.mxu0  ;;  %v9119_v58 = vshrl.u32 %v12296_v42, 16  ;;  %v9122_v0 = vshll.u32 %v12296_v42, 16  ;;  %v5905_v5 = vrot.slane %v5903_v14, 4  ;;  %v12141_v26 = vunpack.c.h.b16 %v12296_v42 }
 0x3f1   : > { %v8430_v47 = vpop.f32.mrf.mxu3  ;;  %16110 = vst [vmem:[#allocation36_spill] sm:$0xff] %v15415_v41  ;;  %v9524_v19 = vor.u32 %v9523_v21, %v9520_v11  ;;  %v6010_v13 = vsel %vm826_vm7, %v6008_v7, %v6009_v16  ;;  %v9533_v39 = vor.u32 %v9532_v52, %v9529_v27  ;;  %v6295_v54 = vsel %vm875_vm3, %v6286_v20, %v6294_v17  ;;  %v16112_v21 = vld [vmem:[#allocation15_spill] sm:$0xff] }
 0x3f2   : > { %v15417_v45 = vadd.f32 %v8430_v47, %v8342_v23  ;;  %v5908_v23 = vrot.slane %v5906_v38, 5  ;;  %v5661_v47 = vld [vmem:[#allocation3 + $0xb8] sm:$0x1]  ;;  %v9124_v37 = vrot.slane %v9122_v0, 5  ;;  %v9516_v38 = vor.u32 %v9515_v48, %v9512_v51 }
 0x3f3   : > { %v5965_v46 = vunpack.c.l.b16 %v5661_v47  ;;  %v6326_v42 = vshll.u32 %v6008_v7, 16  ;;  %v12653_v11 = vor.u32 %v12792_v60, %v12652_v63  ;;  %v9035_v0 = vpack.c.b16 %v12141_v26, %v12141_v26 }
 0x3f4   : > { %v5909_v50 = vor.u32 %v5908_v23, %v5905_v5  ;;  %v6331_v48 = vshrl.u32 %v6010_v13, 16  ;;  %v6325_v47 = vrot.slane %v6323_v4, 3  ;;  %v6334_v20 = vshll.u32 %v6010_v13, 16  ;;  %v16116_v4 = vld [vmem:[#allocation17_spill] sm:$0xff] }
 0x3f5   : > { %v5981_v23 = vpack.c.b16 %v5965_v46, %v5965_v46  ;;  %v9553_v17 = vshrl.u32 %v12653_v11, 16  ;;  %v9561_v63 = vshrl.u32 %v9035_v0, 16  ;;  %v9564_v60 = vshll.u32 %v9035_v0, 16 }
 0x3f6   : > { %v8702_v18 = vpop.f32.mrf.mxu1  ;;  %v8343_v55 = vpop.f32.mrf.mxu2  ;;  %v6532_v5 = vshll.u32 %v5909_v50, 16 }
 0x3f7   : > { %v15426_v32 = vadd.f32 %v8702_v18, %v8614_v25  ;;  %v8344_v36 = vadd.f32 %v8343_v55, %v15279_v53  ;;  %v9121_v25 = vrot.slane %v9119_v58, 4  ;;  %v11627_v53 = vld [vmem:[%s15998_s3 + $0x208] sm:$0xff]  ;;  %v9525_v58 = vsel %vm875_vm3, %v9516_v38, %v9524_v19  ;;  %v15446_v38 = vld [vmem:[#allocation3 + $0x128] sm:$0xff]  }
 0x3f8   : > { %v15429_v1 = vpop.f32.mrf.mxu0  ;;  %v16113_v18 = vld [vmem:[#allocation13_spill] sm:$0xff]  ;;  %10407 = vmatpush.bf16.msra.mxu1 %v11627_v53  ;;  %v6328_v55 = vrot.slane %v6326_v42, 4  ;;  %v9556_v19 = vshll.u32 %v12653_v11, 16  ;;  %v5914_v46 = vshll.u32 %v15446_v38, 16  ;;  %v6534_v53 = vrot.slane %v6532_v5, 4  ;;  %v16117_v42 = vld [vmem:[#allocation14_spill] sm:$0xff] }
 0x3f9   : > { %v8432_v35 = vpop.f32.mrf.mxu3  ;;  %8741 = vmatmul.bf16.gmra.mxu1 %v6492_v62  ;;  %16111 = vst [vmem:[#allocation37_spill] sm:$0xff] %v15429_v1  ;;  %v8616_v16 = vadd.f32 %v16113_v18, %v16112_v21  ;;  %v9125_v27 = vor.u32 %v9124_v37, %v9121_v25  ;;  %v6529_v62 = vshrl.u32 %v5909_v50, 16  ;;  %v6333_v25 = vrot.slane %v6331_v48, 3 }
 0x3fa   : > { %v15432_v14 = vadd.f32 %v8432_v35, %v8344_v36  ;;  %v8619_v11 = vadd.f32 %v16117_v42, %v16116_v4  ;;  %v6336_v21 = vrot.slane %v6334_v20, 4  ;;  %v6011_v18 = vrot.slane %v15309_v9, 5 }
 0x3fb   : > { %8805 = vmatmul.bf16.gmra.mxu2 %v6295_v54  ;;  %10345 = vmatmul.bf16.gmra.mxu0 %v9533_v39  ;;  %v9570_v37 = vshrl.u32 %v9125_v27, 16  ;;  %v5911_v39 = vshrl.u32 %v15446_v38, 16  ;;  %v6531_v13 = vrot.slane %v6529_v62, 3  ;;  %v9573_v54 = vshll.u32 %v9125_v27, 16 }
 0x3fc   : > { %v9558_v0 = vrot.slane %v9556_v19, 4  ;;  %v9566_v48 = vrot.slane %v9564_v60, 4  ;;  %v5916_v1 = vrot.slane %v5914_v46, 5  ;;  %v6329_v4 = vor.u32 %v6328_v55, %v6325_v47  ;;  %v12656_v19 = vld [vmem:[#allocation3 + $0xdc] sm:$0x8] }
 0x3fd   : > { %v6535_v27 = vor.u32 %v6534_v53, %v6531_v13  ;;  %v9572_v5 = vrot.slane %v9570_v37, 3  ;;  %v6337_v20 = vor.u32 %v6336_v21, %v6333_v25  ;;  %v6366_v25 = vshrl.u32 %v6011_v18, 16 }
 0x3fe   : > { %v8704_v51 = vpop.f32.mrf.mxu1  ;;  %10256 = vmatmul.bf16.gmra.mxu3 %v9525_v58  ;;  %v8346_v7 = vpop.f32.mrf.mxu2  ;;  %v9555_v58 = vrot.slane %v9553_v17, 3 }
 0x3ff   : > { %v15441_v52 = vadd.f32 %v8704_v51, %v8616_v16  ;;  %v8347_v36 = vadd.f32 %v8346_v7, %v15291_v57  ;;  %v12297_v57 = vld [vmem:[#allocation3 + $0xe0] sm:$0xff]   ;;  %v6012_v16 = vrot.slane %v5981_v23, 5  ;;  %v9563_v51 = vrot.slane %v9561_v63, 3 }
 0x400   : > { %v15444_v26 = vpop.f32.mrf.mxu0  ;;  %v12793_v63 = vld [vmem:[#allocation3 + $0xdc] sm:$0xf0]   ;;  %v12145_v60 = vunpack.c.h.b16 %v12297_v57  ;;  %v9559_v47 = vor.u32 %v9558_v0, %v9555_v58 }
 0x401   : > { %v8435_v35 = vpop.f32.mrf.mxu3  ;;  %16114 = vst [vmem:[#allocation15_spill] sm:$0xff] %v15444_v26  ;;  %v5913_v26 = vrot.slane %v5911_v39, 4  ;;  %v9567_v17 = vor.u32 %v9566_v48, %v9563_v51  ;;  %v5662_v39 = vld [vmem:[#allocation3 + $0xd0] sm:$0x1]  ;;  %v16120_v51 = vld [vmem:[#allocation22_spill] sm:$0xff] }
 0x402   : > { %v15450_v50 = vadd.f32 %v8435_v35, %v8347_v36  ;;  %v9127_v36 = vshrl.u32 %v12297_v57, 16  ;;  %v9130_v35 = vshll.u32 %v12297_v57, 16  ;;  %v5966_v21 = vunpack.c.l.b16 %v5662_v39  ;;  %v16121_v57 = vld [vmem:[#allocation16_spill] sm:$0xff] }
 0x403   : > { %v5917_v42 = vor.u32 %v5916_v1, %v5913_v26  ;;  %v8621_v48 = vadd.f32 %v16121_v57, %v16120_v51  ;;  %v9568_v1 = vsel %vm875_vm3, %v9559_v47, %v9567_v17  ;;  %v9037_v26 = vpack.c.b16 %v12145_v60, %v12145_v60 }
 0x404   : > { %16115 = vst [vmem:[#allocation13_spill] sm:$0xff] %v15450_v50  ;;  %v9575_v50 = vrot.slane %v9573_v54, 4  ;;  %v9129_v13 = vrot.slane %v9127_v36, 4  ;;  %v9132_v37 = vrot.slane %v9130_v35, 5  ;;  %v12657_v54 = vor.u32 %v12793_v63, %v12656_v19 }
 0x405   : > { %v6575_v0 = vshll.u32 %v5917_v42, 16  ;;  %v6368_v35 = vrot.slane %v6366_v25, 3  ;;  %v9604_v19 = vshrl.u32 %v9037_v26, 16  ;;  %v9607_v63 = vshll.u32 %v9037_v26, 16  ;;  %v15474_v25 = vld [vmem:[#allocation3 + $0x140] sm:$0xff]  }
 0x406   : > { %v8707_v7 = vpop.f32.mrf.mxu1  ;;  %v8348_v41 = vpop.f32.mrf.mxu2  ;;  %v9576_v55 = vor.u32 %v9575_v50, %v9572_v5  ;;  %v9133_v58 = vor.u32 %v9132_v37, %v9129_v13  ;;  %v9599_v17 = vshll.u32 %v12657_v54, 16  ;;  %v6014_v57 = vrot.slane %v15332_v33, 5 }
 0x407   : > { %v15455_v62 = vadd.f32 %v8707_v7, %v8619_v11  ;;  %v8349_v9 = vadd.f32 %v8348_v41, %v15302_v49  ;;  %v6013_v11 = vsel %vm826_vm7, %v6011_v18, %v6012_v16  ;;  %v6338_v49 = vsel %vm875_vm3, %v6329_v4, %v6337_v20 }
 0x408   : > { %v15458_v46 = vpop.f32.mrf.mxu0  ;;  %v6369_v41 = vshll.u32 %v6011_v18, 16  ;;  %v6572_v7 = vshrl.u32 %v5917_v42, 16  ;;  %v6374_v36 = vshrl.u32 %v6013_v11, 16  ;;  %v6377_v5 = vshll.u32 %v6013_v11, 16 }
 0x409   : > { %v8437_v23 = vpop.f32.mrf.mxu3  ;;  %8746 = vmatmul.bf16.gmra.mxu1 %v6535_v27  ;;  %16118 = vst [vmem:[#allocation17_spill] sm:$0xff] %v15458_v46  ;;  %v9596_v4 = vshrl.u32 %v12657_v54, 16  ;;  %v5982_v20 = vpack.c.b16 %v5966_v21, %v5966_v21  ;;  %v9613_v13 = vshrl.u32 %v9133_v58, 16  ;;  %v9616_v37 = vshll.u32 %v9133_v58, 16  ;;  %v16125_v54 = vld [vmem:[#allocation18_spill] sm:$0xff] }
 0x40a   : > { %v15461_v53 = vadd.f32 %v8437_v23, %v8349_v9  ;;  %v6371_v27 = vrot.slane %v6369_v41, 4  ;;  %v6574_v39 = vrot.slane %v6572_v7, 3  ;;  %v6376_v47 = vrot.slane %v6374_v36, 3  ;;  %v16124_v41 = vld [vmem:[#allocation19_spill] sm:$0xff] }
 0x40b   : > { %8810 = vmatmul.bf16.gmra.mxu2 %v6338_v49  ;;  %10350 = vmatmul.bf16.gmra.mxu0 %v9576_v55  ;;  %v6577_v42 = vrot.slane %v6575_v0, 4  ;;  %v5919_v11 = vshrl.u32 %v15474_v25, 16  ;;  %v5922_v49 = vshll.u32 %v15474_v25, 16  ;;  %v8624_v21 = vadd.f32 %v16125_v54, %v16124_v41 }
 0x40c   : > { %16119 = vst [vmem:[#allocation14_spill] sm:$0xff] %v15461_v53  ;;  %v6379_v51 = vrot.slane %v6377_v5, 4  ;;  %v9601_v26 = vrot.slane %v9599_v17, 4  ;;  %v9609_v7 = vrot.slane %v9607_v63, 4  ;;  %v9615_v58 = vrot.slane %v9613_v13, 3 }
 0x40d   : > { %v9618_v0 = vrot.slane %v9616_v37, 4  ;;  %v5921_v46 = vrot.slane %v5919_v11, 4  ;;  %v6372_v41 = vor.u32 %v6371_v27, %v6368_v35  ;;  %v12660_v17 = vld [vmem:[#allocation3 + $0xf4] sm:$0x8]  ;;  %v6409_v13 = vshrl.u32 %v6014_v57, 16 }
 0x40e   : > { %v8709_v16 = vpop.f32.mrf.mxu1  ;;  %10261 = vmatmul.bf16.gmra.mxu3 %v9568_v1  ;;  %v8351_v18 = vpop.f32.mrf.mxu2  ;;  %v9598_v1 = vrot.slane %v9596_v4, 3  ;;  %v6380_v5 = vor.u32 %v6379_v51, %v6376_v47  ;;  %v12794_v37 = vld [vmem:[#allocation3 + $0xf4] sm:$0xf0]   ;;  %v11626_v35 = vld [vmem:[%s15998_s3 + $0x200] sm:$0xff] }
 0x40f   : > { %v15467_v50 = vadd.f32 %v8709_v16, %v8621_v48  ;;  %v8352_v9 = vadd.f32 %v8351_v18, %v15313_v12  ;;  %v12298_v12 = vld [vmem:[#allocation3 + $0xf8] sm:$0xff]   ;;  %v6015_v48 = vrot.slane %v5982_v20, 5  ;;  %v9606_v16 = vrot.slane %v9604_v19, 3  ;;  %10408 = vmatpush.bf16.msra.mxu1 %v11626_v35 }
 0x410   : > { %v15470_v60 = vpop.f32.mrf.mxu0  ;;  %v9135_v18 = vshrl.u32 %v12298_v12, 16  ;;  %v12149_v54 = vunpack.c.h.b16 %v12298_v12  ;;  %v9602_v47 = vor.u32 %v9601_v26, %v9598_v1 }
 0x411   : > { %v8440_v23 = vpop.f32.mrf.mxu3  ;;  %16122 = vst [vmem:[#allocation22_spill] sm:$0xff] %v15470_v60  ;;  %v6578_v60 = vor.u32 %v6577_v42, %v6574_v39  ;;  %v9610_v20 = vor.u32 %v9609_v7, %v9606_v16  ;;  %v6016_v63 = vsel %vm826_vm7, %v6014_v57, %v6015_v48  ;;  %v6412_v42 = vshll.u32 %v6014_v57, 16 }
 0x412   : > { %v15472_v55 = vadd.f32 %v8440_v23, %v8352_v9  ;;  %v9138_v9 = vshll.u32 %v12298_v12, 16  ;;  %v9039_v11 = vpack.c.b16 %v12149_v54, %v12149_v54  ;;  %v16129_v12 = vld [vmem:[#allocation20_spill] sm:$0xff]  ;;  %v6417_v16 = vshrl.u32 %v6016_v63, 16 }
 0x413   : > { %v9611_v48 = vsel %vm875_vm3, %v9602_v47, %v9610_v20  ;;  %v12661_v7 = vor.u32 %v12794_v37, %v12660_v17  ;;  %v6411_v57 = vrot.slane %v6409_v13, 3 }
 0x414   : > { %16123 = vst [vmem:[#allocation16_spill] sm:$0xff] %v15472_v55  ;;  %v5924_v55 = vrot.slane %v5922_v49, 5  ;;  %v9140_v39 = vrot.slane %v9138_v9, 5  ;;  %v16128_v49 = vld [vmem:[#allocation6_spill] sm:$0xff]  ;;  %v9647_v9 = vshrl.u32 %v9039_v11, 16  ;;  %v6419_v20 = vrot.slane %v6417_v16, 3 }
 0x415   : > { %v8626_v51 = vadd.f32 %v16129_v12, %v16128_v49  ;;  %v9639_v17 = vshrl.u32 %v12661_v7, 16  ;;  %v9642_v35 = vshll.u32 %v12661_v7, 16 }
 0x416   : > { %v8712_v36 = vpop.f32.mrf.mxu1  ;;  %v8353_v53 = vpop.f32.mrf.mxu2 }
 0x417   : > { %v15481_v23 = vadd.f32 %v8712_v36, %v8624_v21  ;;  %v8354_v33 = vadd.f32 %v8353_v53, %v15327_v22  ;;  %v9137_v21 = vrot.slane %v9135_v18, 4  ;;  %v9619_v22 = vor.u32 %v9618_v0, %v9615_v58  ;;  %v5663_v36 = vld [vmem:[#allocation3 + $0xe8] sm:$0x1] }
 0x418   : > { %v15484_v19 = vpop.f32.mrf.mxu0  ;;  %v5925_v53 = vor.u32 %v5924_v55, %v5921_v46  ;;  %v6420_v0 = vshll.u32 %v6016_v63, 16  ;;  %v12299_v63 = vld [vmem:[#allocation3 + $0x110] sm:$0xff]  }
 0x419   : > { %16126 = vst [vmem:[#allocation19_spill] sm:$0xff] %v15481_v23  ;;  %v8442_v4 = vpop.f32.mrf.mxu3  ;;  %8751 = vmatmul.bf16.gmra.mxu1 %v6578_v60  ;;  %v6381_v60 = vsel %vm875_vm3, %v6372_v41, %v6380_v5  ;;  %v9141_v1 = vor.u32 %v9140_v39, %v9137_v21  ;;  %v9650_v41 = vshll.u32 %v9039_v11, 16  ;;  %v5967_v5 = vunpack.c.l.b16 %v5663_v36  ;;  %v15501_v39 = vld [vmem:[#allocation3 + $0x158] sm:$0xff]  }
 0x41a   : > { %16127 = vst [vmem:[#allocation18_spill] sm:$0xff] %v15484_v19  ;;  %v15490_v27 = vadd.f32 %v8442_v4, %v8354_v33  ;;  %v6615_v46 = vshrl.u32 %v5925_v53, 16  ;;  %v6618_v55 = vshll.u32 %v5925_v53, 16  ;;  %v6414_v4 = vrot.slane %v6412_v42, 4 }
 0x41b   : > { %8815 = vmatmul.bf16.gmra.mxu2 %v6381_v60  ;;  %10355 = vmatmul.bf16.gmra.mxu0 %v9619_v22  ;;  %v9656_v21 = vshrl.u32 %v9141_v1, 16  ;;  %v5927_v47 = vshrl.u32 %v15501_v39, 16  ;;  %v5930_v13 = vshll.u32 %v15501_v39, 16  ;;  %v6422_v11 = vrot.slane %v6420_v0, 4  ;;  %v8910_v0 = vld [vmem:[#allocation3 + $0x40] sm:$0x1] }
 0x41c   : > { %v6617_v53 = vrot.slane %v6615_v46, 3  ;;  %v6620_v60 = vrot.slane %v6618_v55, 4  ;;  %v9649_v42 = vrot.slane %v9647_v9, 3  ;;  %v9652_v49 = vrot.slane %v9650_v41, 4 }
 0x41d   : > { %v5983_v12 = vpack.c.b16 %v5967_v5, %v5967_v5  ;;  %v6415_v7 = vor.u32 %v6414_v4, %v6411_v57  ;;  %v9143_v36 = vshrl.u32 %v12299_v63, 16  ;;  %v9644_v23 = vrot.slane %v9642_v35, 4  ;;  %v12795_v35 = vld [vmem:[#allocation3 + $0x10c] sm:$0xf0]  }
 0x41e   : > { %v8714_v18 = vpop.f32.mrf.mxu1  ;;  %10266 = vmatmul.bf16.gmra.mxu3 %v9611_v48  ;;  %v8356_v58 = vpop.f32.mrf.mxu2  ;;  %v16134_v48 = vld [vmem:[#allocation7_spill] sm:$0xff]  ;;  %v5932_v19 = vrot.slane %v5930_v13, 5  ;;  %v6621_v46 = vor.u32 %v6620_v60, %v6617_v53  ;;  %v9658_v55 = vrot.slane %v9656_v21, 3  ;;  %v6423_v41 = vor.u32 %v6422_v11, %v6419_v20  ;;  %v16137_v11 = vld [vmem:[#allocation9_spill] sm:$0xff] }
 0x41f   : > { %v15496_v26 = vadd.f32 %v8714_v18, %v8626_v51  ;;  %v8357_v54 = vadd.f32 %v8356_v58, %v15338_v15  ;;  %v9659_v15 = vshll.u32 %v9141_v1, 16  ;;  %v16133_v51 = vld [vmem:[#allocation8_spill] sm:$0xff]  ;;  %v9146_v18 = vshll.u32 %v12299_v63, 16 }
 0x420   : > { %v15499_v37 = vpop.f32.mrf.mxu0  ;;  %v8629_v16 = vadd.f32 %v16134_v48, %v16133_v51  ;;  %v9653_v5 = vor.u32 %v9652_v49, %v9649_v42  ;;  %v6018_v51 = vrot.slane %v5983_v12, 5  ;;  %v9145_v13 = vrot.slane %v9143_v36, 4 }
 0x421   : > { %16130 = vst [vmem:[#allocation6_spill] sm:$0xff] %v15496_v26  ;;  %v8445_v33 = vpop.f32.mrf.mxu3  ;;  %v9641_v26 = vrot.slane %v9639_v17, 3  ;;  %v9661_v1 = vrot.slane %v9659_v15, 4  ;;  %v12664_v17 = vld [vmem:[#allocation3 + $0x10c] sm:$0x8]  ;;  %v9148_v48 = vrot.slane %v9146_v18, 5  ;;  %v9214_v21 = vunpack.c.l.b16 %v8910_v0 }
 0x422   : > { %16131 = vst [vmem:[#allocation20_spill] sm:$0xff] %v15499_v37  ;;  %v15505_v22 = vadd.f32 %v8445_v33, %v8357_v54  ;;  %v5929_v37 = vrot.slane %v5927_v47, 4  ;;  %v6017_v33 = vrot.slane %v15361_v34, 5  ;;  %v12153_v47 = vunpack.c.h.b16 %v12299_v63 }
 0x423   : > { %v9645_v15 = vor.u32 %v9644_v23, %v9641_v26  ;;  %v9662_v20 = vor.u32 %v9661_v1, %v9658_v55  ;;  %v8631_v34 = vadd.f32 %v16137_v11, %v15239_v28  ;;  %v6424_v42 = vsel %vm875_vm3, %v6415_v7, %v6423_v41  ;;  %v15531_v11 = vld [vmem:[#allocation3 + $0x170] sm:$0xff]  }
 0x424   : > { %16132 = vst [vmem:[#allocation38_spill] sm:$0xff] %v15505_v22  ;;  %v5933_v53 = vor.u32 %v5932_v19, %v5929_v37  ;;  %v12665_v49 = vor.u32 %v12795_v35, %v12664_v17  ;;  %v9041_v12 = vpack.c.b16 %v12153_v47, %v12153_v47  ;;  %v9149_v36 = vor.u32 %v9148_v48, %v9145_v13  ;;  %v5664_v19 = vld [vmem:[#allocation3 + $0x100] sm:$0x1] }
 0x425   : > { %v9654_v63 = vsel %vm875_vm3, %v9645_v15, %v9653_v5  ;;  %v15520_v26 = vpack.c.b16 %v9214_v21, %v9214_v21  ;;  %v6455_v55 = vshll.u32 %v6017_v33, 16 }
 0x426   : > { %v8717_v58 = vpop.f32.mrf.mxu1  ;;  %v8358_v9 = vpop.f32.mrf.mxu2  ;;  %v6658_v18 = vshrl.u32 %v5933_v53, 16  ;;  %v6661_v23 = vshll.u32 %v5933_v53, 16  ;;  %v9682_v41 = vshrl.u32 %v12665_v49, 16  ;;  %v9685_v5 = vshll.u32 %v12665_v49, 16  ;;  %v16142_v49 = vld [vmem:[#allocation21_spill] sm:$0xff] }
 0x427   : > { %v15509_v54 = vadd.f32 %v8717_v58, %v8629_v16  ;;  %v8359_v57 = vadd.f32 %v8358_v9, %v15349_v43  ;;  %v6019_v43 = vsel %vm826_vm7, %v6017_v33, %v6018_v51  ;;  %v12846_v58 = vld [vmem:[#allocation3 + $0x38] sm:$0xff]   ;;  %v5968_v51 = vunpack.c.l.b16 %v5664_v19 }
 0x428   : > { %v10321_v16 = vpop.f32.mrf.mxu0  ;;  %v15522_v28 = vrot.slane %v12846_v58, 5  ;;  %v6460_v1 = vshrl.u32 %v6019_v43, 16  ;;  %v6463_v9 = vshll.u32 %v6019_v43, 16  ;;  %v9690_v17 = vshrl.u32 %v9041_v12, 16  ;;  %v16141_v43 = vld [vmem:[#allocation24_spill] sm:$0xff] }
 0x429   : > { %16135 = vst [vmem:[#allocation8_spill] sm:$0xff] %v15509_v54  ;;  %v8447_v4 = vpop.f32.mrf.mxu3  ;;  %8756 = vmatmul.bf16.gmra.mxu1 %v6621_v46  ;;  %v6452_v46 = vshrl.u32 %v6017_v33, 16  ;;  %v9693_v35 = vshll.u32 %v9041_v12, 16  ;;  %v9699_v47 = vshrl.u32 %v9149_v36, 16  ;;  %v6660_v53 = vrot.slane %v6658_v18, 3 }
 0x42a   : > { %v15513_v60 = vadd.f32 %v8447_v4, %v8359_v57  ;;  %v6663_v21 = vrot.slane %v6661_v23, 4  ;;  %v9702_v15 = vshll.u32 %v9149_v36, 16  ;;  %v6462_v12 = vrot.slane %v6460_v1, 3 }
 0x42b   : > { %8820 = vmatmul.bf16.gmra.mxu2 %v6424_v42  ;;  %10360 = vmatmul.bf16.gmra.mxu0 %v9662_v20  ;;  %v6454_v33 = vrot.slane %v6452_v46, 3  ;;  %v6457_v20 = vrot.slane %v6455_v55, 4  ;;  %v5938_v42 = vshll.u32 %v15531_v11, 16  ;;  %v6465_v19 = vrot.slane %v6463_v9, 4 }
 0x42c   : > { %16136 = vst [vmem:[#allocation7_spill] sm:$0xff] %v15513_v60  ;;  %v9687_v58 = vrot.slane %v9685_v5, 4  ;;  %v9692_v18 = vrot.slane %v9690_v17, 3  ;;  %v9695_v23 = vrot.slane %v9693_v35, 4  ;;  %v6664_v46 = vor.u32 %v6663_v21, %v6660_v53 }
 0x42d   : > { %v9701_v55 = vrot.slane %v9699_v47, 3  ;;  %v6458_v22 = vor.u32 %v6457_v20, %v6454_v33  ;;  %v9247_v9 = vrot.slane %v15520_v26, 5  ;;  %v6020_v17 = vrot.slane %v15391_v61, 5  ;;  %v16144_v61 = vld [vmem:[#allocation23_spill] sm:$0xff] }
 0x42e   : > { %v8719_v37 = vpop.f32.mrf.mxu1  ;;  %10271 = vmatmul.bf16.gmra.mxu3 %v9654_v63  ;;  %v8781_v0 = vpop.f32.mrf.mxu2  ;;  %v8634_v63 = vadd.f32 %v16142_v49, %v16141_v43  ;;  %v6466_v43 = vor.u32 %v6465_v19, %v6462_v12  ;;  %v9321_v21 = vshrl.u32 %v15522_v28, 16 }
 0x42f   : > { %v15524_v7 = vadd.f32 %v8719_v37, %v8631_v34  ;;  %v15527_v57 = vadd.f32 %v8781_v0, %v15367_v8  ;;  %v5935_v34 = vshrl.u32 %v15531_v11, 16  ;;  %v12300_v8 = vld [vmem:[#allocation3 + $0x128] sm:$0xff]   ;;  %v9684_v37 = vrot.slane %v9682_v41, 3 }
 0x430   : > { %v10323_v48 = vpop.f32.mrf.mxu0  ;;  %v9704_v0 = vrot.slane %v9702_v15, 4  ;;  %v12157_v1 = vunpack.c.h.b16 %v12300_v8  ;;  %v15550_v49 = vsel %vm826_vm7, %v15522_v28, %v9247_v9 }
 0x431   : > { %16138 = vst [vmem:[#allocation9_spill] sm:$0xff] %v15524_v7  ;;  %v10232_v4 = vpop.f32.mrf.mxu3  ;;  %v5937_v54 = vrot.slane %v5935_v34, 4  ;;  %v9688_v53 = vor.u32 %v9687_v58, %v9684_v37  ;;  %v12668_v34 = vld [vmem:[#allocation3 + $0x124] sm:$0x8] }
 0x432   : > { %16139 = vst [vmem:[#allocation39_spill] sm:$0xff] %v15527_v57  ;;  %v15529_v13 = vadd.f32 %v10321_v16, %v10232_v4  ;;  %v5984_v16 = vpack.c.b16 %v5968_v51, %v5968_v51  ;;  %v9151_v4 = vshrl.u32 %v12300_v8, 16  ;;  %v5940_v57 = vrot.slane %v5938_v42, 5  ;;  %v12796_v42 = vld [vmem:[#allocation3 + $0x124] sm:$0xf0]  }
 0x433   : > { %v9696_v51 = vor.u32 %v9695_v23, %v9692_v18  ;;  %v9705_v33 = vor.u32 %v9704_v0, %v9701_v55  ;;  %v12669_v19 = vor.u32 %v12796_v42, %v12668_v34  ;;  %v5665_v23 = vld [vmem:[#allocation3 + $0x118] sm:$0x1] }
 0x434   : > { %16140 = vst [vmem:[#allocation40_spill] sm:$0xff] %v15529_v13  ;;  %v9154_v13 = vshll.u32 %v12300_v8, 16  ;;  %v6021_v35 = vrot.slane %v5984_v16, 5  ;;  %v5941_v20 = vor.u32 %v5940_v57, %v5937_v54  ;;  %v9153_v26 = vrot.slane %v9151_v4, 4 }
 0x435   : > { %v6495_v57 = vshrl.u32 %v6020_v17, 16  ;;  %v9324_v16 = vshll.u32 %v15522_v28, 16 }
 0x436   : > { %v8722_v36 = vpop.f32.mrf.mxu1  ;;  %v8783_v60 = vpop.f32.mrf.mxu2  ;;  %v9156_v8 = vrot.slane %v9154_v13, 5  ;;  %v6022_v54 = vsel %vm826_vm7, %v6020_v17, %v6021_v35  ;;  %v6498_v13 = vshll.u32 %v6020_v17, 16  ;;  %v6701_v58 = vshrl.u32 %v5941_v20, 16 }
 0x437   : > { %v15537_v7 = vadd.f32 %v8722_v36, %v8634_v63  ;;  %v15541_v41 = vadd.f32 %v8783_v60, %v15386_v6  ;;  %v6467_v6 = vsel %vm875_vm3, %v6458_v22, %v6466_v43  ;;  %v9043_v60 = vpack.c.b16 %v12157_v1, %v12157_v1 }
 0x438   : > { %v10326_v15 = vpop.f32.mrf.mxu0  ;;  %v9697_v63 = vsel %vm875_vm3, %v9688_v53, %v9696_v51  ;;  %v15556_v22 = vrot.slane %v9321_v21, 3  ;;  %v6704_v18 = vshll.u32 %v5941_v20, 16  ;;  %v6506_v55 = vshll.u32 %v6022_v54, 16  ;;  %v8911_v21 = vld [vmem:[#allocation3 + $0x58] sm:$0x1] }
 0x439   : > { %16143 = vst [vmem:[#allocation24_spill] sm:$0xff] %v15537_v7  ;;  %8761 = vmatmul.bf16.gmra.mxu1 %v6664_v46  ;;  %v10234_v5 = vpop.f32.mrf.mxu3  ;;  %v6503_v46 = vshrl.u32 %v6022_v54, 16  ;;  %v9733_v0 = vshrl.u32 %v9043_v60, 16  ;;  %v9736_v4 = vshll.u32 %v9043_v60, 16  ;;  %v6497_v9 = vrot.slane %v6495_v57, 3 }
 0x43a   : > { %v15544_v47 = vadd.f32 %v10323_v48, %v10234_v5  ;;  %v8636_v48 = vadd.f32 %v16144_v61, %v15272_v40  ;;  %v9157_v40 = vor.u32 %v9156_v8, %v9153_v26  ;;  %v9329_v5 = vshrl.u32 %v15550_v49, 16  ;;  %v12301_v26 = vld [vmem:[#allocation3 + $0x140] sm:$0xff]  }
 0x43b   : > { %8825 = vmatmul.bf16.gmra.mxu2 %v6467_v6  ;;  %10365 = vmatmul.bf16.gmra.mxu0 %v9705_v33  ;;  %v5969_v51 = vunpack.c.l.b16 %v5665_v23  ;;  %v6500_v17 = vrot.slane %v6498_v13, 4  ;;  %v9725_v35 = vshrl.u32 %v12669_v19, 16  ;;  %v9728_v53 = vshll.u32 %v12669_v19, 16 }
 0x43c   : > { %v6703_v33 = vrot.slane %v6701_v58, 3  ;;  %v6706_v20 = vrot.slane %v6704_v18, 4  ;;  %v9742_v34 = vshrl.u32 %v9157_v40, 16  ;;  %v9745_v42 = vshll.u32 %v9157_v40, 16 }
 0x43d   : > { %v6505_v8 = vrot.slane %v6503_v46, 3  ;;  %v6508_v6 = vrot.slane %v6506_v55, 4  ;;  %v9738_v60 = vrot.slane %v9736_v4, 4  ;;  %v5985_v57 = vpack.c.b16 %v5969_v51, %v5969_v51 }
 0x43e   : > { %v8724_v12 = vpop.f32.mrf.mxu1  ;;  %10276 = vmatmul.bf16.gmra.mxu3 %v9697_v63  ;;  %v8786_v36 = vpop.f32.mrf.mxu2  ;;  %v16147_v63 = vld [vmem:[#allocation10_spill] sm:$0xff]  ;;  %v9727_v19 = vrot.slane %v9725_v35, 3  ;;  %v9730_v23 = vrot.slane %v9728_v53, 4  ;;  %v9159_v58 = vshrl.u32 %v12301_v26, 16  ;;  %v9162_v18 = vshll.u32 %v12301_v26, 16 }
 0x43f   : > { %v15559_v37 = vadd.f32 %v8724_v12, %v8636_v48  ;;  %v15562_v43 = vadd.f32 %v8786_v36, %v15400_v24  ;;  %v9735_v24 = vrot.slane %v9733_v0, 3  ;;  %v16146_v48 = vld [vmem:[#allocation11_spill] sm:$0xff]  ;;  %v9215_v12 = vunpack.c.l.b16 %v8911_v21 }
 0x440   : > { %v10328_v61 = vpop.f32.mrf.mxu0  ;;  %v8639_v54 = vadd.f32 %v16147_v63, %v16146_v48  ;;  %v6707_v40 = vor.u32 %v6706_v20, %v6703_v33  ;;  %v9744_v46 = vrot.slane %v9742_v34, 3  ;;  %v9747_v55 = vrot.slane %v9745_v42, 4 }
 0x441   : > { %16145 = vst [vmem:[#allocation21_spill] sm:$0xff] %v15559_v37  ;;  %v10237_v1 = vpop.f32.mrf.mxu3  ;;  %v6501_v4 = vor.u32 %v6500_v17, %v6497_v9  ;;  %v9739_v37 = vor.u32 %v9738_v60, %v9735_v24  ;;  %v9326_v7 = vrot.slane %v9324_v16, 4  ;;  %v6023_v35 = vrot.slane %v15419_v2, 5  ;;  %v12672_v17 = vld [vmem:[#allocation3 + $0x13c] sm:$0x8]  ;;  %v16149_v24 = vld [vmem:[#allocation12_spill] sm:$0xff] }
 0x442   : > { %v15565_v28 = vadd.f32 %v10326_v15, %v10237_v1  ;;  %v9332_v15 = vshll.u32 %v15550_v49, 16  ;;  %v6509_v1 = vor.u32 %v6508_v6, %v6505_v8  ;;  %v6024_v53 = vrot.slane %v5985_v57, 5  ;;  %v12797_v8 = vld [vmem:[#allocation3 + $0x13c] sm:$0xf0]  }
 0x443   : > { %v12161_v21 = vunpack.c.h.b16 %v12301_v26  ;;  %v9331_v63 = vrot.slane %v9329_v5, 3  ;;  %v9161_v33 = vrot.slane %v9159_v58, 4  ;;  %v9164_v20 = vrot.slane %v9162_v18, 5  ;;  %v16148_v6 = vld [vmem:[#allocation26_spill] sm:$0xff] }
 0x444   : > { %v9731_v34 = vor.u32 %v9730_v23, %v9727_v19  ;;  %v9748_v42 = vor.u32 %v9747_v55, %v9744_v46  ;;  %v9334_v9 = vrot.slane %v9332_v15, 4  ;;  %v9231_v16 = vpack.c.b16 %v9215_v12, %v9215_v12  ;;  %v12848_v23 = vld [vmem:[#allocation3 + $0x50] sm:$0xff]  }
 0x445   : > { %v6510_v60 = vsel %vm875_vm3, %v6501_v4, %v6509_v1  ;;  %v6025_v26 = vsel %vm826_vm7, %v6023_v35, %v6024_v53  ;;  %v9045_v5 = vpack.c.b16 %v12161_v21, %v12161_v21  ;;  %v12673_v15 = vor.u32 %v12797_v8, %v12672_v17  ;;  %v8912_v1 = vld [vmem:[#allocation3 + $0x70] sm:$0x1] }
 0x446   : > { %v8727_v13 = vpop.f32.mrf.mxu1  ;;  %v8788_v0 = vpop.f32.mrf.mxu2  ;;  %v9740_v2 = vsel %vm875_vm3, %v9731_v34, %v9739_v37  ;;  %v9165_v57 = vor.u32 %v9164_v20, %v9161_v33  ;;  %v9335_v19 = vor.u32 %v9334_v9, %v9331_v63  ;;  %v15586_v58 = vrot.slane %v12848_v23, 5 }
 0x447   : > { %v15570_v36 = vadd.f32 %v8727_v13, %v8639_v54  ;;  %v15573_v49 = vadd.f32 %v8788_v0, %v15412_v29  ;;  %v8641_v29 = vadd.f32 %v16149_v24, %v16148_v6  ;;  %v9327_v54 = vor.u32 %v9326_v7, %v15556_v22  ;;  %v15595_v24 = vld [vmem:[#allocation3 + $0x158] sm:$0xff]  }
 0x448   : > { %v10331_v13 = vpop.f32.mrf.mxu0  ;;  %v9250_v18 = vrot.slane %v9231_v16, 5  ;;  %v6538_v46 = vshrl.u32 %v6023_v35, 16  ;;  %v6541_v55 = vshll.u32 %v6023_v35, 16  ;;  %v6546_v0 = vshrl.u32 %v6025_v26, 16 }
 0x449   : > { %8766 = vmatmul.bf16.gmra.mxu1 %v6707_v40  ;;  %v10239_v51 = vpop.f32.mrf.mxu3  ;;  %v5666_v40 = vld [vmem:[#allocation3 + $0x130] sm:$0x1]  ;;  %v6549_v4 = vshll.u32 %v6025_v26, 16  ;;  %v9776_v22 = vshrl.u32 %v9045_v5, 16  ;;  %v9779_v53 = vshll.u32 %v9045_v5, 16  ;;  %v9768_v63 = vshrl.u32 %v12673_v15, 16 }
 0x44a   : > { %v15576_v48 = vadd.f32 %v10328_v61, %v10239_v51  ;;  %v5970_v21 = vunpack.c.l.b16 %v5666_v40  ;;  %v9771_v20 = vshll.u32 %v12673_v15, 16  ;;  %v9785_v34 = vshrl.u32 %v9165_v57, 16 }
 0x44b   : > { %8830 = vmatmul.bf16.gmra.mxu2 %v6510_v60  ;;  %10370 = vmatmul.bf16.gmra.mxu0 %v9748_v42  ;;  %v9336_v42 = vsel %vm875_vm3, %v9327_v54, %v9335_v19  ;;  %v9788_v9 = vshll.u32 %v9165_v57, 16  ;;  %v9364_v35 = vshrl.u32 %v15586_v58, 16  ;;  %v9216_v17 = vunpack.c.l.b16 %v8912_v1  ;;  %v16151_v60 = vld [vmem:[#allocation25_spill] sm:$0xff] }
 0x44c   : > { %v6540_v8 = vrot.slane %v6538_v46, 3  ;;  %v6543_v16 = vrot.slane %v6541_v55, 4  ;;  %v6548_v6 = vrot.slane %v6546_v0, 3  ;;  %v9778_v26 = vrot.slane %v9776_v22, 3 }
 0x44d   : > { %v9781_v5 = vrot.slane %v9779_v53, 4  ;;  %v9773_v23 = vrot.slane %v9771_v20, 4  ;;  %v9787_v54 = vrot.slane %v9785_v34, 3  ;;  %v9251_v57 = vsel %vm826_vm7, %v15586_v58, %v9250_v18 }
 0x44e   : > { %v8729_v61 = vpop.f32.mrf.mxu1  ;;  %10281 = vmatmul.bf16.gmra.mxu3 %v9740_v2  ;;  %v8791_v37 = vpop.f32.mrf.mxu2  ;;  %v9790_v40 = vrot.slane %v9788_v9, 4  ;;  %v9170_v46 = vshll.u32 %v15595_v24, 16  ;;  %v6544_v0 = vor.u32 %v6543_v16, %v6540_v8  ;;  %v9367_v1 = vshll.u32 %v15586_v58, 16  ;;  %v12798_v58 = vld [vmem:[#allocation3 + $0x154] sm:$0xf0]  }
 0x44f   : > { %v15584_v12 = vadd.f32 %v8729_v61, %v8641_v29  ;;  %v15589_v51 = vadd.f32 %v8791_v37, %v15426_v32  ;;  %v6551_v32 = vrot.slane %v6549_v4, 4  ;;  %v16150_v29 = vld [vmem:[#allocation28_spill] sm:$0xff]  ;;  %v5986_v61 = vpack.c.b16 %v5970_v21, %v5970_v21 }
 0x450   : > { %v8644_v2 = vadd.f32 %v16151_v60, %v16150_v29  ;;  %v9167_v37 = vshrl.u32 %v15595_v24, 16  ;;  %v10333_v22 = vpop.f32.mrf.mxu0  ;;  %v9782_v18 = vor.u32 %v9781_v5, %v9778_v26  ;;  %v9372_v9 = vshrl.u32 %v9251_v57, 16  ;;  %v16153_v26 = vld [vmem:[#allocation27_spill] sm:$0xff] }
 0x451   : > { %v10242_v7 = vpop.f32.mrf.mxu3  ;;  %v6552_v4 = vor.u32 %v6551_v32, %v6548_v6  ;;  %v6027_v20 = vrot.slane %v5986_v61, 5  ;;  %v9375_v29 = vshll.u32 %v9251_v57, 16  ;;  %v9791_v16 = vor.u32 %v9790_v40, %v9787_v54  ;;  %v12676_v6 = vld [vmem:[#allocation3 + $0x154] sm:$0x8] }
 0x452   : > { %v15591_v33 = vadd.f32 %v10331_v13, %v10242_v7  ;;  %v9770_v13 = vrot.slane %v9768_v63, 3  ;;  %v12165_v7 = vunpack.c.h.b16 %v15595_v24  ;;  %v6026_v63 = vrot.slane %v15446_v38, 5 }
 0x453   : > { %v9169_v32 = vrot.slane %v9167_v37, 4  ;;  %v9172_v60 = vrot.slane %v9170_v46, 5  ;;  %v9369_v61 = vrot.slane %v9367_v1, 4  ;;  %v9374_v54 = vrot.slane %v9372_v9, 3 }
 0x454   : > { %v9774_v8 = vor.u32 %v9773_v23, %v9770_v13  ;;  %v6028_v13 = vsel %vm826_vm7, %v6026_v63, %v6027_v20  ;;  %v9377_v57 = vrot.slane %v9375_v29, 4  ;;  %v6581_v40 = vshrl.u32 %v6026_v63, 16  ;;  %v12849_v20 = vld [vmem:[#allocation3 + $0x68] sm:$0xff]  }
 0x455   : > { %v12677_v37 = vor.u32 %v12798_v58, %v12676_v6 }
 0x456   : > { %v8732_v15 = vpop.f32.mrf.mxu1  ;;  %v8793_v55 = vpop.f32.mrf.mxu2  ;;  %v9783_v38 = vsel %vm875_vm3, %v9774_v8, %v9782_v18  ;;  %v15623_v8 = vrot.slane %v12849_v20, 5  ;;  %v9378_v6 = vor.u32 %v9377_v57, %v9374_v54  ;;  %v6583_v58 = vrot.slane %v6581_v40, 3 }
 0x457   : > { %v15601_v19 = vadd.f32 %v8732_v15, %v8644_v2  ;;  %v15608_v53 = vadd.f32 %v8793_v55, %v15441_v52  ;;  %v6553_v2 = vsel %vm875_vm3, %v6544_v0, %v6552_v4  ;;  %v9366_v52 = vrot.slane %v9364_v35, 3  ;;  %v5667_v0 = vld [vmem:[#allocation3 + $0x148] sm:$0x1] }
 0x458   : > { %v9047_v15 = vpack.c.b16 %v12165_v7, %v12165_v7  ;;  %v9232_v55 = vpack.c.b16 %v9216_v17, %v9216_v17  ;;  %v6584_v35 = vshll.u32 %v6026_v63, 16  ;;  %v9173_v17 = vor.u32 %v9172_v60, %v9169_v32  ;;  %v8913_v63 = vld [vmem:[#allocation3 + $0x88] sm:$0x1] }
 0x459   : > { %v10244_v21 = vpop.f32.mrf.mxu3  ;;  %10409 = vmatmul.bf16.vlgmr.msra.gmra.mxu1 %v9336_v42  ;;  %v16152_v42 = vld [vmem:[#allocation30_spill] sm:$0xff]  ;;  %v6589_v7 = vshrl.u32 %v6028_v13, 16  ;;  %v5971_v29 = vunpack.c.l.b16 %v5667_v0  ;;  %v9814_v60 = vshll.u32 %v12677_v37, 16  ;;  %v9217_v0 = vunpack.c.l.b16 %v8913_v63 }
 0x45a   : > { %v15611_v34 = vadd.f32 %v10333_v22, %v10244_v21  ;;  %v8646_v5 = vadd.f32 %v16153_v26, %v16152_v42  ;;  %v6592_v22 = vshll.u32 %v6028_v13, 16  ;;  %v9819_v21 = vshrl.u32 %v9047_v15, 16 }
 0x45b   : > { %8835 = vmatmul.bf16.gmra.mxu2 %v6553_v2  ;;  %10375 = vmatmul.bf16.gmra.mxu0 %v9791_v16  ;;  %v9822_v18 = vshll.u32 %v9047_v15, 16  ;;  %v9253_v9 = vrot.slane %v9232_v55, 5  ;;  %v9370_v16 = vor.u32 %v9369_v61, %v9366_v52  ;;  %v9811_v2 = vshrl.u32 %v12677_v37, 16 }
 0x45c   : > { %v6586_v32 = vrot.slane %v6584_v35, 4  ;;  %v9828_v42 = vshrl.u32 %v9173_v17, 16  ;;  %v9831_v26 = vshll.u32 %v9173_v17, 16  ;;  %v6591_v15 = vrot.slane %v6589_v7, 3 }
 0x45d   : > { %v9824_v13 = vrot.slane %v9822_v18, 4  ;;  %v5987_v55 = vpack.c.b16 %v5971_v29, %v5971_v29  ;;  %v9813_v61 = vrot.slane %v9811_v2, 3  ;;  %v9254_v54 = vsel %vm826_vm7, %v15623_v8, %v9253_v9 }
 0x45e   : > { %v8734_v23 = vpop.f32.mrf.mxu1  ;;  %10286 = vmatmul.bf16.gmra.mxu3 %v9783_v38  ;;  %v8796_v4 = vpop.f32.mrf.mxu2  ;;  %v6594_v38 = vrot.slane %v6592_v22, 4  ;;  %v9816_v35 = vrot.slane %v9814_v60, 4  ;;  %v9830_v17 = vrot.slane %v9828_v42, 3  ;;  %v9833_v7 = vrot.slane %v9831_v26, 4 }
 0x45f   : > { %v15618_v46 = vadd.f32 %v8734_v23, %v8646_v5  ;;  %v15621_v1 = vadd.f32 %v8796_v4, %v15455_v62  ;;  %v15625_v5 = vld [vmem:[#allocation3 + $0x170] sm:$0xff]   ;;  %v9821_v62 = vrot.slane %v9819_v21, 3  ;;  %v16156_v4 = vld [vmem:[#allocation29_spill] sm:$0xff]  ;;  %v9379_v21 = vsel %vm875_vm3, %v9370_v16, %v9378_v6 }
 0x460   : > { %v16155_v23 = vld [vmem:[#allocation32_spill] sm:$0xff]  ;;  %v9175_v57 = vshrl.u32 %v15625_v5, 16  ;;  %v9178_v40 = vshll.u32 %v15625_v5, 16  ;;  %v6587_v18 = vor.u32 %v6586_v32, %v6583_v58  ;;  %v6595_v29 = vor.u32 %v6594_v38, %v6591_v15  ;;  %v12680_v32 = vld [vmem:[#allocation3 + $0x16c] sm:$0x8] }
 0x461   : > { %16154 = vst [vmem:[#allocation23_spill] sm:$0xff] %v15618_v46  ;;  %v8649_v20 = vadd.f32 %v16156_v4, %v16155_v23  ;;  %v9825_v63 = vor.u32 %v9824_v13, %v9821_v62  ;;  %v6029_v9 = vrot.slane %v15474_v25, 5  ;;  %v6030_v23 = vrot.slane %v5987_v55, 5  ;;  %v12799_v15 = vld [vmem:[#allocation3 + $0x16c] sm:$0xf0]  }
 0x462   : > { %v12169_v4 = vunpack.c.h.b16 %v15625_v5  ;;  %v9410_v60 = vshll.u32 %v15623_v8, 16  ;;  %v9177_v42 = vrot.slane %v9175_v57, 4  ;;  %v9180_v26 = vrot.slane %v9178_v40, 5 }
 0x463   : > { %v9834_v16 = vor.u32 %v9833_v7, %v9830_v17  ;;  %v9415_v6 = vshrl.u32 %v9254_v54, 16  ;;  %v9418_v58 = vshll.u32 %v9254_v54, 16  ;;  %v6596_v25 = vsel %vm875_vm3, %v6587_v18, %v6595_v29 }
 0x464   : > { %v6031_v13 = vsel %vm826_vm7, %v6029_v9, %v6030_v23  ;;  %v12681_v57 = vor.u32 %v12799_v15, %v12680_v32  ;;  %v9181_v40 = vor.u32 %v9180_v26, %v9177_v42  ;;  %v9233_v54 = vpack.c.b16 %v9217_v0, %v9217_v0  ;;  %v12850_v23 = vld [vmem:[#allocation3 + $0x80] sm:$0xff]  }
 0x465   : > { %v9412_v17 = vrot.slane %v9410_v60, 4  ;;  %v9417_v7 = vrot.slane %v9415_v6, 3  ;;  %v6627_v18 = vshll.u32 %v6029_v9, 16  ;;  %v6632_v29 = vshrl.u32 %v6031_v13, 16 }
 0x466   : > { %v8737_v52 = vpop.f32.mrf.mxu1  ;;  %v8798_v22 = vpop.f32.mrf.mxu2  ;;  %v9871_v32 = vshrl.u32 %v9181_v40, 16  ;;  %v9256_v42 = vrot.slane %v9233_v54, 5  ;;  %v9874_v15 = vshll.u32 %v9181_v40, 16 }
 0x467   : > { %v15633_v37 = vadd.f32 %v8737_v52, %v8649_v20  ;;  %v15637_v2 = vadd.f32 %v8798_v22, %v15467_v50  ;;  %v9407_v20 = vshrl.u32 %v15623_v8, 16  ;;  %v9817_v52 = vor.u32 %v9816_v35, %v9813_v61  ;;  %v16158_v50 = vld [vmem:[#allocation31_spill] sm:$0xff]  ;;  %v5668_v22 = vld [vmem:[#allocation3 + $0x160] sm:$0x1] }
 0x468   : > { %v8651_v38 = vadd.f32 %v16158_v50, %v15344_v10  ;;  %v9049_v8 = vpack.c.b16 %v12169_v4, %v12169_v4  ;;  %v9420_v10 = vrot.slane %v9418_v58, 4  ;;  %v9255_v4 = vrot.slane %v12850_v23, 5 }
 0x469   : > { %16157 = vst [vmem:[#allocation11_spill] sm:$0xff] %v15633_v37  ;;  %10414 = vmatmul.bf16.gmra.mxu1 %v9379_v21  ;;  %v9826_v62 = vsel %vm875_vm3, %v9817_v52, %v9825_v63  ;;  %v9409_v61 = vrot.slane %v9407_v20, 3  ;;  %v6624_v21 = vshrl.u32 %v6029_v9, 16  ;;  %v6635_v63 = vshll.u32 %v6031_v13, 16  ;;  %v16160_v9 = vld [vmem:[#allocation35_spill] sm:$0xff]  ;;  %v16161_v13 = vld [vmem:[#allocation33_spill] sm:$0xff] }
 0x46a   : > { %v9862_v52 = vshrl.u32 %v9049_v8, 16  ;;  %v5972_v50 = vunpack.c.l.b16 %v5668_v22  ;;  %v9857_v20 = vshll.u32 %v12681_v57, 16  ;;  %v9421_v26 = vor.u32 %v9420_v10, %v9417_v7  ;;  %v8914_v22 = vld [vmem:[#allocation3 + $0xa0] sm:$0x1] }
 0x46b   : > { %8840 = vmatmul.bf16.gmra.mxu2 %v6596_v25  ;;  %10380 = vmatmul.bf16.gmra.mxu0 %v9834_v16  ;;  %v9865_v16 = vshll.u32 %v9049_v8, 16  ;;  %v9854_v25 = vshrl.u32 %v12681_v57, 16  ;;  %v9413_v0 = vor.u32 %v9412_v17, %v9409_v61  ;;  %v6626_v60 = vrot.slane %v6624_v21, 3 }
 0x46c   : > { %v6629_v6 = vrot.slane %v6627_v18, 4  ;;  %v6634_v58 = vrot.slane %v6632_v29, 3  ;;  %v9864_v8 = vrot.slane %v9862_v52, 3  ;;  %v5988_v23 = vpack.c.b16 %v5972_v50, %v5972_v50 }
 0x46d   : > { %v9856_v57 = vrot.slane %v9854_v25, 3  ;;  %v9859_v46 = vrot.slane %v9857_v20, 4  ;;  %v9873_v54 = vrot.slane %v9871_v32, 3  ;;  %v9257_v61 = vsel %vm826_vm7, %v9255_v4, %v9256_v42 }
 0x46e   : > { %v8739_v55 = vpop.f32.mrf.mxu1  ;;  %10291 = vmatmul.bf16.gmra.mxu3 %v9826_v62  ;;  %v15650_v62 = vld [vmem:[#allocation3 + $0x188] sm:$0xff]   ;;  %v9876_v17 = vrot.slane %v9874_v15, 4  ;;  %v9422_v21 = vsel %vm875_vm3, %v9413_v0, %v9421_v26  ;;  %v6630_v18 = vor.u32 %v6629_v6, %v6626_v60  ;;  %v6033_v50 = vrot.slane %v5988_v23, 5  ;;  %v16163_v26 = vld [vmem:[#allocation34_spill] sm:$0xff] }
 0x46f   : > { %v15648_v35 = vadd.f32 %v8739_v55, %v8651_v38  ;;  %v6637_v38 = vrot.slane %v6635_v63, 4  ;;  %v8654_v55 = vadd.f32 %v16161_v13, %v16160_v9  ;;  %v9183_v7 = vshrl.u32 %v15650_v62, 16  ;;  %v12684_v13 = vld [vmem:[#allocation3 + $0x184] sm:$0x8] }
 0x470   : > { %v9186_v10 = vshll.u32 %v15650_v62, 16  ;;  %v9218_v63 = vunpack.c.l.b16 %v8914_v22  ;;  %v12173_v25 = vunpack.c.h.b16 %v15650_v62  ;;  %v9450_v20 = vshrl.u32 %v9255_v4, 16 }
 0x471   : > { %16159 = vst [vmem:[#allocation10_spill] sm:$0xff] %v15648_v35  ;;  %v9867_v35 = vrot.slane %v9865_v16, 4  ;;  %v6638_v29 = vor.u32 %v6637_v38, %v6634_v58  ;;  %v6032_v16 = vrot.slane %v15501_v39, 5  ;;  %v9458_v32 = vshrl.u32 %v9257_v61, 16 }
 0x472   : > { %v9461_v42 = vshll.u32 %v9257_v61, 16  ;;  %v9860_v15 = vor.u32 %v9859_v46, %v9856_v57  ;;  %v9877_v9 = vor.u32 %v9876_v17, %v9873_v54  ;;  %v9188_v0 = vrot.slane %v9186_v10, 5  ;;  %v5669_v61 = vld [vmem:[#allocation3 + $0x178] sm:$0x1] }
 0x473   : > { %v9868_v52 = vor.u32 %v9867_v35, %v9864_v8  ;;  %v8656_v60 = vadd.f32 %v16163_v26, %v15374_v31  ;;  %v6639_v35 = vsel %vm875_vm3, %v6630_v18, %v6638_v29  ;;  %v6034_v6 = vsel %vm826_vm7, %v6032_v16, %v6033_v50 }
 0x474   : > { %v9452_v46 = vrot.slane %v9450_v20, 3  ;;  %v9234_v23 = vpack.c.b16 %v9218_v63, %v9218_v63  ;;  %v9460_v57 = vrot.slane %v9458_v32, 3  ;;  %v9463_v54 = vrot.slane %v9461_v42, 4 }
 0x475   : > { %v9869_v39 = vsel %vm875_vm3, %v9860_v15, %v9868_v52  ;;  %v6667_v17 = vshrl.u32 %v6032_v16, 16  ;;  %v6675_v10 = vshrl.u32 %v6034_v6, 16  ;;  %v5973_v52 = vunpack.c.l.b16 %v5669_v61  ;;  %v12851_v15 = vld [vmem:[#allocation3 + $0x98] sm:$0xff]  }
 0x476   : > { %v8742_v37 = vpop.f32.mrf.mxu1  ;;  %v9258_v20 = vrot.slane %v12851_v15, 5 }
 0x477   : > { %v15655_v40 = vadd.f32 %v8742_v37, %v8654_v55  ;;  %v9453_v37 = vshll.u32 %v9255_v4, 16  ;;  %v12800_v55 = vld [vmem:[#allocation3 + $0x184] sm:$0xf0]   ;;  %v9051_v4 = vpack.c.b16 %v12173_v25, %v12173_v25  ;;  %v6669_v32 = vrot.slane %v6667_v17, 3 }
 0x478   : > { %v12685_v8 = vor.u32 %v12800_v55, %v12684_v13  ;;  %v9493_v61 = vshrl.u32 %v9258_v20, 16  ;;  %v9496_v17 = vshll.u32 %v9258_v20, 16 }
 0x479   : > { %16162 = vst [vmem:[#allocation26_spill] sm:$0xff] %v15655_v40  ;;  %10419 = vmatmul.bf16.gmra.mxu1 %v9422_v21  ;;  %v9185_v40 = vrot.slane %v9183_v7, 4  ;;  %v9455_v38 = vrot.slane %v9453_v37, 4  ;;  %v6670_v7 = vshll.u32 %v6032_v16, 16  ;;  %v6678_v21 = vshll.u32 %v6034_v6, 16 }
 0x47a   : > { %v9905_v18 = vshrl.u32 %v9051_v4, 16  ;;  %v9908_v29 = vshll.u32 %v9051_v4, 16  ;;  %v9897_v25 = vshrl.u32 %v12685_v8, 16  ;;  %v9259_v37 = vrot.slane %v9234_v23, 5 }
 0x47b   : > { %8845 = vmatmul.bf16.gmra.mxu2 %v6639_v35  ;;  %10385 = vmatmul.bf16.gmra.mxu0 %v9877_v9  ;;  %v9189_v31 = vor.u32 %v9188_v0, %v9185_v40  ;;  %v9456_v50 = vor.u32 %v9455_v38, %v9452_v46  ;;  %v9464_v9 = vor.u32 %v9463_v54, %v9460_v57  ;;  %v9900_v63 = vshll.u32 %v12685_v8, 16 }
 0x47c   : > { %v6672_v42 = vrot.slane %v6670_v7, 4  ;;  %v6677_v40 = vrot.slane %v6675_v10, 3  ;;  %v6680_v0 = vrot.slane %v6678_v21, 4  ;;  %v8659_v16 = vadd.f32 %v15371_v30, %v15395_v59  ;;  %v8915_v7 = vld [vmem:[#allocation3 + $0xb8] sm:$0x1] }
 0x47d   : > { %v9914_v13 = vshrl.u32 %v9189_v31, 16  ;;  %v9917_v55 = vshll.u32 %v9189_v31, 16  ;;  %v9907_v26 = vrot.slane %v9905_v18, 3  ;;  %v5989_v35 = vpack.c.b16 %v5973_v52, %v5973_v52 }
 0x47e   : > { %v8744_v58 = vpop.f32.mrf.mxu1  ;;  %10296 = vmatmul.bf16.gmra.mxu3 %v9869_v39  ;;  %v9899_v6 = vrot.slane %v9897_v25, 3  ;;  %v9465_v8 = vsel %vm875_vm3, %v9456_v50, %v9464_v9  ;;  %v6673_v23 = vor.u32 %v6672_v42, %v6669_v32  ;;  %v6681_v57 = vor.u32 %v6680_v0, %v6677_v40 }
 0x47f   : > { %v15667_v22 = vadd.f32 %v8744_v58, %v8656_v60  ;;  %v9910_v60 = vrot.slane %v9908_v29, 4  ;;  %v9902_v58 = vrot.slane %v9900_v63, 4  ;;  %v9916_v46 = vrot.slane %v9914_v13, 3 }
 0x480   : > { %v9919_v38 = vrot.slane %v9917_v55, 4  ;;  %v9260_v54 = vsel %vm826_vm7, %v9258_v20, %v9259_v37  ;;  %v6035_v30 = vrot.slane %v15531_v11, 5  ;;  %v6036_v59 = vrot.slane %v5989_v35, 5 }
 0x481   : > { %v9911_v31 = vor.u32 %v9910_v60, %v9907_v26  ;;  %v9903_v10 = vor.u32 %v9902_v58, %v9899_v6  ;;  %v9501_v18 = vshrl.u32 %v9260_v54, 16  ;;  %v9504_v29 = vshll.u32 %v9260_v54, 16  ;;  %v12852_v58 = vld [vmem:[#allocation3 + $0xb0] sm:$0xff]  }
 0x482   : > { %v9920_v21 = vor.u32 %v9919_v38, %v9916_v46  ;;  %v6682_v52 = vsel %vm875_vm3, %v6673_v23, %v6681_v57  ;;  %v8661_v50 = vadd.f32 %v15389_v44, %v15406_v56  ;;  %v6037_v15 = vsel %vm826_vm7, %v6035_v30, %v6036_v59  ;;  %v8916_v59 = vld [vmem:[#allocation3 + $0xd0] sm:$0x1] }
 0x483   : > { %v9912_v25 = vsel %vm875_vm3, %v9903_v10, %v9911_v31  ;;  %v9219_v11 = vunpack.c.l.b16 %v8915_v7  ;;  %v9495_v20 = vrot.slane %v9493_v61, 3  ;;  %v9498_v63 = vrot.slane %v9496_v17, 4 }
 0x484   : > { %v9503_v13 = vrot.slane %v9501_v18, 3  ;;  %v9506_v55 = vrot.slane %v9504_v29, 4  ;;  %v6710_v32 = vshrl.u32 %v6035_v30, 16  ;;  %v6713_v42 = vshll.u32 %v6035_v30, 16 }
 0x485   : > { %v6718_v40 = vshrl.u32 %v6037_v15, 16  ;;  %v6721_v0 = vshll.u32 %v6037_v15, 16  ;;  %v9235_v44 = vpack.c.b16 %v9219_v11, %v9219_v11  ;;  %v9499_v56 = vor.u32 %v9498_v63, %v9495_v20 }
 0x486   : > { %v8747_v39 = vpop.f32.mrf.mxu1  ;;  %v6712_v26 = vrot.slane %v6710_v32, 3  ;;  %v6715_v60 = vrot.slane %v6713_v42, 4  ;;  %v8664_v6 = vadd.f32 %v15403_v3, %v15417_v45  ;;  %v9261_v46 = vrot.slane %v12852_v58, 5  ;;  %v16164_v45 = vld [vmem:[#allocation36_spill] sm:$0xff]  ;;  %v12853_v42 = vld [vmem:[#allocation3 + $0xc8] sm:$0xff]   ;;  %v16167_v58 = vld [vmem:[#allocation14_spill] sm:$0xff] }
 0x487   : > { %v15671_v4 = vadd.f32 %v8747_v39, %v8659_v16  ;;  %v9507_v16 = vor.u32 %v9506_v55, %v9503_v13  ;;  %v6720_v35 = vrot.slane %v6718_v40, 3  ;;  %v6723_v39 = vrot.slane %v6721_v0, 4  ;;  %v16165_v13 = vld [vmem:[#allocation13_spill] sm:$0xff] }
 0x488   : > { %v9262_v38 = vrot.slane %v9235_v44, 5  ;;  %v6716_v54 = vor.u32 %v6715_v60, %v6712_v26  ;;  %v9536_v61 = vshrl.u32 %v9261_v46, 16  ;;  %v9539_v7 = vshll.u32 %v9261_v46, 16  ;;  %v16166_v55 = vld [vmem:[#allocation37_spill] sm:$0xff]  ;;  %v8917_v26 = vld [vmem:[#allocation3 + $0xe8] sm:$0x1] }
 0x489   : > { %10424 = vmatmul.bf16.gmra.mxu1 %v9465_v8  ;;  %v9508_v57 = vsel %vm875_vm3, %v9499_v56, %v9507_v16  ;;  %v6724_v31 = vor.u32 %v6723_v39, %v6720_v35  ;;  %v9220_v18 = vunpack.c.l.b16 %v8916_v59  ;;  %v8669_v32 = vadd.f32 %v16166_v55, %v16165_v13 }
 0x48a   : > { %v9263_v30 = vsel %vm826_vm7, %v9261_v46, %v9262_v38  ;;  %v9264_v40 = vrot.slane %v12853_v42, 5  ;;  %v16168_v46 = vld [vmem:[#allocation15_spill] sm:$0xff]  ;;  %v16171_v42 = vld [vmem:[#allocation22_spill] sm:$0xff] }
 0x48b   : > { %8850 = vmatmul.bf16.gmra.mxu2 %v6682_v52  ;;  %10390 = vmatmul.bf16.gmra.mxu0 %v9920_v21  ;;  %v6725_v17 = vsel %vm875_vm3, %v6716_v54, %v6724_v31  ;;  %v9544_v10 = vshrl.u32 %v9263_v30, 16  ;;  %v9547_v3 = vshll.u32 %v9263_v30, 16  ;;  %v8666_v21 = vadd.f32 %v16164_v45, %v15432_v14  ;;  %v16170_v45 = vld [vmem:[#allocation17_spill] sm:$0xff] }
 0x48c   : > { %v9579_v60 = vshrl.u32 %v9264_v40, 16  ;;  %v9582_v35 = vshll.u32 %v9264_v40, 16  ;;  %v8671_v38 = vadd.f32 %v16168_v46, %v16167_v58  ;;  %v16172_v46 = vld [vmem:[#allocation38_spill] sm:$0xff] }
 0x48d   : > { %v9546_v15 = vrot.slane %v9544_v10, 3  ;;  %v9549_v11 = vrot.slane %v9547_v3, 4  ;;  %v16169_v3 = vld [vmem:[#allocation16_spill] sm:$0xff] }
 0x48e   : > { %v8749_v37 = vpop.f32.mrf.mxu1  ;;  %10301 = vmatmul.bf16.gmra.mxu3 %v9912_v25  ;;  %v9541_v25 = vrot.slane %v9539_v7, 4  ;;  %v9581_v31 = vrot.slane %v9579_v60, 3  ;;  %v9584_v30 = vrot.slane %v9582_v35, 4 }
 0x48f   : > { %v15681_v9 = vadd.f32 %v8749_v37, %v8661_v50  ;;  %v9538_v50 = vrot.slane %v9536_v61, 3  ;;  %v9236_v37 = vpack.c.b16 %v9220_v18, %v9220_v18  ;;  %v9550_v63 = vor.u32 %v9549_v11, %v9546_v15  ;;  %v12854_v18 = vld [vmem:[#allocation3 + $0xe0] sm:$0xff]  }
 0x490   : > { %v9585_v7 = vor.u32 %v9584_v30, %v9581_v31 }
 0x491   : > { %v9542_v20 = vor.u32 %v9541_v25, %v9538_v50  ;;  %v9265_v0 = vrot.slane %v9236_v37, 5 }
 0x493   : > { %v9551_v56 = vsel %vm875_vm3, %v9542_v20, %v9550_v63  ;;  %v9266_v16 = vsel %vm826_vm7, %v9264_v40, %v9265_v0  ;;  %v8918_v20 = vld [vmem:[#allocation3 + $0x100] sm:$0x1]  ;;  %v8676_v40 = vadd.f32 %v16171_v42, %v15490_v27 }
 0x494   : > { %v9587_v39 = vshrl.u32 %v9266_v16, 16  ;;  %v9222_v0 = vunpack.c.l.b16 %v8918_v20 }
 0x496   : > { %v8752_v8 = vpop.f32.mrf.mxu1  ;;  %v9589_v59 = vrot.slane %v9587_v39, 3  ;;  %v9238_v39 = vpack.c.b16 %v9222_v0, %v9222_v0 }
 0x497   : > { %v15685_v23 = vadd.f32 %v8752_v8, %v8664_v6  ;;  %v9590_v6 = vshll.u32 %v9266_v16, 16  ;;  %v9221_v8 = vunpack.c.l.b16 %v8917_v26 }
 0x498   : > { %v9271_v30 = vrot.slane %v9238_v39, 5  ;;  %v16176_v39 = vld [vmem:[#allocation40_spill] sm:$0xff] }
 0x499   : > { %10429 = vmatmul.bf16.gmra.mxu1 %v9508_v57  ;;  %v9592_v61 = vrot.slane %v9590_v6, 4 }
 0x49b   : > { %8855 = vmatmul.bf16.gmra.mxu2 %v6725_v17  ;;  %v9237_v17 = vpack.c.b16 %v9221_v8, %v9221_v8  ;;  %v9593_v10 = vor.u32 %v9592_v61, %v9589_v59 }
 0x49d   : > { %v9268_v50 = vrot.slane %v9237_v17, 5  ;;  %v9594_v11 = vsel %vm875_vm3, %v9585_v7, %v9593_v10  ;;  %v8919_v7 = vld [vmem:[#allocation3 + $0x118] sm:$0x1] }
 0x49e   : > { %v8754_v29 = vpop.f32.mrf.mxu1 }
 0x49f   : > { %v15692_v52 = vadd.f32 %v8754_v29, %v8666_v21  ;;  %v8674_v21 = vadd.f32 %v16170_v45, %v16169_v3  ;;  %v9267_v29 = vrot.slane %v12854_v18, 5  ;;  %v16174_v18 = vld [vmem:[#allocation7_spill] sm:$0xff] }
 0x4a1   : > { %v9269_v37 = vsel %vm826_vm7, %v9267_v29, %v9268_v50  ;;  %v9622_v63 = vshrl.u32 %v9267_v29, 16  ;;  %v9625_v13 = vshll.u32 %v9267_v29, 16  ;;  %v16175_v29 = vld [vmem:[#allocation20_spill] sm:$0xff] }
 0x4a2   : > { %v9630_v55 = vshrl.u32 %v9269_v37, 16  ;;  %v8681_v50 = vadd.f32 %v16175_v29, %v16174_v18 }
 0x4a3   : > { %v9624_v16 = vrot.slane %v9622_v63, 3  ;;  %v9627_v26 = vrot.slane %v9625_v13, 4 }
 0x4a4   : > { %v9632_v60 = vrot.slane %v9630_v55, 3 }
 0x4a5   : > { %v9628_v6 = vor.u32 %v9627_v26, %v9624_v16  ;;  %v12856_v16 = vld [vmem:[#allocation3 + $0x110] sm:$0xff]  }
 0x4a6   : > { %v8757_v44 = vpop.f32.mrf.mxu1  ;;  %v9273_v26 = vrot.slane %v12856_v16, 5 }
 0x4a7   : > { %v15696_v14 = vadd.f32 %v8757_v44, %v8669_v32  ;;  %v9633_v32 = vshll.u32 %v9269_v37, 16 }
 0x4a9   : > { %10434 = vmatmul.bf16.gmra.mxu1 %v9551_v56  ;;  %v9635_v35 = vrot.slane %v9633_v32, 4  ;;  %v15724_v32 = vpop.f32.mrf.mxu0 }
 0x4ab   : > { %v9636_v58 = vor.u32 %v9635_v35, %v9632_v60 }
 0x4ad   : > { %v9637_v27 = vsel %vm875_vm3, %v9628_v6, %v9636_v58  ;;  %v15732_v58 = vld [vmem:[%s15999_s4] ss:$0 sm:$0xff] }
 0x4ae   : > { %v8759_v57 = vpop.f32.mrf.mxu1 }
 0x4af   : > { %v15702_v54 = vadd.f32 %v8759_v57, %v8671_v38  ;;  %v16173_v38 = vld [vmem:[#allocation18_spill] sm:$0xff]  ;;  %v12855_v57 = vld [vmem:[#allocation3 + $0xf8] sm:$0xff]  }
 0x4b0   : > { %v8679_v8 = vadd.f32 %v16173_v38, %v16172_v46  ;;  %v9270_v31 = vrot.slane %v12855_v57, 5  ;;  %v16177_v38 = vld [vmem:[#allocation39_spill] sm:$0xff] }
 0x4b2   : > { %v9272_v17 = vsel %vm826_vm7, %v9270_v31, %v9271_v30  ;;  %v9665_v10 = vshrl.u32 %v9270_v31, 16  ;;  %v9668_v3 = vshll.u32 %v9270_v31, 16  ;;  %v8920_v31 = vld [vmem:[#allocation3 + $0x130] sm:$0x1]  ;;  %v15737_v30 = vpop.f32.mrf.mxu0 }
 0x4b3   : > { %v9673_v45 = vshrl.u32 %v9272_v17, 16  ;;  %v9224_v18 = vunpack.c.l.b16 %v8920_v31 }
 0x4b4   : > { %v9667_v20 = vrot.slane %v9665_v10, 3  ;;  %v9670_v63 = vrot.slane %v9668_v3, 4 }
 0x4b5   : > { %v9675_v13 = vrot.slane %v9673_v45, 3  ;;  %v12857_v45 = vld [vmem:[%s12961_s8] sm:$0xff] }
 0x4b6   : > { %v8762_v25 = vpop.f32.mrf.mxu1  ;;  %v9671_v0 = vor.u32 %v9670_v63, %v9667_v20 }
 0x4b7   : > { %v15706_v15 = vadd.f32 %v8762_v25, %v8674_v21  ;;  %v9676_v21 = vshll.u32 %v9272_v17, 16  ;;  %v9223_v25 = vunpack.c.l.b16 %v8919_v7  ;;  %v9708_v17 = vshrl.u32 %v9273_v26, 16 }
 0x4b8   : > { %v9711_v7 = vshll.u32 %v9273_v26, 16 }
 0x4b9   : > { %10439 = vmatmul.bf16.gmra.mxu1 %v9594_v11  ;;  %v9678_v55 = vrot.slane %v9676_v21, 4  ;;  %v9239_v42 = vpack.c.b16 %v9223_v25, %v9223_v25 }
 0x4ba   : > { %v9713_v20 = vrot.slane %v9711_v7, 4  ;;  %v8921_v7 = vld [vmem:[#allocation3 + $0x148] sm:$0x1] }
 0x4bb   : > { %v9274_v60 = vrot.slane %v9239_v42, 5  ;;  %v9240_v42 = vpack.c.b16 %v9224_v18, %v9224_v18 }
 0x4bd   : > { %v9275_v57 = vsel %vm826_vm7, %v9273_v26, %v9274_v60  ;;  %v15754_v26 = vpop.f32.mrf.mxu0  ;;  %v15756_v60 = vpop.f32.mrf.mxu2 }
 0x4be   : > { %v8764_v44 = vpop.f32.mrf.mxu1  ;;  %v9716_v10 = vshrl.u32 %v9275_v57, 16  ;;  %v9719_v3 = vshll.u32 %v9275_v57, 16 }
 0x4bf   : > { %v15712_v56 = vadd.f32 %v8764_v44, %v8676_v40  ;;  %v15726_v40 = vpop.f32.mrf.mxu3  ;;  %v9679_v44 = vor.u32 %v9678_v55, %v9675_v13 }
 0x4c0   : > { %v9718_v63 = vrot.slane %v9716_v10, 3  ;;  %v9721_v13 = vrot.slane %v9719_v3, 4 }
 0x4c1   : > { %v9680_v46 = vsel %vm875_vm3, %v9671_v0, %v9679_v44 }
 0x4c2   : > { %v9722_v16 = vor.u32 %v9721_v13, %v9718_v63 }
 0x4c6   : > { %v8767_v59 = vpop.f32.mrf.mxu1 }
 0x4c7   : > { %v15716_v61 = vadd.f32 %v8767_v59, %v8679_v8 }
 0x4c9   : > { %10444 = vmatmul.bf16.gmra.mxu1 %v9637_v27  ;;  %v15740_v27 = vpop.f32.mrf.mxu3 }
 0x4ce   : > { %v8769_v11 = vpop.f32.mrf.mxu1 }
 0x4cf   : > { %v15722_v37 = vadd.f32 %v8769_v11, %v8681_v50  ;;  %v9710_v11 = vrot.slane %v9708_v17, 3 }
 0x4d1   : > { %v9714_v44 = vor.u32 %v9713_v20, %v9710_v11  ;;  %v15768_v11 = vpop.f32.mrf.mxu0  ;;  %v15770_v20 = vpop.f32.mrf.mxu2 }
 0x4d3   : > { %v9723_v31 = vsel %vm875_vm3, %v9714_v44, %v9722_v16 }
 0x4d6   : > { %v10410_v35 = vpop.f32.mrf.mxu1 }
 0x4d7   : > { %v10411_v6 = vadd.f32 %v10410_v35, %v16176_v39  ;;  %v12858_v35 = vld [vmem:[%s12961_s8 + $0x8] sm:$0xff] }
 0x4d9   : > { %v10490_v8 = vadd.f32 %v10411_v6, %v16177_v38  ;;  %10449 = vmatmul.bf16.gmra.mxu1 %v9680_v46  ;;  %v9277_v46 = vrot.slane %v9240_v42, 5  ;;  %v15759_v38 = vpop.f32.mrf.mxu3 }
 0x4db   : > { %v10526_v59 = vadd.f32 %v15732_v58, %v10490_v8 }
 0x4dd   : > { %v10558_v21 = vadd.f32 %v12857_v45, %v10526_v59 }
 0x4de   : > { %v10412_v29 = vpop.f32.mrf.mxu1 }
 0x4df   : > { %v10590_v50 = vmax.f32 %v10558_v21, 0.0  ;;  %v10413_v25 = vadd.f32 %v10412_v29, %v15544_v47  ;;  %v12859_v47 = vld [vmem:[#allocation3 + $0x128] sm:$0xff]   ;;  %v12860_v29 = vld [vmem:[%s12961_s8 + $0x10] sm:$0xff] }
 0x4e0   : > { %v9276_v6 = vrot.slane %v12859_v47, 5 }
 0x4e1   : > { %10622 = vst [vmem:[%s15748_s26] sm:$0xff] %v10590_v50  ;;  %v10491_v55 = vadd.f32 %v10413_v25, %v15541_v41  ;;  %v9225_v25 = vunpack.c.l.b16 %v8921_v7  ;;  %v15773_v13 = vpop.f32.mrf.mxu3 }
 0x4e2   : > { %v9278_v17 = vsel %vm826_vm7, %v9276_v6, %v9277_v46  ;;  %v9751_v3 = vshrl.u32 %v9276_v6, 16  ;;  %v9754_v45 = vshll.u32 %v9276_v6, 16  ;;  %v12861_v46 = vld [vmem:[%s12961_s8 + $0x18] sm:$0xff] }
 0x4e3   : > { %v10527_v0 = vadd.f32 %v15732_v58, %v10491_v55  ;;  %v9759_v21 = vshrl.u32 %v9278_v17, 16  ;;  %v9762_v18 = vshll.u32 %v9278_v17, 16 }
 0x4e4   : > { %v9753_v55 = vrot.slane %v9751_v3, 3  ;;  %v9756_v42 = vrot.slane %v9754_v45, 4 }
 0x4e5   : > { %v10559_v39 = vadd.f32 %v12858_v35, %v10527_v0  ;;  %v9761_v0 = vrot.slane %v9759_v21, 3  ;;  %v9764_v44 = vrot.slane %v9762_v18, 4  ;;  %v9241_v35 = vpack.c.b16 %v9225_v25, %v9225_v25  ;;  %v8922_v18 = vld [vmem:[#allocation3 + $0x160] sm:$0x1] }
 0x4e6   : > { %v10415_v8 = vpop.f32.mrf.mxu1  ;;  %v9757_v47 = vor.u32 %v9756_v42, %v9753_v55  ;;  %v9226_v55 = vunpack.c.l.b16 %v8922_v18 }
 0x4e7   : > { %v10591_v41 = vmax.f32 %v10559_v39, 0.0  ;;  %v10416_v57 = vadd.f32 %v10415_v8, %v15565_v28  ;;  %v9765_v6 = vor.u32 %v9764_v44, %v9761_v0 }
 0x4e9   : > { %10623 = vst [vmem:[%s15748_s26 + $0x8] sm:$0xff] %v10591_v41  ;;  %v10492_v59 = vadd.f32 %v10416_v57, %v15562_v43  ;;  %10454 = vmatmul.bf16.gmra.mxu1 %v9723_v31  ;;  %v12862_v41 = vld [vmem:[#allocation3 + $0x140] sm:$0xff]   ;;  %v9766_v7 = vsel %vm875_vm3, %v9757_v47, %v9765_v6  ;;  %v15788_v21 = vpop.f32.mrf.mxu3  ;;  %v9242_v6 = vpack.c.b16 %v9226_v55, %v9226_v55 }
 0x4ea   : > { %v9279_v57 = vrot.slane %v12862_v41, 5 }
 0x4eb   : > { %v10528_v10 = vadd.f32 %v15732_v58, %v10492_v59 }
 0x4ed   : > { %v10560_v50 = vadd.f32 %v12860_v29, %v10528_v10  ;;  %v15781_v10 = vpop.f32.mrf.mxu0 }
 0x4ee   : > { %v10417_v28 = vpop.f32.mrf.mxu1 }
 0x4ef   : > { %v10592_v43 = vmax.f32 %v10560_v50, 0.0  ;;  %v10418_v63 = vadd.f32 %v10417_v28, %v15576_v48  ;;  %v9280_v48 = vrot.slane %v9241_v35, 5  ;;  %v9794_v50 = vshrl.u32 %v9279_v57, 16 }
 0x4f1   : > { %10624 = vst [vmem:[%s15748_s26 + $0x10] sm:$0xff] %v10592_v43  ;;  %v10493_v16 = vadd.f32 %v10418_v63, %v15573_v49  ;;  %v15783_v49 = vpop.f32.mrf.mxu2  ;;  %v9281_v45 = vsel %vm826_vm7, %v9279_v57, %v9280_v48  ;;  %v12863_v43 = vld [vmem:[%s12961_s8 + $0x20] sm:$0xff]  ;;  %v9796_v44 = vrot.slane %v9794_v50, 3 }
 0x4f2   : > { %v9802_v25 = vshrl.u32 %v9281_v45, 16  ;;  %v9805_v28 = vshll.u32 %v9281_v45, 16 }
 0x4f3   : > { %v10529_v39 = vadd.f32 %v15732_v58, %v10493_v16 }
 0x4f4   : > { %v9804_v35 = vrot.slane %v9802_v25, 3  ;;  %v8923_v25 = vld [vmem:[#allocation3 + $0x178] sm:$0x1] }
 0x4f5   : > { %v10561_v8 = vadd.f32 %v12861_v46, %v10529_v39  ;;  %v9807_v39 = vrot.slane %v9805_v28, 4  ;;  %v15795_v46 = vpop.f32.mrf.mxu0 }
 0x4f6   : > { %v10420_v31 = vpop.f32.mrf.mxu1 }
 0x4f7   : > { %v10593_v59 = vmax.f32 %v10561_v8, 0.0  ;;  %v10421_v17 = vadd.f32 %v10420_v31, %v15591_v33  ;;  %v9797_v33 = vshll.u32 %v9279_v57, 16  ;;  %v15800_v57 = vpop.f32.mrf.mxu3  ;;  %v9808_v31 = vor.u32 %v9807_v39, %v9804_v35 }
 0x4f9   : > { %10625 = vst [vmem:[%s15748_s26 + $0x18] sm:$0xff] %v10593_v59  ;;  %v10494_v3 = vadd.f32 %v10421_v17, %v15589_v51  ;;  %10459 = vmatmul.bf16.gmra.mxu1 %v9766_v7  ;;  %v9799_v16 = vrot.slane %v9797_v33, 4  ;;  %v15797_v8 = vpop.f32.mrf.mxu2  ;;  %v12864_v59 = vld [vmem:[%s12961_s8 + $0x28] sm:$0xff]  ;;  %v9282_v7 = vrot.slane %v15595_v24, 5 }
 0x4fb   : > { %v10530_v29 = vadd.f32 %v15732_v58, %v10494_v3  ;;  %v9800_v48 = vor.u32 %v9799_v16, %v9796_v44  ;;  %v9840_v28 = vshll.u32 %v9282_v7, 16 }
 0x4fd   : > { %v10562_v63 = vadd.f32 %v12863_v43, %v10530_v29  ;;  %v9809_v29 = vsel %vm875_vm3, %v9800_v48, %v9808_v31  ;;  %v15813_v55 = vpop.f32.mrf.mxu0 }
 0x4fe   : > { %v10422_v42 = vpop.f32.mrf.mxu1 }
 0x4ff   : > { %v10594_v0 = vmax.f32 %v10562_v63, 0.0  ;;  %v10423_v51 = vadd.f32 %v10422_v42, %v15611_v34  ;;  %v10337_v34 = vadd.f32 %v15724_v32, %v15726_v40  ;;  %v9837_v40 = vshrl.u32 %v9282_v7, 16  ;;  %v15818_v44 = vpop.f32.mrf.mxu3 }
 0x500   : > { %v10339_v63 = vadd.f32 %v15737_v30, %v15740_v27 }
 0x501   : > { %10626 = vst [vmem:[%s15748_s26 + $0x20] sm:$0xff] %v10594_v0  ;;  %v10495_v47 = vadd.f32 %v10423_v51, %v15608_v53  ;;  %v9283_v53 = vrot.slane %v9242_v6, 5  ;;  %v15815_v42 = vpop.f32.mrf.mxu2  ;;  %v12865_v0 = vld [vmem:[%s12961_s8 + $0x30] sm:$0xff]  ;;  %v9227_v51 = vunpack.c.l.b16 %v8923_v25  ;;  %v9842_v6 = vrot.slane %v9840_v28, 4  ;;  %v8924_v28 = vld [vmem:[#allocation3 + $0x190] sm:$0x1] }
 0x503   : > { %v10531_v41 = vadd.f32 %v15732_v58, %v10495_v47  ;;  %v9284_v33 = vsel %vm826_vm7, %v9282_v7, %v9283_v53  ;;  %v9839_v47 = vrot.slane %v9837_v40, 3  ;;  %v9243_v27 = vpack.c.b16 %v9227_v51, %v9227_v51  ;;  %v12866_v7 = vld [vmem:[%s12961_s8 + $0x38] sm:$0xff]  ;;  %v12867_v51 = vld [vmem:[%s12961_s8 + $0x40] sm:$0xff] }
 0x504   : > { %v9845_v43 = vshrl.u32 %v9284_v33, 16  ;;  %v9848_v24 = vshll.u32 %v9284_v33, 16 }
 0x505   : > { %v10563_v17 = vadd.f32 %v12864_v59, %v10531_v41  ;;  %v15829_v33 = vpop.f32.mrf.mxu0 }
 0x506   : > { %v10425_v3 = vpop.f32.mrf.mxu1  ;;  %v9847_v41 = vrot.slane %v9845_v43, 3  ;;  %v9850_v48 = vrot.slane %v9848_v24, 4 }
 0x507   : > { %v10595_v45 = vmax.f32 %v10563_v17, 0.0  ;;  %v10426_v18 = vadd.f32 %v10425_v3, %v10337_v34  ;;  %v9843_v34 = vor.u32 %v9842_v6, %v9839_v47  ;;  %v10342_v17 = vadd.f32 %v15754_v26, %v15759_v38  ;;  %v15833_v40 = vpop.f32.mrf.mxu3  ;;  %v16179_v47 = vld [vmem:[#allocation6_spill] sm:$0xff] }
 0x508   : > { %v9851_v59 = vor.u32 %v9850_v48, %v9847_v41  ;;  %v9285_v3 = vrot.slane %v15625_v5, 5  ;;  %v8804_v6 = vadd.f32 %v15770_v20, %v16179_v47  ;;  %v10349_v20 = vadd.f32 %v15795_v46, %v15800_v57 }
 0x509   : > { %10627 = vst [vmem:[%s15748_s26 + $0x28] sm:$0xff] %v10595_v45  ;;  %v10496_v50 = vadd.f32 %v10426_v18, %v15621_v1  ;;  %10464 = vmatmul.bf16.gmra.mxu1 %v9809_v29  ;;  %v9286_v45 = vrot.slane %v9243_v27, 5  ;;  %v16178_v29 = vld [vmem:[#allocation19_spill] sm:$0xff] }
 0x50a   : > { %v9852_v26 = vsel %vm875_vm3, %v9843_v34, %v9851_v59  ;;  %v9883_v24 = vshll.u32 %v9285_v3, 16 }
 0x50b   : > { %v10532_v32 = vadd.f32 %v15732_v58, %v10496_v50  ;;  %v8802_v50 = vadd.f32 %v15756_v60, %v16178_v29  ;;  %v9287_v5 = vsel %vm826_vm7, %v9285_v3, %v9286_v45  ;;  %v9880_v60 = vshrl.u32 %v9285_v3, 16 }
 0x50c   : > { %v9885_v27 = vrot.slane %v9883_v24, 4 }
 0x50d   : > { %v10564_v1 = vadd.f32 %v12865_v0, %v10532_v32  ;;  %v9891_v0 = vshll.u32 %v9287_v5, 16  ;;  %v15844_v59 = vpop.f32.mrf.mxu0 }
 0x50e   : > { %v10427_v16 = vpop.f32.mrf.mxu1 }
 0x50f   : > { %v10596_v35 = vmax.f32 %v10564_v1, 0.0  ;;  %v10428_v39 = vadd.f32 %v10427_v16, %v10339_v63  ;;  %v9888_v63 = vshrl.u32 %v9287_v5, 16  ;;  %v10344_v1 = vadd.f32 %v15768_v11, %v15773_v13  ;;  %v5437_v13 = vld [vmem:[#allocation3 + $0x19c] sm:$0x8]  ;;  %v15851_v3 = vpop.f32.mrf.mxu3 }
 0x510   : > { %v9893_v34 = vrot.slane %v9891_v0, 4  ;;  %v5438_v45 = vsel %vm12963_vm2, 0, %v5437_v13  ;;  %v16181_v0 = vld [vmem:[#allocation8_spill] sm:$0xff] }
 0x511   : > { %10628 = vst [vmem:[%s15748_s26 + $0x30] sm:$0xff] %v10596_v35  ;;  %v10497_v30 = vadd.f32 %v10428_v39, %v15637_v2  ;;  %v15831_v2 = vpop.f32.mrf.mxu2  ;;  %v9228_v35 = vunpack.c.l.b16 %v8924_v28  ;;  %v9288_v28 = vrot.slane %v15650_v62, 5 }
 0x512   : > { %5439 = vst [vmem:[#allocation3 + $0x19c] sm:$0x8] %v5438_v45 }
 0x513   : > { %v10533_v31 = vadd.f32 %v15732_v58, %v10497_v30  ;;  %v9882_v30 = vrot.slane %v9880_v60, 3 }
 0x515   : > { %v10565_v53 = vadd.f32 %v12866_v7, %v10533_v31  ;;  %v9890_v31 = vrot.slane %v9888_v63, 3  ;;  %v15849_v7 = vld [vmem:[#allocation3 + $0x1a0] sm:$0xff]  }
 0x516   : > { %v10430_v18 = vpop.f32.mrf.mxu1  ;;  %v9194_v62 = vshll.u32 %v15849_v7, 16 }
 0x517   : > { %v10597_v25 = vmax.f32 %v10565_v53, 0.0  ;;  %v10431_v32 = vadd.f32 %v10430_v18, %v10342_v17  ;;  %v9244_v53 = vpack.c.b16 %v9228_v35, %v9228_v35  ;;  %v12177_v18 = vunpack.c.h.b16 %v15849_v7  ;;  %v15875_v45 = vpop.f32.mrf.mxu3 }
 0x519   : > { %10629 = vst [vmem:[%s15748_s26 + $0x38] sm:$0xff] %v10597_v25  ;;  %v10498_v38 = vadd.f32 %v10431_v32, %v8802_v50  ;;  %10469 = vmatmul.bf16.gmra.mxu1 %v9852_v26  ;;  %v15846_v17 = vpop.f32.mrf.mxu2  ;;  %v9886_v50 = vor.u32 %v9885_v27, %v9882_v30  ;;  %v9894_v25 = vor.u32 %v9893_v34, %v9890_v31  ;;  %v9923_v30 = vshrl.u32 %v9288_v28, 16  ;;  %v15868_v27 = vpop.f32.mrf.mxu0 }
 0x51a   : > { %v9053_v32 = vpack.c.b16 %v12177_v18, %v12177_v18  ;;  %v10347_v26 = vadd.f32 %v15781_v10, %v15788_v21  ;;  %v9191_v21 = vshrl.u32 %v15849_v7, 16 }
 0x51b   : > { %v10534_v43 = vadd.f32 %v15732_v58, %v10498_v38  ;;  %v12868_v38 = vld [vmem:[%s12961_s8 + $0x48] sm:$0xff]  ;;  %v9895_v35 = vsel %vm875_vm3, %v9886_v50, %v9894_v25  ;;  %v12869_v50 = vld [vmem:[%s12961_s8 + $0x50] sm:$0xff] }
 0x51c   : > { %v9948_v24 = vshrl.u32 %v9053_v32, 16  ;;  %v9951_v63 = vshll.u32 %v9053_v32, 16  ;;  %v9193_v13 = vrot.slane %v9191_v21, 4  ;;  %v5442_v21 = vld [vmem:[#allocation3 + $0x1a8] sm:$0x1] }
 0x51d   : > { %v10566_v16 = vadd.f32 %v12867_v51, %v10534_v43  ;;  %v9289_v43 = vrot.slane %v9244_v53, 5  ;;  %v9196_v53 = vrot.slane %v9194_v62, 5 }
 0x51e   : > { %v10432_v39 = vpop.f32.mrf.mxu1 }
 0x51f   : > { %v10598_v41 = vmax.f32 %v10566_v16, 0.0  ;;  %v10433_v48 = vadd.f32 %v10432_v39, %v10344_v1  ;;  %v8807_v1 = vadd.f32 %v15783_v49, %v16181_v0  ;;  %v12801_v39 = vld [vmem:[#allocation3 + $0x19c] sm:$0xf0]   ;;  %v9290_v10 = vsel %vm826_vm7, %v9288_v28, %v9289_v43 }
 0x520   : > { %v9926_v49 = vshll.u32 %v9288_v28, 16  ;;  %v9931_v18 = vshrl.u32 %v9290_v10, 16 }
 0x521   : > { %10630 = vst [vmem:[%s15748_s26 + $0x40] sm:$0xff] %v10598_v41  ;;  %v10499_v11 = vadd.f32 %v10433_v48, %v8804_v6  ;;  %v12688_v6 = vld [vmem:[#allocation3 + $0x19c] sm:$0x8]  ;;  %v9950_v41 = vrot.slane %v9948_v24, 3  ;;  %v9953_v48 = vrot.slane %v9951_v63, 4  ;;  %v15870_v31 = vpop.f32.mrf.mxu2  ;;  %v9925_v24 = vrot.slane %v9923_v30, 3 }
 0x522   : > { %v9928_v63 = vrot.slane %v9926_v49, 4 }
 0x523   : > { %v10535_v29 = vadd.f32 %v15732_v58, %v10499_v11  ;;  %v12689_v11 = vor.u32 %v12801_v39, %v12688_v6 }
 0x524   : > { %v9929_v49 = vor.u32 %v9928_v63, %v9925_v24 }
 0x525   : > { %v10567_v5 = vadd.f32 %v12868_v38, %v10535_v29  ;;  %v9934_v29 = vshll.u32 %v9290_v10, 16  ;;  %v9940_v32 = vshrl.u32 %v12689_v11, 16  ;;  %v9197_v38 = vor.u32 %v9196_v53, %v9193_v13  ;;  %v15887_v53 = vpop.f32.mrf.mxu0 }
 0x526   : > { %v10435_v60 = vpop.f32.mrf.mxu1  ;;  %v10352_v13 = vadd.f32 %v15813_v55, %v15818_v44  ;;  %v9291_v55 = vrot.slane %v15849_v7, 5 }
 0x527   : > { %v10599_v51 = vmax.f32 %v10567_v5, 0.0  ;;  %v10436_v16 = vadd.f32 %v10435_v60, %v10347_v26  ;;  %v9943_v26 = vshll.u32 %v12689_v11, 16  ;;  %v16182_v5 = vld [vmem:[#allocation9_spill] sm:$0xff]  ;;  %v9954_v60 = vor.u32 %v9953_v48, %v9950_v41 }
 0x528   : > { %v8809_v28 = vadd.f32 %v15797_v8, %v16182_v5  ;;  %v9942_v46 = vrot.slane %v9940_v32, 3  ;;  %v9960_v39 = vshll.u32 %v9197_v38, 16  ;;  %v5443_v41 = vsel %vm13265_vm6, 0, %v5442_v21  ;;  %v16184_v32 = vld [vmem:[#allocation24_spill] sm:$0xff] }
 0x529   : > { %10631 = vst [vmem:[%s15748_s26 + $0x48] sm:$0xff] %v10599_v51  ;;  %v10500_v47 = vadd.f32 %v10436_v16, %v8807_v1  ;;  %10474 = vmatmul.bf16.gmra.mxu1 %v9895_v35  ;;  %v9945_v57 = vrot.slane %v9943_v26, 4  ;;  %v9933_v51 = vrot.slane %v9931_v18, 3  ;;  %v9936_v16 = vrot.slane %v9934_v29, 4  ;;  %v12870_v18 = vld [vmem:[%s12961_s8 + $0x58] sm:$0xff] }
 0x52a   : > { %v9957_v35 = vshrl.u32 %v9197_v38, 16  ;;  %v9962_v6 = vrot.slane %v9960_v39, 4  ;;  %5444 = vst [vmem:[#allocation3 + $0x1a8] sm:$0x1] %v5443_v41  ;;  %v8812_v26 = vadd.f32 %v15815_v42, %v16184_v32  ;;  %v9966_v63 = vshrl.u32 %v9291_v55, 16  ;;  %v12871_v42 = vld [vmem:[%s12961_s8 + $0x60] sm:$0xff] }
 0x52b   : > { %v10536_v34 = vadd.f32 %v15732_v58, %v10500_v47  ;;  %v9946_v10 = vor.u32 %v9945_v57, %v9942_v46  ;;  %v8817_v32 = vadd.f32 %v15846_v17, %v15570_v36  ;;  %v8819_v17 = vadd.f32 %v15870_v31, %v15584_v12 }
 0x52c   : > { %v9959_v62 = vrot.slane %v9957_v35, 3 }
 0x52d   : > { %v10568_v25 = vadd.f32 %v12869_v50, %v10536_v34  ;;  %v9955_v30 = vsel %vm875_vm3, %v9946_v10, %v9954_v60  ;;  %v9937_v34 = vor.u32 %v9936_v16, %v9933_v51  ;;  %v15892_v50 = vpop.f32.mrf.mxu3  ;;  %v16185_v16 = vld [vmem:[#allocation21_spill] sm:$0xff]  ;;  %v10363_v35 = vpop.f32.mrf.mxu0 }
 0x52e   : > { %v10437_v43 = vpop.f32.mrf.mxu1  ;;  %10306 = vmatmul.bf16.gmra.mxu3 %v9955_v30  ;;  %v9963_v11 = vor.u32 %v9962_v6, %v9959_v62  ;;  %v8814_v7 = vadd.f32 %v15831_v2, %v16185_v16  ;;  %v9968_v6 = vrot.slane %v9966_v63, 3 }
 0x52f   : > { %v10600_v0 = vmax.f32 %v10568_v25, 0.0  ;;  %v10438_v1 = vadd.f32 %v10437_v43, %v10349_v20  ;;  %v15889_v20 = vpop.f32.mrf.mxu2 }
 0x530   : > { %10395 = vmatmul.bf16.gmra.mxu0 %v9963_v11  ;;  %v10357_v11 = vadd.f32 %v15844_v59, %v15851_v3  ;;  %v10359_v3 = vadd.f32 %v15868_v27, %v15875_v45  ;;  %v10362_v27 = vadd.f32 %v15887_v53, %v15892_v50  ;;  %v12874_v45 = vld [vmem:[%s12961_s8 + $0x78] sm:$0xff]  ;;  %v8822_v12 = vadd.f32 %v15889_v20, %v15601_v19 }
 0x531   : > { %10632 = vst [vmem:[%s15748_s26 + $0x50] sm:$0xff] %v10600_v0  ;;  %v10501_v47 = vadd.f32 %v10438_v1, %v8809_v28  ;;  %v9938_v28 = vsel %vm875_vm3, %v9929_v49, %v9937_v34  ;;  %v8925_v43 = vld [vmem:[#allocation3 + $0x1a8] sm:$0x1]  ;;  %v9969_v0 = vshll.u32 %v9291_v55, 16  ;;  %v10354_v1 = vadd.f32 %v15829_v33, %v15833_v40 }
 0x532   : > { %v9229_v24 = vunpack.c.l.b16 %v8925_v43 }
 0x533   : > { %v10537_v48 = vadd.f32 %v15732_v58, %v10501_v47  ;;  %v9971_v8 = vrot.slane %v9969_v0, 4 }
 0x534   : > { %v9245_v57 = vpack.c.b16 %v9229_v24, %v9229_v24 }
 0x535   : > { %v10569_v29 = vadd.f32 %v12870_v18, %v10537_v48  ;;  %v10274_v62 = vpop.f32.mrf.mxu3  ;;  %v9972_v49 = vor.u32 %v9971_v8, %v9968_v6 }
 0x536   : > { %v10440_v25 = vpop.f32.mrf.mxu1  ;;  %v9292_v21 = vrot.slane %v9245_v57, 5  ;;  %v10364_v6 = vadd.f32 %v10363_v35, %v10274_v62  ;;  %v16187_v62 = vld [vmem:[#allocation11_spill] sm:$0xff] }
 0x537   : > { %v10601_v38 = vmax.f32 %v10569_v29, 0.0  ;;  %v10441_v5 = vadd.f32 %v10440_v25, %v10352_v13  ;;  %v8823_v39 = vpop.f32.mrf.mxu2  ;;  %v12872_v13 = vld [vmem:[%s12961_s8 + $0x68] sm:$0xff] }
 0x538   : > { %v9293_v33 = vsel %vm826_vm7, %v9291_v55, %v9292_v21 }
 0x539   : > { %10633 = vst [vmem:[%s15748_s26 + $0x58] sm:$0xff] %v10601_v38  ;;  %v10502_v44 = vadd.f32 %v10441_v5, %v8812_v26  ;;  %10479 = vmatmul.bf16.gmra.mxu1 %v9938_v28  ;;  %v9974_v40 = vshrl.u32 %v9293_v33, 16  ;;  %v9977_v48 = vshll.u32 %v9293_v33, 16  ;;  %v10366_v28 = vpop.f32.mrf.mxu0  ;;  %v12875_v33 = vld [vmem:[%s12961_s8 + $0x80] sm:$0xff] }
 0x53b   : > { %v10538_v60 = vadd.f32 %v15732_v58, %v10502_v44  ;;  %v9976_v2 = vrot.slane %v9974_v40, 3  ;;  %v9979_v34 = vrot.slane %v9977_v48, 4  ;;  %v16186_v48 = vld [vmem:[#allocation23_spill] sm:$0xff] }
 0x53d   : > { %v10570_v46 = vadd.f32 %v12871_v42, %v10538_v60  ;;  %v9980_v25 = vor.u32 %v9979_v34, %v9976_v2  ;;  %v10277_v43 = vpop.f32.mrf.mxu3  ;;  %v12873_v60 = vld [vmem:[%s12961_s8 + $0x70] sm:$0xff] }
 0x53e   : > { %v10442_v51 = vpop.f32.mrf.mxu1  ;;  %v10367_v34 = vadd.f32 %v10366_v28, %v10277_v43  ;;  %v16188_v43 = vld [vmem:[#allocation10_spill] sm:$0xff] }
 0x53f   : > { %v10602_v47 = vmax.f32 %v10570_v46, 0.0  ;;  %v10443_v10 = vadd.f32 %v10442_v51, %v10354_v1  ;;  %v9981_v5 = vsel %vm875_vm3, %v9972_v49, %v9980_v25  ;;  %v8826_v55 = vpop.f32.mrf.mxu2 }
 0x541   : > { %10634 = vst [vmem:[%s15748_s26 + $0x60] sm:$0xff] %v10602_v47  ;;  %v10503_v41 = vadd.f32 %v10443_v10, %v8814_v7  ;;  %v10368_v42 = vpop.f32.mrf.mxu0 }
 0x543   : > { %v10539_v30 = vadd.f32 %v15732_v58, %v10503_v41 }
 0x545   : > { %v10571_v18 = vadd.f32 %v12872_v13, %v10539_v30  ;;  %v10279_v51 = vpop.f32.mrf.mxu3  ;;  %v8824_v30 = vadd.f32 %v8823_v39, %v16186_v48 }
 0x546   : > { %v10445_v29 = vpop.f32.mrf.mxu1 }
 0x547   : > { %v10603_v26 = vmax.f32 %v10571_v18, 0.0  ;;  %v10446_v38 = vadd.f32 %v10445_v29, %v10357_v11  ;;  %v8828_v46 = vpop.f32.mrf.mxu2  ;;  %v12876_v11 = vld [vmem:[%s12961_s8 + $0x88] sm:$0xff]  ;;  %v8827_v18 = vadd.f32 %v8826_v55, %v16187_v62 }
 0x549   : > { %10635 = vst [vmem:[%s15748_s26 + $0x68] sm:$0xff] %v10603_v26  ;;  %v10504_v44 = vadd.f32 %v10446_v38, %v8817_v32  ;;  %10484 = vmatmul.bf16.gmra.mxu1 %v9981_v5  ;;  %v10371_v8 = vpop.f32.mrf.mxu0 }
 0x54b   : > { %v10540_v59 = vadd.f32 %v15732_v58, %v10504_v44  ;;  %v10369_v44 = vadd.f32 %v10368_v42, %v10279_v51  ;;  %v16189_v51 = vld [vmem:[#allocation26_spill] sm:$0xff] }
 0x54d   : > { %v10572_v24 = vadd.f32 %v12873_v60, %v10540_v59  ;;  %v10282_v53 = vpop.f32.mrf.mxu3  ;;  %v12877_v59 = vld [vmem:[%s12961_s8 + $0x90] sm:$0xff]  ;;  %v8829_v60 = vadd.f32 %v8828_v46, %v16188_v43 }
 0x54e   : > { %v10447_v36 = vpop.f32.mrf.mxu1 }
 0x54f   : > { %v10604_v63 = vmax.f32 %v10572_v24, 0.0  ;;  %v10448_v0 = vadd.f32 %v10447_v36, %v10359_v3  ;;  %v8831_v41 = vpop.f32.mrf.mxu2 }
 0x551   : > { %10636 = vst [vmem:[%s15748_s26 + $0x70] sm:$0xff] %v10604_v63  ;;  %v10505_v1 = vadd.f32 %v10448_v0, %v8819_v17  ;;  %v10373_v29 = vpop.f32.mrf.mxu0 }
 0x553   : > { %v10541_v57 = vadd.f32 %v15732_v58, %v10505_v1 }
 0x555   : > { %v10573_v16 = vadd.f32 %v12874_v45, %v10541_v57  ;;  %v10284_v39 = vpop.f32.mrf.mxu3  ;;  %v10372_v57 = vadd.f32 %v10371_v8, %v10282_v53 }
 0x556   : > { %v10450_v7 = vpop.f32.mrf.mxu1 }
 0x557   : > { %v10605_v31 = vmax.f32 %v10573_v16, 0.0  ;;  %v10451_v47 = vadd.f32 %v10450_v7, %v10362_v27  ;;  %v8833_v25 = vpop.f32.mrf.mxu2  ;;  %v12878_v27 = vld [vmem:[%s12961_s8 + $0x98] sm:$0xff]  ;;  %v8832_v16 = vadd.f32 %v8831_v41, %v16189_v51  ;;  %v12883_v51 = vld [vmem:[%s12961_s8 + $0xc0] sm:$0xff] }
 0x558   : > { %v8834_v53 = vadd.f32 %v8833_v25, %v15667_v22 }
 0x559   : > { %10637 = vst [vmem:[%s15748_s26 + $0x78] sm:$0xff] %v10605_v31  ;;  %v10506_v10 = vadd.f32 %v10451_v47, %v8822_v12  ;;  %v10376_v36 = vpop.f32.mrf.mxu0 }
 0x55b   : > { %v10542_v21 = vadd.f32 %v15732_v58, %v10506_v10 }
 0x55d   : > { %v10574_v40 = vadd.f32 %v12875_v33, %v10542_v21  ;;  %v10287_v0 = vpop.f32.mrf.mxu3  ;;  %v12879_v33 = vld [vmem:[%s12961_s8 + $0xa0] sm:$0xff] }
 0x55e   : > { %v10452_v50 = vpop.f32.mrf.mxu1 }
 0x55f   : > { %v10606_v49 = vmax.f32 %v10574_v40, 0.0  ;;  %v10453_v19 = vadd.f32 %v10452_v50, %v10364_v6  ;;  %v8836_v17 = vpop.f32.mrf.mxu2  ;;  %v10374_v6 = vadd.f32 %v10373_v29, %v10284_v39 }
 0x561   : > { %10638 = vst [vmem:[%s15748_s26 + $0x80] sm:$0xff] %v10606_v49  ;;  %v10507_v20 = vadd.f32 %v10453_v19, %v8824_v30  ;;  %v10378_v31 = vpop.f32.mrf.mxu0  ;;  %v10377_v49 = vadd.f32 %v10376_v36, %v10287_v0 }
 0x563   : > { %v10543_v2 = vadd.f32 %v15732_v58, %v10507_v20 }
 0x565   : > { %v10575_v13 = vadd.f32 %v12876_v11, %v10543_v2  ;;  %v10289_v21 = vpop.f32.mrf.mxu3  ;;  %v12880_v2 = vld [vmem:[%s12961_s8 + $0xa8] sm:$0xff] }
 0x566   : > { %v10455_v35 = vpop.f32.mrf.mxu1  ;;  %v10379_v25 = vadd.f32 %v10378_v31, %v10289_v21 }
 0x567   : > { %v10607_v32 = vmax.f32 %v10575_v13, 0.0  ;;  %v10456_v26 = vadd.f32 %v10455_v35, %v10367_v34  ;;  %v8838_v47 = vpop.f32.mrf.mxu2  ;;  %v8837_v35 = vadd.f32 %v8836_v17, %v15671_v4 }
 0x569   : > { %10639 = vst [vmem:[%s15748_s26 + $0x88] sm:$0xff] %v10607_v32  ;;  %v10508_v38 = vadd.f32 %v10456_v26, %v8827_v18  ;;  %v10381_v19 = vpop.f32.mrf.mxu0  ;;  %v12881_v32 = vld [vmem:[%s12961_s8 + $0xb0] sm:$0xff] }
 0x56b   : > { %v10544_v5 = vadd.f32 %v15732_v58, %v10508_v38  ;;  %v8839_v38 = vadd.f32 %v8838_v47, %v15681_v9 }
 0x56d   : > { %v10576_v3 = vadd.f32 %v12877_v59, %v10544_v5  ;;  %v10292_v11 = vpop.f32.mrf.mxu3 }
 0x56e   : > { %v10457_v28 = vpop.f32.mrf.mxu1 }
 0x56f   : > { %v10608_v24 = vmax.f32 %v10576_v3, 0.0  ;;  %v10458_v55 = vadd.f32 %v10457_v28, %v10369_v44  ;;  %v8841_v20 = vpop.f32.mrf.mxu2 }
 0x570   : > { %v8842_v17 = vadd.f32 %v8841_v20, %v15685_v23 }
 0x571   : > { %10640 = vst [vmem:[%s15748_s26 + $0x90] sm:$0xff] %v10608_v24  ;;  %v10509_v63 = vadd.f32 %v10458_v55, %v8829_v60  ;;  %v10383_v5 = vpop.f32.mrf.mxu0  ;;  %v10382_v60 = vadd.f32 %v10381_v19, %v10292_v11  ;;  %v12882_v24 = vld [vmem:[%s12961_s8 + $0xb8] sm:$0xff] }
 0x573   : > { %v10545_v1 = vadd.f32 %v15732_v58, %v10509_v63 }
 0x575   : > { %v10577_v45 = vadd.f32 %v12878_v27, %v10545_v1  ;;  %v10294_v4 = vpop.f32.mrf.mxu3 }
 0x576   : > { %v10460_v42 = vpop.f32.mrf.mxu1 }
 0x577   : > { %v10609_v7 = vmax.f32 %v10577_v45, 0.0  ;;  %v10461_v46 = vadd.f32 %v10460_v42, %v10372_v57  ;;  %v8843_v44 = vpop.f32.mrf.mxu2  ;;  %v10384_v42 = vadd.f32 %v10383_v5, %v10294_v4 }
 0x579   : > { %10641 = vst [vmem:[%s15748_s26 + $0x98] sm:$0xff] %v10609_v7  ;;  %v10510_v12 = vadd.f32 %v10461_v46, %v8832_v16  ;;  %v10386_v0 = vpop.f32.mrf.mxu0  ;;  %v8844_v46 = vadd.f32 %v8843_v44, %v15692_v52 }
 0x57b   : > { %v10546_v10 = vadd.f32 %v15732_v58, %v10510_v12 }
 0x57d   : > { %v10578_v40 = vadd.f32 %v12879_v33, %v10546_v10  ;;  %v10297_v27 = vpop.f32.mrf.mxu3 }
 0x57e   : > { %v10462_v8 = vpop.f32.mrf.mxu1  ;;  %v10387_v33 = vadd.f32 %v10386_v0, %v10297_v27  ;;  %v12888_v27 = vld [vmem:[%s12961_s8 + $0xe8] sm:$0xff] }
 0x57f   : > { %v10610_v50 = vmax.f32 %v10578_v40, 0.0  ;;  %v10463_v41 = vadd.f32 %v10462_v8, %v10374_v6  ;;  %v8846_v1 = vpop.f32.mrf.mxu2  ;;  %v12884_v40 = vld [vmem:[%s12961_s8 + $0xc8] sm:$0xff] }
 0x581   : > { %10642 = vst [vmem:[%s15748_s26 + $0xa0] sm:$0xff] %v10610_v50  ;;  %v10511_v48 = vadd.f32 %v10463_v41, %v8834_v53  ;;  %v10388_v47 = vpop.f32.mrf.mxu0  ;;  %v8847_v50 = vadd.f32 %v8846_v1, %v15696_v14 }
 0x583   : > { %v10547_v30 = vadd.f32 %v15732_v58, %v10511_v48 }
 0x585   : > { %v10579_v34 = vadd.f32 %v12880_v2, %v10547_v30  ;;  %v10299_v6 = vpop.f32.mrf.mxu3  ;;  %v12885_v2 = vld [vmem:[%s12961_s8 + $0xd0] sm:$0xff] }
 0x586   : > { %v10465_v13 = vpop.f32.mrf.mxu1 }
 0x587   : > { %v10611_v62 = vmax.f32 %v10579_v34, 0.0  ;;  %v10466_v22 = vadd.f32 %v10465_v13, %v10377_v49  ;;  %v8848_v10 = vpop.f32.mrf.mxu2  ;;  %v10389_v49 = vadd.f32 %v10388_v47, %v10299_v6 }
 0x589   : > { %10643 = vst [vmem:[%s15748_s26 + $0xa8] sm:$0xff] %v10611_v62  ;;  %v10512_v18 = vadd.f32 %v10466_v22, %v8837_v35  ;;  %v10391_v19 = vpop.f32.mrf.mxu0  ;;  %v8849_v35 = vadd.f32 %v8848_v10, %v15702_v54  ;;  %v12889_v10 = vld [vmem:[%s12961_s8 + $0xf0] sm:$0xff] }
 0x58b   : > { %v10548_v29 = vadd.f32 %v15732_v58, %v10512_v18 }
 0x58d   : > { %v10580_v26 = vadd.f32 %v12881_v32, %v10548_v29  ;;  %v10302_v11 = vpop.f32.mrf.mxu3 }
 0x58e   : > { %v10467_v39 = vpop.f32.mrf.mxu1  ;;  %v10392_v29 = vadd.f32 %v10391_v19, %v10302_v11 }
 0x58f   : > { %v10612_v59 = vmax.f32 %v10580_v26, 0.0  ;;  %v10468_v3 = vadd.f32 %v10467_v39, %v10379_v25  ;;  %v8851_v20 = vpop.f32.mrf.mxu2  ;;  %v12886_v25 = vld [vmem:[%s12961_s8 + $0xd8] sm:$0xff] }
 0x590   : > { %v8852_v39 = vadd.f32 %v8851_v20, %v15706_v15 }
 0x591   : > { %10644 = vst [vmem:[%s15748_s26 + $0xb0] sm:$0xff] %v10612_v59  ;;  %v10513_v28 = vadd.f32 %v10468_v3, %v8839_v38  ;;  %v10393_v38 = vpop.f32.mrf.mxu0 }
 0x593   : > { %v10549_v43 = vadd.f32 %v15732_v58, %v10513_v28 }
 0x595   : > { %v10581_v55 = vadd.f32 %v12882_v24, %v10549_v43  ;;  %v10304_v54 = vpop.f32.mrf.mxu3  ;;  %v12887_v43 = vld [vmem:[%s12961_s8 + $0xe0] sm:$0xff] }
 0x596   : > { %v10470_v36 = vpop.f32.mrf.mxu1  ;;  %v10394_v28 = vadd.f32 %v10393_v38, %v10304_v54 }
 0x597   : > { %v10613_v63 = vmax.f32 %v10581_v55, 0.0  ;;  %v10471_v9 = vadd.f32 %v10470_v36, %v10382_v60  ;;  %v8853_v59 = vpop.f32.mrf.mxu2 }
 0x598   : > { %v8854_v55 = vadd.f32 %v8853_v59, %v15712_v56 }
 0x599   : > { %10645 = vst [vmem:[%s15748_s26 + $0xb8] sm:$0xff] %v10613_v63  ;;  %v10514_v57 = vadd.f32 %v10471_v9, %v8842_v17 }
 0x59b   : > { %v10550_v45 = vadd.f32 %v15732_v58, %v10514_v57 }
 0x59d   : > { %v10582_v16 = vadd.f32 %v12883_v51, %v10550_v45 }
 0x59e   : > { %v10472_v7 = vpop.f32.mrf.mxu1 }
 0x59f   : > { %v10614_v12 = vmax.f32 %v10582_v16, 0.0  ;;  %v10473_v23 = vadd.f32 %v10472_v7, %v10384_v42  ;;  %v8856_v0 = vpop.f32.mrf.mxu2 }
 0x5a0   : > { %v8857_v51 = vadd.f32 %v8856_v0, %v15716_v61 }
 0x5a1   : > { %10646 = vst [vmem:[%s15748_s26 + $0xc0] sm:$0xff] %v10614_v12  ;;  %v10515_v31 = vadd.f32 %v10473_v23, %v8844_v46 }
 0x5a3   : > { %v10551_v21 = vadd.f32 %v15732_v58, %v10515_v31 }
 0x5a5   : > { %v10583_v8 = vadd.f32 %v12884_v40, %v10551_v21 }
 0x5a6   : > { %v10475_v53 = vpop.f32.mrf.mxu1 }
 0x5a7   : > { %v10615_v41 = vmax.f32 %v10583_v8, 0.0  ;;  %v10476_v52 = vadd.f32 %v10475_v53, %v10387_v33  ;;  %v8858_v31 = vpop.f32.mrf.mxu2 }
 0x5a8   : > { %v8859_v33 = vadd.f32 %v8858_v31, %v15722_v37 }
 0x5a9   : > { %10647 = vst [vmem:[%s15748_s26 + $0xc8] sm:$0xff] %v10615_v41  ;;  %v10516_v48 = vadd.f32 %v10476_v52, %v8847_v50  ;;  %v12890_v50 = vld [vmem:[%s12961_s8 + $0xf8] sm:$0xff] }
 0x5ab   : > { %v10552_v30 = vadd.f32 %v15732_v58, %v10516_v48 }
 0x5ad   : > { %v10584_v34 = vadd.f32 %v12885_v2, %v10552_v30  ;;  %v10396_v63 = vpop.f32.mrf.mxu0 }
 0x5ae   : > { %v10477_v13 = vpop.f32.mrf.mxu1 }
 0x5af   : > { %v10616_v62 = vmax.f32 %v10584_v34, 0.0  ;;  %v10478_v14 = vadd.f32 %v10477_v13, %v10389_v49 }
 0x5b1   : > { %10648 = vst [vmem:[%s15748_s26 + $0xd0] sm:$0xff] %v10616_v62  ;;  %v10517_v22 = vadd.f32 %v10478_v14, %v8849_v35  ;;  %v10307_v17 = vpop.f32.mrf.mxu3 }
 0x5b2   : > { %v10397_v1 = vadd.f32 %v10396_v63, %v10307_v17 }
 0x5b3   : > { %v10553_v18 = vadd.f32 %v15732_v58, %v10517_v22 }
 0x5b5   : > { %v10585_v32 = vadd.f32 %v12886_v25, %v10553_v18  ;;  %v10398_v12 = vpop.f32.mrf.mxu0 }
 0x5b6   : > { %v10480_v26 = vpop.f32.mrf.mxu1 }
 0x5b7   : > { %v10617_v5 = vmax.f32 %v10585_v32, 0.0  ;;  %v10481_v44 = vadd.f32 %v10480_v26, %v10392_v29 }
 0x5b9   : > { %10649 = vst [vmem:[%s15748_s26 + $0xd8] sm:$0xff] %v10617_v5  ;;  %v10518_v3 = vadd.f32 %v10481_v44, %v8852_v39  ;;  %v10309_v46 = vpop.f32.mrf.mxu3 }
 0x5ba   : > { %v10399_v47 = vadd.f32 %v10398_v12, %v10309_v46 }
 0x5bb   : > { %v10554_v4 = vadd.f32 %v15732_v58, %v10518_v3 }
 0x5bd   : > { %v10586_v60 = vadd.f32 %v12887_v43, %v10554_v4 }
 0x5be   : > { %v10482_v24 = vpop.f32.mrf.mxu1 }
 0x5bf   : > { %v10618_v36 = vmax.f32 %v10586_v60, 0.0  ;;  %v10483_v15 = vadd.f32 %v10482_v24, %v10394_v28 }
 0x5c1   : > { %10650 = vst [vmem:[%s15748_s26 + $0xe0] sm:$0xff] %v10618_v36  ;;  %v10519_v9 = vadd.f32 %v10483_v15, %v8854_v55 }
 0x5c3   : > { %v10555_v57 = vadd.f32 %v15732_v58, %v10519_v9 }
 0x5c5   : > { %v10587_v45 = vadd.f32 %v12888_v27, %v10555_v57 }
 0x5c6   : > { %v10485_v42 = vpop.f32.mrf.mxu1 }
 0x5c7   : > { %v10619_v16 = vmax.f32 %v10587_v45, 0.0  ;;  %v10486_v56 = vadd.f32 %v10485_v42, %v10397_v1 }
 0x5c9   : > { %10651 = vst [vmem:[%s15748_s26 + $0xe8] sm:$0xff] %v10619_v16  ;;  %v10520_v7 = vadd.f32 %v10486_v56, %v8857_v51 }
 0x5cb   : > { %v10556_v23 = vadd.f32 %v15732_v58, %v10520_v7 }
 0x5cd   : > { %v10588_v21 = vadd.f32 %v12889_v10, %v10556_v23 }
 0x5ce   : > { %v10487_v6 = vpop.f32.mrf.mxu1 }
 0x5cf   : > { %v10620_v40 = vmax.f32 %v10588_v21, 0.0  ;;  %v10488_v61 = vadd.f32 %v10487_v6, %v10399_v47 }
 0x5d1   : > { %10652 = vst [vmem:[%s15748_s26 + $0xf0] sm:$0xff] %v10620_v40  ;;  %v10521_v8 = vadd.f32 %v10488_v61, %v8859_v33 }
 0x5d3   : > { %v10557_v53 = vadd.f32 %v15732_v58, %v10521_v8 }
 0x5d5   : > { %v10589_v41 = vadd.f32 %v12890_v50, %v10557_v53 }
 0x5d7   : > { %v10621_v52 = vmax.f32 %v10589_v41, 0.0 }
 0x5d9   : > { %10653 = vst [vmem:[%s15748_s26 + $0xf8] sm:$0xff] %v10621_v52 }
 0x5da PF: > { %s15_s18 = sadd.s32 1, %s12897_s18  }
 0x5db   : > { %p12_p4 = scmp.ge.s32.totalorder %s15_s18, 4  }
 0x5dd   :  { %14 = sbr.rel (!%p12_p4) target bundleno = 1 (0x1), region = 80 }

</bundles_post_ra>
